<compile_context>
chip_gen: v5e
topology: v5e:2x2
jax: 0.10.0
libtpu: 0.0.40
codegen_flags: <defaults>
</compile_context>

<pallas_src>
import jax
import jax.numpy as jnp
from jax import lax
from jax.experimental import pallas as pl
from jax.experimental.pallas import tpu as pltpu


def edsr_kernel(x_ref, w1_ref, b1_ref, w2_ref, b2_ref, wres_ref, o_ref):
    # x_ref   : (tile_h+4, W+4, Cin)      input row-tile, zero-padded by 2 (compute dtype)
    # w1_ref  : (3, 3, Cin, Cout)         conv1 weight,   b1_ref: (1, Cout)   f32
    # w2_ref  : (3, 3, Cout, CoutP)       conv2 weight (Cout padded to CoutP on lanes)
    # b2_ref  : (1, CoutP)                conv2 bias (zero-padded)            f32
    # wres_ref: (Cin, CoutP)              1x1 residual weight (zero-padded)
    # o_ref   : (tile_h, W, CoutP)        f32 output tile (lane-dense: CoutP % 128 == 0)
    TH, W, _ = o_ref.shape
    TH2, W2 = TH + 2, W + 2
    Cout = w1_ref.shape[3]

    x = x_ref[...]                                            # (TH+4, W+4, Cin)

    # ---- conv1: 3x3, padding=1, bias, ReLU over the haloed (TH+2, W+2) domain ----
    acc1 = jnp.zeros((TH2, W2, Cout), jnp.float32)
    for dy in range(3):
        for dx in range(3):
            acc1 = acc1 + jnp.dot(x[dy:dy + TH2, dx:dx + W2, :], w1_ref[dy, dx],
                                  preferred_element_type=jnp.float32)
    mid = jnp.maximum(acc1 + b1_ref[0][None, None, :], 0.0)

    # ---- zero the 1-px halo of `mid` wherever it lies outside the image ----
    # (this reproduces conv2's padding=1 zero semantics; interior-tile halo rows are
    #  genuine conv1 values computed from the overlapping input halo and are kept).
    r = pl.program_id(1)
    last_r = pl.num_programs(1) - 1
    row = lax.broadcasted_iota(jnp.int32, (TH2, W2, 1), 0)
    col = lax.broadcasted_iota(jnp.int32, (TH2, W2, 1), 1)
    keep = (col >= 1) & (col <= W)                            # image left/right borders
    keep = keep & jnp.logical_not((row == 0) & (r == 0))      # image top border
    keep = keep & jnp.logical_not((row == TH + 1) & (r == last_r))  # image bottom border
    mid = jnp.where(keep, mid, 0.0).astype(x.dtype)

    # ---- conv2 (3x3, padding=1, bias) + 1x1 residual, accumulated together in f32 ----
    acc2 = jnp.dot(x[2:TH + 2, 2:W + 2, :], wres_ref[...],    # residual path (no bias)
                   preferred_element_type=jnp.float32)
    for dy in range(3):
        for dx in range(3):
            acc2 = acc2 + jnp.dot(mid[dy:dy + TH, dx:dx + W, :], w2_ref[dy, dx],
                                  preferred_element_type=jnp.float32)

    o_ref[...] = (acc2 + b2_ref[0][None, None, :]).astype(o_ref.dtype)


def edsr_conv(x_nchw, w1, b1, w2, b2, wres, *, tile_h=8, use_bf16=False):
    """x_nchw: (N, Cin, H, W) float32. Returns (N, Cout, H, W) float32."""
    N, Cin, H, W = x_nchw.shape
    Cout = w1.shape[-1]
    CoutP = -(-Cout // 128) * 128                 # pad Cout to a lane-dense multiple of 128
    if H % tile_h != 0:
        tile_h = H                                # fall back to one row-tile per image
    num_rt = H // tile_h
    cdt = jnp.bfloat16 if use_bf16 else jnp.float32

    # NHWC + pad-by-2, then overlapping row tiles (tile_h + 4 rows, stride tile_h).
    x = jnp.transpose(x_nchw, (0, 2, 3, 1))
    x_pad = jnp.pad(x, ((0, 0), (2, 2), (2, 2), (0, 0)))
    x_tiles = jnp.stack(
        [x_pad[:, r * tile_h: r * tile_h + tile_h + 4] for r in range(num_rt)],
        axis=1).astype(cdt)                       # (N, num_rt, tile_h+4, W+4, Cin)

    w1c = w1.astype(cdt)
    w2c = jnp.pad(w2, ((0, 0), (0, 0), (0, 0), (0, CoutP - Cout))).astype(cdt)
    wrc = jnp.pad(wres, ((0, 0), (0, CoutP - Cout))).astype(cdt)
    b1r = b1.reshape(1, Cout).astype(jnp.float32)
    b2r = jnp.pad(b2, (0, CoutP - Cout)).reshape(1, CoutP).astype(jnp.float32)

    flops = 2 * N * H * W * (9 * Cin * Cout + 9 * Cout * Cout + Cin * Cout)
    bytes_accessed = int(
        x_tiles.size * x_tiles.dtype.itemsize
        + w1c.size * w1c.dtype.itemsize + w2c.size * w2c.dtype.itemsize
        + wrc.size * wrc.dtype.itemsize + b1r.size * 4 + b2r.size * 4
        + N * H * W * CoutP * 4)

    out_p = pl.pallas_call(
        edsr_kernel,
        out_shape=jax.ShapeDtypeStruct((N, H, W, CoutP), jnp.float32),
        grid_spec=pltpu.PrefetchScalarGridSpec(
            num_scalar_prefetch=0,
            grid=(N, num_rt),
            in_specs=[
                pl.BlockSpec((None, None, tile_h + 4, W + 4, Cin),
                             lambda n, r: (n, r, 0, 0, 0)),
                pl.BlockSpec((3, 3, Cin, Cout), lambda n, r: (0, 0, 0, 0)),
                pl.BlockSpec((1, Cout), lambda n, r: (0, 0)),
                pl.BlockSpec((3, 3, Cout, CoutP), lambda n, r: (0, 0, 0, 0)),
                pl.BlockSpec((1, CoutP), lambda n, r: (0, 0)),
                pl.BlockSpec((Cin, CoutP), lambda n, r: (0, 0)),
            ],
            out_specs=pl.BlockSpec((None, tile_h, W, CoutP),
                                   lambda n, r: (n, r, 0, 0)),
        ),
        compiler_params=pltpu.CompilerParams(
            dimension_semantics=("parallel", "parallel"),
            vmem_limit_bytes=32 * 1024 * 1024),
        cost_estimate=pl.CostEstimate(flops=flops, transcendentals=0,
                                      bytes_accessed=bytes_accessed),
    )(x_tiles, w1c, b1r, w2c, b2r, wrc)

    return jnp.transpose(out_p[..., :Cout], (0, 3, 1, 2))     # slice pad, back to NCHW


def _reference(x_nchw, w1, b1, w2, b2, wres):
    """Pure-JAX reference (NCHW, PyTorch-style) for validation."""
    def conv(x, w_hwio, b=None, pad="SAME"):
        w_oihw = jnp.transpose(w_hwio, (3, 2, 0, 1))
        y = lax.conv_general_dilated(
            x, w_oihw, window_strides=(1, 1), padding=pad,
            dimension_numbers=("NCHW", "OIHW", "NCHW"))
        if b is not None:
            y = y + b[None, :, None, None]
        return y

    h = jnp.maximum(conv(x_nchw, w1, b1), 0.0)
    h = conv(h, w2, b2)
    r = conv(x_nchw, wres[None, None, :, :], None, pad="SAME")
    return h + r


if __name__ == "__main__":
    key = jax.random.PRNGKey(0)
    N, in_ch, out_ch, H, W = 2, 4, 8, 16, 16

    k_x, k_w1, k_b1, k_w2, k_b2, k_wr = jax.random.split(key, 6)
    x = jax.random.normal(k_x, (N, in_ch, H, W), dtype=jnp.float32)

    w1 = 0.1 * jax.random.normal(k_w1, (3, 3, in_ch, out_ch), dtype=jnp.float32)
    b1 = 0.1 * jax.random.normal(k_b1, (out_ch,), dtype=jnp.float32)
    w2 = 0.1 * jax.random.normal(k_w2, (3, 3, out_ch, out_ch), dtype=jnp.float32)
    b2 = 0.1 * jax.random.normal(k_b2, (out_ch,), dtype=jnp.float32)
    wres = 0.1 * jax.random.normal(k_wr, (in_ch, out_ch), dtype=jnp.float32)

    # f32 path: exact semantics of the PyTorch module.
    out = jax.block_until_ready(edsr_conv(x, w1, b1, w2, b2, wres, tile_h=8))
    ref = jax.block_until_ready(_reference(x, w1, b1, w2, b2, wres))
    assert out.shape == (N, out_ch, H, W), out.shape
    assert jnp.allclose(out, ref, atol=1e-4, rtol=1e-4), float(jnp.max(jnp.abs(out - ref)))

    # bf16 MXU path (f32 accumulation): compare against the reference fed the same
    # bf16-rounded activations/weights (only the internal requantization of the ReLU
    # output and accumulation order differ).
    out_bf = jax.block_until_ready(
        edsr_conv(x, w1, b1, w2, b2, wres, tile_h=8, use_bf16=True))
    q = lambda a: a.astype(jnp.bfloat16).astype(jnp.float32)
    ref_bf = jax.block_until_ready(_reference(q(x), q(w1), b1, q(w2), b2, q(wres)))
    assert jnp.allclose(out_bf, ref_bf, atol=5e-2, rtol=5e-2), \
        float(jnp.max(jnp.abs(out_bf - ref_bf)))

    print("KERNEL_OK")
</pallas_src>

<mosaic_0001>
module attributes {stable_mosaic.version = 11 : i64} {
  func.func @edsr_kernel(%arg0: i32, %arg1: i32, %arg2: memref<1x1x12x20x4xf32, #tpu.memory_space<vmem>>, %arg3: memref<3x3x4x8xf32, #tpu.memory_space<vmem>>, %arg4: memref<1x8xf32, #tpu.memory_space<vmem>>, %arg5: memref<3x3x8x128xf32, #tpu.memory_space<vmem>>, %arg6: memref<1x128xf32, #tpu.memory_space<vmem>>, %arg7: memref<4x128xf32, #tpu.memory_space<vmem>>, %arg8: memref<1x8x16x128xf32, #tpu.memory_space<vmem>>) attributes {dimension_semantics = [#tpu.dimension_semantics<parallel>, #tpu.dimension_semantics<parallel>], iteration_bounds = array<i64: 2, 2>, scalar_prefetch = 0 : i64, scratch_operands = 0 : i64, tpu.core_type = #tpu.core_type<tc>, window_params = [{transform_indices = @transform_0, window_bounds = array<i64: 1, 1, 12, 20, 4>}, {pipeline_mode = #tpu.pipeline_mode<synchronous>, transform_indices = @transform_1, window_bounds = array<i64: 3, 3, 4, 8>}, {pipeline_mode = #tpu.pipeline_mode<synchronous>, transform_indices = @transform_2, window_bounds = array<i64: 1, 8>}, {pipeline_mode = #tpu.pipeline_mode<synchronous>, transform_indices = @transform_3, window_bounds = array<i64: 3, 3, 8, 128>}, {pipeline_mode = #tpu.pipeline_mode<synchronous>, transform_indices = @transform_4, window_bounds = array<i64: 1, 128>}, {pipeline_mode = #tpu.pipeline_mode<synchronous>, transform_indices = @transform_5, window_bounds = array<i64: 4, 128>}, {transform_indices = @transform_6, window_bounds = array<i64: 1, 8, 16, 128>}]} {
    %c0 = arith.constant 0 : index
    %c0_0 = arith.constant 0 : index
    %c0_1 = arith.constant 0 : index
    %c0_2 = arith.constant 0 : index
    %c0_3 = arith.constant 0 : index
    %0 = vector.load %arg2[%c0, %c0_0, %c0_1, %c0_2, %c0_3] : memref<1x1x12x20x4xf32, #tpu.memory_space<vmem>>, vector<1x1x12x20x4xf32>
    %1 = vector.shape_cast %0 : vector<1x1x12x20x4xf32> to vector<12x20x4xf32>
    %cst = arith.constant 0.000000e+00 : f32
    %2 = vector.broadcast %cst : f32 to vector<10x18x8xf32>
    %3 = vector.extract_strided_slice %1 {offsets = [0, 0, 0], sizes = [10, 18, 4], strides = [1, 1, 1]} : vector<12x20x4xf32> to vector<10x18x4xf32>
    %c0_4 = arith.constant 0 : index
    %c0_5 = arith.constant 0 : index
    %c0_6 = arith.constant 0 : index
    %c0_7 = arith.constant 0 : index
    %4 = vector.load %arg3[%c0_4, %c0_5, %c0_6, %c0_7] : memref<3x3x4x8xf32, #tpu.memory_space<vmem>>, vector<1x1x4x8xf32>
    %5 = vector.shape_cast %4 : vector<1x1x4x8xf32> to vector<4x8xf32>
    %cst_8 = arith.constant dense<0.000000e+00> : vector<10x18x8xf32>
    %6 = tpu.matmul %3, %5, %cst_8 {dimension_numbers = #tpu.dot_dimension_numbers<[2], [0], [0, 1], [1], [0, 0, 0, 1, 1, 1], [], []>} : vector<10x18x4xf32>, vector<4x8xf32>, vector<10x18x8xf32> -> vector<10x18x8xf32>
    %7 = arith.addf %2, %6 : vector<10x18x8xf32>
    %8 = vector.extract_strided_slice %1 {offsets = [0, 1, 0], sizes = [10, 18, 4], strides = [1, 1, 1]} : vector<12x20x4xf32> to vector<10x18x4xf32>
    %c0_9 = arith.constant 0 : index
    %c1 = arith.constant 1 : index
    %c0_10 = arith.constant 0 : index
    %c0_11 = arith.constant 0 : index
    %9 = vector.load %arg3[%c0_9, %c1, %c0_10, %c0_11] : memref<3x3x4x8xf32, #tpu.memory_space<vmem>>, vector<1x1x4x8xf32>
    %10 = vector.shape_cast %9 : vector<1x1x4x8xf32> to vector<4x8xf32>
    %cst_12 = arith.constant dense<0.000000e+00> : vector<10x18x8xf32>
    %11 = tpu.matmul %8, %10, %cst_12 {dimension_numbers = #tpu.dot_dimension_numbers<[2], [0], [0, 1], [1], [0, 0, 0, 1, 1, 1], [], []>} : vector<10x18x4xf32>, vector<4x8xf32>, vector<10x18x8xf32> -> vector<10x18x8xf32>
    %12 = arith.addf %7, %11 : vector<10x18x8xf32>
    %13 = vector.extract_strided_slice %1 {offsets = [0, 2, 0], sizes = [10, 18, 4], strides = [1, 1, 1]} : vector<12x20x4xf32> to vector<10x18x4xf32>
    %c0_13 = arith.constant 0 : index
    %c2 = arith.constant 2 : index
    %c0_14 = arith.constant 0 : index
    %c0_15 = arith.constant 0 : index
    %14 = vector.load %arg3[%c0_13, %c2, %c0_14, %c0_15] : memref<3x3x4x8xf32, #tpu.memory_space<vmem>>, vector<1x1x4x8xf32>
    %15 = vector.shape_cast %14 : vector<1x1x4x8xf32> to vector<4x8xf32>
    %cst_16 = arith.constant dense<0.000000e+00> : vector<10x18x8xf32>
    %16 = tpu.matmul %13, %15, %cst_16 {dimension_numbers = #tpu.dot_dimension_numbers<[2], [0], [0, 1], [1], [0, 0, 0, 1, 1, 1], [], []>} : vector<10x18x4xf32>, vector<4x8xf32>, vector<10x18x8xf32> -> vector<10x18x8xf32>
    %17 = arith.addf %12, %16 : vector<10x18x8xf32>
    %18 = vector.extract_strided_slice %1 {offsets = [1, 0, 0], sizes = [10, 18, 4], strides = [1, 1, 1]} : vector<12x20x4xf32> to vector<10x18x4xf32>
    %c1_17 = arith.constant 1 : index
    %c0_18 = arith.constant 0 : index
    %c0_19 = arith.constant 0 : index
    %c0_20 = arith.constant 0 : index
    %19 = vector.load %arg3[%c1_17, %c0_18, %c0_19, %c0_20] : memref<3x3x4x8xf32, #tpu.memory_space<vmem>>, vector<1x1x4x8xf32>
    %20 = vector.shape_cast %19 : vector<1x1x4x8xf32> to vector<4x8xf32>
    %cst_21 = arith.constant dense<0.000000e+00> : vector<10x18x8xf32>
    %21 = tpu.matmul %18, %20, %cst_21 {dimension_numbers = #tpu.dot_dimension_numbers<[2], [0], [0, 1], [1], [0, 0, 0, 1, 1, 1], [], []>} : vector<10x18x4xf32>, vector<4x8xf32>, vector<10x18x8xf32> -> vector<10x18x8xf32>
    %22 = arith.addf %17, %21 : vector<10x18x8xf32>
    %23 = vector.extract_strided_slice %1 {offsets = [1, 1, 0], sizes = [10, 18, 4], strides = [1, 1, 1]} : vector<12x20x4xf32> to vector<10x18x4xf32>
    %c1_22 = arith.constant 1 : index
    %c1_23 = arith.constant 1 : index
    %c0_24 = arith.constant 0 : index
    %c0_25 = arith.constant 0 : index
    %24 = vector.load %arg3[%c1_22, %c1_23, %c0_24, %c0_25] : memref<3x3x4x8xf32, #tpu.memory_space<vmem>>, vector<1x1x4x8xf32>
    %25 = vector.shape_cast %24 : vector<1x1x4x8xf32> to vector<4x8xf32>
    %cst_26 = arith.constant dense<0.000000e+00> : vector<10x18x8xf32>
    %26 = tpu.matmul %23, %25, %cst_26 {dimension_numbers = #tpu.dot_dimension_numbers<[2], [0], [0, 1], [1], [0, 0, 0, 1, 1, 1], [], []>} : vector<10x18x4xf32>, vector<4x8xf32>, vector<10x18x8xf32> -> vector<10x18x8xf32>
    %27 = arith.addf %22, %26 : vector<10x18x8xf32>
    %28 = vector.extract_strided_slice %1 {offsets = [1, 2, 0], sizes = [10, 18, 4], strides = [1, 1, 1]} : vector<12x20x4xf32> to vector<10x18x4xf32>
    %c1_27 = arith.constant 1 : index
    %c2_28 = arith.constant 2 : index
    %c0_29 = arith.constant 0 : index
    %c0_30 = arith.constant 0 : index
    %29 = vector.load %arg3[%c1_27, %c2_28, %c0_29, %c0_30] : memref<3x3x4x8xf32, #tpu.memory_space<vmem>>, vector<1x1x4x8xf32>
    %30 = vector.shape_cast %29 : vector<1x1x4x8xf32> to vector<4x8xf32>
    %cst_31 = arith.constant dense<0.000000e+00> : vector<10x18x8xf32>
    %31 = tpu.matmul %28, %30, %cst_31 {dimension_numbers = #tpu.dot_dimension_numbers<[2], [0], [0, 1], [1], [0, 0, 0, 1, 1, 1], [], []>} : vector<10x18x4xf32>, vector<4x8xf32>, vector<10x18x8xf32> -> vector<10x18x8xf32>
    %32 = arith.addf %27, %31 : vector<10x18x8xf32>
    %33 = vector.extract_strided_slice %1 {offsets = [2, 0, 0], sizes = [10, 18, 4], strides = [1, 1, 1]} : vector<12x20x4xf32> to vector<10x18x4xf32>
    %c2_32 = arith.constant 2 : index
    %c0_33 = arith.constant 0 : index
    %c0_34 = arith.constant 0 : index
    %c0_35 = arith.constant 0 : index
    %34 = vector.load %arg3[%c2_32, %c0_33, %c0_34, %c0_35] : memref<3x3x4x8xf32, #tpu.memory_space<vmem>>, vector<1x1x4x8xf32>
    %35 = vector.shape_cast %34 : vector<1x1x4x8xf32> to vector<4x8xf32>
    %cst_36 = arith.constant dense<0.000000e+00> : vector<10x18x8xf32>
    %36 = tpu.matmul %33, %35, %cst_36 {dimension_numbers = #tpu.dot_dimension_numbers<[2], [0], [0, 1], [1], [0, 0, 0, 1, 1, 1], [], []>} : vector<10x18x4xf32>, vector<4x8xf32>, vector<10x18x8xf32> -> vector<10x18x8xf32>
    %37 = arith.addf %32, %36 : vector<10x18x8xf32>
    %38 = vector.extract_strided_slice %1 {offsets = [2, 1, 0], sizes = [10, 18, 4], strides = [1, 1, 1]} : vector<12x20x4xf32> to vector<10x18x4xf32>
    %c2_37 = arith.constant 2 : index
    %c1_38 = arith.constant 1 : index
    %c0_39 = arith.constant 0 : index
    %c0_40 = arith.constant 0 : index
    %39 = vector.load %arg3[%c2_37, %c1_38, %c0_39, %c0_40] : memref<3x3x4x8xf32, #tpu.memory_space<vmem>>, vector<1x1x4x8xf32>
    %40 = vector.shape_cast %39 : vector<1x1x4x8xf32> to vector<4x8xf32>
    %cst_41 = arith.constant dense<0.000000e+00> : vector<10x18x8xf32>
    %41 = tpu.matmul %38, %40, %cst_41 {dimension_numbers = #tpu.dot_dimension_numbers<[2], [0], [0, 1], [1], [0, 0, 0, 1, 1, 1], [], []>} : vector<10x18x4xf32>, vector<4x8xf32>, vector<10x18x8xf32> -> vector<10x18x8xf32>
    %42 = arith.addf %37, %41 : vector<10x18x8xf32>
    %43 = vector.extract_strided_slice %1 {offsets = [2, 2, 0], sizes = [10, 18, 4], strides = [1, 1, 1]} : vector<12x20x4xf32> to vector<10x18x4xf32>
    %c2_42 = arith.constant 2 : index
    %c2_43 = arith.constant 2 : index
    %c0_44 = arith.constant 0 : index
    %c0_45 = arith.constant 0 : index
    %44 = vector.load %arg3[%c2_42, %c2_43, %c0_44, %c0_45] : memref<3x3x4x8xf32, #tpu.memory_space<vmem>>, vector<1x1x4x8xf32>
    %45 = vector.shape_cast %44 : vector<1x1x4x8xf32> to vector<4x8xf32>
    %cst_46 = arith.constant dense<0.000000e+00> : vector<10x18x8xf32>
    %46 = tpu.matmul %43, %45, %cst_46 {dimension_numbers = #tpu.dot_dimension_numbers<[2], [0], [0, 1], [1], [0, 0, 0, 1, 1, 1], [], []>} : vector<10x18x4xf32>, vector<4x8xf32>, vector<10x18x8xf32> -> vector<10x18x8xf32>
    %47 = arith.addf %42, %46 : vector<10x18x8xf32>
    %c0_47 = arith.constant 0 : index
    %c0_48 = arith.constant 0 : index
    %48 = vector.load %arg4[%c0_47, %c0_48] : memref<1x8xf32, #tpu.memory_space<vmem>>, vector<1x8xf32>
    %49 = vector.shape_cast %48 : vector<1x8xf32> to vector<8xf32>
    %50 = vector.shape_cast %49 : vector<8xf32> to vector<1x1x8xf32>
    %51 = vector.broadcast %50 : vector<1x1x8xf32> to vector<10x18x8xf32>
    %52 = arith.addf %47, %51 : vector<10x18x8xf32>
    %cst_49 = arith.constant 0.000000e+00 : f32
    %53 = vector.broadcast %cst_49 : f32 to vector<10x18x8xf32>
    %54 = arith.maximumf %52, %53 : vector<10x18x8xf32>
    %55 = tpu.iota {dimensions = array<i32: 0>} : vector<10x18x1xi32>
    %56 = tpu.iota {dimensions = array<i32: 1>} : vector<10x18x1xi32>
    %c1_i32 = arith.constant 1 : i32
    %57 = vector.broadcast %c1_i32 : i32 to vector<10x18x1xi32>
    %58 = arith.cmpi sge, %56, %57 : vector<10x18x1xi32>
    %c16_i32 = arith.constant 16 : i32
    %59 = vector.broadcast %c16_i32 : i32 to vector<10x18x1xi32>
    %60 = arith.cmpi sle, %56, %59 : vector<10x18x1xi32>
    %61 = arith.andi %58, %60 : vector<10x18x1xi1>
    %c0_i32 = arith.constant 0 : i32
    %62 = vector.broadcast %c0_i32 : i32 to vector<10x18x1xi32>
    %63 = arith.cmpi eq, %55, %62 : vector<10x18x1xi32>
    %c0_i32_50 = arith.constant 0 : i32
    %64 = arith.cmpi eq, %arg1, %c0_i32_50 : i32
    %65 = vector.broadcast %64 : i1 to vector<10x18x1xi1>
    %66 = arith.andi %63, %65 : vector<10x18x1xi1>
    %cst_51 = arith.constant dense<true> : vector<10x18x1xi1>
    %67 = arith.xori %66, %cst_51 : vector<10x18x1xi1>
    %68 = arith.andi %61, %67 : vector<10x18x1xi1>
    %c9_i32 = arith.constant 9 : i32
    %69 = vector.broadcast %c9_i32 : i32 to vector<10x18x1xi32>
    %70 = arith.cmpi eq, %55, %69 : vector<10x18x1xi32>
    %c1_i32_52 = arith.constant 1 : i32
    %71 = arith.cmpi eq, %arg1, %c1_i32_52 : i32
    %72 = vector.broadcast %71 : i1 to vector<10x18x1xi1>
    %73 = arith.andi %70, %72 : vector<10x18x1xi1>
    %cst_53 = arith.constant dense<true> : vector<10x18x1xi1>
    %74 = arith.xori %73, %cst_53 : vector<10x18x1xi1>
    %75 = arith.andi %68, %74 : vector<10x18x1xi1>
    %cst_54 = arith.constant 0.000000e+00 : f32
    %76 = vector.shape_cast %75 : vector<10x18x1xi1> to vector<10x18x1xi1>
    %77 = vector.broadcast %76 : vector<10x18x1xi1> to vector<10x18x8xi1>
    %78 = vector.broadcast %cst_54 : f32 to vector<10x18x8xf32>
    %79 = arith.select %77, %54, %78 : vector<10x18x8xi1>, vector<10x18x8xf32>
    %80 = vector.extract_strided_slice %1 {offsets = [2, 2, 0], sizes = [8, 16, 4], strides = [1, 1, 1]} : vector<12x20x4xf32> to vector<8x16x4xf32>
    %c0_55 = arith.constant 0 : index
    %c0_56 = arith.constant 0 : index
    %81 = vector.load %arg7[%c0_55, %c0_56] : memref<4x128xf32, #tpu.memory_space<vmem>>, vector<4x128xf32>
    %cst_57 = arith.constant dense<0.000000e+00> : vector<8x16x128xf32>
    %82 = tpu.matmul %80, %81, %cst_57 {dimension_numbers = #tpu.dot_dimension_numbers<[2], [0], [0, 1], [1], [0, 0, 0, 1, 1, 1], [], []>} : vector<8x16x4xf32>, vector<4x128xf32>, vector<8x16x128xf32> -> vector<8x16x128xf32>
    %83 = vector.extract_strided_slice %79 {offsets = [0, 0, 0], sizes = [8, 16, 8], strides = [1, 1, 1]} : vector<10x18x8xf32> to vector<8x16x8xf32>
    %c0_58 = arith.constant 0 : index
    %c0_59 = arith.constant 0 : index
    %c0_60 = arith.constant 0 : index
    %c0_61 = arith.constant 0 : index
    %84 = vector.load %arg5[%c0_58, %c0_59, %c0_60, %c0_61] : memref<3x3x8x128xf32, #tpu.memory_space<vmem>>, vector<1x1x8x128xf32>
    %85 = vector.shape_cast %84 : vector<1x1x8x128xf32> to vector<8x128xf32>
    %cst_62 = arith.constant dense<0.000000e+00> : vector<8x16x128xf32>
    %86 = tpu.matmul %83, %85, %cst_62 {dimension_numbers = #tpu.dot_dimension_numbers<[2], [0], [0, 1], [1], [0, 0, 0, 1, 1, 1], [], []>} : vector<8x16x8xf32>, vector<8x128xf32>, vector<8x16x128xf32> -> vector<8x16x128xf32>
    %87 = arith.addf %82, %86 : vector<8x16x128xf32>
    %88 = vector.extract_strided_slice %79 {offsets = [0, 1, 0], sizes = [8, 16, 8], strides = [1, 1, 1]} : vector<10x18x8xf32> to vector<8x16x8xf32>
    %c0_63 = arith.constant 0 : index
    %c1_64 = arith.constant 1 : index
    %c0_65 = arith.constant 0 : index
    %c0_66 = arith.constant 0 : index
    %89 = vector.load %arg5[%c0_63, %c1_64, %c0_65, %c0_66] : memref<3x3x8x128xf32, #tpu.memory_space<vmem>>, vector<1x1x8x128xf32>
    %90 = vector.shape_cast %89 : vector<1x1x8x128xf32> to vector<8x128xf32>
    %cst_67 = arith.constant dense<0.000000e+00> : vector<8x16x128xf32>
    %91 = tpu.matmul %88, %90, %cst_67 {dimension_numbers = #tpu.dot_dimension_numbers<[2], [0], [0, 1], [1], [0, 0, 0, 1, 1, 1], [], []>} : vector<8x16x8xf32>, vector<8x128xf32>, vector<8x16x128xf32> -> vector<8x16x128xf32>
    %92 = arith.addf %87, %91 : vector<8x16x128xf32>
    %93 = vector.extract_strided_slice %79 {offsets = [0, 2, 0], sizes = [8, 16, 8], strides = [1, 1, 1]} : vector<10x18x8xf32> to vector<8x16x8xf32>
    %c0_68 = arith.constant 0 : index
    %c2_69 = arith.constant 2 : index
    %c0_70 = arith.constant 0 : index
    %c0_71 = arith.constant 0 : index
    %94 = vector.load %arg5[%c0_68, %c2_69, %c0_70, %c0_71] : memref<3x3x8x128xf32, #tpu.memory_space<vmem>>, vector<1x1x8x128xf32>
    %95 = vector.shape_cast %94 : vector<1x1x8x128xf32> to vector<8x128xf32>
    %cst_72 = arith.constant dense<0.000000e+00> : vector<8x16x128xf32>
    %96 = tpu.matmul %93, %95, %cst_72 {dimension_numbers = #tpu.dot_dimension_numbers<[2], [0], [0, 1], [1], [0, 0, 0, 1, 1, 1], [], []>} : vector<8x16x8xf32>, vector<8x128xf32>, vector<8x16x128xf32> -> vector<8x16x128xf32>
    %97 = arith.addf %92, %96 : vector<8x16x128xf32>
    %98 = vector.extract_strided_slice %79 {offsets = [1, 0, 0], sizes = [8, 16, 8], strides = [1, 1, 1]} : vector<10x18x8xf32> to vector<8x16x8xf32>
    %c1_73 = arith.constant 1 : index
    %c0_74 = arith.constant 0 : index
    %c0_75 = arith.constant 0 : index
    %c0_76 = arith.constant 0 : index
    %99 = vector.load %arg5[%c1_73, %c0_74, %c0_75, %c0_76] : memref<3x3x8x128xf32, #tpu.memory_space<vmem>>, vector<1x1x8x128xf32>
    %100 = vector.shape_cast %99 : vector<1x1x8x128xf32> to vector<8x128xf32>
    %cst_77 = arith.constant dense<0.000000e+00> : vector<8x16x128xf32>
    %101 = tpu.matmul %98, %100, %cst_77 {dimension_numbers = #tpu.dot_dimension_numbers<[2], [0], [0, 1], [1], [0, 0, 0, 1, 1, 1], [], []>} : vector<8x16x8xf32>, vector<8x128xf32>, vector<8x16x128xf32> -> vector<8x16x128xf32>
    %102 = arith.addf %97, %101 : vector<8x16x128xf32>
    %103 = vector.extract_strided_slice %79 {offsets = [1, 1, 0], sizes = [8, 16, 8], strides = [1, 1, 1]} : vector<10x18x8xf32> to vector<8x16x8xf32>
    %c1_78 = arith.constant 1 : index
    %c1_79 = arith.constant 1 : index
    %c0_80 = arith.constant 0 : index
    %c0_81 = arith.constant 0 : index
    %104 = vector.load %arg5[%c1_78, %c1_79, %c0_80, %c0_81] : memref<3x3x8x128xf32, #tpu.memory_space<vmem>>, vector<1x1x8x128xf32>
    %105 = vector.shape_cast %104 : vector<1x1x8x128xf32> to vector<8x128xf32>
    %cst_82 = arith.constant dense<0.000000e+00> : vector<8x16x128xf32>
    %106 = tpu.matmul %103, %105, %cst_82 {dimension_numbers = #tpu.dot_dimension_numbers<[2], [0], [0, 1], [1], [0, 0, 0, 1, 1, 1], [], []>} : vector<8x16x8xf32>, vector<8x128xf32>, vector<8x16x128xf32> -> vector<8x16x128xf32>
    %107 = arith.addf %102, %106 : vector<8x16x128xf32>
    %108 = vector.extract_strided_slice %79 {offsets = [1, 2, 0], sizes = [8, 16, 8], strides = [1, 1, 1]} : vector<10x18x8xf32> to vector<8x16x8xf32>
    %c1_83 = arith.constant 1 : index
    %c2_84 = arith.constant 2 : index
    %c0_85 = arith.constant 0 : index
    %c0_86 = arith.constant 0 : index
    %109 = vector.load %arg5[%c1_83, %c2_84, %c0_85, %c0_86] : memref<3x3x8x128xf32, #tpu.memory_space<vmem>>, vector<1x1x8x128xf32>
    %110 = vector.shape_cast %109 : vector<1x1x8x128xf32> to vector<8x128xf32>
    %cst_87 = arith.constant dense<0.000000e+00> : vector<8x16x128xf32>
    %111 = tpu.matmul %108, %110, %cst_87 {dimension_numbers = #tpu.dot_dimension_numbers<[2], [0], [0, 1], [1], [0, 0, 0, 1, 1, 1], [], []>} : vector<8x16x8xf32>, vector<8x128xf32>, vector<8x16x128xf32> -> vector<8x16x128xf32>
    %112 = arith.addf %107, %111 : vector<8x16x128xf32>
    %113 = vector.extract_strided_slice %79 {offsets = [2, 0, 0], sizes = [8, 16, 8], strides = [1, 1, 1]} : vector<10x18x8xf32> to vector<8x16x8xf32>
    %c2_88 = arith.constant 2 : index
    %c0_89 = arith.constant 0 : index
    %c0_90 = arith.constant 0 : index
    %c0_91 = arith.constant 0 : index
    %114 = vector.load %arg5[%c2_88, %c0_89, %c0_90, %c0_91] : memref<3x3x8x128xf32, #tpu.memory_space<vmem>>, vector<1x1x8x128xf32>
    %115 = vector.shape_cast %114 : vector<1x1x8x128xf32> to vector<8x128xf32>
    %cst_92 = arith.constant dense<0.000000e+00> : vector<8x16x128xf32>
    %116 = tpu.matmul %113, %115, %cst_92 {dimension_numbers = #tpu.dot_dimension_numbers<[2], [0], [0, 1], [1], [0, 0, 0, 1, 1, 1], [], []>} : vector<8x16x8xf32>, vector<8x128xf32>, vector<8x16x128xf32> -> vector<8x16x128xf32>
    %117 = arith.addf %112, %116 : vector<8x16x128xf32>
    %118 = vector.extract_strided_slice %79 {offsets = [2, 1, 0], sizes = [8, 16, 8], strides = [1, 1, 1]} : vector<10x18x8xf32> to vector<8x16x8xf32>
    %c2_93 = arith.constant 2 : index
    %c1_94 = arith.constant 1 : index
    %c0_95 = arith.constant 0 : index
    %c0_96 = arith.constant 0 : index
    %119 = vector.load %arg5[%c2_93, %c1_94, %c0_95, %c0_96] : memref<3x3x8x128xf32, #tpu.memory_space<vmem>>, vector<1x1x8x128xf32>
    %120 = vector.shape_cast %119 : vector<1x1x8x128xf32> to vector<8x128xf32>
    %cst_97 = arith.constant dense<0.000000e+00> : vector<8x16x128xf32>
    %121 = tpu.matmul %118, %120, %cst_97 {dimension_numbers = #tpu.dot_dimension_numbers<[2], [0], [0, 1], [1], [0, 0, 0, 1, 1, 1], [], []>} : vector<8x16x8xf32>, vector<8x128xf32>, vector<8x16x128xf32> -> vector<8x16x128xf32>
    %122 = arith.addf %117, %121 : vector<8x16x128xf32>
    %123 = vector.extract_strided_slice %79 {offsets = [2, 2, 0], sizes = [8, 16, 8], strides = [1, 1, 1]} : vector<10x18x8xf32> to vector<8x16x8xf32>
    %c2_98 = arith.constant 2 : index
    %c2_99 = arith.constant 2 : index
    %c0_100 = arith.constant 0 : index
    %c0_101 = arith.constant 0 : index
    %124 = vector.load %arg5[%c2_98, %c2_99, %c0_100, %c0_101] : memref<3x3x8x128xf32, #tpu.memory_space<vmem>>, vector<1x1x8x128xf32>
    %125 = vector.shape_cast %124 : vector<1x1x8x128xf32> to vector<8x128xf32>
    %cst_102 = arith.constant dense<0.000000e+00> : vector<8x16x128xf32>
    %126 = tpu.matmul %123, %125, %cst_102 {dimension_numbers = #tpu.dot_dimension_numbers<[2], [0], [0, 1], [1], [0, 0, 0, 1, 1, 1], [], []>} : vector<8x16x8xf32>, vector<8x128xf32>, vector<8x16x128xf32> -> vector<8x16x128xf32>
    %127 = arith.addf %122, %126 : vector<8x16x128xf32>
    %c0_103 = arith.constant 0 : index
    %c0_104 = arith.constant 0 : index
    %128 = vector.load %arg6[%c0_103, %c0_104] : memref<1x128xf32, #tpu.memory_space<vmem>>, vector<1x128xf32>
    %129 = vector.shape_cast %128 : vector<1x128xf32> to vector<128xf32>
    %130 = vector.shape_cast %129 : vector<128xf32> to vector<1x1x128xf32>
    %131 = vector.broadcast %130 : vector<1x1x128xf32> to vector<8x16x128xf32>
    %132 = arith.addf %127, %131 : vector<8x16x128xf32>
    %c0_105 = arith.constant 0 : index
    %c0_106 = arith.constant 0 : index
    %c0_107 = arith.constant 0 : index
    %c0_108 = arith.constant 0 : index
    %133 = vector.load %arg8[%c0_105, %c0_106, %c0_107, %c0_108] : memref<1x8x16x128xf32, #tpu.memory_space<vmem>>, vector<1x8x16x128xf32>
    %134 = vector.shape_cast %133 : vector<1x8x16x128xf32> to vector<8x16x128xf32>
    %135 = vector.shape_cast %132 : vector<8x16x128xf32> to vector<1x8x16x128xf32>
    tpu.vector_store %arg8[%c0_105, %c0_106, %c0_107, %c0_108], %135 {strides = array<i32>} : memref<1x8x16x128xf32, #tpu.memory_space<vmem>>, vector<1x8x16x128xf32>,
    return
  }
  func.func @transform_0(%arg0: i32, %arg1: i32) -> (i32, i32, i32, i32, i32) {
    %c0_i32 = arith.constant 0 : i32
    %c0_i32_0 = arith.constant 0 : i32
    %c0_i32_1 = arith.constant 0 : i32
    %c0_i32_2 = arith.constant 0 : i32
    return %arg0, %arg1, %c0_i32, %c0_i32_0, %c0_i32_1 : i32, i32, i32, i32, i32
  }
  func.func @transform_1(%arg0: i32, %arg1: i32) -> (i32, i32, i32, i32) {
    %c0_i32 = arith.constant 0 : i32
    %c0_i32_0 = arith.constant 0 : i32
    %c0_i32_1 = arith.constant 0 : i32
    %c0_i32_2 = arith.constant 0 : i32
    %c0_i32_3 = arith.constant 0 : i32
    return %c0_i32, %c0_i32_0, %c0_i32_1, %c0_i32_2 : i32, i32, i32, i32
  }
  func.func @transform_2(%arg0: i32, %arg1: i32) -> (i32, i32) {
    %c0_i32 = arith.constant 0 : i32
    %c0_i32_0 = arith.constant 0 : i32
    %c0_i32_1 = arith.constant 0 : i32
    return %c0_i32, %c0_i32_0 : i32, i32
  }
  func.func @transform_3(%arg0: i32, %arg1: i32) -> (i32, i32, i32, i32) {
    %c0_i32 = arith.constant 0 : i32
    %c0_i32_0 = arith.constant 0 : i32
    %c0_i32_1 = arith.constant 0 : i32
    %c0_i32_2 = arith.constant 0 : i32
    %c0_i32_3 = arith.constant 0 : i32
    return %c0_i32, %c0_i32_0, %c0_i32_1, %c0_i32_2 : i32, i32, i32, i32
  }
  func.func @transform_4(%arg0: i32, %arg1: i32) -> (i32, i32) {
    %c0_i32 = arith.constant 0 : i32
    %c0_i32_0 = arith.constant 0 : i32
    %c0_i32_1 = arith.constant 0 : i32
    return %c0_i32, %c0_i32_0 : i32, i32
  }
  func.func @transform_5(%arg0: i32, %arg1: i32) -> (i32, i32) {
    %c0_i32 = arith.constant 0 : i32
    %c0_i32_0 = arith.constant 0 : i32
    %c0_i32_1 = arith.constant 0 : i32
    return %c0_i32, %c0_i32_0 : i32, i32
  }
  func.func @transform_6(%arg0: i32, %arg1: i32) -> (i32, i32, i32, i32) {
    %c0_i32 = arith.constant 0 : i32
    %c0_i32_0 = arith.constant 0 : i32
    %c0_i32_1 = arith.constant 0 : i32
    return %arg0, %arg1, %c0_i32, %c0_i32_0 : i32, i32, i32, i32
  }
}

</mosaic_0001>

<bundles_post_ra>
// kernel: tpu_custom_call.1
= control target key start
LH: loop header
LB: loop body
LE: loop exit
PB: predicated region body
PF: predicated region fallthrough
CT: control target
= control target key end

     0   :  { %11 = vsyncpa [#allocation3], 0  ;;  %s13824_s0 = inlined_call_operand.vmem [shape: f32[2,2,12,20,4], index: 0, kind: input, shape index: {}]   ;;  %s13825_s1 = inlined_call_operand.vmem [shape: f32[3,3,4,8], index: 1, kind: input, shape index: {}]   ;;  %s13826_s2 = inlined_call_operand.vmem [shape: f32[1,8], index: 2, kind: input, shape index: {}]   ;;  %s13827_s3 = inlined_call_operand.vmem [shape: f32[3,3,8,128], index: 3, kind: input, shape index: {}]   ;;  %s13828_s4 = inlined_call_operand.vmem [shape: f32[1,128], index: 4, kind: input, shape index: {}]   ;;  %s13829_s5 = inlined_call_operand.vmem [shape: f32[4,128], index: 5, kind: input, shape index: {}]   ;;  %s13830_s6 = inlined_call_operand.hbm [shape: f32[2,16,16,128], index: 6, kind: output, shape index: {}]  }
   0x1   :  { %13 = vsyncpa [#allocation3 + $0x1], 0  ;;  %s7759_s21 = smov 0   ;;  %s7761_s22 = smov 0  }
   0x2   :  { %s7763_s23 = smov 0   ;;  %s7765_s24 = smov 0  }
   0x3   :  { %s7767_s25 = smov 0   ;;  %s7769_s26 = smov 0  }
   0x4   :  { %s7771_s27 = smov 0   ;;  %s7773_s28 = smov 0  }
   0x5 LB: > { %s7119_s29 = sadd.s32 4294967295, %s7719_s28   ;;  %s7120_s30 = sadd.s32 4294967294, %s7719_s28   ;;  %s7719_s28 = sphi %s7773_s28, %s19_s28   ;;  %s7715_s27 = sphi %s7771_s27, %s15922_s27   ;;  %s7711_s26 = sphi %s7769_s26, %s15921_s26   ;;  %s7707_s25 = sphi %s7767_s25, %s15920_s25   ;;  %s7703_s24 = sphi %s7765_s24, %s15919_s24   ;;  %s7699_s23 = sphi %s7763_s23, %s15918_s23   ;;  %s7695_s22 = sphi %s7761_s22, %s15917_s22   ;;  %s7691_s21 = sphi %s7759_s21, %s15916_s21  }
   0x6   : > { %s28_s7 = sadd.s32 1, %s7711_s26  ;;  %s31_s8 = sadd.s32 1, %s7715_s27 }
   0x7   : > { %p29_p0 = scmp.ge.s32.totalorder %s28_s7, 2  ;;  %p183_p1 = scmp.ne.s32.totalorder %s7699_s23, %s7695_s22 }
   0x8   : > { %p184_p2 = scmp.eq.s32.totalorder %s7119_s29, 3  ;;  %p189_p5 = scmp.ne.s32.totalorder %s7695_s22, %s7691_s21 }
   0x9   : > { %s15924_s7 = smov (%p29_p0, %s28_s7), 0  ;;  %s15926_s8 = smov (!%p29_p0, %s31_s8), %s7715_s27 }
   0xa   : > { %s169_s9 = ssub.s32 %s7711_s26, %s15924_s7  ;;  %p7810_p3 = por %p184_p2, %p183_p1 }
   0xb   : > { %p33_p4 = scmp.ge.s32.totalorder %s15926_s8, 2  ;;  %p190_p6 = scmp.eq.s32.totalorder %s7120_s30, 3 }
   0xc   : > { %p7123_p7 = scmp.ge.s32.totalorder %s7719_s28, 1  ;;  %p235_p9 = scmp.lt.s32.totalorder %s7719_s28, 5 }
   0xd   : > { %s15928_s8 = smov (%p33_p4, %s15926_s8), 0  ;;  %p7819_p8 = por %p190_p6, %p189_p5 }
   0xe   : > { %s168_s12 = ssub.s32 %s7715_s27, %s15928_s8  ;;  %s173_s13 = sadd.s32 1, %s7699_s23 }
   0xf   : > { %s170_s14 = sor.u32 %s169_s9, %s168_s12  ;;  %p236_p10 = pnand %p7123_p7, %p235_p9 }
  0x10   : > { %p171_p11 = scmp.eq.s32.totalorder %s170_s14, 0 }
  0x11   : > { %239 = sbr.rel (%p236_p10) target bundleno = 2479 (0x9af), region = 44 }
  0x12   : > { %s7828_s15 = scalar_select %p171_p11, %s7699_s23, %s173_s13  }
  0x16   : > { %v7126_v0 = vld [vmem:[%s13825_s1 + $0x4] sm:$0xf]  ;;  %vm872_vm0 = vcmask 1043456   ;;  %p269_p12 = scmp.lt.s32.totalorder %s7707_s25, 1  ;;  %p271_p13 = scmp.lt.s32.totalorder %s7703_s24, 1  ;;  %vm418_vm1 = vcmask 1040384  }
  0x17   : > { %7139 = vmatpush.msk.msra.mxu0 %vm872_vm0, %v7126_v0  ;;  %vm419_vm2 = vcmask 1042434   ;;  %vm421_vm4 = vcmask 1044484   ;;  %vm423_vm6 = vcmask 1046534   ;;  %v14310_v8 = vmov 0  ;;  %p5562_p0 = scmp.eq.s32.totalorder %s7703_s24, 0  ;;  %p5573_p1 = scmp.eq.s32.totalorder %s7703_s24, 1 }
  0x18   : > { %s270_s18 = scalar_select %p269_p12, %s7707_s25, 1  ;;  %vm420_vm3 = vmor %vm418_vm1, %vm419_vm2  ;;  %vm825_vm8 = vcmask 31744   ;;  %vm5995_vm9 = vcmask 1045504   ;;  %vm7721_vm12 = vmmov 1   ;;  %vm5881_vm15 = vcmask 64512  }
  0x19   : > { %s272_s19 = scalar_select %p271_p13, %s7703_s24, 1  ;;  %vm422_vm5 = vmor %vm420_vm3, %vm421_vm4  ;;  %vm6122_vm1 = vcmask 1046528  }
  0x1a   : > { %s7547_s20 = smul.u32 72, %s270_s18  ;;  %vm7856_vm7 = vmor %vm422_vm5, %vm423_vm6  ;;  %s266_s13 = sand.u32 1, %s7695_s22  }
  0x1b   : > { %s7546_s29 = smul.u32 36, %s272_s19  ;;  %v14311_v8 = vsel %vm7856_vm7, 4294967295, %v14310_v8  ;;  %s7124_s16 = sshll.u32 %s266_s13, 7 }
  0x1c   : > { %14312 = vst [vmem:[#allocation6_spill] sm:$0xff] %v14311_v8  ;;  %s12319_s19 = scalar_select %p5562_p0, 1, 0 }
  0x1d   : > { %s275_s30 = sadd.s32 %s7547_s20, %s7546_s29  ;;  %s7538_s20 = sshll.u32 %s7707_s25, 5 }
  0x1e   : > { %s7125_s9 = sshll.u32 %s275_s30, 3  ;;  %s7016_s17 = scalar_lea.sflag [#allocation3], %s266_s13 }
  0x1f   : > { %s7841_s14 = scalar_lea.vmem %s13824_s0, %s7125_s9 }
  0x20   : > { %v7844_v1 = vld [vmem:[%s7841_s14] sm:$0xff]  ;;  %v7847_v2 = vld [vmem:[%s7841_s14 + $0x8] sm:$0xff]  ;;  %v7850_v3 = vld [vmem:[%s7841_s14 + $0x10] sm:$0xf]  ;;  %s5574_s12 = scalar_select %p5573_p1, 1, 0 }
  0x21   : > { %14309 = vst [vmem:[#allocation5_spill] sm:$0xff] %v7844_v1  ;;  %v13837_v4 = vrot.slane %v7844_v1, 2  ;;  %v13836_v5 = vrot.slane %v7844_v1, 4  ;;  %v13835_v6 = vrot.slane %v7844_v1, 6  ;;  %v7127_v7 = vrot.slane %v7844_v1, 9  ;;  %v7878_v21 = vld [vmem:[%s7841_s14 + $0x18] sm:$0xff] }
  0x22   : > { %v436_v9 = vrot.slane %v7847_v2, 7  ;;  %v13834_v10 = vrot.slane %v7847_v2, 2  ;;  %v13833_v11 = vrot.slane %v7847_v2, 4  ;;  %v13832_v12 = vrot.slane %v7847_v2, 6  ;;  %14313 = vst [vmem:[#allocation7_spill] sm:$0xff] %v7878_v21  ;;  %v7906_v39 = vld [vmem:[%s7841_s14 + $0x20] sm:$0xff] }
  0x23   : > { %v427_v13 = vrot.slane %v13837_v4, 7  ;;  %v430_v14 = vrot.slane %v13836_v5, 7  ;;  %v433_v15 = vrot.slane %v13835_v6, 7  ;;  %v448_v16 = vrot.slane %v7850_v3, 7  ;;  %14317 = vst [vmem:[#allocation11_spill] sm:$0xff] %v7906_v39  ;;  %v7926_v54 = vld [vmem:[%s7841_s14 + $0x30] sm:$0xff] }
  0x24   : > { %v438_v17 = vrot.slane %v436_v9, 2  ;;  %v439_v18 = vrot.slane %v13834_v10, 7  ;;  %v442_v19 = vrot.slane %v13833_v11, 7  ;;  %v445_v20 = vrot.slane %v13832_v12, 7  ;;  %14321 = vst [vmem:[#allocation15_spill] sm:$0xff] %v7926_v54 }
  0x25   : > { %v428_v22 = vsel %vm7856_vm7, %v7127_v7, %v427_v13  ;;  %v429_v23 = vrot.slane %v427_v13, 2  ;;  %v432_v24 = vrot.slane %v430_v14, 2  ;;  %v435_v25 = vrot.slane %v433_v15, 2  ;;  %v7935_v59 = vld [vmem:[%s7841_s14 + $0x28] sm:$0xf] }
  0x26   : > { %705 = vst [vmem:[#allocation1] ss:$4 sm:$0xff] %v428_v22  ;;  %v440_v26 = vsel %vm7856_vm7, %v438_v17, %v439_v18  ;;  %v441_v27 = vrot.slane %v439_v18, 2  ;;  %v444_v28 = vrot.slane %v442_v19, 2  ;;  %v447_v29 = vrot.slane %v445_v20, 2 }
  0x27   : > { %v431_v30 = vsel %vm7856_vm7, %v429_v23, %v430_v14  ;;  %v434_v31 = vsel %vm7856_vm7, %v432_v24, %v433_v15  ;;  %v437_v32 = vsel %vm7856_vm7, %v435_v25, %v436_v9  ;;  %713 = vst [vmem:[#allocation1 + $0x20] ss:$4 sm:$0xff] %v440_v26  ;;  %v7891_v33 = vrot.slane %v7878_v21, 2  ;;  %v7957_v15 = vld [vmem:[%s7841_s14 + $0x38] sm:$0xff] }
  0x28   : > { %707 = vst [vmem:[#allocation1 + $0x1] ss:$4 sm:$0xff] %v431_v30  ;;  %v443_v34 = vsel %vm7856_vm7, %v441_v27, %v442_v19  ;;  %v7896_v35 = vrot.slane %v7878_v21, 4  ;;  %v446_v36 = vsel %vm7856_vm7, %v444_v28, %v445_v20  ;;  %v449_v37 = vsel %vm7856_vm7, %v447_v29, %v448_v16 }
  0x29   : > { %14314 = vst [vmem:[#allocation8_spill] sm:$0xff] %v7891_v33  ;;  %v7903_v38 = vrot.slane %v7878_v21, 6  ;;  %v455_v40 = vrot.slane %v7891_v33, 7  ;;  %v7911_v42 = vrot.slane %v7906_v39, 2  ;;  %v7914_v43 = vrot.slane %v7906_v39, 4 }
  0x2a   : > { %14315 = vst [vmem:[#allocation9_spill] sm:$0xff] %v7896_v35  ;;  %v458_v41 = vrot.slane %v7896_v35, 7  ;;  %v450_v44 = vrot.slane %v448_v16, 2  ;;  %v7128_v45 = vrot.slane %v7850_v3, 9  ;;  %v7129_v46 = vrot.slane %v7878_v21, 9 }
  0x2b   : > { %709 = vst [vmem:[#allocation1 + $0x2] ss:$4 sm:$0xff] %v434_v31  ;;  %v464_v47 = vrot.slane %v7906_v39, 7  ;;  %v457_v48 = vrot.slane %v455_v40, 2  ;;  %v461_v49 = vrot.slane %v7903_v38, 7  ;;  %v467_v50 = vrot.slane %v7911_v42, 7 }
  0x2c   : > { %14316 = vst [vmem:[#allocation10_spill] sm:$0xff] %v7903_v38  ;;  %v460_v51 = vrot.slane %v458_v41, 2  ;;  %v7922_v52 = vrot.slane %v7906_v39, 6  ;;  %v470_v53 = vrot.slane %v7914_v43, 7  ;;  %v452_v55 = vsel %vm7856_vm7, %v450_v44, %v7128_v45 }
  0x2d   : > { %711 = vst [vmem:[#allocation1 + $0x3] ss:$4 sm:$0xff] %v437_v32  ;;  %v463_v56 = vrot.slane %v461_v49, 2  ;;  %v7932_v57 = vsel %vm7856_vm7, %v7129_v46, %v455_v40  ;;  %v466_v58 = vrot.slane %v464_v47, 2  ;;  %v7939_v61 = vsel %vm7856_vm7, %v457_v48, %v458_v41  ;;  %v8009_v46 = vld [vmem:[%s7841_s14 + $0x40] sm:$0xf] }
  0x2e   : > { %14318 = vst [vmem:[#allocation12_spill] sm:$0xff] %v7911_v42  ;;  %v469_v62 = vrot.slane %v467_v50, 2  ;;  %v7942_v63 = vrot.slane %v7926_v54, 2  ;;  %v7947_v0 = vsel %vm7856_vm7, %v460_v51, %v461_v49  ;;  %v472_v7 = vrot.slane %v470_v53, 2 }
  0x2f   : > { %14319 = vst [vmem:[#allocation13_spill] sm:$0xff] %v7914_v43  ;;  %v473_v9 = vrot.slane %v7922_v52, 7  ;;  %v7953_v13 = vsel %vm7856_vm7, %v463_v56, %v464_v47  ;;  %v476_v14 = vrot.slane %v7935_v59, 7  ;;  %v7960_v16 = vrot.slane %v7926_v54, 6 }
  0x30   : > { %715 = vst [vmem:[#allocation1 + $0x21] ss:$4 sm:$0xff] %v443_v34  ;;  %v7965_v18 = vsel %vm7856_vm7, %v466_v58, %v467_v50  ;;  %v7968_v19 = vrot.slane %v7926_v54, 4  ;;  %v7973_v20 = vsel %vm7856_vm7, %v469_v62, %v470_v53  ;;  %v483_v22 = vrot.slane %v7942_v63, 7  ;;  %v8016_v50 = vld [vmem:[%s7841_s14 + $0x48] sm:$0xff] }
  0x31   : > { %717 = vst [vmem:[#allocation1 + $0x22] ss:$4 sm:$0xff] %v446_v36  ;;  %v7977_v23 = vrot.slane %v7957_v15, 2  ;;  %v7981_v24 = vsel %vm7856_vm7, %v472_v7, %v473_v9  ;;  %v475_v25 = vrot.slane %v473_v9, 2  ;;  %v478_v26 = vrot.slane %v476_v14, 2 }
  0x32   : > { %719 = vst [vmem:[#allocation1 + $0x23] ss:$4 sm:$0xff] %v449_v37  ;;  %v7130_v27 = vrot.slane %v7935_v59, 9  ;;  %v489_v28 = vrot.slane %v7960_v16, 7  ;;  %v7131_v29 = vrot.slane %v7926_v54, 9  ;;  %v486_v30 = vrot.slane %v7968_v19, 7 }
  0x33   : > { %14320 = vst [vmem:[#allocation14_spill] sm:$0xff] %v7922_v52  ;;  %v492_v31 = vrot.slane %v7957_v15, 7  ;;  %v485_v32 = vrot.slane %v483_v22, 2  ;;  %v7993_v34 = vrot.slane %v7957_v15, 4  ;;  %v495_v36 = vrot.slane %v7977_v23, 7 }
  0x34   : > { %14322 = vst [vmem:[#allocation16_spill] sm:$0xff] %v7932_v57  ;;  %v720_v60 = vld.sshfl [vmem:[#allocation1] sm:$0xff pattern:$0x73625140]  ;;  %v7999_v37 = vsel %vm7856_vm7, %v475_v25, %v476_v14  ;;  %v488_v40 = vrot.slane %v486_v30, 2  ;;  %v8002_v41 = vrot.slane %v7957_v15, 6  ;;  %v8006_v44 = vsel %vm7856_vm7, %v478_v26, %v7130_v27 }
  0x35   : > { %14323 = vst [vmem:[#allocation17_spill] sm:$0xff] %v7935_v59  ;;  %7140 = vmatmul.msk.f32.vlgmr.msra.gmra.mxu0 %vm825_vm8, %v720_v60  ;;  %v491_v45 = vrot.slane %v489_v28, 2  ;;  %v8013_v48 = vsel %vm7856_vm7, %v7131_v29, %v483_v22  ;;  %v494_v49 = vrot.slane %v492_v31, 2  ;;  %v8020_v51 = vsel %vm7856_vm7, %v485_v32, %v486_v30  ;;  %v8051_v26 = vld [vmem:[%s7841_s14 + $0x50] sm:$0xff] }
  0x36   : > { %14324 = vst [vmem:[#allocation18_spill] sm:$0xff] %v7939_v61  ;;  %v497_v53 = vrot.slane %v495_v36, 2  ;;  %v8027_v56 = vsel %vm7856_vm7, %v488_v40, %v489_v28  ;;  %v501_v58 = vrot.slane %v8002_v41, 7  ;;  %v13831_v62 = vrot.slane %v8009_v46, 2 }
  0x37   : > { %14325 = vst [vmem:[#allocation19_spill] sm:$0xff] %v7942_v63  ;;  %v8033_v60 = vsel %vm7856_vm7, %v491_v45, %v492_v31  ;;  %v8037_v7 = vrot.slane %v8016_v50, 2  ;;  %v504_v9 = vrot.slane %v8009_v46, 7  ;;  %v8056_v28 = vrot.slane %v8016_v50, 4 }
  0x38   : > { %14326 = vst [vmem:[#allocation20_spill] sm:$0xff] %v7947_v0  ;;  %v503_v27 = vrot.slane %v501_v58, 2  ;;  %v8059_v29 = vrot.slane %v8016_v50, 6  ;;  %v507_v31 = vrot.slane %v13831_v62, 7  ;;  %v7132_v32 = vrot.slane %v8016_v50, 9 }
  0x39   : > { %722 = vst [vmem:[#allocation1] ss:$4 sm:$0xff] %v452_v55  ;;  %v721_v17 = vld.sshfl [vmem:[#allocation1 + $0x20] sm:$0xff pattern:$0x73625140]  ;;  %v498_v55 = vrot.slane %v7993_v34, 7 }
  0x3a   : > { %723 = vst [vmem:[#allocation1 + $0x1] ss:$4 sm:$0xff] %v7932_v57  ;;  %v506_v30 = vrot.slane %v504_v9, 2  ;;  %v8068_v40 = vrot.slane %v8051_v26, 2  ;;  %v514_v45 = vrot.slane %v8056_v28, 7  ;;  %v8078_v62 = vrot.slane %v8051_v26, 4 }
  0x3b   : > { %14327 = vst [vmem:[#allocation21_spill] sm:$0xff] %v7953_v13  ;;  %v8047_v22 = vsel %vm7856_vm7, %v497_v53, %v498_v55  ;;  %v500_v25 = vrot.slane %v498_v55, 2  ;;  %v8082_v12 = vsel %vm7856_vm7, %v503_v27, %v504_v9  ;;  %v8085_v10 = vrot.slane %v8051_v26, 6 }
  0x3c   : > { %14328 = vst [vmem:[#allocation22_spill] sm:$0xff] %v7957_v15  ;;  %v516_v11 = vrot.slane %v514_v45, 2  ;;  %v8089_v5 = vsel %vm7856_vm7, %v506_v30, %v507_v31  ;;  %v523_v27 = vrot.slane %v8068_v40, 7  ;;  %v526_v30 = vrot.slane %v8078_v62, 7 }
  0x3d   : > { %14329 = vst [vmem:[#allocation23_spill] sm:$0xff] %v7960_v16  ;;  %7141 = vmatmul.msk.f32.gmra.mxu0 %vm825_vm8, %v721_v17  ;;  %v8043_v17 = vsel %vm7856_vm7, %v494_v49, %v495_v36  ;;  %v511_v36 = vrot.slane %v8037_v7, 7  ;;  %v520_v49 = vrot.slane %v8051_v26, 7  ;;  %v8075_v53 = vsel %vm7856_vm7, %v500_v25, %v501_v58  ;;  %v8092_v58 = vld [vmem:[%s7841_s14 + $0x58] sm:$0xf] }
  0x3e   : > { %724 = vst [vmem:[#allocation1 + $0x2] ss:$4 sm:$0xff] %v7939_v61  ;;  %v8200_v61 = vld [vmem:[%s7841_s14 + $0x80] sm:$0xff] }
  0x3f   : > { %14330 = vst [vmem:[#allocation24_spill] sm:$0xff] %v7965_v18  ;;  %v513_v55 = vrot.slane %v511_v36, 2  ;;  %v8096_v25 = vsel %vm7856_vm7, %v7132_v32, %v511_v36  ;;  %v522_v9 = vrot.slane %v520_v49, 2  ;;  %v529_v36 = vrot.slane %v8085_v10, 7  ;;  %v8128_v32 = vld [vmem:[%s7841_s14 + $0x68] sm:$0xff] }
  0x40   : > { %14331 = vst [vmem:[#allocation25_spill] sm:$0xff] %v7968_v19 }
  0x41   : > { %725 = vst [vmem:[#allocation1 + $0x3] ss:$4 sm:$0xff] %v7947_v0 }
  0x42   : > { %14332 = vst [vmem:[#allocation26_spill] sm:$0xff] %v7973_v20 }
  0x43   : > { %14333 = vst [vmem:[#allocation27_spill] sm:$0xff] %v7977_v23 }
  0x44   : > { %14334 = vst [vmem:[#allocation28_spill] sm:$0xff] %v7981_v24 }
  0x45   : > { %726 = vst [vmem:[#allocation1 + $0x20] ss:$4 sm:$0xff] %v7953_v13 }
  0x46   : > { %727 = vst [vmem:[#allocation1 + $0x21] ss:$4 sm:$0xff] %v7965_v18 }
  0x47   : > { %728 = vst [vmem:[#allocation1 + $0x22] ss:$4 sm:$0xff] %v7973_v20 }
  0x48   : > { %729 = vst [vmem:[#allocation1 + $0x23] ss:$4 sm:$0xff] %v7981_v24  ;;  %v730_v47 = vld.sshfl [vmem:[#allocation1] sm:$0xff pattern:$0x73625140]  ;;  %v8225_v24 = vrot.slane %v8200_v61, 2 }
  0x49   : > { %14335 = vst [vmem:[#allocation29_spill] sm:$0xff] %v7993_v34  ;;  %7142 = vmatmul.msk.f32.gmra.mxu0 %vm825_vm8, %v730_v47  ;;  %v517_v47 = vrot.slane %v8059_v29, 7 }
  0x4a   : > { %14336 = vst [vmem:[#allocation30_spill] sm:$0xff] %v7999_v37 }
  0x4b   : > { %14337 = vst [vmem:[#allocation31_spill] sm:$0xff] %v8002_v41  ;;  %v519_v4 = vrot.slane %v517_v47, 2  ;;  %v8110_v31 = vsel %vm7856_vm7, %v516_v11, %v517_v47  ;;  %v528_v11 = vrot.slane %v526_v30, 2  ;;  %v531_v47 = vrot.slane %v529_v36, 2 }
  0x4c   : > { %14338 = vst [vmem:[#allocation32_spill] sm:$0xff] %v8006_v44 }
  0x4d   : > { %14339 = vst [vmem:[#allocation33_spill] sm:$0xff] %v8009_v46 }
  0x4e   : > { %14340 = vst [vmem:[#allocation34_spill] sm:$0xff] %v8013_v48 }
  0x4f   : > { %14341 = vst [vmem:[#allocation35_spill] sm:$0xff] %v8016_v50  ;;  %v731_v14 = vld.sshfl [vmem:[#allocation1 + $0x20] sm:$0xff pattern:$0x73625140] }
  0x50   : > { %14342 = vst [vmem:[#allocation36_spill] sm:$0xff] %v8020_v51 }
  0x51   : > { %732 = vst [vmem:[#allocation1] ss:$4 sm:$0xff] %v7999_v37  ;;  %7143 = vmatmul.msk.f32.gmra.mxu0 %vm825_vm8, %v731_v14  ;;  %v532_v14 = vrot.slane %v8092_v58, 7 }
  0x52   : > { %733 = vst [vmem:[#allocation1 + $0x1] ss:$4 sm:$0xff] %v8006_v44 }
  0x53   : > { %14343 = vst [vmem:[#allocation37_spill] sm:$0xff] %v8027_v56 }
  0x54   : > { %734 = vst [vmem:[#allocation1 + $0x2] ss:$4 sm:$0xff] %v8013_v48 }
  0x55   : > { %14344 = vst [vmem:[#allocation38_spill] sm:$0xff] %v8033_v60 }
  0x56   : > { %14345 = vst [vmem:[#allocation39_spill] sm:$0xff] %v8037_v7 }
  0x57   : > { %735 = vst [vmem:[#allocation1 + $0x3] ss:$4 sm:$0xff] %v8020_v51 }
  0x58   : > { %14346 = vst [vmem:[#allocation40_spill] sm:$0xff] %v8043_v17 }
  0x59   : > { %14347 = vst [vmem:[#allocation41_spill] sm:$0xff] %v8047_v22 }
  0x5a   : > { %736 = vst [vmem:[#allocation1 + $0x20] ss:$4 sm:$0xff] %v8027_v56  ;;  %v8103_v56 = vsel %vm7856_vm7, %v513_v55, %v514_v45  ;;  %v8117_v45 = vsel %vm7856_vm7, %v519_v4, %v520_v49  ;;  %v8122_v55 = vsel %vm7856_vm7, %v522_v9, %v523_v27  ;;  %v534_v4 = vrot.slane %v532_v14, 2 }
  0x5b   : > { %14348 = vst [vmem:[#allocation42_spill] sm:$0xff] %v8051_v26  ;;  %v14364_v49 = vrot.slane %v8092_v58, 2 }
  0x5c   : > { %737 = vst [vmem:[#allocation1 + $0x21] ss:$4 sm:$0xff] %v8033_v60 }
  0x5d   : > { %14349 = vst [vmem:[#allocation43_spill] sm:$0xff] %v8056_v28 }
  0x5e   : > { %14350 = vst [vmem:[#allocation44_spill] sm:$0xff] %v8059_v29  ;;  %v740_v6 = vld.sshfl [vmem:[#allocation1] sm:$0xff pattern:$0x73625140] }
  0x5f   : > { %738 = vst [vmem:[#allocation1 + $0x22] ss:$4 sm:$0xff] %v8043_v17  ;;  %7144 = vmatmul.msk.f32.gmra.mxu0 %vm825_vm8, %v740_v6  ;;  %v8164_v6 = vrot.slane %v8128_v32, 4 }
  0x60   : > { %739 = vst [vmem:[#allocation1 + $0x23] ss:$4 sm:$0xff] %v8047_v22 }
  0x61   : > { %14351 = vst [vmem:[#allocation45_spill] sm:$0xff] %v8068_v40 }
  0x62   : > { %14352 = vst [vmem:[#allocation46_spill] sm:$0xff] %v8075_v53 }
  0x63   : > { %14353 = vst [vmem:[#allocation47_spill] sm:$0xff] %v8078_v62 }
  0x64   : > { %14354 = vst [vmem:[#allocation48_spill] sm:$0xff] %v8082_v12 }
  0x65   : > { %14355 = vst [vmem:[#allocation49_spill] sm:$0xff] %v8085_v10 }
  0x66   : > { %14356 = vst [vmem:[#allocation50_spill] sm:$0xff] %v8089_v5 }
  0x67   : > { %14357 = vst [vmem:[#allocation51_spill] sm:$0xff] %v8092_v58 }
  0x68   : > { %14358 = vst [vmem:[#allocation52_spill] sm:$0xff] %v8096_v25 }
  0x69   : > { %742 = vst [vmem:[#allocation1] ss:$4 sm:$0xff] %v8075_v53 }
  0x6a   : > { %743 = vst [vmem:[#allocation1 + $0x1] ss:$4 sm:$0xff] %v8082_v12  ;;  %v741_v12 = vld.sshfl [vmem:[#allocation1 + $0x20] sm:$0xff pattern:$0x73625140] }
  0x6b   : > { %14359 = vst [vmem:[#allocation53_spill] sm:$0xff] %v8103_v56  ;;  %7145 = vmatmul.msk.f32.gmra.mxu0 %vm825_vm8, %v741_v12 }
  0x6c   : > { %744 = vst [vmem:[#allocation1 + $0x2] ss:$4 sm:$0xff] %v8089_v5  ;;  %v525_v5 = vrot.slane %v523_v27, 2  ;;  %v8139_v27 = vsel %vm7856_vm7, %v528_v11, %v529_v36  ;;  %v8167_v36 = vrot.slane %v8128_v32, 6 }
  0x6d   : > { %14360 = vst [vmem:[#allocation54_spill] sm:$0xff] %v8110_v31 }
  0x6e   : > { %745 = vst [vmem:[#allocation1 + $0x3] ss:$4 sm:$0xff] %v8096_v25  ;;  %v535_v25 = vrot.slane %v14364_v49, 7  ;;  %v8135_v9 = vsel %vm7856_vm7, %v525_v5, %v526_v30  ;;  %v315_v49 = vld [vmem:[%s13825_s1] sm:$0xf] }
  0x6f   : > { %14361 = vst [vmem:[#allocation55_spill] sm:$0xff] %v8117_v45  ;;  %v8153_v5 = vld [vmem:[%s7841_s14 + $0x60] sm:$0xff]  ;;  %7543 = vmatpush.msk.msra.mxu1 %vm872_vm0, %v315_v49  ;;  %7163 = vmatpush.msk.msrb.mxu0 %vm872_vm0, %v315_v49  ;;  %v8183_v49 = vld [vmem:[%s7841_s14 + $0x70] sm:$0xf] }
  0x70   : > { %14362 = vst [vmem:[#allocation56_spill] sm:$0xff] %v8122_v55  ;;  %v8157_v30 = vsel %vm7856_vm7, %v534_v4, %v535_v25  ;;  %v8174_v25 = vrot.slane %v8153_v5, 4  ;;  %v8177_v11 = vrot.slane %v8153_v5, 6 }
  0x71   : > { %746 = vst [vmem:[#allocation1 + $0x20] ss:$4 sm:$0xff] %v8103_v56  ;;  %v8142_v56 = vrot.slane %v8128_v32, 2 }
  0x72   : > { %747 = vst [vmem:[#allocation1 + $0x21] ss:$4 sm:$0xff] %v8110_v31  ;;  %v557_v31 = vrot.slane %v8167_v36, 7  ;;  %v545_v44 = vrot.slane %v8177_v11, 7 }
  0x73   : > { %748 = vst [vmem:[#allocation1 + $0x22] ss:$4 sm:$0xff] %v8117_v45  ;;  %v551_v4 = vrot.slane %v8142_v56, 7 }
  0x74   : > { %14363 = vst [vmem:[#allocation57_spill] sm:$0xff] %v8128_v32  ;;  %v547_v0 = vrot.slane %v545_v44, 2  ;;  %v559_v20 = vrot.slane %v557_v31, 2 }
  0x75   : > { %749 = vst [vmem:[#allocation1 + $0x23] ss:$4 sm:$0xff] %v8122_v55  ;;  %v750_v45 = vld.sshfl [vmem:[#allocation1] sm:$0xff pattern:$0x73625140]  ;;  %v8147_v55 = vsel %vm7856_vm7, %v531_v47, %v532_v14  ;;  %v8171_v14 = vrot.slane %v8153_v5, 2 }
  0x76   : > { %14365 = vst [vmem:[#allocation58_spill] sm:$0xff] %v8135_v9  ;;  %v548_v47 = vrot.slane %v8128_v32, 7  ;;  %v553_v22 = vrot.slane %v551_v4, 2  ;;  %7146 = vmatmul.msk.f32.gmra.mxu0 %vm825_vm8, %v750_v45 }
  0x77   : > { %14366 = vst [vmem:[#allocation59_spill] sm:$0xff] %v8139_v27  ;;  %v539_v48 = vrot.slane %v8171_v14, 7 }
  0x78   : > { %14367 = vst [vmem:[#allocation60_spill] sm:$0xff] %v8142_v56  ;;  %v550_v53 = vrot.slane %v548_v47, 2 }
  0x79   : > { %14368 = vst [vmem:[#allocation61_spill] sm:$0xff] %v8147_v55  ;;  %v541_v60 = vrot.slane %v539_v48, 2 }
  0x7a   : > { %14369 = vst [vmem:[#allocation62_spill] sm:$0xff] %v8153_v5 }
  0x7b   : > { %14370 = vst [vmem:[#allocation63_spill] sm:$0xff] %v8157_v30 }
  0x7c   : > { %752 = vst [vmem:[#allocation1] ss:$4 sm:$0xff] %v8135_v9  ;;  %v554_v9 = vrot.slane %v8164_v6, 7  ;;  %v751_v51 = vld.sshfl [vmem:[#allocation1 + $0x20] sm:$0xff pattern:$0x73625140] }
  0x7d   : > { %753 = vst [vmem:[#allocation1 + $0x1] ss:$4 sm:$0xff] %v8139_v27  ;;  %v8186_v27 = vld [vmem:[%s7841_s14 + $0x78] sm:$0xff] }
  0x7e   : > { %14371 = vst [vmem:[#allocation64_spill] sm:$0xff] %v8164_v6  ;;  %v8203_v57 = vrot.slane %v8186_v27, 6  ;;  %v556_v37 = vrot.slane %v554_v9, 2  ;;  %7147 = vmatmul.msk.f32.gmra.mxu0 %vm825_vm8, %v751_v51 }
  0x7f   : > { %14372 = vst [vmem:[#allocation65_spill] sm:$0xff] %v8167_v36 }
  0x80   : > { %754 = vst [vmem:[#allocation1 + $0x2] ss:$4 sm:$0xff] %v8147_v55  ;;  %v7133_v55 = vrot.slane %v8153_v5, 9 }
  0x81   : > { %14373 = vst [vmem:[#allocation66_spill] sm:$0xff] %v8171_v14 }
  0x82   : > { %14374 = vst [vmem:[#allocation67_spill] sm:$0xff] %v8174_v25  ;;  %v8197_v17 = vsel %vm7856_vm7, %v7133_v55, %v539_v48  ;;  %v8217_v48 = vsel %vm7856_vm7, %v547_v0, %v548_v47  ;;  %v8233_v0 = vrot.slane %v8200_v61, 4 }
  0x83   : > { %14375 = vst [vmem:[#allocation68_spill] sm:$0xff] %v8177_v11  ;;  %v8221_v11 = vsel %vm7856_vm7, %v550_v53, %v551_v4 }
  0x84   : > { %755 = vst [vmem:[#allocation1 + $0x3] ss:$4 sm:$0xff] %v8157_v30  ;;  %v542_v30 = vrot.slane %v8174_v25, 7 }
  0x85   : > { %14376 = vst [vmem:[#allocation69_spill] sm:$0xff] %v8183_v49 }
  0x86   : > { %14377 = vst [vmem:[#allocation70_spill] sm:$0xff] %v8186_v27  ;;  %v544_v13 = vrot.slane %v542_v30, 2  ;;  %v8209_v12 = vsel %vm7856_vm7, %v541_v60, %v542_v30  ;;  %v8229_v60 = vsel %vm7856_vm7, %v553_v22, %v554_v9  ;;  %v13895_v22 = vrot.slane %v8203_v57, 7  ;;  %v8259_v30 = vld [vmem:[%s7841_s14 + $0x90] sm:$0xff] }
  0x87   : > { %14378 = vst [vmem:[#allocation71_spill] sm:$0xff] %v8197_v17  ;;  %v576_v9 = vrot.slane %v8200_v61, 7 }
  0x88   : > { %14379 = vst [vmem:[#allocation72_spill] sm:$0xff] %v8200_v61  ;;  %v8213_v55 = vsel %vm7856_vm7, %v544_v13, %v545_v44  ;;  %v8237_v13 = vsel %vm7856_vm7, %v556_v37, %v557_v31  ;;  %v14389_v44 = vrot.slane %v8183_v49, 7  ;;  %v579_v37 = vrot.slane %v8225_v24, 7 }
  0x89   : > { %14380 = vst [vmem:[#allocation73_spill] sm:$0xff] %v8203_v57  ;;  %v8254_v31 = vrot.slane %v8200_v61, 6  ;;  %v575_v45 = vrot.slane %v13895_v22, 2  ;;  %v578_v47 = vrot.slane %v576_v9, 2 }
  0x8a   : > { %756 = vst [vmem:[#allocation1 + $0x20] ss:$4 sm:$0xff] %v8197_v17  ;;  %v8244_v53 = vsel %vm7856_vm7, %v559_v20, %v14389_v44  ;;  %v582_v20 = vrot.slane %v8233_v0, 7  ;;  %v581_v4 = vrot.slane %v579_v37, 2  ;;  %v8264_v44 = vld [vmem:[%s7841_s14 + $0x98] sm:$0xff] }
  0x8b   : > { %14381 = vst [vmem:[#allocation74_spill] sm:$0xff] %v8209_v12  ;;  %v760_v18 = vld.sshfl [vmem:[#allocation1] sm:$0xff pattern:$0x73625140]  ;;  %v8280_v22 = vsel %vm7856_vm7, %v578_v47, %v579_v37 }
  0x8c   : > { %14382 = vst [vmem:[#allocation75_spill] sm:$0xff] %v8213_v55  ;;  %v8287_v17 = vsel %vm7856_vm7, %v581_v4, %v582_v20  ;;  %7148 = vmatmul.msk.f32.gmra.mxu0 %vm825_vm8, %v760_v18 }
  0x8d   : > { %14383 = vst [vmem:[#allocation76_spill] sm:$0xff] %v8217_v48 }
  0x8e   : > { %14384 = vst [vmem:[#allocation77_spill] sm:$0xff] %v8221_v11 }
  0x8f   : > { %757 = vst [vmem:[#allocation1 + $0x21] ss:$4 sm:$0xff] %v8209_v12  ;;  %v14400_v12 = vrot.slane %v8254_v31, 7 }
  0x90   : > { %14385 = vst [vmem:[#allocation78_spill] sm:$0xff] %v8225_v24  ;;  %v14429_v24 = vrot.slane %v8183_v49, 7 }
  0x91   : > { %14386 = vst [vmem:[#allocation79_spill] sm:$0xff] %v8229_v60 }
  0x92   : > { %758 = vst [vmem:[#allocation1 + $0x22] ss:$4 sm:$0xff] %v8213_v55  ;;  %v562_v61 = vrot.slane %v14429_v24, 2 }
  0x93   : > { %14387 = vst [vmem:[#allocation80_spill] sm:$0xff] %v8233_v0 }
  0x94   : > { %14388 = vst [vmem:[#allocation81_spill] sm:$0xff] %v8237_v13 }
  0x95   : > { %759 = vst [vmem:[#allocation1 + $0x23] ss:$4 sm:$0xff] %v8217_v48  ;;  %v8283_v48 = vrot.slane %v8264_v44, 2 }
  0x96   : > { %14390 = vst [vmem:[#allocation82_spill] sm:$0xff] %v8244_v53 }
  0x97   : > { %762 = vst [vmem:[#allocation1] ss:$4 sm:$0xff] %v8221_v11  ;;  %v8271_v11 = vrot.slane %v8259_v30, 6  ;;  %v607_v47 = vrot.slane %v8283_v48, 7 }
  0x98   : > { %763 = vst [vmem:[#allocation1 + $0x1] ss:$4 sm:$0xff] %v8229_v60  ;;  %v8267_v60 = vrot.slane %v8259_v30, 4 }
  0x99   : > { %764 = vst [vmem:[#allocation1 + $0x2] ss:$4 sm:$0xff] %v8237_v13  ;;  %v584_v13 = vrot.slane %v582_v20, 2  ;;  %v601_v37 = vrot.slane %v8271_v11, 7  ;;  %v8302_v20 = vrot.slane %v8264_v44, 4 }
  0x9a   : > { %14391 = vst [vmem:[#allocation83_spill] sm:$0xff] %v8254_v31  ;;  %v13916_v51 = vrot.slane %v8267_v60, 7 }
  0x9b   : > { %765 = vst [vmem:[#allocation1 + $0x3] ss:$4 sm:$0xff] %v8244_v53  ;;  %v8275_v53 = vsel %vm7856_vm7, %v575_v45, %v576_v9  ;;  %v8293_v9 = vsel %vm7856_vm7, %v584_v13, %v14400_v12  ;;  %v604_v45 = vrot.slane %v8264_v44, 7  ;;  %v8307_v12 = vld [vmem:[%s7841_s14 + $0xa8] sm:$0xff]  ;;  %v603_v4 = vrot.slane %v601_v37, 2 }
  0x9c   : > { %14392 = vst [vmem:[#allocation84_spill] sm:$0xff] %v8259_v30  ;;  %v600_v13 = vrot.slane %v13916_v51, 2  ;;  %v8317_v14 = vrot.slane %v8307_v12, 4  ;;  %v8324_v5 = vrot.slane %v8307_v12, 6 }
  0x9d   : > { %14393 = vst [vmem:[#allocation85_spill] sm:$0xff] %v8264_v44  ;;  %v8328_v18 = vsel %vm7856_vm7, %v603_v4, %v604_v45 }
  0x9e   : > { %14394 = vst [vmem:[#allocation86_spill] sm:$0xff] %v8267_v60 }
  0x9f   : > { %14395 = vst [vmem:[#allocation87_spill] sm:$0xff] %v8271_v11  ;;  %v14411_v11 = vrot.slane %v8302_v20, 7 }
  0xa0   : > { %14396 = vst [vmem:[#allocation88_spill] sm:$0xff] %v8275_v53 }
  0xa1   : > { %14397 = vst [vmem:[#allocation89_spill] sm:$0xff] %v8280_v22 }
  0xa2   : > { %14398 = vst [vmem:[#allocation90_spill] sm:$0xff] %v8283_v48  ;;  %v770_v55 = vld.sshfl [vmem:[#allocation1] sm:$0xff pattern:$0x73625140]  ;;  %v8337_v48 = vld [vmem:[%s7841_s14 + $0xb0] sm:$0xff] }
  0xa3   : > { %14399 = vst [vmem:[#allocation91_spill] sm:$0xff] %v8287_v17  ;;  %v8352_v4 = vrot.slane %v8337_v48, 2  ;;  %v632_v26 = vrot.slane %v8337_v48, 7 }
  0xa4   : > { %14401 = vst [vmem:[#allocation92_spill] sm:$0xff] %v8293_v9 }
  0xa5   : > { %772 = vst [vmem:[#allocation1] ss:$4 sm:$0xff] %v8275_v53  ;;  %v8313_v53 = vrot.slane %v8307_v12, 2 }
  0xa6   : > { %773 = vst [vmem:[#allocation1 + $0x1] ss:$4 sm:$0xff] %v8280_v22  ;;  %v606_v22 = vrot.slane %v604_v45, 2  ;;  %v626_v45 = vrot.slane %v8317_v14, 7 }
  0xa7   : > { %774 = vst [vmem:[#allocation1 + $0x2] ss:$4 sm:$0xff] %v8287_v17  ;;  %v609_v17 = vrot.slane %v607_v47, 2 }
  0xa8   : > { %14402 = vst [vmem:[#allocation93_spill] sm:$0xff] %v8302_v20  ;;  %v8332_v51 = vsel %vm7856_vm7, %v606_v22, %v607_v47  ;;  %v629_v22 = vrot.slane %v8324_v5, 7  ;;  %v761_v47 = vld.sshfl [vmem:[#allocation1 + $0x20] sm:$0xff pattern:$0x73625140] }
  0xa9   : > { %775 = vst [vmem:[#allocation1 + $0x3] ss:$4 sm:$0xff] %v8293_v9  ;;  %v8321_v9 = vsel %vm7856_vm7, %v600_v13, %v601_v37  ;;  %v8343_v37 = vsel %vm7856_vm7, %v609_v17, %v14411_v11  ;;  %v13935_v13 = vrot.slane %v8313_v53, 7  ;;  %7149 = vmatmul.msk.f32.gmra.mxu0 %vm825_vm8, %v761_v47  ;;  %v8360_v11 = vld [vmem:[%s7841_s14 + $0xc0] sm:$0xff] }
  0xaa   : > { %14403 = vst [vmem:[#allocation94_spill] sm:$0xff] %v8307_v12  ;;  %v8371_v47 = vrot.slane %v8360_v11, 4 }
  0xab   : > { %14404 = vst [vmem:[#allocation95_spill] sm:$0xff] %v8313_v53  ;;  %v625_v17 = vrot.slane %v13935_v13, 2 }
  0xac   : > { %14405 = vst [vmem:[#allocation96_spill] sm:$0xff] %v8317_v14 }
  0xad   : > { %14406 = vst [vmem:[#allocation97_spill] sm:$0xff] %v8321_v9  ;;  %v8368_v29 = vsel %vm7856_vm7, %v625_v17, %v626_v45 }
  0xae   : > { %14407 = vst [vmem:[#allocation98_spill] sm:$0xff] %v8324_v5  ;;  %v634_v5 = vrot.slane %v632_v26, 2 }
  0xaf   : > { %14408 = vst [vmem:[#allocation99_spill] sm:$0xff] %v8328_v18 }
  0xb0   : > { %14409 = vst [vmem:[#allocation100_spill] sm:$0xff] %v8332_v51  ;;  %v8334_v25 = vld.sshfl [vmem:[#allocation1] sm:$0xff pattern:$0x73625140] }
  0xb1   : > { %14410 = vst [vmem:[#allocation101_spill] sm:$0xff] %v8337_v48  ;;  %7150 = vmatmul.msk.f32.gmra.mxu0 %vm825_vm8, %v770_v55  ;;  %v8408_v55 = vrot.slane %v8186_v27, 4 }
  0xb2   : > { %14412 = vst [vmem:[#allocation102_spill] sm:$0xff] %v8343_v37 }
  0xb3   : > { %782 = vst [vmem:[#allocation1] ss:$4 sm:$0xff] %v8321_v9  ;;  %v631_v9 = vrot.slane %v629_v22, 2  ;;  %v570_v7 = vrot.slane %v8408_v55, 7 }
  0xb4   : > { %783 = vst [vmem:[#allocation1 + $0x1] ss:$4 sm:$0xff] %v8328_v18  ;;  %v628_v18 = vrot.slane %v626_v45, 2  ;;  %v14421_v45 = vrot.slane %v8352_v4, 7 }
  0xb5   : > { %784 = vst [vmem:[#allocation1 + $0x2] ss:$4 sm:$0xff] %v8332_v51  ;;  %v8364_v51 = vrot.slane %v8360_v11, 2  ;;  %v8382_v14 = vsel %vm7856_vm7, %v631_v9, %v632_v26  ;;  %v654_v26 = vrot.slane %v8371_v47, 7 }
  0xb6   : > { %14413 = vst [vmem:[#allocation103_spill] sm:$0xff] %v8352_v4  ;;  %v8375_v13 = vsel %vm7856_vm7, %v628_v18, %v629_v22  ;;  %v8390_v17 = vsel %vm7856_vm7, %v634_v5, %v14421_v45  ;;  %v8401_v22 = vld [vmem:[%s7841_s14 + $0xc8] sm:$0xff]  ;;  %v7137_v5 = vrot.slane %v8360_v11, 9  ;;  %v8405_v45 = vrot.slane %v8186_v27, 2 }
  0xb7   : > { %785 = vst [vmem:[#allocation1 + $0x3] ss:$4 sm:$0xff] %v8343_v37  ;;  %v8378_v37 = vrot.slane %v8360_v11, 6  ;;  %v651_v18 = vrot.slane %v8364_v51, 7 }
  0xb8   : > { %14414 = vst [vmem:[#allocation104_spill] sm:$0xff] %v8360_v11  ;;  %v8418_v11 = vld [vmem:[%s7841_s14 + $0xd0] sm:$0xf] }
  0xb9   : > { %14415 = vst [vmem:[#allocation105_spill] sm:$0xff] %v8364_v51  ;;  %v657_v9 = vrot.slane %v8378_v37, 7  ;;  %v8422_v0 = vsel %vm7856_vm7, %v7137_v5, %v651_v18 }
  0xba   : > { %14416 = vst [vmem:[#allocation106_spill] sm:$0xff] %v8368_v29 }
  0xbb   : > { %14417 = vst [vmem:[#allocation107_spill] sm:$0xff] %v8371_v47  ;;  %v656_v47 = vrot.slane %v654_v26, 2  ;;  %v659_v51 = vrot.slane %v657_v9, 2 }
  0xbc   : > { %14418 = vst [vmem:[#allocation108_spill] sm:$0xff] %v8375_v13 }
  0xbd   : > { %14419 = vst [vmem:[#allocation109_spill] sm:$0xff] %v8378_v37  ;;  %v567_v37 = vrot.slane %v8405_v45, 7 }
  0xbe   : > { %14420 = vst [vmem:[#allocation110_spill] sm:$0xff] %v8382_v14  ;;  %v8384_v28 = vld.sshfl [vmem:[#allocation1] sm:$0xff pattern:$0x73625140] }
  0xbf   : > { %14422 = vst [vmem:[#allocation111_spill] sm:$0xff] %v8390_v17  ;;  %v569_v5 = vrot.slane %v567_v37, 2 }
  0xc0   : > { %792 = vst [vmem:[#allocation1] ss:$4 sm:$0xff] %v8368_v29  ;;  %v8411_v29 = vld [vmem:[%s7841_s14 + $0xd8] sm:$0xff] }
  0xc1   : > { %793 = vst [vmem:[#allocation1 + $0x1] ss:$4 sm:$0xff] %v8375_v13  ;;  %v653_v13 = vrot.slane %v651_v18, 2  ;;  %v8429_v15 = vrot.slane %v8411_v29, 2  ;;  %v8441_v18 = vsel %vm7856_vm7, %v656_v47, %v657_v9 }
  0xc2   : > { %794 = vst [vmem:[#allocation1 + $0x2] ss:$4 sm:$0xff] %v8382_v14  ;;  %v13972_v14 = vrot.slane %v8183_v49, 2  ;;  %v14434_v49 = vrot.slane %v8401_v22, 7 }
  0xc3   : > { %795 = vst [vmem:[#allocation1 + $0x3] ss:$4 sm:$0xff] %v8390_v17  ;;  %v8433_v17 = vsel %vm7856_vm7, %v653_v13, %v654_v26  ;;  %v679_v9 = vrot.slane %v8429_v15, 7 }
  0xc4   : > { %14423 = vst [vmem:[#allocation112_spill] sm:$0xff] %v8401_v22  ;;  %v563_v23 = vrot.slane %v13972_v14, 7  ;;  %v8450_v13 = vsel %vm7856_vm7, %v659_v51, %v14434_v49  ;;  %v8462_v14 = vld [vmem:[%s7841_s14 + $0x88] sm:$0xf]  ;;  %v8469_v51 = vrot.slane %v8411_v29, 6 }
  0xc5   : > { %14424 = vst [vmem:[#allocation113_spill] sm:$0xff] %v8405_v45  ;;  %v8437_v45 = vrot.slane %v8411_v29, 4 }
  0xc6   : > { %14425 = vst [vmem:[#allocation114_spill] sm:$0xff] %v8408_v55  ;;  %v7134_v55 = vrot.slane %v8186_v27, 9  ;;  %v572_v27 = vrot.slane %v570_v7, 2  ;;  %v8457_v47 = vsel %vm7856_vm7, %v562_v61, %v563_v23  ;;  %v8474_v61 = vrot.slane %v8259_v30, 2 }
  0xc7   : > { %14426 = vst [vmem:[#allocation115_spill] sm:$0xff] %v8411_v29  ;;  %v682_v26 = vrot.slane %v8437_v45, 7  ;;  %v8478_v23 = vsel %vm7856_vm7, %v569_v5, %v570_v7  ;;  %v7138_v7 = vrot.slane %v8411_v29, 9  ;;  %v8512_v29 = vld [vmem:[%s7841_s14 + $0xe8] sm:$0xf] }
  0xc8   : > { %14427 = vst [vmem:[#allocation116_spill] sm:$0xff] %v8418_v11  ;;  %v8466_v49 = vsel %vm7856_vm7, %v7134_v55, %v567_v37  ;;  %v14444_v55 = vrot.slane %v8418_v11, 2 }
  0xc9   : > { %14428 = vst [vmem:[#allocation117_spill] sm:$0xff] %v8422_v0 }
  0xca   : > { %14430 = vst [vmem:[#allocation118_spill] sm:$0xff] %v8429_v15  ;;  %v8443_v24 = vld.sshfl [vmem:[#allocation1] sm:$0xff pattern:$0x73625140]  ;;  %v14445_v15 = vrot.slane %v8203_v57, 7  ;;  %v684_v57 = vrot.slane %v682_v26, 2 }
  0xcb   : > { %14431 = vst [vmem:[#allocation119_spill] sm:$0xff] %v8433_v17 }
  0xcc   : > { %14432 = vst [vmem:[#allocation120_spill] sm:$0xff] %v8437_v45  ;;  %v588_v45 = vrot.slane %v8462_v14, 7 }
  0xcd   : > { %14433 = vst [vmem:[#allocation121_spill] sm:$0xff] %v8441_v18 }
  0xce   : > { %14435 = vst [vmem:[#allocation122_spill] sm:$0xff] %v8450_v13  ;;  %v590_v16 = vrot.slane %v588_v45, 2 }
  0xcf   : > { %802 = vst [vmem:[#allocation1] ss:$4 sm:$0xff] %v8422_v0  ;;  %v675_v0 = vrot.slane %v14444_v55, 7 }
  0xd0   : > { %803 = vst [vmem:[#allocation1 + $0x1] ss:$4 sm:$0xff] %v8433_v17  ;;  %v14443_v17 = vrot.slane %v8418_v11, 7 }
  0xd1   : > { %14436 = vst [vmem:[#allocation123_spill] sm:$0xff] %v8457_v47 }
  0xd2   : > { %804 = vst [vmem:[#allocation1 + $0x2] ss:$4 sm:$0xff] %v8441_v18  ;;  %v8481_v18 = vld [vmem:[%s7841_s14 + $0xe0] sm:$0xff]  ;;  %v674_v37 = vrot.slane %v14443_v17, 2  ;;  %v681_v17 = vrot.slane %v679_v9, 2 }
  0xd3   : > { %14437 = vst [vmem:[#allocation124_spill] sm:$0xff] %v8462_v14  ;;  %v8500_v55 = vrot.slane %v8481_v18, 6 }
  0xd4   : > { %14438 = vst [vmem:[#allocation125_spill] sm:$0xff] %v8466_v49  ;;  %v8507_v5 = vsel %vm7856_vm7, %v674_v37, %v675_v0  ;;  %v7135_v37 = vrot.slane %v8259_v30, 9 }
  0xd5   : > { %14439 = vst [vmem:[#allocation126_spill] sm:$0xff] %v8469_v51 }
  0xd6   : > { %805 = vst [vmem:[#allocation1 + $0x3] ss:$4 sm:$0xff] %v8450_v13  ;;  %v8491_v13 = vsel %vm7856_vm7, %v572_v27, %v14445_v15  ;;  %v595_v27 = vrot.slane %v8474_v61, 7  ;;  %v14452_v15 = vrot.slane %v8462_v14, 2 }
  0xd7   : > { %14440 = vst [vmem:[#allocation127_spill] sm:$0xff] %v8474_v61 }
  0xd8   : > { %14441 = vst [vmem:[#allocation128_spill] sm:$0xff] %v8478_v23  ;;  %v591_v61 = vrot.slane %v14452_v15, 7  ;;  %v8556_v15 = vsel %vm7856_vm7, %v7135_v37, %v595_v27 }
  0xd9   : > { %14442 = vst [vmem:[#allocation129_spill] sm:$0xff] %v8481_v18 }
  0xda   : > { %14446 = vst [vmem:[#allocation130_spill] sm:$0xff] %v8491_v13 }
  0xdb   : > { %766 = vst [vmem:[#allocation1 + $0x20] ss:$4 sm:$0xff] %v8457_v47  ;;  %v14449_v47 = vrot.slane %v8254_v31, 7 }
  0xdc   : > { %767 = vst [vmem:[#allocation1 + $0x21] ss:$4 sm:$0xff] %v8466_v49 }
  0xdd   : > { %768 = vst [vmem:[#allocation1 + $0x22] ss:$4 sm:$0xff] %v8478_v23  ;;  %v587_v49 = vrot.slane %v14449_v47, 2  ;;  %v8516_v23 = vsel %vm7856_vm7, %v7138_v7, %v679_v9  ;;  %v8524_v0 = vld.sshfl [vmem:[#allocation1] sm:$0xff pattern:$0x73625140] }
  0xde   : > { %14447 = vst [vmem:[#allocation131_spill] sm:$0xff] %v8500_v55  ;;  %v14454_v47 = vrot.slane %v8469_v51, 7  ;;  %v597_v7 = vrot.slane %v595_v27, 2 }
  0xdf   : > { %769 = vst [vmem:[#allocation1 + $0x23] ss:$4 sm:$0xff] %v8491_v13  ;;  %v8522_v13 = vsel %vm7856_vm7, %v681_v17, %v682_v26  ;;  %v700_v26 = vrot.slane %v8512_v29, 7  ;;  %v8539_v17 = vrot.slane %v8264_v44, 6  ;;  %v8543_v30 = vsel %vm7856_vm7, %v587_v49, %v588_v45 }
  0xe0   : > { %14448 = vst [vmem:[#allocation132_spill] sm:$0xff] %v8507_v5  ;;  %v8531_v31 = vsel %vm7856_vm7, %v684_v57, %v14454_v47  ;;  %v8547_v57 = vld [vmem:[%s7841_s14 + $0xa0] sm:$0xf]  ;;  %v8551_v47 = vsel %vm7856_vm7, %v590_v16, %v591_v61  ;;  %v14462_v45 = vrot.slane %v8267_v60, 7  ;;  %v14464_v61 = vrot.slane %v8512_v29, 2 }
  0xe1   : > { %14450 = vst [vmem:[#allocation133_spill] sm:$0xff] %v8512_v29  ;;  %v702_v16 = vrot.slane %v700_v26, 2  ;;  %v613_v27 = vrot.slane %v8539_v17, 7  ;;  %v616_v37 = vrot.slane %v8547_v57, 7 }
  0xe2   : > { %14451 = vst [vmem:[#allocation134_spill] sm:$0xff] %v8516_v23  ;;  %v8564_v49 = vsel %vm7856_vm7, %v597_v7, %v14462_v45 }
  0xe3   : > { %14453 = vst [vmem:[#allocation135_spill] sm:$0xff] %v8522_v13 }
  0xe4   : > { %14455 = vst [vmem:[#allocation136_spill] sm:$0xff] %v8531_v31 }
  0xe5   : > { %812 = vst [vmem:[#allocation1] ss:$4 sm:$0xff] %v8507_v5 }
  0xe6   : > { %813 = vst [vmem:[#allocation1 + $0x1] ss:$4 sm:$0xff] %v8516_v23  ;;  %v771_v9 = vld.sshfl [vmem:[#allocation1 + $0x20] sm:$0xff pattern:$0x73625140]  ;;  %v14461_v23 = vrot.slane %v8500_v55, 7 }
  0xe7   : > { %14456 = vst [vmem:[#allocation137_spill] sm:$0xff] %v8539_v17  ;;  %7151 = vmatmul.msk.f32.gmra.mxu0 %vm825_vm8, %v771_v9  ;;  %v14466_v9 = vrot.slane %v8302_v20, 7 }
  0xe8   : > { %14457 = vst [vmem:[#allocation138_spill] sm:$0xff] %v8543_v30  ;;  %v699_v5 = vrot.slane %v14461_v23, 2 }
  0xe9   : > { %814 = vst [vmem:[#allocation1 + $0x2] ss:$4 sm:$0xff] %v8522_v13  ;;  %v612_v45 = vrot.slane %v14466_v9, 2  ;;  %v615_v13 = vrot.slane %v613_v27, 2 }
  0xea   : > { %14458 = vst [vmem:[#allocation139_spill] sm:$0xff] %v8547_v57  ;;  %v8578_v7 = vsel %vm7856_vm7, %v699_v5, %v700_v26  ;;  %v7136_v5 = vrot.slane %v8307_v12, 9  ;;  %v8594_v26 = vrot.slane %v8337_v48, 4 }
  0xeb   : > { %14459 = vst [vmem:[#allocation140_spill] sm:$0xff] %v8551_v47 }
  0xec   : > { %815 = vst [vmem:[#allocation1 + $0x3] ss:$4 sm:$0xff] %v8531_v31  ;;  %v703_v31 = vrot.slane %v14464_v61, 7 }
  0xed   : > { %14460 = vst [vmem:[#allocation141_spill] sm:$0xff] %v8556_v15 }
  0xee   : > { %14463 = vst [vmem:[#allocation142_spill] sm:$0xff] %v8564_v49  ;;  %v8584_v61 = vsel %vm7856_vm7, %v702_v16, %v703_v31  ;;  %v8598_v31 = vsel %vm7856_vm7, %v612_v45, %v613_v27  ;;  %v8603_v16 = vrot.slane %v8337_v48, 6  ;;  %v14475_v27 = vrot.slane %v8313_v53, 7 }
  0xef   : > { %776 = vst [vmem:[#allocation1 + $0x20] ss:$4 sm:$0xff] %v8543_v30  ;;  %v618_v30 = vrot.slane %v616_v37, 2  ;;  %7152 = vmatmul.msk.f32.gmra.mxu0 %vm825_vm8, %v8334_v25  ;;  %v638_v25 = vrot.slane %v8594_v26, 7 }
  0xf0   : > { %777 = vst [vmem:[#allocation1 + $0x21] ss:$4 sm:$0xff] %v8551_v47  ;;  %v8620_v45 = vsel %vm7856_vm7, %v7136_v5, %v14475_v27  ;;  %v14477_v5 = vrot.slane %v8352_v4, 7 }
  0xf1   : > { %778 = vst [vmem:[#allocation1 + $0x22] ss:$4 sm:$0xff] %v8556_v15  ;;  %v14468_v15 = vrot.slane %v8547_v57, 2 }
  0xf2   : > { %779 = vst [vmem:[#allocation1 + $0x23] ss:$4 sm:$0xff] %v8564_v49  ;;  %v637_v27 = vrot.slane %v14477_v5, 2  ;;  %v8645_v5 = vrot.slane %v8401_v22, 2 }
  0xf3   : > { %14465 = vst [vmem:[#allocation143_spill] sm:$0xff] %v8578_v7  ;;  %v8586_v23 = vld.sshfl [vmem:[#allocation1] sm:$0xff pattern:$0x73625140]  ;;  %v619_v47 = vrot.slane %v14468_v15, 7  ;;  %v8607_v15 = vsel %vm7856_vm7, %v615_v13, %v616_v37  ;;  %v641_v13 = vrot.slane %v8603_v16, 7 }
  0xf4   : > { %14467 = vst [vmem:[#allocation144_spill] sm:$0xff] %v8584_v61 }
  0xf5   : > { %822 = vst [vmem:[#allocation1] ss:$4 sm:$0xff] %v8578_v7  ;;  %v8611_v9 = vsel %vm7856_vm7, %v618_v30, %v619_v47  ;;  %v8614_v7 = vld [vmem:[%s7841_s14 + $0xb8] sm:$0xf]  ;;  %v14479_v30 = vrot.slane %v7844_v1, 4 }
  0xf6   : > { %823 = vst [vmem:[#allocation1 + $0x1] ss:$4 sm:$0xff] %v8584_v61  ;;  %v644_v47 = vrot.slane %v8614_v7, 7 }
  0xf7   : > { %14469 = vst [vmem:[#allocation145_spill] sm:$0xff] %v8594_v26  ;;  %v14481_v26 = vrot.slane %v7844_v1, 6 }
  0xf8   : > { %14470 = vst [vmem:[#allocation146_spill] sm:$0xff] %v8598_v31  ;;  %v646_v49 = vrot.slane %v644_v47, 2 }
  0xf9   : > { %14471 = vst [vmem:[#allocation147_spill] sm:$0xff] %v8603_v16  ;;  %v781_v61 = vld.sshfl [vmem:[#allocation1 + $0x20] sm:$0xff pattern:$0x73625140] }
  0xfa   : > { %14472 = vst [vmem:[#allocation148_spill] sm:$0xff] %v8607_v15  ;;  %7153 = vmatmul.msk.f32.gmra.mxu0 %vm825_vm8, %v781_v61  ;;  %v8649_v61 = vsel %vm7856_vm7, %v637_v27, %v638_v25 }
  0xfb   : > { %14473 = vst [vmem:[#allocation149_spill] sm:$0xff] %v8611_v9 }
  0xfc   : > { %14474 = vst [vmem:[#allocation150_spill] sm:$0xff] %v8614_v7 }
  0xfd   : > { %14476 = vst [vmem:[#allocation151_spill] sm:$0xff] %v8620_v45  ;;  %v8630_v37 = vld.sshfl [vmem:[#allocation1] sm:$0xff pattern:$0x73625140] }
  0xfe   : > { %786 = vst [vmem:[#allocation1 + $0x20] ss:$4 sm:$0xff] %v8598_v31  ;;  %v640_v31 = vrot.slane %v638_v25, 2  ;;  %v663_v25 = vrot.slane %v8645_v5, 7 }
  0xff   : > { %787 = vst [vmem:[#allocation1 + $0x21] ss:$4 sm:$0xff] %v8607_v15  ;;  %v14478_v15 = vrot.slane %v7844_v1, 2 }
 0x100   : > { %788 = vst [vmem:[#allocation1 + $0x22] ss:$4 sm:$0xff] %v8611_v9  ;;  %v643_v9 = vrot.slane %v641_v13, 2 }
 0x101   : > { %789 = vst [vmem:[#allocation1 + $0x23] ss:$4 sm:$0xff] %v8620_v45  ;;  %v14480_v45 = vrot.slane %v8614_v7, 2  ;;  %v8659_v7 = vrot.slane %v8401_v22, 6 }
 0x102   : > { %962 = vst [vmem:[#allocation1] ss:$4 sm:$0xff] %v7844_v1  ;;  %7154 = vmatmul.msk.f32.gmra.mxu0 %vm825_vm8, %v8384_v28 }
 0x103   : > { %964 = vst [vmem:[#allocation1 + $0x1] ss:$4 sm:$0xff] %v14478_v15  ;;  %v647_v16 = vrot.slane %v14480_v45, 7  ;;  %v8652_v15 = vrot.slane %v8401_v22, 4 }
 0x104   : > { %966 = vst [vmem:[#allocation1 + $0x2] ss:$4 sm:$0xff] %v14479_v30  ;;  %v8656_v30 = vsel %vm7856_vm7, %v640_v31, %v641_v13 }
 0x105   : > { %968 = vst [vmem:[#allocation1 + $0x3] ss:$4 sm:$0xff] %v14481_v26  ;;  %v8663_v26 = vsel %vm7856_vm7, %v643_v9, %v644_v47  ;;  %v8667_v1 = vsel %vm7856_vm7, %v646_v49, %v647_v16  ;;  %v666_v31 = vrot.slane %v8652_v15, 7  ;;  %v669_v9 = vrot.slane %v8659_v7, 7 }
 0x106   : > { %14482 = vst [vmem:[#allocation152_spill] sm:$0xff] %v8645_v5  ;;  %v14489_v49 = vrot.slane %v8401_v22, 7  ;;  %v665_v47 = vrot.slane %v663_v25, 2 }
 0x107   : > { %14483 = vst [vmem:[#allocation153_spill] sm:$0xff] %v8649_v61  ;;  %v668_v27 = vrot.slane %v666_v31, 2 }
 0x108   : > { %14484 = vst [vmem:[#allocation154_spill] sm:$0xff] %v8652_v15  ;;  %v791_v45 = vld.sshfl [vmem:[#allocation1 + $0x20] sm:$0xff pattern:$0x73625140]  ;;  %v662_v16 = vrot.slane %v14489_v49, 2  ;;  %v8695_v49 = vsel %vm7856_vm7, %v665_v47, %v666_v31  ;;  %v688_v31 = vrot.slane %v8481_v18, 7 }
 0x109   : > { %14485 = vst [vmem:[#allocation155_spill] sm:$0xff] %v8656_v30 }
 0x10a   : > { %14486 = vst [vmem:[#allocation156_spill] sm:$0xff] %v8659_v7  ;;  %v8688_v28 = vsel %vm7856_vm7, %v662_v16, %v663_v25  ;;  %7155 = vmatmul.msk.f32.gmra.mxu0 %vm825_vm8, %v791_v45  ;;  %v14495_v25 = vrot.slane %v8418_v11, 7 }
 0x10b   : > { %14487 = vst [vmem:[#allocation157_spill] sm:$0xff] %v8663_v26 }
 0x10c   : > { %14488 = vst [vmem:[#allocation158_spill] sm:$0xff] %v8667_v1  ;;  %v8678_v13 = vld.sshfl [vmem:[#allocation1] sm:$0xff pattern:$0x73625140] }
 0x10d   : > { %796 = vst [vmem:[#allocation1 + $0x20] ss:$4 sm:$0xff] %v8649_v61  ;;  %v671_v61 = vrot.slane %v669_v9, 2 }
 0x10e   : > { %797 = vst [vmem:[#allocation1 + $0x21] ss:$4 sm:$0xff] %v8656_v30  ;;  %v8702_v30 = vsel %vm7856_vm7, %v668_v27, %v669_v9  ;;  %v14497_v27 = vrot.slane %v8469_v51, 7 }
 0x10f   : > { %798 = vst [vmem:[#allocation1 + $0x22] ss:$4 sm:$0xff] %v8663_v26  ;;  %v8698_v26 = vrot.slane %v8481_v18, 4  ;;  %v8709_v16 = vsel %vm7856_vm7, %v671_v61, %v14495_v25  ;;  %v690_v61 = vrot.slane %v688_v31, 2 }
 0x110   : > { %799 = vst [vmem:[#allocation1 + $0x23] ss:$4 sm:$0xff] %v8667_v1  ;;  %v8691_v1 = vrot.slane %v8481_v18, 2 }
 0x111   : > { %979 = vst [vmem:[#allocation1] ss:$4 sm:$0xff] %v7850_v3  ;;  %v694_v9 = vrot.slane %v8698_v26, 7 }
 0x112   : > { %980 = vst [vmem:[#allocation1 + $0x1] ss:$4 sm:$0xff] %v7878_v21  ;;  %v691_v47 = vrot.slane %v8691_v1, 7  ;;  %7156 = vmatmul.msk.f32.gmra.mxu0 %vm825_vm8, %v8443_v24 }
 0x113   : > { %981 = vst [vmem:[#allocation1 + $0x2] ss:$4 sm:$0xff] %v7891_v33 }
 0x114   : > { %982 = vst [vmem:[#allocation1 + $0x3] ss:$4 sm:$0xff] %v7896_v35  ;;  %v687_v35 = vrot.slane %v14497_v27, 2  ;;  %v693_v25 = vrot.slane %v691_v47, 2 }
 0x115   : > { %14490 = vst [vmem:[#allocation159_spill] sm:$0xff] %v8688_v28 }
 0x116   : > { %14491 = vst [vmem:[#allocation160_spill] sm:$0xff] %v8691_v1  ;;  %v8737_v27 = vsel %vm7856_vm7, %v693_v25, %v694_v9  ;;  %v14507_v25 = vld [vmem:[#allocation22_spill] sm:$0xff] }
 0x117   : > { %14492 = vst [vmem:[#allocation161_spill] sm:$0xff] %v8695_v49  ;;  %v801_v33 = vld.sshfl [vmem:[#allocation1 + $0x20] sm:$0xff pattern:$0x73625140] }
 0x118   : > { %14493 = vst [vmem:[#allocation162_spill] sm:$0xff] %v8698_v26 }
 0x119   : > { %14494 = vst [vmem:[#allocation163_spill] sm:$0xff] %v8702_v30 }
 0x11a   : > { %14496 = vst [vmem:[#allocation164_spill] sm:$0xff] %v8709_v16  ;;  %7157 = vmatmul.msk.f32.gmra.mxu0 %vm825_vm8, %v801_v33  ;;  %v14505_v33 = vrot.slane %v7847_v2, 6 }
 0x11b   : > { %806 = vst [vmem:[#allocation1 + $0x20] ss:$4 sm:$0xff] %v8688_v28  ;;  %v987_v45 = vld.sshfl [vmem:[#allocation1] sm:$0xff pattern:$0x73625140]  ;;  %v696_v28 = vrot.slane %v694_v9, 2 }
 0x11c   : > { %807 = vst [vmem:[#allocation1 + $0x21] ss:$4 sm:$0xff] %v8695_v49  ;;  %7166 = vmatmul.msk.f32.vlgmr.msra.gmra.mxu1 %vm825_vm8, %v987_v45  ;;  %v8733_v45 = vsel %vm7856_vm7, %v690_v61, %v691_v47  ;;  %v14501_v49 = vrot.slane %v8500_v55, 7  ;;  %v14506_v61 = vld [vmem:[#allocation23_spill] sm:$0xff] }
 0x11d   : > { %808 = vst [vmem:[#allocation1 + $0x22] ss:$4 sm:$0xff] %v8702_v30 }
 0x11e   : > { %809 = vst [vmem:[#allocation1 + $0x23] ss:$4 sm:$0xff] %v8709_v16  ;;  %v8729_v16 = vsel %vm7856_vm7, %v687_v35, %v688_v31  ;;  %v8743_v24 = vsel %vm7856_vm7, %v696_v28, %v14501_v49  ;;  %v14503_v49 = vrot.slane %v7847_v2, 2  ;;  %v14504_v31 = vrot.slane %v7847_v2, 4 }
 0x11f   : > { %989 = vst [vmem:[#allocation1] ss:$4 sm:$0xff] %v7922_v52 }
 0x120   : > { %990 = vst [vmem:[#allocation1 + $0x1] ss:$4 sm:$0xff] %v7935_v59 }
 0x121   : > { %991 = vst [vmem:[#allocation1 + $0x2] ss:$4 sm:$0xff] %v7926_v54 }
 0x122   : > { %992 = vst [vmem:[#allocation1 + $0x3] ss:$4 sm:$0xff] %v7942_v63  ;;  %7158 = vmatmul.msk.f32.gmra.mxu0 %vm825_vm8, %v8524_v0 }
 0x123   : > { %14498 = vst [vmem:[#allocation165_spill] sm:$0xff] %v8729_v16 }
 0x124   : > { %14499 = vst [vmem:[#allocation166_spill] sm:$0xff] %v8733_v45 }
 0x125   : > { %14500 = vst [vmem:[#allocation167_spill] sm:$0xff] %v8737_v27  ;;  %v811_v30 = vld.sshfl [vmem:[#allocation1 + $0x20] sm:$0xff pattern:$0x73625140] }
 0x126   : > { %14502 = vst [vmem:[#allocation168_spill] sm:$0xff] %v8743_v24 }
 0x127   : > { %816 = vst [vmem:[#allocation1 + $0x20] ss:$4 sm:$0xff] %v8729_v16  ;;  %v14511_v16 = vld [vmem:[#allocation78_spill] sm:$0xff] }
 0x128   : > { %817 = vst [vmem:[#allocation1 + $0x21] ss:$4 sm:$0xff] %v8733_v45  ;;  %v14516_v45 = vld [vmem:[#allocation42_spill] sm:$0xff] }
 0x129   : > { %818 = vst [vmem:[#allocation1 + $0x22] ss:$4 sm:$0xff] %v8737_v27  ;;  %v997_v35 = vld.sshfl [vmem:[#allocation1] sm:$0xff pattern:$0x73625140]  ;;  %v14514_v27 = vld [vmem:[#allocation43_spill] sm:$0xff] }
 0x12a   : > { %819 = vst [vmem:[#allocation1 + $0x23] ss:$4 sm:$0xff] %v8743_v24  ;;  %7159 = vmatmul.msk.f32.gmra.mxu0 %vm825_vm8, %v811_v30  ;;  %v14513_v24 = vld [vmem:[#allocation39_spill] sm:$0xff] }
 0x12b   : > { %999 = vst [vmem:[#allocation1] ss:$4 sm:$0xff] %v7993_v34 }
 0x12c   : > { %1000 = vst [vmem:[#allocation1 + $0x1] ss:$4 sm:$0xff] %v8002_v41 }
 0x12d   : > { %1001 = vst [vmem:[#allocation1 + $0x2] ss:$4 sm:$0xff] %v8009_v46 }
 0x12e   : > { %1002 = vst [vmem:[#allocation1 + $0x3] ss:$4 sm:$0xff] %v8016_v50 }
 0x131   : > { %v821_v28 = vld.sshfl [vmem:[#allocation1 + $0x20] sm:$0xff pattern:$0x73625140] }
 0x132   : > { %970 = vst [vmem:[#allocation1 + $0x20] ss:$4 sm:$0xff] %v7847_v2  ;;  %7160 = vmatmul.msk.f32.gmra.mxu0 %vm825_vm8, %v8586_v23  ;;  %v14510_v23 = vld [vmem:[#allocation72_spill] sm:$0xff] }
 0x133   : > { %972 = vst [vmem:[#allocation1 + $0x21] ss:$4 sm:$0xff] %v14503_v49  ;;  %v14508_v49 = vld [vmem:[#allocation27_spill] sm:$0xff] }
 0x134   : > { %974 = vst [vmem:[#allocation1 + $0x22] ss:$4 sm:$0xff] %v14504_v31 }
 0x135   : > { %976 = vst [vmem:[#allocation1 + $0x23] ss:$4 sm:$0xff] %v14505_v33  ;;  %v1007_v47 = vld.sshfl [vmem:[#allocation1] sm:$0xff pattern:$0x73625140]  ;;  %v14509_v33 = vld [vmem:[#allocation73_spill] sm:$0xff] }
 0x136   : > { %1009 = vst [vmem:[#allocation1] ss:$4 sm:$0xff] %v8068_v40 }
 0x137   : > { %1010 = vst [vmem:[#allocation1 + $0x1] ss:$4 sm:$0xff] %v8078_v62  ;;  %v14528_v62 = vld [vmem:[#allocation113_spill] sm:$0xff] }
 0x138   : > { %1011 = vst [vmem:[#allocation1 + $0x2] ss:$4 sm:$0xff] %v8085_v10  ;;  %v14527_v10 = vld [vmem:[#allocation70_spill] sm:$0xff] }
 0x139   : > { %1012 = vst [vmem:[#allocation1 + $0x3] ss:$4 sm:$0xff] %v8092_v58 }
 0x13a   : > { %7161 = vmatmul.msk.f32.gmra.mxu0 %vm825_vm8, %v821_v28  ;;  %v14515_v28 = vld [vmem:[#allocation44_spill] sm:$0xff] }
 0x13c   : > { %v978_v9 = vld.sshfl [vmem:[#allocation1 + $0x20] sm:$0xff pattern:$0x73625140] }
 0x13d   : > { %983 = vst [vmem:[#allocation1 + $0x20] ss:$4 sm:$0xff] %v7903_v38 }
 0x13e   : > { %984 = vst [vmem:[#allocation1 + $0x21] ss:$4 sm:$0xff] %v7906_v39 }
 0x13f   : > { %985 = vst [vmem:[#allocation1 + $0x22] ss:$4 sm:$0xff] %v7911_v42 }
 0x140   : > { %986 = vst [vmem:[#allocation1 + $0x23] ss:$4 sm:$0xff] %v7914_v43  ;;  %v1017_v0 = vld.sshfl [vmem:[#allocation1] sm:$0xff pattern:$0x73625140] }
 0x141   : > { %1019 = vst [vmem:[#allocation1] ss:$4 sm:$0xff] %v8128_v32 }
 0x142   : > { %1020 = vst [vmem:[#allocation1 + $0x1] ss:$4 sm:$0xff] %v8142_v56  ;;  %7162 = vmatmul.msk.f32.gmra.mxu0 %vm825_vm8, %v8630_v37  ;;  %v14520_v56 = vld [vmem:[#allocation66_spill] sm:$0xff] }
 0x143   : > { %1021 = vst [vmem:[#allocation1 + $0x2] ss:$4 sm:$0xff] %v8164_v6 }
 0x144   : > { %1022 = vst [vmem:[#allocation1 + $0x3] ss:$4 sm:$0xff] %v8167_v36  ;;  %v14521_v36 = vld [vmem:[#allocation67_spill] sm:$0xff] }
 0x147   : > { %v988_v30 = vld.sshfl [vmem:[#allocation1 + $0x20] sm:$0xff pattern:$0x73625140] }
 0x148   : > { %7167 = vmatmul.msk.f32.gmra.mxu1 %vm825_vm8, %v988_v30  ;;  %993 = vst [vmem:[#allocation1 + $0x20] ss:$4 sm:$0xff] %v7968_v19  ;;  %v14512_v30 = vld [vmem:[#allocation80_spill] sm:$0xff] }
 0x149   : > { %994 = vst [vmem:[#allocation1 + $0x21] ss:$4 sm:$0xff] %v14506_v61 }
 0x14a   : > { %995 = vst [vmem:[#allocation1 + $0x22] ss:$4 sm:$0xff] %v14507_v25  ;;  %7164 = vmatmul.msk.f32.vlgmr.msrb.gmra.mxu0 %vm825_vm8, %v8678_v13  ;;  %v14525_v13 = vld [vmem:[#allocation98_spill] sm:$0xff] }
 0x14b   : > { %996 = vst [vmem:[#allocation1 + $0x23] ss:$4 sm:$0xff] %v14508_v49  ;;  %v1027_v31 = vld.sshfl [vmem:[#allocation1] sm:$0xff pattern:$0x73625140] }
 0x14c   : > { %1029 = vst [vmem:[#allocation1] ss:$4 sm:$0xff] %v14509_v33  ;;  %v14526_v33 = vld [vmem:[#allocation69_spill] sm:$0xff] }
 0x14d   : > { %1030 = vst [vmem:[#allocation1 + $0x1] ss:$4 sm:$0xff] %v14510_v23 }
 0x14e   : > { %1031 = vst [vmem:[#allocation1 + $0x2] ss:$4 sm:$0xff] %v14511_v16  ;;  %v14519_v16 = vld [vmem:[#allocation62_spill] sm:$0xff] }
 0x14f   : > { %1032 = vst [vmem:[#allocation1 + $0x3] ss:$4 sm:$0xff] %v14512_v30  ;;  %v14518_v30 = vld [vmem:[#allocation90_spill] sm:$0xff] }
 0x150   : > { %7168 = vmatmul.msk.f32.gmra.mxu1 %vm825_vm8, %v997_v35  ;;  %v14517_v35 = vld [vmem:[#allocation87_spill] sm:$0xff] }
 0x152   : > { %v998_v8 = vld.sshfl [vmem:[#allocation1 + $0x20] sm:$0xff pattern:$0x73625140] }
 0x153   : > { %1003 = vst [vmem:[#allocation1 + $0x20] ss:$4 sm:$0xff] %v14513_v24 }
 0x154   : > { %1004 = vst [vmem:[#allocation1 + $0x21] ss:$4 sm:$0xff] %v14514_v27 }
 0x155   : > { %1005 = vst [vmem:[#allocation1 + $0x22] ss:$4 sm:$0xff] %v14515_v28 }
 0x156   : > { %1006 = vst [vmem:[#allocation1 + $0x23] ss:$4 sm:$0xff] %v14516_v45  ;;  %v1037_v6 = vld.sshfl [vmem:[#allocation1] sm:$0xff pattern:$0x73625140] }
 0x157   : > { %1039 = vst [vmem:[#allocation1] ss:$4 sm:$0xff] %v8267_v60 }
 0x158   : > { %7169 = vmatmul.msk.f32.gmra.mxu1 %vm825_vm8, %v998_v8  ;;  %1040 = vst [vmem:[#allocation1 + $0x1] ss:$4 sm:$0xff] %v14517_v35  ;;  %v14522_v8 = vld [vmem:[#allocation68_spill] sm:$0xff]  ;;  %v8807_v35 = vpop.f32.mrf.mxu0  ;;  %7165 = vmatmul.msk.f32.gmra.mxu0 %vm825_vm8, %v978_v9  ;;  %v14531_v9 = vld [vmem:[#allocation105_spill] sm:$0xff] }
 0x159   : > { %1041 = vst [vmem:[#allocation1 + $0x2] ss:$4 sm:$0xff] %v8264_v44 }
 0x15a   : > { %1042 = vst [vmem:[#allocation1 + $0x3] ss:$4 sm:$0xff] %v14518_v30  ;;  %v14524_v30 = vld [vmem:[#allocation96_spill] sm:$0xff] }
 0x15b   : > { %14523 = vst [vmem:[#allocation169_spill] sm:$0xff] %v8807_v35  ;;  %v14529_v35 = vld [vmem:[#allocation114_spill] sm:$0xff] }
 0x15d   : > { %v1008_v37 = vld.sshfl [vmem:[#allocation1 + $0x20] sm:$0xff pattern:$0x73625140] }
 0x15e   : > { %1013 = vst [vmem:[#allocation1 + $0x20] ss:$4 sm:$0xff] %v14519_v16 }
 0x15f   : > { %1014 = vst [vmem:[#allocation1 + $0x21] ss:$4 sm:$0xff] %v14520_v56  ;;  %v14535_v56 = vld [vmem:[#allocation84_spill] sm:$0xff] }
 0x160   : > { %7170 = vmatmul.msk.f32.gmra.mxu1 %vm825_vm8, %v1007_v47  ;;  %1015 = vst [vmem:[#allocation1 + $0x22] ss:$4 sm:$0xff] %v14521_v36  ;;  %v14534_v36 = vld [vmem:[#allocation83_spill] sm:$0xff] }
 0x161   : > { %1016 = vst [vmem:[#allocation1 + $0x23] ss:$4 sm:$0xff] %v14522_v8  ;;  %v1047_v60 = vld.sshfl [vmem:[#allocation1] sm:$0xff pattern:$0x73625140] }
 0x162   : > { %1049 = vst [vmem:[#allocation1] ss:$4 sm:$0xff] %v8313_v53  ;;  %v14530_v8 = vld [vmem:[#allocation104_spill] sm:$0xff] }
 0x163   : > { %1050 = vst [vmem:[#allocation1 + $0x1] ss:$4 sm:$0xff] %v14524_v30  ;;  %v14533_v30 = vld [vmem:[#allocation109_spill] sm:$0xff] }
 0x164   : > { %1051 = vst [vmem:[#allocation1 + $0x2] ss:$4 sm:$0xff] %v14525_v13  ;;  %v14532_v13 = vld [vmem:[#allocation107_spill] sm:$0xff] }
 0x165   : > { %1052 = vst [vmem:[#allocation1 + $0x3] ss:$4 sm:$0xff] %v8337_v48 }
 0x168   : > { %7171 = vmatmul.msk.f32.gmra.mxu1 %vm825_vm8, %v1008_v37  ;;  %v1018_v47 = vld.sshfl [vmem:[#allocation1 + $0x20] sm:$0xff pattern:$0x73625140] }
 0x169   : > { %1023 = vst [vmem:[#allocation1 + $0x20] ss:$4 sm:$0xff] %v14526_v33 }
 0x16a   : > { %1024 = vst [vmem:[#allocation1 + $0x21] ss:$4 sm:$0xff] %v14527_v10 }
 0x16b   : > { %1025 = vst [vmem:[#allocation1 + $0x22] ss:$4 sm:$0xff] %v14528_v62  ;;  %v14536_v62 = vld [vmem:[#allocation127_spill] sm:$0xff] }
 0x16c   : > { %1026 = vst [vmem:[#allocation1 + $0x23] ss:$4 sm:$0xff] %v14529_v35  ;;  %v1057_v53 = vld.sshfl [vmem:[#allocation1] sm:$0xff pattern:$0x73625140] }
 0x16d   : > { %1059 = vst [vmem:[#allocation1] ss:$4 sm:$0xff] %v14530_v8 }
 0x16e   : > { %1060 = vst [vmem:[#allocation1 + $0x1] ss:$4 sm:$0xff] %v14531_v9 }
 0x16f   : > { %1061 = vst [vmem:[#allocation1 + $0x2] ss:$4 sm:$0xff] %v14532_v13  ;;  %v14538_v13 = vld [vmem:[#allocation118_spill] sm:$0xff] }
 0x170   : > { %7172 = vmatmul.msk.f32.gmra.mxu1 %vm825_vm8, %v1017_v0  ;;  %1062 = vst [vmem:[#allocation1 + $0x3] ss:$4 sm:$0xff] %v14533_v30  ;;  %v14537_v0 = vld [vmem:[#allocation115_spill] sm:$0xff]  ;;  %v14539_v30 = vld [vmem:[#allocation120_spill] sm:$0xff] }
 0x173   : > { %v1028_v37 = vld.sshfl [vmem:[#allocation1 + $0x20] sm:$0xff pattern:$0x73625140] }
 0x174   : > { %1033 = vst [vmem:[#allocation1 + $0x20] ss:$4 sm:$0xff] %v14534_v36  ;;  %v14543_v36 = vld [vmem:[#allocation5_spill] sm:$0xff] }
 0x175   : > { %1034 = vst [vmem:[#allocation1 + $0x21] ss:$4 sm:$0xff] %v8462_v14 }
 0x176   : > { %1035 = vst [vmem:[#allocation1 + $0x22] ss:$4 sm:$0xff] %v14535_v56 }
 0x177   : > { %1036 = vst [vmem:[#allocation1 + $0x23] ss:$4 sm:$0xff] %v14536_v62  ;;  %v8829_v35 = vld.sshfl [vmem:[#allocation1] sm:$0xff pattern:$0x73625140] }
 0x178   : > { %7173 = vmatmul.msk.f32.gmra.mxu1 %vm825_vm8, %v1018_v47  ;;  %1069 = vst [vmem:[#allocation1] ss:$4 sm:$0xff] %v8418_v11 }
 0x179   : > { %1070 = vst [vmem:[#allocation1 + $0x1] ss:$4 sm:$0xff] %v14537_v0 }
 0x17a   : > { %1071 = vst [vmem:[#allocation1 + $0x2] ss:$4 sm:$0xff] %v14538_v13  ;;  %v14540_v13 = vld [vmem:[#allocation145_spill] sm:$0xff] }
 0x17b   : > { %1072 = vst [vmem:[#allocation1 + $0x3] ss:$4 sm:$0xff] %v14539_v30 }
 0x17e   : > { %v1038_v9 = vld.sshfl [vmem:[#allocation1 + $0x20] sm:$0xff pattern:$0x73625140] }
 0x17f   : > { %1043 = vst [vmem:[#allocation1 + $0x20] ss:$4 sm:$0xff] %v8302_v20 }
 0x180   : > { %7174 = vmatmul.msk.f32.gmra.mxu1 %vm825_vm8, %v1027_v31  ;;  %1044 = vst [vmem:[#allocation1 + $0x21] ss:$4 sm:$0xff] %v8539_v17  ;;  %v14541_v31 = vld [vmem:[#allocation147_spill] sm:$0xff]  ;;  %v14542_v17 = vld [vmem:[#allocation150_spill] sm:$0xff] }
 0x181   : > { %1045 = vst [vmem:[#allocation1 + $0x22] ss:$4 sm:$0xff] %v8547_v57 }
 0x182   : > { %1046 = vst [vmem:[#allocation1 + $0x23] ss:$4 sm:$0xff] %v8307_v12  ;;  %v8840_v47 = vld.sshfl [vmem:[#allocation1] sm:$0xff pattern:$0x73625140] }
 0x183   : > { %1079 = vst [vmem:[#allocation1] ss:$4 sm:$0xff] %v8500_v55 }
 0x184   : > { %1080 = vst [vmem:[#allocation1 + $0x1] ss:$4 sm:$0xff] %v8512_v29 }
 0x188   : > { %7175 = vmatmul.msk.f32.gmra.mxu1 %vm825_vm8, %v1028_v37 }
 0x189   : > { %v1048_v30 = vld.sshfl [vmem:[#allocation1 + $0x20] sm:$0xff pattern:$0x73625140] }
 0x18a   : > { %1053 = vst [vmem:[#allocation1 + $0x20] ss:$4 sm:$0xff] %v8352_v4 }
 0x18b   : > { %1054 = vst [vmem:[#allocation1 + $0x21] ss:$4 sm:$0xff] %v14540_v13  ;;  %v8848_v20 = vld.sshfl [vmem:[#allocation1] sm:$0xff pattern:$0x73625140] }
 0x18c   : > { %1055 = vst [vmem:[#allocation1 + $0x22] ss:$4 sm:$0xff] %v14541_v31 }
 0x18d   : > { %1056 = vst [vmem:[#allocation1 + $0x23] ss:$4 sm:$0xff] %v14542_v17 }
 0x18e   : > { %1376 = vst.sshfl [vmem:[#allocation1] sm:$0xff pattern:$0x73625140] %v14543_v36 }
 0x190   : > { %7176 = vmatmul.msk.f32.gmra.mxu1 %vm825_vm8, %v1037_v6 }
 0x194   : > { %v1058_v55 = vld.sshfl [vmem:[#allocation1 + $0x20] sm:$0xff pattern:$0x73625140] }
 0x195   : > { %1063 = vst [vmem:[#allocation1 + $0x20] ss:$4 sm:$0xff] %v8401_v22  ;;  %v8854_v62 = vld [vmem:[#allocation1 + $0x1] ss:$4 sm:$0xff]  ;;  %v8857_v37 = vld [vmem:[#allocation1 + $0x2] ss:$4 sm:$0xff] }
 0x196   : > { %1064 = vst [vmem:[#allocation1 + $0x21] ss:$4 sm:$0xff] %v8645_v5  ;;  %v8859_v4 = vld [vmem:[#allocation1 + $0x3] ss:$4 sm:$0xff] }
 0x197   : > { %1065 = vst [vmem:[#allocation1 + $0x22] ss:$4 sm:$0xff] %v8652_v15 }
 0x198   : > { %1066 = vst [vmem:[#allocation1 + $0x23] ss:$4 sm:$0xff] %v8659_v7  ;;  %7177 = vmatmul.msk.f32.gmra.mxu1 %vm825_vm8, %v1038_v9 }
 0x199   : > { %1392 = vst.sshfl [vmem:[#allocation1] sm:$0xff pattern:$0x73625140] %v7850_v3 }
 0x19f   : > { %v1068_v6 = vld.sshfl [vmem:[#allocation1 + $0x20] sm:$0xff pattern:$0x73625140] }
 0x1a0   : > { %1073 = vst [vmem:[#allocation1 + $0x20] ss:$4 sm:$0xff] %v8469_v51  ;;  %7178 = vmatmul.msk.f32.gmra.mxu1 %vm825_vm8, %v1047_v60  ;;  %v8868_v36 = vld [vmem:[#allocation1] ss:$4 sm:$0xff]  ;;  %v8870_v5 = vld [vmem:[#allocation1 + $0x1] ss:$4 sm:$0xff] }
 0x1a1   : > { %1074 = vst [vmem:[#allocation1 + $0x21] ss:$4 sm:$0xff] %v8481_v18 }
 0x1a2   : > { %1075 = vst [vmem:[#allocation1 + $0x22] ss:$4 sm:$0xff] %v8691_v1 }
 0x1a3   : > { %1076 = vst [vmem:[#allocation1 + $0x23] ss:$4 sm:$0xff] %v8698_v26 }
 0x1a4   : > { %1399 = vst.sshfl [vmem:[#allocation1] sm:$0xff pattern:$0x73625140] %v7906_v39 }
 0x1a8   : > { %7179 = vmatmul.msk.f32.gmra.mxu1 %vm825_vm8, %v1048_v30 }
 0x1aa   : > { %v1078_v3 = vld.sshfl [vmem:[#allocation1 + $0x20] sm:$0xff pattern:$0x73625140] }
 0x1ab   : > { %1377 = vst.sshfl [vmem:[#allocation1 + $0x20] sm:$0xff pattern:$0x73625140] %v7847_v2  ;;  %v8877_v9 = vld [vmem:[#allocation1] ss:$4 sm:$0xff] }
 0x1ac   : > { %v8879_v60 = vld [vmem:[#allocation1 + $0x1] ss:$4 sm:$0xff]  ;;  %v8881_v51 = vld [vmem:[#allocation1 + $0x2] ss:$4 sm:$0xff]  ;;  %v8883_v7 = vld [vmem:[#allocation1 + $0x3] ss:$4 sm:$0xff] }
 0x1ad   : > { %1407 = vst.sshfl [vmem:[#allocation1] sm:$0xff pattern:$0x73625140] %v7926_v54 }
 0x1b0   : > { %7180 = vmatmul.msk.f32.gmra.mxu1 %vm825_vm8, %v1057_v53 }
 0x1b2   : > { %v8887_v26 = vld [vmem:[#allocation1 + $0x20] ss:$4 sm:$0xff]  ;;  %v8889_v1 = vld [vmem:[#allocation1 + $0x21] ss:$4 sm:$0xff]  ;;  %v8891_v30 = vld [vmem:[#allocation1 + $0x22] ss:$4 sm:$0xff] }
 0x1b3   : > { %v8893_v15 = vld [vmem:[#allocation1 + $0x23] ss:$4 sm:$0xff] }
 0x1b4   : > { %1395 = vst.sshfl [vmem:[#allocation1 + $0x20] sm:$0xff pattern:$0x73625140] %v7878_v21  ;;  %v8896_v2 = vld [vmem:[#allocation1 + $0x1] ss:$4 sm:$0xff] }
 0x1b5   : > { %v8898_v31 = vld [vmem:[#allocation1 + $0x2] ss:$4 sm:$0xff]  ;;  %v8900_v13 = vld [vmem:[#allocation1 + $0x3] ss:$4 sm:$0xff] }
 0x1b6   : > { %1416 = vst.sshfl [vmem:[#allocation1] sm:$0xff pattern:$0x73625140] %v8009_v46 }
 0x1b8   : > { %7181 = vmatmul.msk.f32.gmra.mxu1 %vm825_vm8, %v1058_v55 }
 0x1bb   : > { %v8904_v53 = vld [vmem:[#allocation1 + $0x21] ss:$4 sm:$0xff]  ;;  %v8906_v24 = vld [vmem:[#allocation1 + $0x22] ss:$4 sm:$0xff]  ;;  %v8908_v41 = vld [vmem:[#allocation1 + $0x23] ss:$4 sm:$0xff] }
 0x1bc   : > { %1400 = vst.sshfl [vmem:[#allocation1 + $0x20] sm:$0xff pattern:$0x73625140] %v7935_v59 }
 0x1bd   : > { %v8911_v40 = vld [vmem:[#allocation1] ss:$4 sm:$0xff]  ;;  %v8913_v28 = vld [vmem:[#allocation1 + $0x1] ss:$4 sm:$0xff] }
 0x1be   : > { %1423 = vst.sshfl [vmem:[#allocation1] sm:$0xff pattern:$0x73625140] %v14516_v45 }
 0x1c0   : > { %7182 = vmatmul.msk.f32.gmra.mxu1 %vm825_vm8, %v8829_v35 }
 0x1c3   : > { %v8918_v46 = vld [vmem:[#allocation1 + $0x20] ss:$4 sm:$0xff]  ;;  %v8920_v55 = vld [vmem:[#allocation1 + $0x21] ss:$4 sm:$0xff] }
 0x1c4   : > { %1408 = vst.sshfl [vmem:[#allocation1 + $0x20] sm:$0xff pattern:$0x73625140] %v14507_v25 }
 0x1c5   : > { %v8923_v27 = vld [vmem:[#allocation1] ss:$4 sm:$0xff]  ;;  %v8925_v19 = vld [vmem:[#allocation1 + $0x1] ss:$4 sm:$0xff]  ;;  %v8927_v63 = vld [vmem:[#allocation1 + $0x2] ss:$4 sm:$0xff] }
 0x1c6   : > { %v8929_v54 = vld [vmem:[#allocation1 + $0x3] ss:$4 sm:$0xff] }
 0x1c7   : > { %1431 = vst.sshfl [vmem:[#allocation1] sm:$0xff pattern:$0x73625140] %v14519_v16 }
 0x1c8   : > { %7183 = vmatmul.msk.f32.gmra.mxu1 %vm825_vm8, %v1068_v6 }
 0x1cb   : > { %v8933_v45 = vld [vmem:[#allocation1 + $0x20] ss:$4 sm:$0xff]  ;;  %v8935_v35 = vld [vmem:[#allocation1 + $0x21] ss:$4 sm:$0xff]  ;;  %v8937_v59 = vld [vmem:[#allocation1 + $0x22] ss:$4 sm:$0xff] }
 0x1cc   : > { %v8939_v34 = vld [vmem:[#allocation1 + $0x23] ss:$4 sm:$0xff] }
 0x1cd   : > { %1419 = vst.sshfl [vmem:[#allocation1 + $0x20] sm:$0xff pattern:$0x73625140] %v8016_v50 }
 0x1ce   : > { %v8942_v49 = vld [vmem:[#allocation1 + $0x1] ss:$4 sm:$0xff]  ;;  %v8944_v25 = vld [vmem:[#allocation1 + $0x2] ss:$4 sm:$0xff]  ;;  %v8946_v61 = vld [vmem:[#allocation1 + $0x3] ss:$4 sm:$0xff] }
 0x1cf   : > { %1440 = vst.sshfl [vmem:[#allocation1] sm:$0xff pattern:$0x73625140] %v14526_v33 }
 0x1d0   : > { %7184 = vmatmul.msk.f32.gmra.mxu1 %vm825_vm8, %v8840_v47 }
 0x1d4   : > { %v8951_v6 = vld [vmem:[#allocation1 + $0x21] ss:$4 sm:$0xff]  ;;  %v8953_v16 = vld [vmem:[#allocation1 + $0x22] ss:$4 sm:$0xff]  ;;  %v8955_v38 = vld [vmem:[#allocation1 + $0x23] ss:$4 sm:$0xff] }
 0x1d5   : > { %1424 = vst.sshfl [vmem:[#allocation1 + $0x20] sm:$0xff pattern:$0x73625140] %v8092_v58 }
 0x1d6   : > { %v8958_v50 = vld [vmem:[#allocation1] ss:$4 sm:$0xff]  ;;  %v8960_v21 = vld [vmem:[#allocation1 + $0x1] ss:$4 sm:$0xff] }
 0x1d7   : > { %14544 = vst [vmem:[#allocation5_spill] sm:$0xff] %v8958_v50 }
 0x1d8   : > { %14545 = vst [vmem:[#allocation170_spill] sm:$0xff] %v8960_v21  ;;  %7185 = vmatmul.msk.f32.gmra.mxu1 %vm825_vm8, %v1078_v3 }
 0x1d9   : > { %1447 = vst.sshfl [vmem:[#allocation1] sm:$0xff pattern:$0x73625140] %v14510_v23 }
 0x1dc   : > { %v8964_v33 = vld [vmem:[#allocation1 + $0x20] ss:$4 sm:$0xff]  ;;  %v8966_v52 = vld [vmem:[#allocation1 + $0x21] ss:$4 sm:$0xff] }
 0x1dd   : > { %1432 = vst.sshfl [vmem:[#allocation1 + $0x20] sm:$0xff pattern:$0x73625140] %v8128_v32 }
 0x1e0   : > { %v8969_v47 = vld [vmem:[#allocation1] ss:$4 sm:$0xff]  ;;  %v8971_v43 = vld [vmem:[#allocation1 + $0x1] ss:$4 sm:$0xff]  ;;  %v8973_v42 = vld [vmem:[#allocation1 + $0x2] ss:$4 sm:$0xff]  ;;  %7186 = vmatmul.msk.f32.gmra.mxu1 %vm825_vm8, %v8848_v20 }
 0x1e1   : > { %14546 = vst [vmem:[#allocation171_spill] sm:$0xff] %v8969_v47  ;;  %v8975_v58 = vld [vmem:[#allocation1 + $0x3] ss:$4 sm:$0xff] }
 0x1e2   : > { %14547 = vst [vmem:[#allocation172_spill] sm:$0xff] %v8971_v43 }
 0x1e3   : > { %14548 = vst [vmem:[#allocation173_spill] sm:$0xff] %v8973_v42 }
 0x1e4   : > { %14549 = vst [vmem:[#allocation174_spill] sm:$0xff] %v8975_v58  ;;  %v8980_v3 = vld [vmem:[#allocation1 + $0x20] ss:$4 sm:$0xff]  ;;  %v8982_v23 = vld [vmem:[#allocation1 + $0x21] ss:$4 sm:$0xff] }
 0x1e5   : > { %1455 = vst.sshfl [vmem:[#allocation1] sm:$0xff pattern:$0x73625140] %v14535_v56  ;;  %v8984_v39 = vld [vmem:[#allocation1 + $0x22] ss:$4 sm:$0xff] }
 0x1e6   : > { %v8986_v32 = vld [vmem:[#allocation1 + $0x23] ss:$4 sm:$0xff] }
 0x1e7   : > { %1443 = vst.sshfl [vmem:[#allocation1 + $0x20] sm:$0xff pattern:$0x73625140] %v14527_v10 }
 0x1ec   : > { %v8989_v43 = vld [vmem:[#allocation1 + $0x1] ss:$4 sm:$0xff]  ;;  %v8991_v42 = vld [vmem:[#allocation1 + $0x2] ss:$4 sm:$0xff]  ;;  %v8993_v58 = vld [vmem:[#allocation1 + $0x3] ss:$4 sm:$0xff] }
 0x1ed   : > { %14550 = vst [vmem:[#allocation175_spill] sm:$0xff] %v8989_v43 }
 0x1ee   : > { %14551 = vst [vmem:[#allocation176_spill] sm:$0xff] %v8991_v42  ;;  %v8996_v56 = vld [vmem:[#allocation1 + $0x21] ss:$4 sm:$0xff]  ;;  %v8998_v20 = vld [vmem:[#allocation1 + $0x22] ss:$4 sm:$0xff] }
 0x1ef   : > { %14552 = vst [vmem:[#allocation177_spill] sm:$0xff] %v8993_v58  ;;  %v9000_v47 = vld [vmem:[#allocation1 + $0x23] ss:$4 sm:$0xff] }
 0x1f0   : > { %1464 = vst.sshfl [vmem:[#allocation1] sm:$0xff pattern:$0x73625140] %v8547_v57 }
 0x1f1   : > { %14553 = vst [vmem:[#allocation178_spill] sm:$0xff] %v9000_v47 }
 0x1f2   : > { %1448 = vst.sshfl [vmem:[#allocation1 + $0x20] sm:$0xff pattern:$0x73625140] %v8462_v14 }
 0x1f7   : > { %v9003_v21 = vld [vmem:[#allocation1] ss:$4 sm:$0xff]  ;;  %v9005_v50 = vld [vmem:[#allocation1 + $0x1] ss:$4 sm:$0xff] }
 0x1f8   : > { %14554 = vst [vmem:[#allocation179_spill] sm:$0xff] %v9003_v21 }
 0x1f9   : > { %14555 = vst [vmem:[#allocation180_spill] sm:$0xff] %v9005_v50  ;;  %v9008_v10 = vld [vmem:[#allocation1 + $0x20] ss:$4 sm:$0xff]  ;;  %v9010_v42 = vld [vmem:[#allocation1 + $0x21] ss:$4 sm:$0xff] }
 0x1fa   : > { %1471 = vst.sshfl [vmem:[#allocation1] sm:$0xff pattern:$0x73625140] %v8337_v48 }
 0x1fb   : > { %1456 = vst.sshfl [vmem:[#allocation1 + $0x20] sm:$0xff pattern:$0x73625140] %v8264_v44 }
 0x201   : > { %v9013_v57 = vld [vmem:[#allocation1] ss:$4 sm:$0xff]  ;;  %v9015_v58 = vld [vmem:[#allocation1 + $0x1] ss:$4 sm:$0xff]  ;;  %v9017_v43 = vld [vmem:[#allocation1 + $0x2] ss:$4 sm:$0xff] }
 0x202   : > { %14556 = vst [vmem:[#allocation181_spill] sm:$0xff] %v9013_v57  ;;  %v9019_v47 = vld [vmem:[#allocation1 + $0x3] ss:$4 sm:$0xff]  ;;  %v9022_v14 = vld [vmem:[#allocation1 + $0x20] ss:$4 sm:$0xff] }
 0x203   : > { %14557 = vst [vmem:[#allocation182_spill] sm:$0xff] %v9015_v58  ;;  %v9024_v50 = vld [vmem:[#allocation1 + $0x21] ss:$4 sm:$0xff]  ;;  %v9026_v48 = vld [vmem:[#allocation1 + $0x22] ss:$4 sm:$0xff] }
 0x204   : > { %14558 = vst [vmem:[#allocation183_spill] sm:$0xff] %v9017_v43  ;;  %v9028_v21 = vld [vmem:[#allocation1 + $0x23] ss:$4 sm:$0xff] }
 0x205   : > { %14559 = vst [vmem:[#allocation184_spill] sm:$0xff] %v9019_v47 }
 0x206   : > { %1479 = vst.sshfl [vmem:[#allocation1] sm:$0xff pattern:$0x73625140] %v14530_v8 }
 0x207   : > { %14560 = vst [vmem:[#allocation185_spill] sm:$0xff] %v9026_v48 }
 0x208   : > { %14561 = vst [vmem:[#allocation186_spill] sm:$0xff] %v9028_v21 }
 0x209   : > { %1467 = vst.sshfl [vmem:[#allocation1 + $0x20] sm:$0xff pattern:$0x73625140] %v8307_v12 }
 0x20d   : > { %v9031_v44 = vld [vmem:[#allocation1 + $0x1] ss:$4 sm:$0xff]  ;;  %v9033_v57 = vld [vmem:[#allocation1 + $0x2] ss:$4 sm:$0xff]  ;;  %v9035_v58 = vld [vmem:[#allocation1 + $0x3] ss:$4 sm:$0xff] }
 0x20e   : > { %14562 = vst [vmem:[#allocation187_spill] sm:$0xff] %v9031_v44 }
 0x20f   : > { %14563 = vst [vmem:[#allocation188_spill] sm:$0xff] %v9033_v57 }
 0x210   : > { %14564 = vst [vmem:[#allocation189_spill] sm:$0xff] %v9035_v58  ;;  %v9038_v47 = vld [vmem:[#allocation1 + $0x21] ss:$4 sm:$0xff]  ;;  %v9040_v8 = vld [vmem:[#allocation1 + $0x22] ss:$4 sm:$0xff] }
 0x211   : > { %1488 = vst.sshfl [vmem:[#allocation1] sm:$0xff pattern:$0x73625140] %v8418_v11  ;;  %v9042_v43 = vld [vmem:[#allocation1 + $0x23] ss:$4 sm:$0xff] }
 0x212   : > { %14565 = vst [vmem:[#allocation190_spill] sm:$0xff] %v9042_v43 }
 0x213   : > { %1472 = vst.sshfl [vmem:[#allocation1 + $0x20] sm:$0xff pattern:$0x73625140] %v14542_v17 }
 0x218   : > { %v9045_v48 = vld [vmem:[#allocation1] ss:$4 sm:$0xff]  ;;  %v9047_v21 = vld [vmem:[#allocation1 + $0x1] ss:$4 sm:$0xff] }
 0x219   : > { %1495 = vst.sshfl [vmem:[#allocation1] sm:$0xff pattern:$0x73625140] %v8481_v18 }
 0x21a   : > { %v9050_v12 = vld [vmem:[#allocation1 + $0x20] ss:$4 sm:$0xff]  ;;  %v9052_v57 = vld [vmem:[#allocation1 + $0x21] ss:$4 sm:$0xff] }
 0x21b   : > { %1480 = vst.sshfl [vmem:[#allocation1 + $0x20] sm:$0xff pattern:$0x73625140] %v8401_v22 }
 0x220   : > { %v9055_v11 = vld [vmem:[#allocation1] ss:$4 sm:$0xff]  ;;  %v9057_v58 = vld [vmem:[#allocation1 + $0x1] ss:$4 sm:$0xff]  ;;  %v9059_v44 = vld [vmem:[#allocation1 + $0x2] ss:$4 sm:$0xff] }
 0x221   : > { %14566 = vst [vmem:[#allocation191_spill] sm:$0xff] %v9055_v11  ;;  %v9061_v43 = vld [vmem:[#allocation1 + $0x3] ss:$4 sm:$0xff] }
 0x222   : > { %14567 = vst [vmem:[#allocation192_spill] sm:$0xff] %v9059_v44  ;;  %v9067_v18 = vld [vmem:[#allocation1 + $0x20] ss:$4 sm:$0xff]  ;;  %v9069_v17 = vld [vmem:[#allocation1 + $0x21] ss:$4 sm:$0xff] }
 0x223   : > { %14568 = vst [vmem:[#allocation193_spill] sm:$0xff] %v9061_v43  ;;  %v9071_v22 = vld [vmem:[#allocation1 + $0x22] ss:$4 sm:$0xff]  ;;  %v9073_v11 = vld [vmem:[#allocation1 + $0x23] ss:$4 sm:$0xff] }
 0x224   : > { %1503 = vst [vmem:[#allocation1] ss:$4 sm:$0xff] %v8854_v62 }
 0x225   : > { %1505 = vst [vmem:[#allocation1 + $0x1] ss:$4 sm:$0xff] %v8857_v37 }
 0x226   : > { %1507 = vst [vmem:[#allocation1 + $0x2] ss:$4 sm:$0xff] %v8859_v4 }
 0x227   : > { %1509 = vst [vmem:[#allocation1 + $0x3] ss:$4 sm:$0xff] %v8887_v26 }
 0x228   : > { %1491 = vst.sshfl [vmem:[#allocation1 + $0x20] sm:$0xff pattern:$0x73625140] %v14537_v0 }
 0x22e   : > { %v9091_v37 = vld.sshfl [vmem:[#allocation1] sm:$0xff pattern:$0x73625140] }
 0x22f   : > { %v9076_v44 = vld [vmem:[#allocation1 + $0x21] ss:$4 sm:$0xff]  ;;  %v9078_v43 = vld [vmem:[#allocation1 + $0x22] ss:$4 sm:$0xff]  ;;  %v9080_v62 = vld [vmem:[#allocation1 + $0x23] ss:$4 sm:$0xff] }
 0x230   : > { %1496 = vst.sshfl [vmem:[#allocation1 + $0x20] sm:$0xff pattern:$0x73625140] %v8512_v29 }
 0x231   : > { %1515 = vst [vmem:[#allocation1 + $0x22] ss:$4 sm:$0xff] %v8893_v15 }
 0x232   : > { %1517 = vst [vmem:[#allocation1 + $0x23] ss:$4 sm:$0xff] %v8868_v36 }
 0x233   : > { %1520 = vst [vmem:[#allocation1] ss:$4 sm:$0xff] %v8870_v5  ;;  %v14573_v5 = vld [vmem:[#allocation172_spill] sm:$0xff] }
 0x234   : > { %1521 = vst [vmem:[#allocation1 + $0x1] ss:$4 sm:$0xff] %v8904_v53  ;;  %v14598_v53 = vld [vmem:[#allocation7_spill] sm:$0xff] }
 0x235   : > { %1522 = vst [vmem:[#allocation1 + $0x2] ss:$4 sm:$0xff] %v8906_v24  ;;  %v14578_v24 = vld [vmem:[#allocation177_spill] sm:$0xff] }
 0x236   : > { %1523 = vst [vmem:[#allocation1 + $0x3] ss:$4 sm:$0xff] %v8908_v41 }
 0x237   : > { %v9085_v4 = vld [vmem:[#allocation1 + $0x20] ss:$4 sm:$0xff]  ;;  %v9087_v26 = vld [vmem:[#allocation1 + $0x21] ss:$4 sm:$0xff] }
 0x238   : > { %1511 = vst [vmem:[#allocation1 + $0x20] ss:$4 sm:$0xff] %v8889_v1 }
 0x239   : > { %1513 = vst [vmem:[#allocation1 + $0x21] ss:$4 sm:$0xff] %v8891_v30 }
 0x23d   : > { %v9103_v1 = vld.sshfl [vmem:[#allocation1] sm:$0xff pattern:$0x73625140] }
 0x23e   : > { %1530 = vst [vmem:[#allocation1] ss:$4 sm:$0xff] %v8918_v46 }
 0x23f   : > { %1531 = vst [vmem:[#allocation1 + $0x1] ss:$4 sm:$0xff] %v8920_v55  ;;  %v14599_v55 = vld [vmem:[#allocation8_spill] sm:$0xff] }
 0x240   : > { %v9097_v15 = vld.sshfl [vmem:[#allocation1 + $0x20] sm:$0xff pattern:$0x73625140]  ;;  %1532 = vst [vmem:[#allocation1 + $0x2] ss:$4 sm:$0xff] %v8896_v2  ;;  %v14596_v2 = vld [vmem:[#allocation13_spill] sm:$0xff] }
 0x241   : > { %1524 = vst [vmem:[#allocation1 + $0x20] ss:$4 sm:$0xff] %v8877_v9  ;;  %v14588_v9 = vld [vmem:[#allocation187_spill] sm:$0xff] }
 0x242   : > { %1525 = vst [vmem:[#allocation1 + $0x21] ss:$4 sm:$0xff] %v8879_v60  ;;  %v14590_v60 = vld [vmem:[#allocation189_spill] sm:$0xff] }
 0x243   : > { %1526 = vst [vmem:[#allocation1 + $0x22] ss:$4 sm:$0xff] %v8881_v51 }
 0x244   : > { %1527 = vst [vmem:[#allocation1 + $0x23] ss:$4 sm:$0xff] %v8883_v7  ;;  %v14572_v7 = vld [vmem:[#allocation171_spill] sm:$0xff] }
 0x245   : > { %1533 = vst [vmem:[#allocation1 + $0x3] ss:$4 sm:$0xff] %v8898_v31  ;;  %v14587_v31 = vld [vmem:[#allocation184_spill] sm:$0xff] }
 0x24b   : > { %v9109_v41 = vld.sshfl [vmem:[#allocation1 + $0x20] sm:$0xff pattern:$0x73625140] }
 0x24c   : > { %1534 = vst [vmem:[#allocation1 + $0x20] ss:$4 sm:$0xff] %v8900_v13  ;;  %v9115_v51 = vld.sshfl [vmem:[#allocation1] sm:$0xff pattern:$0x73625140]  ;;  %v14586_v13 = vld [vmem:[#allocation183_spill] sm:$0xff] }
 0x24d   : > { %1535 = vst [vmem:[#allocation1 + $0x21] ss:$4 sm:$0xff] %v8933_v45  ;;  %v14577_v45 = vld [vmem:[#allocation176_spill] sm:$0xff] }
 0x24e   : > { %1536 = vst [vmem:[#allocation1 + $0x22] ss:$4 sm:$0xff] %v8935_v35  ;;  %v14600_v35 = vld [vmem:[#allocation9_spill] sm:$0xff] }
 0x24f   : > { %1537 = vst [vmem:[#allocation1 + $0x23] ss:$4 sm:$0xff] %v8937_v59 }
 0x250   : > { %1540 = vst [vmem:[#allocation1] ss:$4 sm:$0xff] %v8939_v34 }
 0x251   : > { %1541 = vst [vmem:[#allocation1 + $0x1] ss:$4 sm:$0xff] %v8911_v40 }
 0x252   : > { %1542 = vst [vmem:[#allocation1 + $0x2] ss:$4 sm:$0xff] %v8913_v28 }
 0x253   : > { %1543 = vst [vmem:[#allocation1 + $0x3] ss:$4 sm:$0xff] %v8951_v6  ;;  %v14601_v6 = vld [vmem:[#allocation10_spill] sm:$0xff] }
 0x256   : > { %v9121_v46 = vld.sshfl [vmem:[#allocation1 + $0x20] sm:$0xff pattern:$0x73625140] }
 0x257   : > { %1544 = vst [vmem:[#allocation1 + $0x20] ss:$4 sm:$0xff] %v8953_v16 }
 0x258   : > { %1545 = vst [vmem:[#allocation1 + $0x21] ss:$4 sm:$0xff] %v8955_v38 }
 0x259   : > { %1546 = vst [vmem:[#allocation1 + $0x22] ss:$4 sm:$0xff] %v8923_v27 }
 0x25a   : > { %1547 = vst [vmem:[#allocation1 + $0x23] ss:$4 sm:$0xff] %v8925_v19  ;;  %v9127_v59 = vld.sshfl [vmem:[#allocation1] sm:$0xff pattern:$0x73625140]  ;;  %v14571_v19 = vld [vmem:[#allocation178_spill] sm:$0xff] }
 0x25b   : > { %1550 = vst [vmem:[#allocation1] ss:$4 sm:$0xff] %v8927_v63  ;;  %v14570_v63 = vld [vmem:[#allocation170_spill] sm:$0xff] }
 0x25c   : > { %1551 = vst [vmem:[#allocation1 + $0x1] ss:$4 sm:$0xff] %v8929_v54  ;;  %v14569_v54 = vld [vmem:[#allocation5_spill] sm:$0xff] }
 0x25d   : > { %1552 = vst [vmem:[#allocation1 + $0x2] ss:$4 sm:$0xff] %v8964_v33 }
 0x25e   : > { %1553 = vst [vmem:[#allocation1 + $0x3] ss:$4 sm:$0xff] %v8966_v52 }
 0x261   : > { %v9133_v34 = vld.sshfl [vmem:[#allocation1 + $0x20] sm:$0xff pattern:$0x73625140] }
 0x262   : > { %1554 = vst [vmem:[#allocation1 + $0x20] ss:$4 sm:$0xff] %v8942_v49  ;;  %v14580_v49 = vld [vmem:[#allocation186_spill] sm:$0xff] }
 0x263   : > { %1555 = vst [vmem:[#allocation1 + $0x21] ss:$4 sm:$0xff] %v8944_v25 }
 0x264   : > { %1556 = vst [vmem:[#allocation1 + $0x22] ss:$4 sm:$0xff] %v8946_v61  ;;  %v14579_v61 = vld [vmem:[#allocation185_spill] sm:$0xff] }
 0x265   : > { %1557 = vst [vmem:[#allocation1 + $0x23] ss:$4 sm:$0xff] %v8980_v3  ;;  %v9139_v38 = vld.sshfl [vmem:[#allocation1] sm:$0xff pattern:$0x73625140]  ;;  %v14602_v3 = vld [vmem:[#allocation23_spill] sm:$0xff] }
 0x266   : > { %1560 = vst [vmem:[#allocation1] ss:$4 sm:$0xff] %v8982_v23  ;;  %v14583_v23 = vld [vmem:[#allocation190_spill] sm:$0xff] }
 0x267   : > { %1561 = vst [vmem:[#allocation1 + $0x1] ss:$4 sm:$0xff] %v8984_v39  ;;  %v14574_v39 = vld [vmem:[#allocation173_spill] sm:$0xff] }
 0x268   : > { %1562 = vst [vmem:[#allocation1 + $0x2] ss:$4 sm:$0xff] %v8986_v32  ;;  %v14575_v32 = vld [vmem:[#allocation174_spill] sm:$0xff] }
 0x269   : > { %1563 = vst [vmem:[#allocation1 + $0x3] ss:$4 sm:$0xff] %v14569_v54  ;;  %v14606_v54 = vld [vmem:[#allocation17_spill] sm:$0xff] }
 0x26c   : > { %v9145_v52 = vld.sshfl [vmem:[#allocation1 + $0x20] sm:$0xff pattern:$0x73625140] }
 0x26d   : > { %1564 = vst [vmem:[#allocation1 + $0x20] ss:$4 sm:$0xff] %v14570_v63  ;;  %v14607_v63 = vld [vmem:[#allocation15_spill] sm:$0xff] }
 0x26e   : > { %1565 = vst [vmem:[#allocation1 + $0x21] ss:$4 sm:$0xff] %v8996_v56  ;;  %v14576_v56 = vld [vmem:[#allocation175_spill] sm:$0xff] }
 0x26f   : > { %1566 = vst [vmem:[#allocation1 + $0x22] ss:$4 sm:$0xff] %v8998_v20  ;;  %v14603_v20 = vld [vmem:[#allocation22_spill] sm:$0xff] }
 0x270   : > { %1567 = vst [vmem:[#allocation1 + $0x23] ss:$4 sm:$0xff] %v14571_v19  ;;  %v9151_v40 = vld.sshfl [vmem:[#allocation1] sm:$0xff pattern:$0x73625140]  ;;  %v14608_v19 = vld [vmem:[#allocation19_spill] sm:$0xff] }
 0x271   : > { %1570 = vst [vmem:[#allocation1] ss:$4 sm:$0xff] %v14572_v7  ;;  %v14609_v7 = vld [vmem:[#allocation25_spill] sm:$0xff] }
 0x272   : > { %1571 = vst [vmem:[#allocation1 + $0x1] ss:$4 sm:$0xff] %v14573_v5 }
 0x273   : > { %1572 = vst [vmem:[#allocation1 + $0x2] ss:$4 sm:$0xff] %v14574_v39  ;;  %v14610_v39 = vld [vmem:[#allocation43_spill] sm:$0xff] }
 0x274   : > { %1573 = vst [vmem:[#allocation1 + $0x3] ss:$4 sm:$0xff] %v14575_v32  ;;  %v14611_v32 = vld [vmem:[#allocation44_spill] sm:$0xff] }
 0x277   : > { %v9157_v16 = vld.sshfl [vmem:[#allocation1 + $0x20] sm:$0xff pattern:$0x73625140] }
 0x278   : > { %1574 = vst [vmem:[#allocation1 + $0x20] ss:$4 sm:$0xff] %v9008_v10  ;;  %v14581_v10 = vld [vmem:[#allocation179_spill] sm:$0xff] }
 0x279   : > { %1575 = vst [vmem:[#allocation1 + $0x21] ss:$4 sm:$0xff] %v9010_v42  ;;  %v14582_v42 = vld [vmem:[#allocation180_spill] sm:$0xff] }
 0x27a   : > { %1576 = vst [vmem:[#allocation1 + $0x22] ss:$4 sm:$0xff] %v14576_v56  ;;  %v14612_v56 = vld [vmem:[#allocation42_spill] sm:$0xff] }
 0x27b   : > { %1577 = vst [vmem:[#allocation1 + $0x23] ss:$4 sm:$0xff] %v14577_v45  ;;  %v9163_v27 = vld.sshfl [vmem:[#allocation1] sm:$0xff pattern:$0x73625140]  ;;  %v14613_v45 = vld [vmem:[#allocation45_spill] sm:$0xff] }
 0x27c   : > { %1580 = vst [vmem:[#allocation1] ss:$4 sm:$0xff] %v14578_v24 }
 0x27d   : > { %1581 = vst [vmem:[#allocation1 + $0x1] ss:$4 sm:$0xff] %v9022_v14  ;;  %v14584_v14 = vld [vmem:[#allocation181_spill] sm:$0xff] }
 0x27e   : > { %1582 = vst [vmem:[#allocation1 + $0x2] ss:$4 sm:$0xff] %v9024_v50  ;;  %v14585_v50 = vld [vmem:[#allocation182_spill] sm:$0xff] }
 0x27f   : > { %1583 = vst [vmem:[#allocation1 + $0x3] ss:$4 sm:$0xff] %v14579_v61  ;;  %v14614_v61 = vld [vmem:[#allocation31_spill] sm:$0xff] }
 0x282   : > { %v9169_v25 = vld.sshfl [vmem:[#allocation1 + $0x20] sm:$0xff pattern:$0x73625140] }
 0x283   : > { %1584 = vst [vmem:[#allocation1 + $0x20] ss:$4 sm:$0xff] %v14580_v49  ;;  %v14615_v49 = vld [vmem:[#allocation33_spill] sm:$0xff] }
 0x284   : > { %1585 = vst [vmem:[#allocation1 + $0x21] ss:$4 sm:$0xff] %v14581_v10  ;;  %v14616_v10 = vld [vmem:[#allocation35_spill] sm:$0xff] }
 0x285   : > { %1586 = vst [vmem:[#allocation1 + $0x22] ss:$4 sm:$0xff] %v14582_v42  ;;  %v14617_v42 = vld [vmem:[#allocation39_spill] sm:$0xff] }
 0x286   : > { %1587 = vst [vmem:[#allocation1 + $0x23] ss:$4 sm:$0xff] %v9038_v47  ;;  %v9175_v33 = vld.sshfl [vmem:[#allocation1] sm:$0xff pattern:$0x73625140] }
 0x287   : > { %1590 = vst [vmem:[#allocation1] ss:$4 sm:$0xff] %v9040_v8  ;;  %v14589_v8 = vld [vmem:[#allocation188_spill] sm:$0xff] }
 0x288   : > { %1591 = vst [vmem:[#allocation1 + $0x1] ss:$4 sm:$0xff] %v14583_v23 }
 0x289   : > { %1592 = vst [vmem:[#allocation1 + $0x2] ss:$4 sm:$0xff] %v14584_v14  ;;  %v14618_v14 = vld [vmem:[#allocation66_spill] sm:$0xff] }
 0x28a   : > { %1593 = vst [vmem:[#allocation1 + $0x3] ss:$4 sm:$0xff] %v14585_v50  ;;  %v14619_v50 = vld [vmem:[#allocation67_spill] sm:$0xff] }
 0x28d   : > { %v9181_v28 = vld.sshfl [vmem:[#allocation1 + $0x20] sm:$0xff pattern:$0x73625140] }
 0x28e   : > { %1594 = vst [vmem:[#allocation1 + $0x20] ss:$4 sm:$0xff] %v14586_v13  ;;  %v14620_v13 = vld [vmem:[#allocation68_spill] sm:$0xff] }
 0x28f   : > { %1595 = vst [vmem:[#allocation1 + $0x21] ss:$4 sm:$0xff] %v14587_v31  ;;  %v14621_v31 = vld [vmem:[#allocation57_spill] sm:$0xff] }
 0x290   : > { %1596 = vst [vmem:[#allocation1 + $0x22] ss:$4 sm:$0xff] %v9050_v12 }
 0x291   : > { %1597 = vst [vmem:[#allocation1 + $0x23] ss:$4 sm:$0xff] %v9052_v57  ;;  %v9187_v36 = vld.sshfl [vmem:[#allocation1] sm:$0xff pattern:$0x73625140]  ;;  %v14591_v57 = vld [vmem:[#allocation191_spill] sm:$0xff] }
 0x292   : > { %1600 = vst [vmem:[#allocation1] ss:$4 sm:$0xff] %v14588_v9 }
 0x293   : > { %1601 = vst [vmem:[#allocation1 + $0x1] ss:$4 sm:$0xff] %v14589_v8  ;;  %v14622_v8 = vld [vmem:[#allocation47_spill] sm:$0xff] }
 0x294   : > { %1602 = vst [vmem:[#allocation1 + $0x2] ss:$4 sm:$0xff] %v14590_v60  ;;  %v14623_v60 = vld [vmem:[#allocation49_spill] sm:$0xff] }
 0x295   : > { %1603 = vst [vmem:[#allocation1 + $0x3] ss:$4 sm:$0xff] %v9067_v18 }
 0x298   : > { %v9193_v30 = vld.sshfl [vmem:[#allocation1 + $0x20] sm:$0xff pattern:$0x73625140] }
 0x299   : > { %1604 = vst [vmem:[#allocation1 + $0x20] ss:$4 sm:$0xff] %v9069_v17 }
 0x29a   : > { %1605 = vst [vmem:[#allocation1 + $0x21] ss:$4 sm:$0xff] %v9071_v22  ;;  %v14592_v22 = vld [vmem:[#allocation192_spill] sm:$0xff] }
 0x29b   : > { %1606 = vst [vmem:[#allocation1 + $0x22] ss:$4 sm:$0xff] %v9073_v11  ;;  %v14593_v11 = vld [vmem:[#allocation193_spill] sm:$0xff] }
 0x29c   : > { %1607 = vst [vmem:[#allocation1 + $0x23] ss:$4 sm:$0xff] %v9045_v48  ;;  %v9199_v12 = vld.sshfl [vmem:[#allocation1] sm:$0xff pattern:$0x73625140] }
 0x29d   : > { %1610 = vst [vmem:[#allocation1] ss:$4 sm:$0xff] %v9047_v21 }
 0x29e   : > { %1611 = vst [vmem:[#allocation1 + $0x1] ss:$4 sm:$0xff] %v9076_v44  ;;  %v14595_v44 = vld [vmem:[#allocation12_spill] sm:$0xff] }
 0x29f   : > { %1612 = vst [vmem:[#allocation1 + $0x2] ss:$4 sm:$0xff] %v9078_v43  ;;  %v14594_v43 = vld [vmem:[#allocation11_spill] sm:$0xff] }
 0x2a0   : > { %1613 = vst [vmem:[#allocation1 + $0x3] ss:$4 sm:$0xff] %v9080_v62  ;;  %v14604_v62 = vld [vmem:[#allocation27_spill] sm:$0xff] }
 0x2a3   : > { %v9205_v18 = vld.sshfl [vmem:[#allocation1 + $0x20] sm:$0xff pattern:$0x73625140] }
 0x2a4   : > { %1614 = vst [vmem:[#allocation1 + $0x20] ss:$4 sm:$0xff] %v14591_v57  ;;  %v14624_v57 = vld [vmem:[#allocation51_spill] sm:$0xff] }
 0x2a5   : > { %1615 = vst [vmem:[#allocation1 + $0x21] ss:$4 sm:$0xff] %v9057_v58  ;;  %v14597_v58 = vld [vmem:[#allocation14_spill] sm:$0xff] }
 0x2a6   : > { %1616 = vst [vmem:[#allocation1 + $0x22] ss:$4 sm:$0xff] %v14592_v22  ;;  %v14625_v22 = vld [vmem:[#allocation62_spill] sm:$0xff] }
 0x2a7   : > { %1617 = vst [vmem:[#allocation1 + $0x23] ss:$4 sm:$0xff] %v14593_v11  ;;  %v9211_v48 = vld.sshfl [vmem:[#allocation1] sm:$0xff pattern:$0x73625140] }
 0x2a8   : > { %1620 = vst [vmem:[#allocation1] ss:$4 sm:$0xff] %v9085_v4  ;;  %v14605_v4 = vld [vmem:[#allocation29_spill] sm:$0xff] }
 0x2a9   : > { %1621 = vst [vmem:[#allocation1 + $0x1] ss:$4 sm:$0xff] %v9087_v26 }
 0x2ae   : > { %v9215_v21 = vld.sshfl [vmem:[#allocation1 + $0x20] sm:$0xff pattern:$0x73625140] }
 0x2af   : > { %2024 = vst [vmem:[#allocation1 + $0x20] ss:$4 sm:$0xff] %v14594_v43 }
 0x2b0   : > { %2026 = vst [vmem:[#allocation1 + $0x21] ss:$4 sm:$0xff] %v14595_v44  ;;  %v9219_v17 = vld.sshfl [vmem:[#allocation1] sm:$0xff pattern:$0x73625140]  ;;  %v14626_v44 = vld [vmem:[#allocation70_spill] sm:$0xff] }
 0x2b1   : > { %2028 = vst [vmem:[#allocation1 + $0x22] ss:$4 sm:$0xff] %v14596_v2  ;;  %v14627_v2 = vld [vmem:[#allocation113_spill] sm:$0xff] }
 0x2b2   : > { %2030 = vst [vmem:[#allocation1 + $0x23] ss:$4 sm:$0xff] %v14597_v58  ;;  %v14628_v58 = vld [vmem:[#allocation114_spill] sm:$0xff] }
 0x2b3   : > { %2016 = vst [vmem:[#allocation1] ss:$4 sm:$0xff] %v14598_v53 }
 0x2b4   : > { %2018 = vst [vmem:[#allocation1 + $0x1] ss:$4 sm:$0xff] %v14599_v55  ;;  %v14629_v55 = vld [vmem:[#allocation73_spill] sm:$0xff] }
 0x2b5   : > { %2020 = vst [vmem:[#allocation1 + $0x2] ss:$4 sm:$0xff] %v14600_v35 }
 0x2b6   : > { %2022 = vst [vmem:[#allocation1 + $0x3] ss:$4 sm:$0xff] %v14601_v6  ;;  %v14630_v6 = vld [vmem:[#allocation65_spill] sm:$0xff] }
 0x2b9   : > { %v9227_v47 = vld.sshfl [vmem:[#allocation1 + $0x20] sm:$0xff pattern:$0x73625140] }
 0x2ba   : > { %2037 = vst [vmem:[#allocation1 + $0x20] ss:$4 sm:$0xff] %v14602_v3  ;;  %v14645_v3 = vld [vmem:[#allocation94_spill] sm:$0xff] }
 0x2bb   : > { %2038 = vst [vmem:[#allocation1 + $0x21] ss:$4 sm:$0xff] %v14603_v20 }
 0x2bc   : > { %2039 = vst [vmem:[#allocation1 + $0x22] ss:$4 sm:$0xff] %v14604_v62  ;;  %v14665_v62 = vld [vmem:[#allocation105_spill] sm:$0xff] }
 0x2bd   : > { %2040 = vst [vmem:[#allocation1 + $0x23] ss:$4 sm:$0xff] %v14605_v4  ;;  %v9233_v26 = vld.sshfl [vmem:[#allocation1] sm:$0xff pattern:$0x73625140]  ;;  %v14659_v4 = vld [vmem:[#allocation101_spill] sm:$0xff] }
 0x2be   : > { %2033 = vst [vmem:[#allocation1] ss:$4 sm:$0xff] %v14606_v54 }
 0x2bf   : > { %2034 = vst [vmem:[#allocation1 + $0x1] ss:$4 sm:$0xff] %v14607_v63 }
 0x2c0   : > { %2035 = vst [vmem:[#allocation1 + $0x2] ss:$4 sm:$0xff] %v14608_v19  ;;  %v14656_v19 = vld [vmem:[#allocation96_spill] sm:$0xff] }
 0x2c1   : > { %2036 = vst [vmem:[#allocation1 + $0x3] ss:$4 sm:$0xff] %v14609_v7 }
 0x2c4   : > { %v9239_v5 = vld.sshfl [vmem:[#allocation1 + $0x20] sm:$0xff pattern:$0x73625140] }
 0x2c5   : > { %2047 = vst [vmem:[#allocation1 + $0x20] ss:$4 sm:$0xff] %v14610_v39 }
 0x2c6   : > { %2048 = vst [vmem:[#allocation1 + $0x21] ss:$4 sm:$0xff] %v14611_v32  ;;  %v9283_v32 = vpop.f32.mrf.mxu0 }
 0x2c7   : > { %2049 = vst [vmem:[#allocation1 + $0x22] ss:$4 sm:$0xff] %v14612_v56 }
 0x2c8   : > { %2050 = vst [vmem:[#allocation1 + $0x23] ss:$4 sm:$0xff] %v14613_v45  ;;  %v9245_v24 = vld.sshfl [vmem:[#allocation1] sm:$0xff pattern:$0x73625140] }
 0x2c9   : > { %2043 = vst [vmem:[#allocation1] ss:$4 sm:$0xff] %v14614_v61  ;;  %v14635_v45 = vld [vmem:[#allocation84_spill] sm:$0xff]  ;;  %v14644_v61 = vld [vmem:[#allocation139_spill] sm:$0xff] }
 0x2ca   : > { %2044 = vst [vmem:[#allocation1 + $0x1] ss:$4 sm:$0xff] %v14615_v49 }
 0x2cb   : > { %2045 = vst [vmem:[#allocation1 + $0x2] ss:$4 sm:$0xff] %v14616_v10 }
 0x2cc   : > { %2046 = vst [vmem:[#allocation1 + $0x3] ss:$4 sm:$0xff] %v14617_v42  ;;  %v14643_v42 = vld [vmem:[#allocation137_spill] sm:$0xff] }
 0x2cd   : > { %14638 = vst [vmem:[#allocation5_spill] sm:$0xff] %v9283_v32 }
 0x2cf   : > { %v9251_v23 = vld.sshfl [vmem:[#allocation1 + $0x20] sm:$0xff pattern:$0x73625140] }
 0x2d0   : > { %2057 = vst [vmem:[#allocation1 + $0x20] ss:$4 sm:$0xff] %v14618_v14  ;;  %v14633_v14 = vld [vmem:[#allocation64_spill] sm:$0xff] }
 0x2d1   : > { %2058 = vst [vmem:[#allocation1 + $0x21] ss:$4 sm:$0xff] %v14619_v50  ;;  %v14632_v50 = vld [vmem:[#allocation60_spill] sm:$0xff] }
 0x2d2   : > { %2059 = vst [vmem:[#allocation1 + $0x22] ss:$4 sm:$0xff] %v14620_v13  ;;  %v14631_v13 = vld [vmem:[#allocation69_spill] sm:$0xff] }
 0x2d3   : > { %2060 = vst [vmem:[#allocation1 + $0x23] ss:$4 sm:$0xff] %v14621_v31  ;;  %v9257_v9 = vld.sshfl [vmem:[#allocation1] sm:$0xff pattern:$0x73625140] }
 0x2d4   : > { %2053 = vst [vmem:[#allocation1] ss:$4 sm:$0xff] %v14622_v8  ;;  %v14634_v8 = vld [vmem:[#allocation124_spill] sm:$0xff] }
 0x2d5   : > { %2054 = vst [vmem:[#allocation1 + $0x1] ss:$4 sm:$0xff] %v14623_v60 }
 0x2d6   : > { %2055 = vst [vmem:[#allocation1 + $0x2] ss:$4 sm:$0xff] %v14624_v57 }
 0x2d7   : > { %2056 = vst [vmem:[#allocation1 + $0x3] ss:$4 sm:$0xff] %v14625_v22 }
 0x2da   : > { %v9263_v11 = vld.sshfl [vmem:[#allocation1 + $0x20] sm:$0xff pattern:$0x73625140] }
 0x2db   : > { %2067 = vst [vmem:[#allocation1 + $0x20] ss:$4 sm:$0xff] %v14626_v44 }
 0x2dc   : > { %2068 = vst [vmem:[#allocation1 + $0x21] ss:$4 sm:$0xff] %v14627_v2  ;;  %v14636_v2 = vld [vmem:[#allocation127_spill] sm:$0xff] }
 0x2dd   : > { %2069 = vst [vmem:[#allocation1 + $0x22] ss:$4 sm:$0xff] %v14628_v58  ;;  %v14637_v58 = vld [vmem:[#allocation86_spill] sm:$0xff] }
 0x2de   : > { %2070 = vst [vmem:[#allocation1 + $0x23] ss:$4 sm:$0xff] %v14629_v55  ;;  %v9269_v35 = vld.sshfl [vmem:[#allocation1] sm:$0xff pattern:$0x73625140] }
 0x2df   : > { %2065 = vst [vmem:[#allocation1 + $0x2] ss:$4 sm:$0xff] %v14630_v6  ;;  %v7187_v6 = vld [vmem:[%s13825_s1 + $0x8] sm:$0xf] }
 0x2e0   : > { %2066 = vst [vmem:[#allocation1 + $0x3] ss:$4 sm:$0xff] %v14631_v13  ;;  %7544 = vmatpush.msk.msra.mxu2 %vm872_vm0, %v7187_v6  ;;  %7188 = vmatpush.msk.msra.mxu0 %vm872_vm0, %v7187_v6  ;;  %v9303_v6 = vpop.f32.mrf.mxu0 }
 0x2e1   : > { %2063 = vst [vmem:[#allocation1] ss:$4 sm:$0xff] %v14632_v50  ;;  %v14639_v50 = vld [vmem:[#allocation72_spill] sm:$0xff]  ;;  %7191 = vmatmul.msk.f32.vlgmr.msra.gmra.mxu2 %vm825_vm8, %v9103_v1  ;;  %7189 = vmatmul.msk.f32.vlgmr.msra.gmra.mxu0 %vm825_vm8, %v9091_v37  ;;  %v14648_v1 = vld [vmem:[#allocation87_spill] sm:$0xff] }
 0x2e2   : > { %2064 = vst [vmem:[#allocation1 + $0x1] ss:$4 sm:$0xff] %v14633_v14  ;;  %v14640_v14 = vld [vmem:[#allocation78_spill] sm:$0xff] }
 0x2e3   : > { %14646 = vst [vmem:[#allocation170_spill] sm:$0xff] %v9303_v6  ;;  %v14652_v6 = vld [vmem:[#allocation145_spill] sm:$0xff] }
 0x2e5   : > { %v9275_v60 = vld.sshfl [vmem:[#allocation1 + $0x20] sm:$0xff pattern:$0x73625140] }
 0x2e6   : > { %2077 = vst [vmem:[#allocation1 + $0x20] ss:$4 sm:$0xff] %v14634_v8 }
 0x2e7   : > { %2078 = vst [vmem:[#allocation1 + $0x21] ss:$4 sm:$0xff] %v14635_v45 }
 0x2e8   : > { %2079 = vst [vmem:[#allocation1 + $0x22] ss:$4 sm:$0xff] %v14636_v2  ;;  %v14642_v2 = vld [vmem:[#allocation83_spill] sm:$0xff] }
 0x2e9   : > { %2080 = vst [vmem:[#allocation1 + $0x23] ss:$4 sm:$0xff] %v14637_v58  ;;  %v9281_v55 = vld.sshfl [vmem:[#allocation1] sm:$0xff pattern:$0x73625140]  ;;  %7192 = vmatmul.msk.f32.gmra.mxu2 %vm825_vm8, %v9109_v41  ;;  %7190 = vmatmul.msk.f32.gmra.mxu0 %vm825_vm8, %v9097_v15  ;;  %v14653_v41 = vld [vmem:[#allocation147_spill] sm:$0xff] }
 0x2ea   : > { %2073 = vst [vmem:[#allocation1] ss:$4 sm:$0xff] %v14639_v50  ;;  %v14641_v58 = vld [vmem:[#allocation80_spill] sm:$0xff]  ;;  %v14654_v15 = vld [vmem:[#allocation150_spill] sm:$0xff] }
 0x2eb   : > { %2074 = vst [vmem:[#allocation1 + $0x1] ss:$4 sm:$0xff] %v14640_v14  ;;  %v14647_v14 = vld [vmem:[#allocation95_spill] sm:$0xff] }
 0x2ec   : > { %2075 = vst [vmem:[#allocation1 + $0x2] ss:$4 sm:$0xff] %v14641_v58  ;;  %v14651_v58 = vld [vmem:[#allocation93_spill] sm:$0xff] }
 0x2ed   : > { %2076 = vst [vmem:[#allocation1 + $0x3] ss:$4 sm:$0xff] %v14642_v2  ;;  %v14649_v2 = vld [vmem:[#allocation85_spill] sm:$0xff] }
 0x2f0   : > { %v9298_v39 = vld.sshfl [vmem:[#allocation1 + $0x20] sm:$0xff pattern:$0x73625140] }
 0x2f1   : > { %2087 = vst [vmem:[#allocation1 + $0x20] ss:$4 sm:$0xff] %v14643_v42  ;;  %v14650_v42 = vld [vmem:[#allocation90_spill] sm:$0xff]  ;;  %7193 = vmatmul.msk.f32.gmra.mxu2 %vm825_vm8, %v9115_v51  ;;  %v14660_v51 = vld [vmem:[#allocation103_spill] sm:$0xff] }
 0x2f2   : > { %2088 = vst [vmem:[#allocation1 + $0x21] ss:$4 sm:$0xff] %v14644_v61 }
 0x2f3   : > { %2089 = vst [vmem:[#allocation1 + $0x22] ss:$4 sm:$0xff] %v14645_v3  ;;  %v14697_v3 = vld [vmem:[#allocation40_spill] sm:$0xff] }
 0x2f4   : > { %2090 = vst [vmem:[#allocation1 + $0x23] ss:$4 sm:$0xff] %v14647_v14  ;;  %v9310_v37 = vld.sshfl [vmem:[#allocation1] sm:$0xff pattern:$0x73625140] }
 0x2f5   : > { %2083 = vst [vmem:[#allocation1] ss:$4 sm:$0xff] %v14648_v1  ;;  %v14655_v14 = vld [vmem:[#allocation104_spill] sm:$0xff] }
 0x2f6   : > { %2084 = vst [vmem:[#allocation1 + $0x1] ss:$4 sm:$0xff] %v14649_v2 }
 0x2f7   : > { %2085 = vst [vmem:[#allocation1 + $0x2] ss:$4 sm:$0xff] %v14650_v42  ;;  %v14657_v42 = vld [vmem:[#allocation98_spill] sm:$0xff] }
 0x2f8   : > { %2086 = vst [vmem:[#allocation1 + $0x3] ss:$4 sm:$0xff] %v14651_v58  ;;  %v9328_v58 = vpop.f32.mrf.mxu0 }
 0x2f9   : > { %14658 = vst [vmem:[#allocation178_spill] sm:$0xff] %v9328_v58  ;;  %7194 = vmatmul.msk.f32.gmra.mxu2 %vm825_vm8, %v9121_v46 }
 0x2fb   : > { %v9316_v7 = vld.sshfl [vmem:[#allocation1 + $0x20] sm:$0xff pattern:$0x73625140] }
 0x2fc   : > { %2097 = vst [vmem:[#allocation1 + $0x20] ss:$4 sm:$0xff] %v14652_v6  ;;  %v7212_v6 = vld [vmem:[%s13825_s1 + $0xc] sm:$0xf] }
 0x2fd   : > { %2098 = vst [vmem:[#allocation1 + $0x21] ss:$4 sm:$0xff] %v14653_v41  ;;  %7213 = vmatpush.msk.msrb.mxu0 %vm872_vm0, %v7212_v6  ;;  %7545 = vmatpush.msk.msra.mxu3 %vm872_vm0, %v7212_v6  ;;  %v14661_v41 = vld [vmem:[#allocation152_spill] sm:$0xff] }
 0x2fe   : > { %2099 = vst [vmem:[#allocation1 + $0x22] ss:$4 sm:$0xff] %v14654_v15  ;;  %7214 = vmatmul.msk.f32.vlgmr.msrb.gmra.mxu0 %vm825_vm8, %v9233_v26  ;;  %7216 = vmatmul.msk.f32.vlgmr.msra.gmra.mxu3 %vm825_vm8, %v9245_v24  ;;  %v14667_v26 = vld [vmem:[#allocation107_spill] sm:$0xff]  ;;  %v14668_v24 = vld [vmem:[#allocation109_spill] sm:$0xff]  ;;  %v14690_v15 = vld [vmem:[#allocation30_spill] sm:$0xff] }
 0x2ff   : > { %2100 = vst [vmem:[#allocation1 + $0x23] ss:$4 sm:$0xff] %v14655_v14  ;;  %v9324_v1 = vld.sshfl [vmem:[#allocation1] sm:$0xff pattern:$0x73625140] }
 0x300   : > { %2093 = vst [vmem:[#allocation1] ss:$4 sm:$0xff] %v14656_v19  ;;  %v14663_v19 = vld [vmem:[#allocation156_spill] sm:$0xff]  ;;  %v9352_v46 = vpop.f32.mrf.mxu0 }
 0x301   : > { %2094 = vst [vmem:[#allocation1 + $0x1] ss:$4 sm:$0xff] %v14657_v42  ;;  %v14662_v42 = vld [vmem:[#allocation154_spill] sm:$0xff]  ;;  %7195 = vmatmul.msk.f32.gmra.mxu2 %vm825_vm8, %v9127_v59  ;;  %v14670_v59 = vld [vmem:[#allocation129_spill] sm:$0xff] }
 0x302   : > { %2095 = vst [vmem:[#allocation1 + $0x2] ss:$4 sm:$0xff] %v14659_v4 }
 0x303   : > { %2096 = vst [vmem:[#allocation1 + $0x3] ss:$4 sm:$0xff] %v14660_v51  ;;  %v14664_v51 = vld [vmem:[#allocation116_spill] sm:$0xff] }
 0x304   : > { %14666 = vst [vmem:[#allocation171_spill] sm:$0xff] %v9352_v46  ;;  %v7237_v46 = vld [vmem:[%s13825_s1 + $0x10] sm:$0xf] }
 0x305   : > { %7240 = vmatpush.msk.msra.mxu0 %vm872_vm0, %v7237_v46  ;;  %v14675_v46 = vld [vmem:[#allocation126_spill] sm:$0xff] }
 0x306   : > { %v9343_v58 = vld.sshfl [vmem:[#allocation1 + $0x20] sm:$0xff pattern:$0x73625140]  ;;  %7215 = vmatmul.msk.f32.gmra.mxu0 %vm825_vm8, %v9227_v47  ;;  %7217 = vmatmul.msk.f32.gmra.mxu3 %vm825_vm8, %v9239_v5 }
 0x307   : > { %2107 = vst [vmem:[#allocation1 + $0x20] ss:$4 sm:$0xff] %v14661_v41  ;;  %v14671_v47 = vld [vmem:[#allocation160_spill] sm:$0xff]  ;;  %v14672_v41 = vld [vmem:[#allocation162_spill] sm:$0xff] }
 0x308   : > { %2108 = vst [vmem:[#allocation1 + $0x21] ss:$4 sm:$0xff] %v14662_v42 }
 0x309   : > { %2109 = vst [vmem:[#allocation1 + $0x22] ss:$4 sm:$0xff] %v14663_v19  ;;  %v14669_v19 = vld [vmem:[#allocation112_spill] sm:$0xff]  ;;  %7196 = vmatmul.msk.f32.gmra.mxu2 %vm825_vm8, %v9133_v34  ;;  %v9386_v34 = vld [vmem:[%s7841_s14 + $0xf0] sm:$0xff] }
 0x30a   : > { %2110 = vst [vmem:[#allocation1 + $0x23] ss:$4 sm:$0xff] %v14664_v51  ;;  %v9349_v6 = vld.sshfl [vmem:[#allocation1] sm:$0xff pattern:$0x73625140] }
 0x30b   : > { %2103 = vst [vmem:[#allocation1] ss:$4 sm:$0xff] %v14665_v62  ;;  %v14691_v51 = vld [vmem:[#allocation16_spill] sm:$0xff] }
 0x30c   : > { %2104 = vst [vmem:[#allocation1 + $0x1] ss:$4 sm:$0xff] %v14667_v26  ;;  %v14674_v26 = vld [vmem:[#allocation120_spill] sm:$0xff] }
 0x30d   : > { %2105 = vst [vmem:[#allocation1 + $0x2] ss:$4 sm:$0xff] %v14668_v24  ;;  %v14673_v24 = vld [vmem:[#allocation118_spill] sm:$0xff] }
 0x30e   : > { %2106 = vst [vmem:[#allocation1 + $0x3] ss:$4 sm:$0xff] %v14669_v19  ;;  %7218 = vmatmul.msk.f32.gmra.mxu3 %vm825_vm8, %v9257_v9  ;;  %v9391_v9 = vrot.slane %v9386_v34, 2  ;;  %v14688_v19 = vld [vmem:[#allocation26_spill] sm:$0xff] }
 0x30f   : > { %14677 = vst [vmem:[#allocation172_spill] sm:$0xff] %v9386_v34 }
 0x310   : > { %14678 = vst [vmem:[#allocation173_spill] sm:$0xff] %v9391_v9 }
 0x311   : > { %v9363_v42 = vld.sshfl [vmem:[#allocation1 + $0x20] sm:$0xff pattern:$0x73625140]  ;;  %7197 = vmatmul.msk.f32.gmra.mxu2 %vm825_vm8, %v9139_v38  ;;  %v9403_v38 = vld [vmem:[%s7841_s14 + $0xf8] sm:$0xff] }
 0x312   : > { %2117 = vst [vmem:[#allocation1 + $0x20] ss:$4 sm:$0xff] %v14670_v59  ;;  %v9424_v62 = vrot.slane %v9403_v38, 6  ;;  %v14689_v59 = vld [vmem:[#allocation28_spill] sm:$0xff] }
 0x313   : > { %2118 = vst [vmem:[#allocation1 + $0x21] ss:$4 sm:$0xff] %v14671_v47  ;;  %v14676_v47 = vld [vmem:[#allocation131_spill] sm:$0xff] }
 0x314   : > { %2119 = vst [vmem:[#allocation1 + $0x22] ss:$4 sm:$0xff] %v14672_v41  ;;  %v9394_v41 = vrot.slane %v9386_v34, 4 }
 0x315   : > { %v9374_v5 = vld.sshfl [vmem:[#allocation1] sm:$0xff pattern:$0x73625140]  ;;  %2120 = vst [vmem:[#allocation1 + $0x23] ss:$4 sm:$0xff] %v14676_v47 }
 0x316   : > { %2113 = vst [vmem:[#allocation1] ss:$4 sm:$0xff] %v14537_v0  ;;  %7219 = vmatmul.msk.f32.gmra.mxu3 %vm825_vm8, %v9251_v23  ;;  %v9409_v23 = vrot.slane %v9403_v38, 2  ;;  %v14687_v0 = vld [vmem:[#allocation24_spill] sm:$0xff] }
 0x317   : > { %2114 = vst [vmem:[#allocation1 + $0x1] ss:$4 sm:$0xff] %v14673_v24 }
 0x318   : > { %2115 = vst [vmem:[#allocation1 + $0x2] ss:$4 sm:$0xff] %v14674_v26  ;;  %v9415_v26 = vrot.slane %v9403_v38, 4 }
 0x319   : > { %2116 = vst [vmem:[#allocation1 + $0x3] ss:$4 sm:$0xff] %v14675_v46  ;;  %v9399_v46 = vrot.slane %v9386_v34, 6  ;;  %7198 = vmatmul.msk.f32.gmra.mxu2 %vm825_vm8, %v9145_v52  ;;  %v9428_v52 = vld [vmem:[%s7841_s14 + $0x100] sm:$0xf] }
 0x31a   : > { %14679 = vst [vmem:[#allocation174_spill] sm:$0xff] %v9394_v41 }
 0x31b   : > { %14680 = vst [vmem:[#allocation175_spill] sm:$0xff] %v9399_v46 }
 0x31c   : > { %14681 = vst [vmem:[#allocation176_spill] sm:$0xff] %v9403_v38  ;;  %v9405_v47 = vld.sshfl [vmem:[#allocation1 + $0x20] sm:$0xff pattern:$0x73625140] }
 0x31d   : > { %14682 = vst [vmem:[#allocation177_spill] sm:$0xff] %v9409_v23 }
 0x31e   : > { %14683 = vst [vmem:[#allocation185_spill] sm:$0xff] %v9415_v26  ;;  %7220 = vmatmul.msk.f32.gmra.mxu3 %vm825_vm8, %v9269_v35 }
 0x31f   : > { %2127 = vst [vmem:[#allocation1 + $0x20] ss:$4 sm:$0xff] %v9399_v46 }
 0x320   : > { %v9396_v24 = vld.sshfl [vmem:[#allocation1] sm:$0xff pattern:$0x73625140]  ;;  %2128 = vst [vmem:[#allocation1 + $0x21] ss:$4 sm:$0xff] %v9403_v38 }
 0x321   : > { %2123 = vst [vmem:[#allocation1] ss:$4 sm:$0xff] %v8512_v29  ;;  %7199 = vmatmul.msk.f32.gmra.mxu2 %vm825_vm8, %v9151_v40  ;;  %v9440_v29 = vpop.f32.mrf.mxu0 }
 0x322   : > { %2124 = vst [vmem:[#allocation1 + $0x1] ss:$4 sm:$0xff] %v9386_v34 }
 0x323   : > { %2125 = vst [vmem:[#allocation1 + $0x2] ss:$4 sm:$0xff] %v9391_v9 }
 0x324   : > { %2126 = vst [vmem:[#allocation1 + $0x3] ss:$4 sm:$0xff] %v9394_v41 }
 0x325   : > { %2129 = vst [vmem:[#allocation1 + $0x22] ss:$4 sm:$0xff] %v9409_v23 }
 0x326   : > { %14684 = vst [vmem:[#allocation186_spill] sm:$0xff] %v9424_v62  ;;  %7221 = vmatmul.msk.f32.gmra.mxu3 %vm825_vm8, %v9263_v11  ;;  %v14692_v11 = vld [vmem:[#allocation18_spill] sm:$0xff] }
 0x327   : > { %2130 = vst [vmem:[#allocation1 + $0x23] ss:$4 sm:$0xff] %v9415_v26 }
 0x328   : > { %14685 = vst [vmem:[#allocation179_spill] sm:$0xff] %v9428_v52 }
 0x329   : > { %14686 = vst [vmem:[#allocation180_spill] sm:$0xff] %v9440_v29  ;;  %7200 = vmatmul.msk.f32.gmra.mxu2 %vm825_vm8, %v9157_v16  ;;  %v14693_v29 = vld [vmem:[#allocation20_spill] sm:$0xff]  ;;  %v14698_v16 = vld [vmem:[#allocation41_spill] sm:$0xff] }
 0x32b   : > { %v9430_v32 = vld.sshfl [vmem:[#allocation1] sm:$0xff pattern:$0x73625140] }
 0x32c   : > { %2133 = vst [vmem:[#allocation1] ss:$4 sm:$0xff] %v9424_v62 }
 0x32d   : > { %2134 = vst [vmem:[#allocation1 + $0x1] ss:$4 sm:$0xff] %v9428_v52 }
 0x32e   : > { %v9438_v35 = vld.sshfl [vmem:[#allocation1 + $0x20] sm:$0xff pattern:$0x73625140]  ;;  %7222 = vmatmul.msk.f32.gmra.mxu3 %vm825_vm8, %v9281_v55  ;;  %v14699_v55 = vld [vmem:[#allocation46_spill] sm:$0xff] }
 0x32f   : > { %2557 = vst [vmem:[#allocation1 + $0x20] ss:$4 sm:$0xff] %v14687_v0  ;;  %v14694_v0 = vld [vmem:[#allocation21_spill] sm:$0xff] }
 0x330   : > { %2559 = vst [vmem:[#allocation1 + $0x21] ss:$4 sm:$0xff] %v14688_v19  ;;  %v9456_v19 = vpop.f32.mrf.mxu0 }
 0x331   : > { %2561 = vst [vmem:[#allocation1 + $0x22] ss:$4 sm:$0xff] %v14689_v59  ;;  %7201 = vmatmul.msk.f32.gmra.mxu2 %vm825_vm8, %v9163_v27 }
 0x332   : > { %2563 = vst [vmem:[#allocation1 + $0x23] ss:$4 sm:$0xff] %v14690_v15  ;;  %v14696_v15 = vld [vmem:[#allocation38_spill] sm:$0xff] }
 0x333   : > { %14695 = vst [vmem:[#allocation190_spill] sm:$0xff] %v9456_v19  ;;  %v14703_v19 = vld [vmem:[#allocation37_spill] sm:$0xff] }
 0x334   : > { %v9446_v40 = vld.sshfl [vmem:[#allocation1] sm:$0xff pattern:$0x73625140] }
 0x335   : > { %2549 = vst [vmem:[#allocation1] ss:$4 sm:$0xff] %v14691_v51  ;;  %v14700_v51 = vld [vmem:[#allocation32_spill] sm:$0xff] }
 0x336   : > { %2551 = vst [vmem:[#allocation1 + $0x1] ss:$4 sm:$0xff] %v14692_v11  ;;  %7223 = vmatmul.msk.f32.gmra.mxu3 %vm825_vm8, %v9275_v60  ;;  %v14701_v11 = vld [vmem:[#allocation34_spill] sm:$0xff] }
 0x337   : > { %2553 = vst [vmem:[#allocation1 + $0x2] ss:$4 sm:$0xff] %v14693_v29  ;;  %v14705_v60 = vld [vmem:[#allocation54_spill] sm:$0xff] }
 0x338   : > { %2555 = vst [vmem:[#allocation1 + $0x3] ss:$4 sm:$0xff] %v14694_v0  ;;  %v14702_v0 = vld [vmem:[#allocation36_spill] sm:$0xff] }
 0x339   : > { %v2565_v59 = vld.sshfl [vmem:[#allocation1 + $0x20] sm:$0xff pattern:$0x73625140]  ;;  %7202 = vmatmul.msk.f32.gmra.mxu2 %vm825_vm8, %v9169_v25 }
 0x33a   : > { %2570 = vst [vmem:[#allocation1 + $0x20] ss:$4 sm:$0xff] %v14696_v15  ;;  %v9471_v15 = vpop.f32.mrf.mxu0  ;;  %v14711_v25 = vld [vmem:[#allocation52_spill] sm:$0xff] }
 0x33b   : > { %2571 = vst [vmem:[#allocation1 + $0x21] ss:$4 sm:$0xff] %v14697_v3 }
 0x33c   : > { %2572 = vst [vmem:[#allocation1 + $0x22] ss:$4 sm:$0xff] %v14698_v16 }
 0x33d   : > { %2573 = vst [vmem:[#allocation1 + $0x23] ss:$4 sm:$0xff] %v14699_v55 }
 0x33e   : > { %14704 = vst [vmem:[#allocation181_spill] sm:$0xff] %v9471_v15  ;;  %7224 = vmatmul.msk.f32.gmra.mxu3 %vm825_vm8, %v9310_v37  ;;  %v14710_v15 = vld [vmem:[#allocation50_spill] sm:$0xff] }
 0x33f   : > { %v2564_v29 = vld.sshfl [vmem:[#allocation1] sm:$0xff pattern:$0x73625140] }
 0x340   : > { %2566 = vst [vmem:[#allocation1] ss:$4 sm:$0xff] %v14700_v51  ;;  %7241 = vmatmul.msk.f32.vlgmr.msra.gmra.mxu0 %vm825_vm8, %v2564_v29  ;;  %v14706_v51 = vld [vmem:[#allocation55_spill] sm:$0xff]  ;;  %v14707_v29 = vld [vmem:[#allocation56_spill] sm:$0xff] }
 0x341   : > { %2567 = vst [vmem:[#allocation1 + $0x1] ss:$4 sm:$0xff] %v14701_v11  ;;  %v14709_v11 = vld [vmem:[#allocation48_spill] sm:$0xff]  ;;  %7203 = vmatmul.msk.f32.gmra.mxu2 %vm825_vm8, %v9175_v33 }
 0x342   : > { %2568 = vst [vmem:[#allocation1 + $0x2] ss:$4 sm:$0xff] %v14702_v0  ;;  %v14708_v0 = vld [vmem:[#allocation58_spill] sm:$0xff]  ;;  %v9489_v37 = vpop.f32.mrf.mxu0 }
 0x343   : > { %2569 = vst [vmem:[#allocation1 + $0x3] ss:$4 sm:$0xff] %v14703_v19 }
 0x344   : > { %v2575_v27 = vld.sshfl [vmem:[#allocation1 + $0x20] sm:$0xff pattern:$0x73625140]  ;;  %14712 = vst [vmem:[#allocation182_spill] sm:$0xff] %v9489_v37  ;;  %v14719_v37 = vld [vmem:[#allocation61_spill] sm:$0xff] }
 0x345   : > { %2580 = vst [vmem:[#allocation1 + $0x20] ss:$4 sm:$0xff] %v14705_v60  ;;  %v14713_v60 = vld [vmem:[#allocation53_spill] sm:$0xff] }
 0x346   : > { %2581 = vst [vmem:[#allocation1 + $0x21] ss:$4 sm:$0xff] %v14706_v51  ;;  %7225 = vmatmul.msk.f32.gmra.mxu3 %vm825_vm8, %v9298_v39  ;;  %v14717_v51 = vld [vmem:[#allocation77_spill] sm:$0xff]  ;;  %v14718_v39 = vld [vmem:[#allocation59_spill] sm:$0xff] }
 0x347   : > { %2582 = vst [vmem:[#allocation1 + $0x22] ss:$4 sm:$0xff] %v14707_v29  ;;  %v14715_v29 = vld [vmem:[#allocation75_spill] sm:$0xff] }
 0x348   : > { %7242 = vmatmul.msk.f32.gmra.mxu0 %vm825_vm8, %v2565_v59  ;;  %2583 = vst [vmem:[#allocation1 + $0x23] ss:$4 sm:$0xff] %v14708_v0  ;;  %v14714_v0 = vld [vmem:[#allocation74_spill] sm:$0xff] }
 0x349   : > { %7204 = vmatmul.msk.f32.gmra.mxu2 %vm825_vm8, %v9181_v28  ;;  %v14724_v28 = vld [vmem:[#allocation128_spill] sm:$0xff] }
 0x34a   : > { %v2574_v19 = vld.sshfl [vmem:[#allocation1] sm:$0xff pattern:$0x73625140] }
 0x34b   : > { %2576 = vst [vmem:[#allocation1] ss:$4 sm:$0xff] %v14709_v11 }
 0x34c   : > { %2577 = vst [vmem:[#allocation1 + $0x1] ss:$4 sm:$0xff] %v14710_v15  ;;  %v14716_v15 = vld [vmem:[#allocation76_spill] sm:$0xff] }
 0x34d   : > { %2578 = vst [vmem:[#allocation1 + $0x2] ss:$4 sm:$0xff] %v14711_v25 }
 0x34e   : > { %2579 = vst [vmem:[#allocation1 + $0x3] ss:$4 sm:$0xff] %v14713_v60  ;;  %7226 = vmatmul.msk.f32.gmra.mxu3 %vm825_vm8, %v9324_v1  ;;  %v14725_v1 = vld [vmem:[#allocation130_spill] sm:$0xff] }
 0x34f   : > { %v2585_v59 = vld.sshfl [vmem:[#allocation1 + $0x20] sm:$0xff pattern:$0x73625140] }
 0x350   : > { %7243 = vmatmul.msk.f32.gmra.mxu0 %vm825_vm8, %v2574_v19  ;;  %2590 = vst [vmem:[#allocation1 + $0x20] ss:$4 sm:$0xff] %v14714_v0  ;;  %v9503_v19 = vpop.f32.mrf.mxu0  ;;  %v14721_v0 = vld [vmem:[#allocation63_spill] sm:$0xff] }
 0x351   : > { %2591 = vst [vmem:[#allocation1 + $0x21] ss:$4 sm:$0xff] %v14715_v29  ;;  %v14723_v29 = vld [vmem:[#allocation125_spill] sm:$0xff]  ;;  %7205 = vmatmul.msk.f32.gmra.mxu2 %vm825_vm8, %v9187_v36  ;;  %v14731_v36 = vld [vmem:[#allocation123_spill] sm:$0xff] }
 0x352   : > { %2592 = vst [vmem:[#allocation1 + $0x22] ss:$4 sm:$0xff] %v14716_v15  ;;  %v14722_v15 = vld [vmem:[#allocation71_spill] sm:$0xff] }
 0x353   : > { %2593 = vst [vmem:[#allocation1 + $0x23] ss:$4 sm:$0xff] %v14717_v51 }
 0x354   : > { %14720 = vst [vmem:[#allocation183_spill] sm:$0xff] %v9503_v19  ;;  %v14726_v19 = vld [vmem:[#allocation88_spill] sm:$0xff] }
 0x355   : > { %v2584_v33 = vld.sshfl [vmem:[#allocation1] sm:$0xff pattern:$0x73625140] }
 0x356   : > { %2586 = vst [vmem:[#allocation1] ss:$4 sm:$0xff] %v14718_v39  ;;  %7227 = vmatmul.msk.f32.gmra.mxu3 %vm825_vm8, %v9316_v7 }
 0x357   : > { %2587 = vst [vmem:[#allocation1 + $0x1] ss:$4 sm:$0xff] %v14719_v37  ;;  %v14730_v37 = vld [vmem:[#allocation82_spill] sm:$0xff] }
 0x358   : > { %2588 = vst [vmem:[#allocation1 + $0x2] ss:$4 sm:$0xff] %v14721_v0  ;;  %7244 = vmatmul.msk.f32.gmra.mxu0 %vm825_vm8, %v2575_v27  ;;  %v14727_v27 = vld [vmem:[#allocation79_spill] sm:$0xff] }
 0x359   : > { %2589 = vst [vmem:[#allocation1 + $0x3] ss:$4 sm:$0xff] %v14722_v15  ;;  %v9518_v15 = vpop.f32.mrf.mxu0  ;;  %7206 = vmatmul.msk.f32.gmra.mxu2 %vm825_vm8, %v9193_v30  ;;  %v14738_v30 = vld [vmem:[#allocation91_spill] sm:$0xff] }
 0x35a   : > { %v2595_v51 = vld.sshfl [vmem:[#allocation1 + $0x20] sm:$0xff pattern:$0x73625140]  ;;  %14728 = vst [vmem:[#allocation184_spill] sm:$0xff] %v9518_v15  ;;  %v14734_v15 = vld [vmem:[#allocation142_spill] sm:$0xff] }
 0x35b   : > { %2600 = vst [vmem:[#allocation1 + $0x20] ss:$4 sm:$0xff] %v14723_v29  ;;  %v14729_v29 = vld [vmem:[#allocation81_spill] sm:$0xff] }
 0x35c   : > { %2601 = vst [vmem:[#allocation1 + $0x21] ss:$4 sm:$0xff] %v14724_v28 }
 0x35d   : > { %2602 = vst [vmem:[#allocation1 + $0x22] ss:$4 sm:$0xff] %v14725_v1  ;;  %v14737_v1 = vld [vmem:[#allocation89_spill] sm:$0xff] }
 0x35e   : > { %2603 = vst [vmem:[#allocation1 + $0x23] ss:$4 sm:$0xff] %v14726_v19  ;;  %7228 = vmatmul.msk.f32.gmra.mxu3 %vm825_vm8, %v9349_v6  ;;  %v14732_v19 = vld [vmem:[#allocation140_spill] sm:$0xff] }
 0x35f   : > { %v14739_v6 = vld [vmem:[#allocation92_spill] sm:$0xff] }
 0x360   : > { %v2594_v0 = vld.sshfl [vmem:[#allocation1] sm:$0xff pattern:$0x73625140]  ;;  %7245 = vmatmul.msk.f32.gmra.mxu0 %vm825_vm8, %v2584_v33  ;;  %v14733_v33 = vld [vmem:[#allocation141_spill] sm:$0xff] }
 0x361   : > { %2596 = vst [vmem:[#allocation1] ss:$4 sm:$0xff] %v14727_v27  ;;  %7207 = vmatmul.msk.f32.gmra.mxu2 %vm825_vm8, %v9199_v12  ;;  %v14744_v12 = vld [vmem:[#allocation106_spill] sm:$0xff] }
 0x362   : > { %2597 = vst [vmem:[#allocation1 + $0x1] ss:$4 sm:$0xff] %v14729_v29  ;;  %v14735_v29 = vld [vmem:[#allocation97_spill] sm:$0xff] }
 0x363   : > { %2598 = vst [vmem:[#allocation1 + $0x2] ss:$4 sm:$0xff] %v14730_v37 }
 0x364   : > { %2599 = vst [vmem:[#allocation1 + $0x3] ss:$4 sm:$0xff] %v14731_v36  ;;  %v9534_v36 = vpop.f32.mrf.mxu0 }
 0x365   : > { %v9527_v7 = vld.sshfl [vmem:[#allocation1 + $0x20] sm:$0xff pattern:$0x73625140]  ;;  %14736 = vst [vmem:[#allocation187_spill] sm:$0xff] %v9534_v36  ;;  %v14742_v36 = vld [vmem:[#allocation149_spill] sm:$0xff] }
 0x366   : > { %2610 = vst [vmem:[#allocation1 + $0x20] ss:$4 sm:$0xff] %v14732_v19  ;;  %7229 = vmatmul.msk.f32.gmra.mxu3 %vm825_vm8, %v9343_v58 }
 0x367   : > { %2611 = vst [vmem:[#allocation1 + $0x21] ss:$4 sm:$0xff] %v14733_v33 }
 0x368   : > { %7246 = vmatmul.msk.f32.gmra.mxu0 %vm825_vm8, %v2585_v59  ;;  %2612 = vst [vmem:[#allocation1 + $0x22] ss:$4 sm:$0xff] %v14734_v15  ;;  %v14740_v59 = vld [vmem:[#allocation138_spill] sm:$0xff]  ;;  %v14743_v15 = vld [vmem:[#allocation151_spill] sm:$0xff] }
 0x369   : > { %2613 = vst [vmem:[#allocation1 + $0x23] ss:$4 sm:$0xff] %v14735_v29  ;;  %v14741_v29 = vld [vmem:[#allocation148_spill] sm:$0xff]  ;;  %7208 = vmatmul.msk.f32.gmra.mxu2 %vm825_vm8, %v9205_v18 }
 0x36b   : > { %v2604_v37 = vld.sshfl [vmem:[#allocation1] sm:$0xff pattern:$0x73625140] }
 0x36c   : > { %2606 = vst [vmem:[#allocation1] ss:$4 sm:$0xff] %v14737_v1  ;;  %v9555_v58 = vpop.f32.mrf.mxu0 }
 0x36d   : > { %2607 = vst [vmem:[#allocation1 + $0x1] ss:$4 sm:$0xff] %v14738_v30  ;;  %v14775_v30 = vld [vmem:[#allocation135_spill] sm:$0xff] }
 0x36e   : > { %2608 = vst [vmem:[#allocation1 + $0x2] ss:$4 sm:$0xff] %v14739_v6  ;;  %7230 = vmatmul.msk.f32.gmra.mxu3 %vm825_vm8, %v9374_v5  ;;  %v14747_v6 = vld [vmem:[#allocation100_spill] sm:$0xff]  ;;  %v14750_v5 = vld [vmem:[#allocation155_spill] sm:$0xff] }
 0x36f   : > { %2609 = vst [vmem:[#allocation1 + $0x3] ss:$4 sm:$0xff] %v14740_v59 }
 0x370   : > { %7247 = vmatmul.msk.f32.gmra.mxu0 %vm825_vm8, %v2594_v0  ;;  %v9545_v19 = vld.sshfl [vmem:[#allocation1 + $0x20] sm:$0xff pattern:$0x73625140]  ;;  %14745 = vst [vmem:[#allocation188_spill] sm:$0xff] %v9555_v58  ;;  %v14746_v0 = vld [vmem:[#allocation99_spill] sm:$0xff]  ;;  %v14751_v58 = vld [vmem:[#allocation157_spill] sm:$0xff] }
 0x371   : > { %2620 = vst [vmem:[#allocation1 + $0x20] ss:$4 sm:$0xff] %v14741_v29  ;;  %v14748_v29 = vld [vmem:[#allocation102_spill] sm:$0xff]  ;;  %7209 = vmatmul.msk.f32.gmra.mxu2 %vm825_vm8, %v9211_v48 }
 0x372   : > { %2621 = vst [vmem:[#allocation1 + $0x21] ss:$4 sm:$0xff] %v14742_v36  ;;  %v14756_v48 = vld [vmem:[#allocation110_spill] sm:$0xff] }
 0x373   : > { %2622 = vst [vmem:[#allocation1 + $0x22] ss:$4 sm:$0xff] %v14743_v15  ;;  %v14749_v15 = vld [vmem:[#allocation146_spill] sm:$0xff] }
 0x374   : > { %2623 = vst [vmem:[#allocation1 + $0x23] ss:$4 sm:$0xff] %v14744_v12  ;;  %v14752_v12 = vld [vmem:[#allocation158_spill] sm:$0xff] }
 0x375   : > { %v14774_v36 = vld [vmem:[#allocation134_spill] sm:$0xff] }
 0x376   : > { %v9557_v59 = vld.sshfl [vmem:[#allocation1] sm:$0xff pattern:$0x73625140]  ;;  %7231 = vmatmul.msk.f32.gmra.mxu3 %vm825_vm8, %v9363_v42  ;;  %v14758_v42 = vld [vmem:[#allocation153_spill] sm:$0xff] }
 0x377   : > { %2616 = vst [vmem:[#allocation1] ss:$4 sm:$0xff] %v14746_v0  ;;  %v2523_v0 = vrot.slane %v9391_v9, 7 }
 0x378   : > { %2617 = vst [vmem:[#allocation1 + $0x1] ss:$4 sm:$0xff] %v14747_v6  ;;  %7248 = vmatmul.msk.f32.gmra.mxu0 %vm825_vm8, %v2595_v51  ;;  %v9573_v6 = vpop.f32.mrf.mxu0  ;;  %v14754_v51 = vld [vmem:[#allocation117_spill] sm:$0xff] }
 0x379   : > { %2618 = vst [vmem:[#allocation1 + $0x2] ss:$4 sm:$0xff] %v14748_v29  ;;  %v14755_v29 = vld [vmem:[#allocation108_spill] sm:$0xff]  ;;  %7210 = vmatmul.msk.f32.gmra.mxu2 %vm825_vm8, %v9215_v21  ;;  %v14764_v21 = vld [vmem:[#allocation119_spill] sm:$0xff] }
 0x37a   : > { %2619 = vst [vmem:[#allocation1 + $0x3] ss:$4 sm:$0xff] %v14749_v15 }
 0x37b   : > { %v9564_v18 = vld.sshfl [vmem:[#allocation1 + $0x20] sm:$0xff pattern:$0x73625140]  ;;  %14753 = vst [vmem:[#allocation189_spill] sm:$0xff] %v9573_v6 }
 0x37c   : > { %2630 = vst [vmem:[#allocation1 + $0x20] ss:$4 sm:$0xff] %v14750_v5  ;;  %v14757_v5 = vld [vmem:[#allocation111_spill] sm:$0xff] }
 0x37d   : > { %2631 = vst [vmem:[#allocation1 + $0x21] ss:$4 sm:$0xff] %v14751_v58  ;;  %v14763_v58 = vld [vmem:[#allocation132_spill] sm:$0xff] }
 0x37e   : > { %2632 = vst [vmem:[#allocation1 + $0x22] ss:$4 sm:$0xff] %v14752_v12  ;;  %7232 = vmatmul.msk.f32.gmra.mxu3 %vm825_vm8, %v9396_v24  ;;  %v14762_v12 = vld [vmem:[#allocation164_spill] sm:$0xff]  ;;  %v14765_v24 = vld [vmem:[#allocation121_spill] sm:$0xff] }
 0x37f   : > { %2633 = vst [vmem:[#allocation1 + $0x23] ss:$4 sm:$0xff] %v14754_v51  ;;  %v14760_v51 = vld [vmem:[#allocation161_spill] sm:$0xff] }
 0x380   : > { %7249 = vmatmul.msk.f32.gmra.mxu0 %vm825_vm8, %v2604_v37  ;;  %v14761_v37 = vld [vmem:[#allocation163_spill] sm:$0xff] }
 0x381   : > { %v9577_v15 = vld.sshfl [vmem:[#allocation1] sm:$0xff pattern:$0x73625140]  ;;  %7211 = vmatmul.msk.f32.gmra.mxu2 %vm825_vm8, %v9219_v17  ;;  %v2529_v17 = vrot.slane %v9399_v46, 7 }
 0x382   : > { %2626 = vst [vmem:[#allocation1] ss:$4 sm:$0xff] %v14755_v29  ;;  %v14771_v29 = vld [vmem:[#allocation168_spill] sm:$0xff] }
 0x383   : > { %2627 = vst [vmem:[#allocation1 + $0x1] ss:$4 sm:$0xff] %v14756_v48 }
 0x384   : > { %2628 = vst [vmem:[#allocation1 + $0x2] ss:$4 sm:$0xff] %v14757_v5  ;;  %v14770_v5 = vld [vmem:[#allocation167_spill] sm:$0xff] }
 0x385   : > { %2629 = vst [vmem:[#allocation1 + $0x3] ss:$4 sm:$0xff] %v14758_v42  ;;  %v14766_v42 = vld [vmem:[#allocation122_spill] sm:$0xff] }
 0x386   : > { %v9587_v6 = vld.sshfl [vmem:[#allocation1 + $0x20] sm:$0xff pattern:$0x73625140]  ;;  %7233 = vmatmul.msk.f32.gmra.mxu3 %vm825_vm8, %v9405_v47  ;;  %v2538_v47 = vrot.slane %v9415_v26, 7 }
 0x387   : > { %14759 = vst [vmem:[#allocation191_spill] sm:$0xff] %v9587_v6 }
 0x388   : > { %2640 = vst [vmem:[#allocation1 + $0x20] ss:$4 sm:$0xff] %v14760_v51  ;;  %v14767_v51 = vld [vmem:[#allocation159_spill] sm:$0xff]  ;;  %v2540_v33 = vrot.slane %v2538_v47, 2 }
 0x389   : > { %2641 = vst [vmem:[#allocation1 + $0x21] ss:$4 sm:$0xff] %v14761_v37 }
 0x38a   : > { %2642 = vst [vmem:[#allocation1 + $0x22] ss:$4 sm:$0xff] %v14762_v12  ;;  %v14769_v12 = vld [vmem:[#allocation166_spill] sm:$0xff] }
 0x38b   : > { %2643 = vst [vmem:[#allocation1 + $0x23] ss:$4 sm:$0xff] %v14763_v58  ;;  %v2532_v58 = vrot.slane %v9403_v38, 7 }
 0x38c   : > { %v9593_v48 = vld.sshfl [vmem:[#allocation1] sm:$0xff pattern:$0x73625140] }
 0x38d   : > { %2636 = vst [vmem:[#allocation1] ss:$4 sm:$0xff] %v14764_v21  ;;  %v2535_v21 = vrot.slane %v9409_v23, 7 }
 0x38e   : > { %2637 = vst [vmem:[#allocation1 + $0x1] ss:$4 sm:$0xff] %v14765_v24  ;;  %7234 = vmatmul.msk.f32.gmra.mxu3 %vm825_vm8, %v9430_v32  ;;  %v2526_v32 = vrot.slane %v9394_v41, 7 }
 0x38f   : > { %2638 = vst [vmem:[#allocation1 + $0x2] ss:$4 sm:$0xff] %v14766_v42  ;;  %v2531_v42 = vrot.slane %v2529_v17, 2 }
 0x390   : > { %2639 = vst [vmem:[#allocation1 + $0x3] ss:$4 sm:$0xff] %v14767_v51  ;;  %v14772_v51 = vld [vmem:[#allocation143_spill] sm:$0xff] }
 0x391   : > { %v9624_v28 = vsel %vm7856_vm7, %v2531_v42, %v2532_v58 }
 0x392   : > { %v9603_v37 = vld.sshfl [vmem:[#allocation1 + $0x20] sm:$0xff pattern:$0x73625140]  ;;  %14778 = vst [vmem:[#allocation11_spill] sm:$0xff] %v9624_v28 }
 0x393   : > { %14768 = vst [vmem:[#allocation192_spill] sm:$0xff] %v9603_v37 }
 0x394   : > { %2650 = vst [vmem:[#allocation1 + $0x20] ss:$4 sm:$0xff] %v14769_v12  ;;  %v2534_v12 = vrot.slane %v2532_v58, 2  ;;  %v2525_v58 = vrot.slane %v2523_v0, 2 }
 0x395   : > { %2651 = vst [vmem:[#allocation1 + $0x21] ss:$4 sm:$0xff] %v14770_v5  ;;  %v2537_v5 = vrot.slane %v2535_v21, 2 }
 0x396   : > { %2652 = vst [vmem:[#allocation1 + $0x22] ss:$4 sm:$0xff] %v14771_v29  ;;  %v14776_v29 = vld [vmem:[#allocation136_spill] sm:$0xff]  ;;  %v9629_v27 = vsel %vm7856_vm7, %v2534_v12, %v2535_v21  ;;  %7235 = vmatmul.msk.f32.gmra.mxu3 %vm825_vm8, %v9438_v35  ;;  %v2528_v12 = vrot.slane %v2526_v32, 2  ;;  %v9655_v35 = vsel %vm7856_vm7, %v2525_v58, %v2526_v32  ;;  %v7239_v32 = vrot.slane %v9428_v52, 9 }
 0x397   : > { %2653 = vst [vmem:[#allocation1 + $0x23] ss:$4 sm:$0xff] %v14772_v51  ;;  %v9615_v24 = vld.sshfl [vmem:[#allocation1] sm:$0xff pattern:$0x73625140]  ;;  %v14779_v51 = vld [vmem:[#allocation165_spill] sm:$0xff]  ;;  %v9635_v60 = vsel %vm7856_vm7, %v2537_v5, %v2538_v47 }
 0x398   : > { %14773 = vst [vmem:[#allocation193_spill] sm:$0xff] %v9615_v24  ;;  %v14788_v47 = vld [vmem:[#allocation144_spill] sm:$0xff] }
 0x399   : > { %2646 = vst [vmem:[#allocation1] ss:$4 sm:$0xff] %v14774_v36  ;;  %v2541_v36 = vrot.slane %v9424_v62, 7 }
 0x39a   : > { %2647 = vst [vmem:[#allocation1 + $0x1] ss:$4 sm:$0xff] %v14775_v30  ;;  %v7238_v30 = vrot.slane %v9386_v34, 9 }
 0x39b   : > { %2648 = vst [vmem:[#allocation1 + $0x2] ss:$4 sm:$0xff] %v14776_v29  ;;  %v9643_v42 = vsel %vm7856_vm7, %v2540_v33, %v2541_v36  ;;  %v9661_v33 = vsel %vm7856_vm7, %v2528_v12, %v2529_v17 }
 0x39c   : > { %2649 = vst [vmem:[#allocation1 + $0x3] ss:$4 sm:$0xff] %v14779_v51  ;;  %v9650_v5 = vsel %vm7856_vm7, %v7238_v30, %v2523_v0  ;;  %v2543_v30 = vrot.slane %v2541_v36, 2 }
 0x39d   : > { %14780 = vst [vmem:[#allocation12_spill] sm:$0xff] %v9629_v27 }
 0x39e   : > { %14781 = vst [vmem:[#allocation13_spill] sm:$0xff] %v9635_v60  ;;  %v9637_v29 = vld.sshfl [vmem:[#allocation1 + $0x20] sm:$0xff pattern:$0x73625140]  ;;  %7236 = vmatmul.msk.f32.gmra.mxu3 %vm825_vm8, %v9446_v40 }
 0x39f   : > { %14782 = vst [vmem:[#allocation14_spill] sm:$0xff] %v9637_v29 }
 0x3a0   : > { %14783 = vst [vmem:[#allocation7_spill] sm:$0xff] %v9643_v42 }
 0x3a1   : > { %2660 = vst [vmem:[#allocation1 + $0x20] ss:$4 sm:$0xff] %v9624_v28 }
 0x3a2   : > { %2661 = vst [vmem:[#allocation1 + $0x21] ss:$4 sm:$0xff] %v9629_v27 }
 0x3a3   : > { %2662 = vst [vmem:[#allocation1 + $0x22] ss:$4 sm:$0xff] %v9635_v60  ;;  %v9657_v21 = vld.sshfl [vmem:[#allocation1] sm:$0xff pattern:$0x73625140]  ;;  %v2544_v60 = vrot.slane %v9428_v52, 7 }
 0x3a4   : > { %14784 = vst [vmem:[#allocation8_spill] sm:$0xff] %v9650_v5 }
 0x3a5   : > { %2663 = vst [vmem:[#allocation1 + $0x23] ss:$4 sm:$0xff] %v9643_v42  ;;  %v2546_v0 = vrot.slane %v2544_v60, 2  ;;  %v9676_v17 = vsel %vm7856_vm7, %v2543_v30, %v2544_v60 }
 0x3a6   : > { %14785 = vst [vmem:[#allocation9_spill] sm:$0xff] %v9655_v35 }
 0x3a7   : > { %14786 = vst [vmem:[#allocation10_spill] sm:$0xff] %v9657_v21  ;;  %v9680_v12 = vsel %vm7856_vm7, %v2546_v0, %v7239_v32 }
 0x3a8   : > { %14787 = vst [vmem:[#allocation17_spill] sm:$0xff] %v9661_v33 }
 0x3a9   : > { %2656 = vst [vmem:[#allocation1] ss:$4 sm:$0xff] %v14788_v47 }
 0x3aa   : > { %2657 = vst [vmem:[#allocation1 + $0x1] ss:$4 sm:$0xff] %v9650_v5 }
 0x3ab   : > { %2658 = vst [vmem:[#allocation1 + $0x2] ss:$4 sm:$0xff] %v9655_v35 }
 0x3ac   : > { %2659 = vst [vmem:[#allocation1 + $0x3] ss:$4 sm:$0xff] %v9661_v33  ;;  %v9671_v58 = vld.sshfl [vmem:[#allocation1 + $0x20] sm:$0xff pattern:$0x73625140] }
 0x3ad   : > { %14789 = vst [vmem:[#allocation24_spill] sm:$0xff] %v9671_v58 }
 0x3ae   : > { %3054 = vst.sshfl [vmem:[#allocation1 + $0x20] sm:$0xff pattern:$0x73625140] %v14594_v43 }
 0x3af   : > { %14790 = vst [vmem:[#allocation26_spill] sm:$0xff] %v9676_v17 }
 0x3b0   : > { %14791 = vst [vmem:[#allocation28_spill] sm:$0xff] %v9680_v12 }
 0x3b3   : > { %v9682_v42 = vld.sshfl [vmem:[#allocation1] sm:$0xff pattern:$0x73625140] }
 0x3b4   : > { %14792 = vst [vmem:[#allocation30_spill] sm:$0xff] %v9682_v42 }
 0x3b5   : > { %2666 = vst [vmem:[#allocation1] ss:$4 sm:$0xff] %v9676_v17  ;;  %v9686_v40 = vld [vmem:[#allocation1 + $0x20] ss:$4 sm:$0xff]  ;;  %v9688_v36 = vld [vmem:[#allocation1 + $0x21] ss:$4 sm:$0xff] }
 0x3b6   : > { %2667 = vst [vmem:[#allocation1 + $0x1] ss:$4 sm:$0xff] %v9680_v12  ;;  %v9690_v27 = vld [vmem:[#allocation1 + $0x22] ss:$4 sm:$0xff]  ;;  %v9692_v43 = vld [vmem:[#allocation1 + $0x23] ss:$4 sm:$0xff] }
 0x3b7   : > { %3072 = vst.sshfl [vmem:[#allocation1 + $0x20] sm:$0xff pattern:$0x73625140] %v14607_v63 }
 0x3bd   : > { %v9695_v60 = vld.sshfl [vmem:[#allocation1] sm:$0xff pattern:$0x73625140] }
 0x3be   : > { %14793 = vst [vmem:[#allocation16_spill] sm:$0xff] %v9695_v60  ;;  %v9698_v30 = vld [vmem:[#allocation1 + $0x21] ss:$4 sm:$0xff]  ;;  %v9700_v0 = vld [vmem:[#allocation1 + $0x22] ss:$4 sm:$0xff] }
 0x3bf   : > { %3053 = vst.sshfl [vmem:[#allocation1] sm:$0xff pattern:$0x73625140] %v14598_v53  ;;  %v9702_v32 = vld [vmem:[#allocation1 + $0x23] ss:$4 sm:$0xff] }
 0x3c0   : > { %3077 = vst.sshfl [vmem:[#allocation1 + $0x20] sm:$0xff pattern:$0x73625140] %v14615_v49 }
 0x3c6   : > { %v9705_v12 = vld [vmem:[#allocation1 + $0x1] ss:$4 sm:$0xff]  ;;  %v9707_v1 = vld [vmem:[#allocation1 + $0x2] ss:$4 sm:$0xff]  ;;  %v9709_v17 = vld [vmem:[#allocation1 + $0x3] ss:$4 sm:$0xff] }
 0x3c7   : > { %3069 = vst.sshfl [vmem:[#allocation1] sm:$0xff pattern:$0x73625140] %v14606_v54  ;;  %v9712_v28 = vld [vmem:[#allocation1 + $0x20] ss:$4 sm:$0xff] }
 0x3c8   : > { %v9714_v33 = vld [vmem:[#allocation1 + $0x21] ss:$4 sm:$0xff] }
 0x3c9   : > { %3085 = vst.sshfl [vmem:[#allocation1 + $0x20] sm:$0xff pattern:$0x73625140] %v14612_v56 }
 0x3ce   : > { %v9717_v53 = vld [vmem:[#allocation1] ss:$4 sm:$0xff]  ;;  %v9719_v35 = vld [vmem:[#allocation1 + $0x1] ss:$4 sm:$0xff] }
 0x3cf   : > { %3076 = vst.sshfl [vmem:[#allocation1] sm:$0xff pattern:$0x73625140] %v14603_v20 }
 0x3d0   : > { %v9722_v5 = vld [vmem:[#allocation1 + $0x20] ss:$4 sm:$0xff]  ;;  %v9724_v47 = vld [vmem:[#allocation1 + $0x21] ss:$4 sm:$0xff]  ;;  %v9726_v51 = vld [vmem:[#allocation1 + $0x22] ss:$4 sm:$0xff] }
 0x3d1   : > { %v9728_v25 = vld [vmem:[#allocation1 + $0x23] ss:$4 sm:$0xff] }
 0x3d2   : > { %3096 = vst.sshfl [vmem:[#allocation1 + $0x20] sm:$0xff pattern:$0x73625140] %v14625_v22 }
 0x3d6   : > { %v9731_v54 = vld [vmem:[#allocation1] ss:$4 sm:$0xff]  ;;  %v9733_v39 = vld [vmem:[#allocation1 + $0x1] ss:$4 sm:$0xff]  ;;  %v9735_v11 = vld [vmem:[#allocation1 + $0x2] ss:$4 sm:$0xff] }
 0x3d7   : > { %v9737_v55 = vld [vmem:[#allocation1 + $0x3] ss:$4 sm:$0xff] }
 0x3d8   : > { %3084 = vst.sshfl [vmem:[#allocation1] sm:$0xff pattern:$0x73625140] %v14616_v10 }
 0x3d9   : > { %v9740_v16 = vld [vmem:[#allocation1 + $0x21] ss:$4 sm:$0xff]  ;;  %v9742_v3 = vld [vmem:[#allocation1 + $0x22] ss:$4 sm:$0xff]  ;;  %v9744_v62 = vld [vmem:[#allocation1 + $0x23] ss:$4 sm:$0xff] }
 0x3da   : > { %3101 = vst.sshfl [vmem:[#allocation1 + $0x20] sm:$0xff pattern:$0x73625140] %v14631_v13 }
 0x3df   : > { %v9747_v26 = vld [vmem:[#allocation1 + $0x1] ss:$4 sm:$0xff]  ;;  %v9749_v23 = vld [vmem:[#allocation1 + $0x2] ss:$4 sm:$0xff]  ;;  %v9751_v46 = vld [vmem:[#allocation1 + $0x3] ss:$4 sm:$0xff] }
 0x3e0   : > { %3093 = vst.sshfl [vmem:[#allocation1] sm:$0xff pattern:$0x73625140] %v14624_v57 }
 0x3e1   : > { %v9754_v41 = vld [vmem:[#allocation1 + $0x20] ss:$4 sm:$0xff]  ;;  %v9756_v9 = vld [vmem:[#allocation1 + $0x21] ss:$4 sm:$0xff] }
 0x3e2   : > { %3109 = vst.sshfl [vmem:[#allocation1 + $0x20] sm:$0xff pattern:$0x73625140] %v14639_v50 }
 0x3e7   : > { %v9759_v22 = vld [vmem:[#allocation1] ss:$4 sm:$0xff]  ;;  %v9761_v56 = vld [vmem:[#allocation1 + $0x1] ss:$4 sm:$0xff] }
 0x3e8   : > { %3100 = vst.sshfl [vmem:[#allocation1] sm:$0xff pattern:$0x73625140] %v14621_v31 }
 0x3e9   : > { %v9764_v13 = vld [vmem:[#allocation1 + $0x20] ss:$4 sm:$0xff]  ;;  %v9766_v10 = vld [vmem:[#allocation1 + $0x21] ss:$4 sm:$0xff]  ;;  %v9768_v49 = vld [vmem:[#allocation1 + $0x22] ss:$4 sm:$0xff] }
 0x3ea   : > { %14794 = vst [vmem:[#allocation18_spill] sm:$0xff] %v9766_v10  ;;  %v9770_v63 = vld [vmem:[#allocation1 + $0x23] ss:$4 sm:$0xff] }
 0x3eb   : > { %14795 = vst [vmem:[#allocation20_spill] sm:$0xff] %v9768_v49 }
 0x3ec   : > { %14796 = vst [vmem:[#allocation21_spill] sm:$0xff] %v9770_v63 }
 0x3ed   : > { %3120 = vst.sshfl [vmem:[#allocation1 + $0x20] sm:$0xff pattern:$0x73625140] %v14635_v45 }
 0x3ef   : > { %v9773_v57 = vld [vmem:[#allocation1] ss:$4 sm:$0xff]  ;;  %v9775_v20 = vld [vmem:[#allocation1 + $0x1] ss:$4 sm:$0xff]  ;;  %v9777_v50 = vld [vmem:[#allocation1 + $0x2] ss:$4 sm:$0xff] }
 0x3f0   : > { %v9779_v60 = vld [vmem:[#allocation1 + $0x3] ss:$4 sm:$0xff] }
 0x3f1   : > { %3108 = vst.sshfl [vmem:[#allocation1] sm:$0xff pattern:$0x73625140] %v14626_v44 }
 0x3f4   : > { %v9782_v31 = vld [vmem:[#allocation1 + $0x21] ss:$4 sm:$0xff]  ;;  %v9784_v58 = vld [vmem:[#allocation1 + $0x22] ss:$4 sm:$0xff]  ;;  %v9786_v42 = vld [vmem:[#allocation1 + $0x23] ss:$4 sm:$0xff] }
 0x3f5   : > { %3125 = vst.sshfl [vmem:[#allocation1 + $0x20] sm:$0xff pattern:$0x73625140] %v14644_v61 }
 0x3f8   : > { %v9789_v29 = vld [vmem:[#allocation1 + $0x1] ss:$4 sm:$0xff]  ;;  %v9791_v45 = vld [vmem:[#allocation1 + $0x2] ss:$4 sm:$0xff]  ;;  %v9793_v21 = vld [vmem:[#allocation1 + $0x3] ss:$4 sm:$0xff] }
 0x3f9   : > { %3117 = vst.sshfl [vmem:[#allocation1] sm:$0xff pattern:$0x73625140] %v14634_v8 }
 0x3fc   : > { %v9796_v37 = vld [vmem:[#allocation1 + $0x20] ss:$4 sm:$0xff]  ;;  %v9798_v24 = vld [vmem:[#allocation1 + $0x21] ss:$4 sm:$0xff] }
 0x3fd   : > { %14797 = vst [vmem:[#allocation32_spill] sm:$0xff] %v9796_v37 }
 0x3fe   : > { %14798 = vst [vmem:[#allocation194_spill] sm:$0xff] %v9798_v24 }
 0x3ff   : > { %3133 = vst.sshfl [vmem:[#allocation1 + $0x20] sm:$0xff pattern:$0x73625140] %v14659_v4 }
 0x400   : > { %v9801_v44 = vld [vmem:[#allocation1] ss:$4 sm:$0xff]  ;;  %v9803_v63 = vld [vmem:[#allocation1 + $0x1] ss:$4 sm:$0xff] }
 0x401   : > { %14799 = vst [vmem:[#allocation195_spill] sm:$0xff] %v9801_v44  ;;  %v14808_v44 = vld [vmem:[#allocation94_spill] sm:$0xff] }
 0x402   : > { %3124 = vst.sshfl [vmem:[#allocation1] sm:$0xff pattern:$0x73625140] %v14649_v2 }
 0x406   : > { %v9806_v61 = vld [vmem:[#allocation1 + $0x20] ss:$4 sm:$0xff]  ;;  %v9808_v49 = vld [vmem:[#allocation1 + $0x21] ss:$4 sm:$0xff]  ;;  %v9810_v10 = vld [vmem:[#allocation1 + $0x22] ss:$4 sm:$0xff] }
 0x407   : > { %14800 = vst [vmem:[#allocation196_spill] sm:$0xff] %v9806_v61  ;;  %v9812_v6 = vld [vmem:[#allocation1 + $0x23] ss:$4 sm:$0xff] }
 0x408   : > { %14801 = vst [vmem:[#allocation197_spill] sm:$0xff] %v9808_v49 }
 0x409   : > { %14802 = vst [vmem:[#allocation198_spill] sm:$0xff] %v9810_v10  ;;  %v9815_v8 = vld [vmem:[#allocation1] ss:$4 sm:$0xff]  ;;  %v9817_v24 = vld [vmem:[#allocation1 + $0x1] ss:$4 sm:$0xff] }
 0x40a   : > { %14803 = vst [vmem:[#allocation199_spill] sm:$0xff] %v9812_v6  ;;  %v9819_v4 = vld [vmem:[#allocation1 + $0x2] ss:$4 sm:$0xff]  ;;  %v9821_v37 = vld [vmem:[#allocation1 + $0x3] ss:$4 sm:$0xff] }
 0x40b   : > { %3144 = vst.sshfl [vmem:[#allocation1 + $0x20] sm:$0xff pattern:$0x73625140] %v14655_v14  ;;  %v14812_v10 = vld [vmem:[#allocation116_spill] sm:$0xff] }
 0x40c   : > { %14804 = vst [vmem:[#allocation200_spill] sm:$0xff] %v9815_v8 }
 0x40d   : > { %14805 = vst [vmem:[#allocation201_spill] sm:$0xff] %v9817_v24  ;;  %v14816_v24 = vld [vmem:[#allocation150_spill] sm:$0xff] }
 0x40e   : > { %14806 = vst [vmem:[#allocation202_spill] sm:$0xff] %v9819_v4 }
 0x40f   : > { %14807 = vst [vmem:[#allocation203_spill] sm:$0xff] %v9821_v37 }
 0x410   : > { %3132 = vst.sshfl [vmem:[#allocation1] sm:$0xff pattern:$0x73625140] %v14808_v44  ;;  %v14819_v44 = vld [vmem:[#allocation129_spill] sm:$0xff] }
 0x412   : > { %v9824_v2 = vld [vmem:[#allocation1 + $0x21] ss:$4 sm:$0xff]  ;;  %v9826_v61 = vld [vmem:[#allocation1 + $0x22] ss:$4 sm:$0xff]  ;;  %v9828_v49 = vld [vmem:[#allocation1 + $0x23] ss:$4 sm:$0xff] }
 0x413   : > { %14809 = vst [vmem:[#allocation204_spill] sm:$0xff] %v9824_v2 }
 0x414   : > { %14810 = vst [vmem:[#allocation205_spill] sm:$0xff] %v9826_v61 }
 0x415   : > { %14811 = vst [vmem:[#allocation206_spill] sm:$0xff] %v9828_v49  ;;  %v14821_v49 = vld [vmem:[#allocation112_spill] sm:$0xff] }
 0x416   : > { %3149 = vst.sshfl [vmem:[#allocation1 + $0x20] sm:$0xff pattern:$0x73625140] %v14812_v10 }
 0x417   : > { %v9831_v6 = vld [vmem:[#allocation1 + $0x1] ss:$4 sm:$0xff]  ;;  %v9833_v14 = vld [vmem:[#allocation1 + $0x2] ss:$4 sm:$0xff]  ;;  %v9835_v8 = vld [vmem:[#allocation1 + $0x3] ss:$4 sm:$0xff] }
 0x418   : > { %14813 = vst [vmem:[#allocation207_spill] sm:$0xff] %v9831_v6 }
 0x419   : > { %14814 = vst [vmem:[#allocation208_spill] sm:$0xff] %v9833_v14 }
 0x41a   : > { %14815 = vst [vmem:[#allocation209_spill] sm:$0xff] %v9835_v8 }
 0x41b   : > { %3141 = vst.sshfl [vmem:[#allocation1] sm:$0xff pattern:$0x73625140] %v14816_v24 }
 0x41d   : > { %v9838_v4 = vld [vmem:[#allocation1 + $0x20] ss:$4 sm:$0xff]  ;;  %v9840_v37 = vld [vmem:[#allocation1 + $0x21] ss:$4 sm:$0xff] }
 0x41e   : > { %14817 = vst [vmem:[#allocation210_spill] sm:$0xff] %v9838_v4 }
 0x41f   : > { %14818 = vst [vmem:[#allocation211_spill] sm:$0xff] %v9840_v37 }
 0x420   : > { %3157 = vst.sshfl [vmem:[#allocation1 + $0x20] sm:$0xff pattern:$0x73625140] %v14819_v44 }
 0x422   : > { %v9843_v2 = vld [vmem:[#allocation1] ss:$4 sm:$0xff]  ;;  %v9845_v61 = vld [vmem:[#allocation1 + $0x1] ss:$4 sm:$0xff] }
 0x423   : > { %14820 = vst [vmem:[#allocation212_spill] sm:$0xff] %v9845_v61  ;;  %v14827_v61 = vld [vmem:[#allocation115_spill] sm:$0xff] }
 0x424   : > { %3148 = vst.sshfl [vmem:[#allocation1] sm:$0xff pattern:$0x73625140] %v14821_v49 }
 0x427   : > { %v9848_v10 = vld [vmem:[#allocation1 + $0x20] ss:$4 sm:$0xff]  ;;  %v9850_v6 = vld [vmem:[#allocation1 + $0x21] ss:$4 sm:$0xff]  ;;  %v9852_v14 = vld [vmem:[#allocation1 + $0x22] ss:$4 sm:$0xff] }
 0x428   : > { %14822 = vst [vmem:[#allocation213_spill] sm:$0xff] %v9848_v10  ;;  %v9854_v8 = vld [vmem:[#allocation1 + $0x23] ss:$4 sm:$0xff] }
 0x429   : > { %14823 = vst [vmem:[#allocation214_spill] sm:$0xff] %v9850_v6 }
 0x42a   : > { %14824 = vst [vmem:[#allocation215_spill] sm:$0xff] %v9852_v14 }
 0x42b   : > { %14825 = vst [vmem:[#allocation216_spill] sm:$0xff] %v9854_v8  ;;  %v9857_v24 = vld [vmem:[#allocation1] ss:$4 sm:$0xff]  ;;  %v9859_v37 = vld [vmem:[#allocation1 + $0x1] ss:$4 sm:$0xff] }
 0x42c   : > { %3168 = vst.sshfl [vmem:[#allocation1 + $0x20] sm:$0xff pattern:$0x73625140] %v9386_v34  ;;  %v9861_v44 = vld [vmem:[#allocation1 + $0x2] ss:$4 sm:$0xff] }
 0x42d   : > { %v9863_v4 = vld [vmem:[#allocation1 + $0x3] ss:$4 sm:$0xff] }
 0x42e   : > { %14826 = vst [vmem:[#allocation217_spill] sm:$0xff] %v9863_v4  ;;  %v14829_v4 = vld [vmem:[#allocation133_spill] sm:$0xff] }
 0x42f   : > { %3156 = vst.sshfl [vmem:[#allocation1] sm:$0xff pattern:$0x73625140] %v14827_v61 }
 0x433   : > { %v9866_v49 = vld [vmem:[#allocation1 + $0x21] ss:$4 sm:$0xff]  ;;  %v9868_v10 = vld [vmem:[#allocation1 + $0x22] ss:$4 sm:$0xff]  ;;  %v9870_v6 = vld [vmem:[#allocation1 + $0x23] ss:$4 sm:$0xff] }
 0x434   : > { %14828 = vst [vmem:[#allocation218_spill] sm:$0xff] %v9866_v49 }
 0x435   : > { %3173 = vst.sshfl [vmem:[#allocation1 + $0x20] sm:$0xff pattern:$0x73625140] %v9428_v52 }
 0x436   : > { %3192 = vst [vmem:[#allocation1 + $0x22] ss:$4 sm:$0xff] %v9692_v43  ;;  %v9875_v34 = vld [vmem:[#allocation1 + $0x1] ss:$4 sm:$0xff]  ;;  %v9877_v8 = vld [vmem:[#allocation1 + $0x2] ss:$4 sm:$0xff] }
 0x437   : > { %3194 = vst [vmem:[#allocation1 + $0x23] ss:$4 sm:$0xff] %v9717_v53  ;;  %v9879_v14 = vld [vmem:[#allocation1 + $0x3] ss:$4 sm:$0xff] }
 0x438   : > { %3165 = vst.sshfl [vmem:[#allocation1] sm:$0xff pattern:$0x73625140] %v14829_v4  ;;  %v7264_v4 = vld [vmem:[%s13825_s1 + $0x14] sm:$0xf] }
 0x439   : > { %7265 = vmatpush.msk.msrb.mxu1 %vm872_vm0, %v7264_v4 }
 0x43c   : > { %v9882_v61 = vld [vmem:[#allocation1 + $0x20] ss:$4 sm:$0xff]  ;;  %v9884_v49 = vld [vmem:[#allocation1 + $0x21] ss:$4 sm:$0xff] }
 0x43d   : > { %14830 = vst [vmem:[#allocation219_spill] sm:$0xff] %v9882_v61 }
 0x43e   : > { %14831 = vst [vmem:[#allocation220_spill] sm:$0xff] %v9884_v49 }
 0x43f   : > { %3188 = vst [vmem:[#allocation1 + $0x20] ss:$4 sm:$0xff] %v9688_v36  ;;  %v9888_v52 = vld [vmem:[#allocation1] ss:$4 sm:$0xff]  ;;  %v9890_v43 = vld [vmem:[#allocation1 + $0x1] ss:$4 sm:$0xff]  ;;  %v9899_v36 = vpop.f32.mrf.mxu1 }
 0x440   : > { %3190 = vst [vmem:[#allocation1 + $0x21] ss:$4 sm:$0xff] %v9690_v27 }
 0x441   : > { %3172 = vst.sshfl [vmem:[#allocation1] sm:$0xff pattern:$0x73625140] %v9403_v38 }
 0x447   : > { %v3196_v53 = vld.sshfl [vmem:[#allocation1 + $0x20] sm:$0xff pattern:$0x73625140] }
 0x448   : > { %3201 = vst [vmem:[#allocation1 + $0x20] ss:$4 sm:$0xff] %v9731_v54  ;;  %v9901_v27 = vld [vmem:[#allocation1] ss:$4 sm:$0xff]  ;;  %v9903_v49 = vld [vmem:[#allocation1 + $0x1] ss:$4 sm:$0xff] }
 0x449   : > { %3202 = vst [vmem:[#allocation1 + $0x21] ss:$4 sm:$0xff] %v9733_v39  ;;  %v9905_v61 = vld [vmem:[#allocation1 + $0x2] ss:$4 sm:$0xff]  ;;  %v9908_v38 = vld [vmem:[#allocation1 + $0x3] ss:$4 sm:$0xff]  ;;  %v9919_v39 = vpop.f32.mrf.mxu1 }
 0x44a   : > { %3203 = vst [vmem:[#allocation1 + $0x22] ss:$4 sm:$0xff] %v9735_v11  ;;  %v9914_v11 = vpop.f32.mrf.mxu0  ;;  %7250 = vmatmul.msk.f32.gmra.mxu0 %vm825_vm8, %v9527_v7 }
 0x44b   : > { %3180 = vst [vmem:[#allocation1] ss:$4 sm:$0xff] %v9705_v12 }
 0x44c   : > { %3182 = vst [vmem:[#allocation1 + $0x1] ss:$4 sm:$0xff] %v9707_v1 }
 0x44d   : > { %3184 = vst [vmem:[#allocation1 + $0x2] ss:$4 sm:$0xff] %v9709_v17  ;;  %v14851_v17 = vld [vmem:[#allocation202_spill] sm:$0xff] }
 0x44e   : > { %3186 = vst [vmem:[#allocation1 + $0x3] ss:$4 sm:$0xff] %v9686_v40  ;;  %v14852_v40 = vld [vmem:[#allocation203_spill] sm:$0xff] }
 0x44f   : > { %14832 = vst [vmem:[#allocation221_spill] sm:$0xff] %v9914_v11 }
 0x450   : > { %3204 = vst [vmem:[#allocation1 + $0x23] ss:$4 sm:$0xff] %v9737_v55 }
 0x451   : > { %v9934_v55 = vpop.f32.mrf.mxu1 }
 0x452   : > { %v9923_v12 = vpop.f32.mrf.mxu0  ;;  %7251 = vmatmul.msk.f32.gmra.mxu0 %vm825_vm8, %v9557_v59 }
 0x453   : > { %14833 = vst [vmem:[#allocation222_spill] sm:$0xff] %v9923_v12 }
 0x455   : > { %v3195_v4 = vld.sshfl [vmem:[#allocation1] sm:$0xff pattern:$0x73625140] }
 0x456   : > { %3197 = vst [vmem:[#allocation1] ss:$4 sm:$0xff] %v9719_v35  ;;  %7266 = vmatmul.msk.f32.vlgmr.msrb.gmra.mxu1 %vm825_vm8, %v3195_v4  ;;  %v14847_v35 = vld [vmem:[#allocation200_spill] sm:$0xff] }
 0x457   : > { %3198 = vst [vmem:[#allocation1 + $0x1] ss:$4 sm:$0xff] %v9698_v30  ;;  %v3206_v1 = vld.sshfl [vmem:[#allocation1 + $0x20] sm:$0xff pattern:$0x73625140]  ;;  %v10023_v30 = vpop.f32.mrf.mxu2 }
 0x458   : > { %3199 = vst [vmem:[#allocation1 + $0x2] ss:$4 sm:$0xff] %v9700_v0  ;;  %v14855_v4 = vld [vmem:[#allocation196_spill] sm:$0xff] }
 0x459   : > { %3200 = vst [vmem:[#allocation1 + $0x3] ss:$4 sm:$0xff] %v9702_v32  ;;  %v14853_v32 = vld [vmem:[#allocation10_spill] sm:$0xff] }
 0x45a   : > { %3211 = vst [vmem:[#allocation1 + $0x20] ss:$4 sm:$0xff] %v9751_v46  ;;  %v9937_v7 = vpop.f32.mrf.mxu0  ;;  %7252 = vmatmul.msk.f32.gmra.mxu0 %vm825_vm8, %v9545_v19  ;;  %v9953_v19 = vpop.f32.mrf.mxu1 }
 0x45b   : > { %3212 = vst [vmem:[#allocation1 + $0x21] ss:$4 sm:$0xff] %v9722_v5 }
 0x45c   : > { %3213 = vst [vmem:[#allocation1 + $0x22] ss:$4 sm:$0xff] %v9724_v47  ;;  %v7289_v47 = vld [vmem:[%s13825_s1 + $0x18] sm:$0xf] }
 0x45d   : > { %3214 = vst [vmem:[#allocation1 + $0x23] ss:$4 sm:$0xff] %v9726_v51  ;;  %7290 = vmatpush.msk.msrb.mxu2 %vm872_vm0, %v7289_v47  ;;  %v14866_v47 = vld [vmem:[#allocation30_spill] sm:$0xff] }
 0x45e   : > { %7267 = vmatmul.msk.f32.gmra.mxu1 %vm825_vm8, %v3196_v53  ;;  %14834 = vst [vmem:[#allocation223_spill] sm:$0xff] %v9937_v7  ;;  %v14854_v53 = vld [vmem:[#allocation209_spill] sm:$0xff] }
 0x460   : > { %v3205_v59 = vld.sshfl [vmem:[#allocation1] sm:$0xff pattern:$0x73625140] }
 0x461   : > { %3207 = vst [vmem:[#allocation1] ss:$4 sm:$0xff] %v9712_v28  ;;  %v14843_v28 = vld [vmem:[#allocation193_spill] sm:$0xff] }
 0x462   : > { %3208 = vst [vmem:[#allocation1 + $0x1] ss:$4 sm:$0xff] %v9714_v33  ;;  %v9948_v51 = vpop.f32.mrf.mxu0  ;;  %7253 = vmatmul.msk.f32.gmra.mxu0 %vm825_vm8, %v9577_v15  ;;  %v14841_v15 = vld [vmem:[#allocation195_spill] sm:$0xff] }
 0x463   : > { %3209 = vst [vmem:[#allocation1 + $0x2] ss:$4 sm:$0xff] %v9747_v26 }
 0x464   : > { %3210 = vst [vmem:[#allocation1 + $0x3] ss:$4 sm:$0xff] %v9749_v23  ;;  %v3216_v46 = vld.sshfl [vmem:[#allocation1 + $0x20] sm:$0xff pattern:$0x73625140] }
 0x465   : > { %3221 = vst [vmem:[#allocation1 + $0x20] ss:$4 sm:$0xff] %v9742_v3  ;;  %v14839_v23 = vld [vmem:[#allocation20_spill] sm:$0xff] }
 0x466   : > { %3222 = vst [vmem:[#allocation1 + $0x21] ss:$4 sm:$0xff] %v9744_v62  ;;  %7268 = vmatmul.msk.f32.gmra.mxu1 %vm825_vm8, %v3205_v59 }
 0x467   : > { %14835 = vst [vmem:[#allocation224_spill] sm:$0xff] %v9948_v51  ;;  %v14977_v51 = vld [vmem:[#allocation131_spill] sm:$0xff] }
 0x468   : > { %3223 = vst [vmem:[#allocation1 + $0x22] ss:$4 sm:$0xff] %v9773_v57 }
 0x469   : > { %3224 = vst [vmem:[#allocation1 + $0x23] ss:$4 sm:$0xff] %v9775_v20  ;;  %v9967_v20 = vpop.f32.mrf.mxu1 }
 0x46a   : > { %v9960_v3 = vpop.f32.mrf.mxu0  ;;  %7254 = vmatmul.msk.f32.gmra.mxu0 %vm825_vm8, %v9564_v18  ;;  %v14844_v18 = vld [vmem:[#allocation194_spill] sm:$0xff] }
 0x46b   : > { %v3215_v26 = vld.sshfl [vmem:[#allocation1] sm:$0xff pattern:$0x73625140]  ;;  %14836 = vst [vmem:[#allocation225_spill] sm:$0xff] %v9960_v3 }
 0x46c   : > { %3217 = vst [vmem:[#allocation1] ss:$4 sm:$0xff] %v9728_v25  ;;  %v14971_v3 = vld [vmem:[#allocation120_spill] sm:$0xff] }
 0x46d   : > { %3218 = vst [vmem:[#allocation1 + $0x1] ss:$4 sm:$0xff] %v9759_v22  ;;  %v14837_v22 = vld [vmem:[#allocation191_spill] sm:$0xff] }
 0x46e   : > { %3219 = vst [vmem:[#allocation1 + $0x2] ss:$4 sm:$0xff] %v9761_v56  ;;  %7269 = vmatmul.msk.f32.gmra.mxu1 %vm825_vm8, %v3206_v1  ;;  %v14856_v1 = vld [vmem:[#allocation197_spill] sm:$0xff] }
 0x46f   : > { %3220 = vst [vmem:[#allocation1 + $0x3] ss:$4 sm:$0xff] %v9740_v16  ;;  %v14842_v16 = vld [vmem:[#allocation32_spill] sm:$0xff] }
 0x470   : > { %v3226_v62 = vld.sshfl [vmem:[#allocation1 + $0x20] sm:$0xff pattern:$0x73625140] }
 0x471   : > { %3231 = vst [vmem:[#allocation1 + $0x20] ss:$4 sm:$0xff] %v9789_v29 }
 0x472   : > { %3232 = vst [vmem:[#allocation1 + $0x21] ss:$4 sm:$0xff] %v9791_v45  ;;  %v9972_v57 = vpop.f32.mrf.mxu0  ;;  %7255 = vmatmul.msk.f32.gmra.mxu0 %vm825_vm8, %v9593_v48  ;;  %v14845_v48 = vld [vmem:[#allocation207_spill] sm:$0xff] }
 0x473   : > { %3233 = vst [vmem:[#allocation1 + $0x22] ss:$4 sm:$0xff] %v9793_v21  ;;  %v14848_v21 = vld [vmem:[#allocation201_spill] sm:$0xff] }
 0x474   : > { %3234 = vst [vmem:[#allocation1 + $0x23] ss:$4 sm:$0xff] %v9764_v13  ;;  %v9981_v13 = vpop.f32.mrf.mxu1 }
 0x476   : > { %v3225_v56 = vld.sshfl [vmem:[#allocation1] sm:$0xff pattern:$0x73625140]  ;;  %7270 = vmatmul.msk.f32.gmra.mxu1 %vm825_vm8, %v3215_v26  ;;  %v14857_v26 = vld [vmem:[#allocation198_spill] sm:$0xff] }
 0x477   : > { %3227 = vst [vmem:[#allocation1] ss:$4 sm:$0xff] %v9777_v50 }
 0x478   : > { %3228 = vst [vmem:[#allocation1 + $0x1] ss:$4 sm:$0xff] %v9779_v60 }
 0x479   : > { %3229 = vst [vmem:[#allocation1 + $0x2] ss:$4 sm:$0xff] %v9754_v41 }
 0x47a   : > { %3230 = vst [vmem:[#allocation1 + $0x3] ss:$4 sm:$0xff] %v9756_v9  ;;  %v9987_v50 = vpop.f32.mrf.mxu0  ;;  %7256 = vmatmul.msk.f32.gmra.mxu0 %vm825_vm8, %v14837_v22  ;;  %v14838_v9 = vld [vmem:[#allocation18_spill] sm:$0xff] }
 0x47b   : > { %v3236_v45 = vld.sshfl [vmem:[#allocation1 + $0x20] sm:$0xff pattern:$0x73625140] }
 0x47c   : > { %3241 = vst [vmem:[#allocation1 + $0x20] ss:$4 sm:$0xff] %v9803_v63  ;;  %v14840_v63 = vld [vmem:[#allocation21_spill] sm:$0xff]  ;;  %v9998_v29 = vpop.f32.mrf.mxu1 }
 0x47d   : > { %3242 = vst [vmem:[#allocation1 + $0x21] ss:$4 sm:$0xff] %v9782_v31 }
 0x47e   : > { %3243 = vst [vmem:[#allocation1 + $0x22] ss:$4 sm:$0xff] %v9784_v58  ;;  %7271 = vmatmul.msk.f32.gmra.mxu1 %vm825_vm8, %v3216_v46  ;;  %v14850_v58 = vld [vmem:[#allocation192_spill] sm:$0xff] }
 0x47f   : > { %3244 = vst [vmem:[#allocation1 + $0x23] ss:$4 sm:$0xff] %v9786_v42  ;;  %v14846_v42 = vld [vmem:[#allocation208_spill] sm:$0xff] }
 0x481   : > { %v3235_v41 = vld.sshfl [vmem:[#allocation1] sm:$0xff pattern:$0x73625140] }
 0x482   : > { %3237 = vst [vmem:[#allocation1] ss:$4 sm:$0xff] %v14838_v9  ;;  %v10001_v25 = vpop.f32.mrf.mxu0  ;;  %7257 = vmatmul.msk.f32.gmra.mxu0 %vm825_vm8, %v14843_v28  ;;  %v14861_v9 = vld [vmem:[#allocation14_spill] sm:$0xff]  ;;  %v14864_v28 = vld [vmem:[#allocation205_spill] sm:$0xff] }
 0x483   : > { %3238 = vst [vmem:[#allocation1 + $0x1] ss:$4 sm:$0xff] %v14839_v23  ;;  %v14862_v23 = vld [vmem:[#allocation204_spill] sm:$0xff] }
 0x484   : > { %3239 = vst [vmem:[#allocation1 + $0x2] ss:$4 sm:$0xff] %v14840_v63  ;;  %v10021_v60 = vpop.f32.mrf.mxu1  ;;  %v14863_v63 = vld [vmem:[#allocation169_spill] sm:$0xff] }
 0x485   : > { %3240 = vst [vmem:[#allocation1 + $0x3] ss:$4 sm:$0xff] %v14841_v15 }
 0x486   : > { %v9995_v31 = vld.sshfl [vmem:[#allocation1 + $0x20] sm:$0xff pattern:$0x73625140]  ;;  %7272 = vmatmul.msk.f32.gmra.mxu1 %vm825_vm8, %v3225_v56  ;;  %v14859_v56 = vld [vmem:[#allocation199_spill] sm:$0xff] }
 0x487   : > { %3251 = vst [vmem:[#allocation1 + $0x20] ss:$4 sm:$0xff] %v14842_v16 }
 0x488   : > { %3252 = vst [vmem:[#allocation1 + $0x21] ss:$4 sm:$0xff] %v14844_v18  ;;  %v14865_v18 = vld [vmem:[#allocation206_spill] sm:$0xff] }
 0x489   : > { %3253 = vst [vmem:[#allocation1 + $0x22] ss:$4 sm:$0xff] %v14845_v48 }
 0x48a   : > { %3254 = vst [vmem:[#allocation1 + $0x23] ss:$4 sm:$0xff] %v14846_v42  ;;  %v10011_v33 = vpop.f32.mrf.mxu0  ;;  %7258 = vmatmul.msk.f32.gmra.mxu0 %vm825_vm8, %v14850_v58 }
 0x48b   : > { %14849 = vst [vmem:[#allocation191_spill] sm:$0xff] %v10011_v33  ;;  %v14953_v33 = vld [vmem:[#allocation101_spill] sm:$0xff] }
 0x48c   : > { %v3245_v5 = vld.sshfl [vmem:[#allocation1] sm:$0xff pattern:$0x73625140]  ;;  %v10031_v59 = vpop.f32.mrf.mxu1 }
 0x48d   : > { %3247 = vst [vmem:[#allocation1] ss:$4 sm:$0xff] %v14847_v35 }
 0x48e   : > { %3248 = vst [vmem:[#allocation1 + $0x1] ss:$4 sm:$0xff] %v14848_v21  ;;  %7273 = vmatmul.msk.f32.gmra.mxu1 %vm825_vm8, %v3226_v62  ;;  %v10037_v62 = vpop.f32.mrf.mxu2 }
 0x48f   : > { %3249 = vst [vmem:[#allocation1 + $0x2] ss:$4 sm:$0xff] %v14851_v17 }
 0x490   : > { %3250 = vst [vmem:[#allocation1 + $0x3] ss:$4 sm:$0xff] %v14852_v40 }
 0x491   : > { %v10033_v46 = vld.sshfl [vmem:[#allocation1 + $0x20] sm:$0xff pattern:$0x73625140]  ;;  %14858 = vst [vmem:[#allocation18_spill] sm:$0xff] %v10037_v62 }
 0x492   : > { %v1148_v0 = vpop.f32.mrf.mxu0  ;;  %7259 = vmatmul.msk.f32.gmra.mxu0 %vm825_vm8, %v14853_v32  ;;  %3262 = vst [vmem:[#allocation1 + $0x21] ss:$4 sm:$0xff] %v9843_v2 }
 0x493   : > { %3261 = vst [vmem:[#allocation1 + $0x20] ss:$4 sm:$0xff] %v14859_v56  ;;  %v1149_v15 = vadd.f32 %v1148_v0, %v14863_v63  ;;  %v14874_v63 = vld [vmem:[#allocation215_spill] sm:$0xff] }
 0x494   : > { %3264 = vst [vmem:[#allocation1 + $0x23] ss:$4 sm:$0xff] %v14862_v23  ;;  %v10049_v2 = vpop.f32.mrf.mxu1  ;;  %v14873_v23 = vld [vmem:[#allocation214_spill] sm:$0xff] }
 0x495   : > { %v1240_v48 = vrot.slane %v1149_v15, 2  ;;  %v1242_v42 = vrot.slane %v1149_v15, 6 }
 0x496   : > { %7274 = vmatmul.msk.f32.gmra.mxu1 %vm825_vm8, %v3235_v41  ;;  %v14860_v41 = vld [vmem:[#allocation212_spill] sm:$0xff]  ;;  %v10059_v58 = vpop.f32.mrf.mxu2 }
 0x497   : > { %v3255_v54 = vld.sshfl [vmem:[#allocation1] sm:$0xff pattern:$0x73625140]  ;;  %3263 = vst [vmem:[#allocation1 + $0x22] ss:$4 sm:$0xff] %v14860_v41  ;;  %v14872_v41 = vld [vmem:[#allocation213_spill] sm:$0xff] }
 0x498   : > { %3257 = vst [vmem:[#allocation1] ss:$4 sm:$0xff] %v14854_v53  ;;  %v14868_v53 = vld [vmem:[#allocation217_spill] sm:$0xff] }
 0x499   : > { %3258 = vst [vmem:[#allocation1 + $0x1] ss:$4 sm:$0xff] %v14855_v4 }
 0x49a   : > { %3259 = vst [vmem:[#allocation1 + $0x2] ss:$4 sm:$0xff] %v14856_v1  ;;  %v1151_v22 = vpop.f32.mrf.mxu0  ;;  %7260 = vmatmul.msk.f32.gmra.mxu0 %vm825_vm8, %v14861_v9  ;;  %v14869_v1 = vld [vmem:[#allocation210_spill] sm:$0xff] }
 0x49b   : > { %3260 = vst [vmem:[#allocation1 + $0x3] ss:$4 sm:$0xff] %v14857_v26 }
 0x49c   : > { %14867 = vst [vmem:[#allocation20_spill] sm:$0xff] %v10059_v58  ;;  %v10067_v56 = vpop.f32.mrf.mxu1 }
 0x49e   : > { %7275 = vmatmul.msk.f32.gmra.mxu1 %vm825_vm8, %v3236_v45  ;;  %v1241_v45 = vrot.slane %v1149_v15, 4  ;;  %v10055_v21 = vld.sshfl [vmem:[#allocation1 + $0x20] sm:$0xff pattern:$0x73625140] }
 0x49f   : > { %3271 = vst [vmem:[#allocation1 + $0x20] ss:$4 sm:$0xff] %v9861_v44  ;;  %v10074_v44 = vpop.f32.mrf.mxu2 }
 0x4a0   : > { %3272 = vst [vmem:[#allocation1 + $0x21] ss:$4 sm:$0xff] %v14868_v53 }
 0x4a1   : > { %3273 = vst [vmem:[#allocation1 + $0x22] ss:$4 sm:$0xff] %v14869_v1 }
 0x4a2   : > { %v10046_v16 = vld.sshfl [vmem:[#allocation1] sm:$0xff pattern:$0x73625140]  ;;  %v1689_v35 = vpop.f32.mrf.mxu0  ;;  %7261 = vmatmul.msk.f32.gmra.mxu0 %vm825_vm8, %v14866_v47  ;;  %14871 = vst [vmem:[#allocation21_spill] sm:$0xff] %v10074_v44  ;;  %v14981_v44 = vld [vmem:[#allocation174_spill] sm:$0xff] }
 0x4a3   : > { %3267 = vst [vmem:[#allocation1] ss:$4 sm:$0xff] %v14864_v28  ;;  %v1781_v17 = vrot.slane %v1689_v35, 2  ;;  %v1782_v40 = vrot.slane %v1689_v35, 4  ;;  %v1783_v0 = vrot.slane %v1689_v35, 6  ;;  %v1915_v32 = vadd.f32 %v1689_v35, %v1149_v15  ;;  %v14875_v15 = vld [vmem:[#allocation216_spill] sm:$0xff] }
 0x4a4   : > { %3268 = vst [vmem:[#allocation1 + $0x1] ss:$4 sm:$0xff] %v14865_v18  ;;  %v14879_v35 = vld [vmem:[#allocation24_spill] sm:$0xff] }
 0x4a5   : > { %3269 = vst [vmem:[#allocation1 + $0x2] ss:$4 sm:$0xff] %v9857_v24  ;;  %v1916_v24 = vadd.f32 %v1781_v17, %v1240_v48  ;;  %v1918_v4 = vadd.f32 %v1783_v0, %v1242_v42 }
 0x4a6   : > { %7276 = vmatmul.msk.f32.gmra.mxu1 %vm825_vm8, %v3245_v5  ;;  %3270 = vst [vmem:[#allocation1 + $0x3] ss:$4 sm:$0xff] %v9859_v37  ;;  %v1917_v5 = vadd.f32 %v1782_v40, %v1241_v45  ;;  %v14870_v37 = vld [vmem:[#allocation211_spill] sm:$0xff]  ;;  %v14877_v45 = vld [vmem:[#allocation218_spill] sm:$0xff] }
 0x4a7   : > { %3274 = vst [vmem:[#allocation1 + $0x23] ss:$4 sm:$0xff] %v14870_v37  ;;  %v10091_v42 = vpop.f32.mrf.mxu2  ;;  %v14885_v37 = vld [vmem:[#allocation16_spill] sm:$0xff] }
 0x4a8   : > { %14878 = vst [vmem:[#allocation195_spill] sm:$0xff] %v10091_v42  ;;  %v14965_v42 = vld [vmem:[#allocation154_spill] sm:$0xff] }
 0x4ad   : > { %v10065_v26 = vld.sshfl [vmem:[#allocation1] sm:$0xff pattern:$0x73625140] }
 0x4ae   : > { %7277 = vmatmul.msk.f32.gmra.mxu1 %vm825_vm8, %v9995_v31  ;;  %3277 = vst [vmem:[#allocation1] ss:$4 sm:$0xff] %v9875_v34  ;;  %v10077_v9 = vld.sshfl [vmem:[#allocation1 + $0x20] sm:$0xff pattern:$0x73625140]  ;;  %v14876_v31 = vld [vmem:[#allocation5_spill] sm:$0xff] }
 0x4af   : > { %3278 = vst [vmem:[#allocation1 + $0x1] ss:$4 sm:$0xff] %v9877_v8  ;;  %v1152_v34 = vadd.f32 %v1151_v22, %v14876_v31  ;;  %v10085_v8 = vpop.f32.mrf.mxu1 }
 0x4b0   : > { %3279 = vst [vmem:[#allocation1 + $0x2] ss:$4 sm:$0xff] %v9879_v14 }
 0x4b1   : > { %3280 = vst [vmem:[#allocation1 + $0x3] ss:$4 sm:$0xff] %v14872_v41  ;;  %v1243_v28 = vrot.slane %v1152_v34, 2  ;;  %v1244_v18 = vrot.slane %v1152_v34, 4  ;;  %v1245_v48 = vrot.slane %v1152_v34, 6  ;;  %v14886_v41 = vld [vmem:[#allocation219_spill] sm:$0xff] }
 0x4b2   : > { %3281 = vst [vmem:[#allocation1 + $0x20] ss:$4 sm:$0xff] %v14873_v23  ;;  %v14887_v23 = vld [vmem:[#allocation220_spill] sm:$0xff] }
 0x4b3   : > { %3282 = vst [vmem:[#allocation1 + $0x21] ss:$4 sm:$0xff] %v14874_v63 }
 0x4b4   : > { %3283 = vst [vmem:[#allocation1 + $0x22] ss:$4 sm:$0xff] %v14875_v15 }
 0x4b5   : > { %3284 = vst [vmem:[#allocation1 + $0x23] ss:$4 sm:$0xff] %v9888_v52  ;;  %v1692_v52 = vpop.f32.mrf.mxu0  ;;  %7262 = vmatmul.msk.f32.gmra.mxu0 %vm825_vm8, %v14879_v35  ;;  %v14902_v35 = vld [vmem:[#allocation31_spill] sm:$0xff] }
 0x4b6   : > { %7278 = vmatmul.msk.f32.gmra.mxu1 %vm825_vm8, %v3255_v54  ;;  %v1784_v54 = vrot.slane %v1692_v52, 2  ;;  %v1785_v22 = vrot.slane %v1692_v52, 4  ;;  %v1786_v47 = vrot.slane %v1692_v52, 6  ;;  %v10097_v17 = vadd.f32 %v1692_v52, %v1152_v34  ;;  %v14897_v52 = vld [vmem:[#allocation15_spill] sm:$0xff] }
 0x4b8   : > { %v10087_v14 = vld.sshfl [vmem:[#allocation1] sm:$0xff pattern:$0x73625140]  ;;  %14880 = vst [vmem:[#allocation32_spill] sm:$0xff] %v10097_v17  ;;  %v10101_v40 = vadd.f32 %v1784_v54, %v1243_v28  ;;  %v10103_v0 = vadd.f32 %v1785_v22, %v1244_v18  ;;  %v10105_v53 = vadd.f32 %v1786_v47, %v1245_v48  ;;  %v14893_v28 = vld [vmem:[#allocation22_spill] sm:$0xff]  ;;  %v14894_v18 = vld [vmem:[#allocation27_spill] sm:$0xff] }
 0x4b9   : > { %3287 = vst [vmem:[#allocation1] ss:$4 sm:$0xff] %v9890_v43  ;;  %v14904_v47 = vld [vmem:[#allocation33_spill] sm:$0xff]  ;;  %v14956_v17 = vld [vmem:[#allocation147_spill] sm:$0xff] }
 0x4ba   : > { %3288 = vst [vmem:[#allocation1 + $0x1] ss:$4 sm:$0xff] %v14877_v45 }
 0x4bb   : > { %3289 = vst [vmem:[#allocation1 + $0x2] ss:$4 sm:$0xff] %v9868_v10  ;;  %v10112_v10 = vpop.f32.mrf.mxu1 }
 0x4bc   : > { %3290 = vst [vmem:[#allocation1 + $0x3] ss:$4 sm:$0xff] %v9870_v6  ;;  %v10099_v43 = vld.sshfl [vmem:[#allocation1 + $0x20] sm:$0xff pattern:$0x73625140] }
 0x4bd   : > { %14881 = vst [vmem:[#allocation193_spill] sm:$0xff] %v10101_v40  ;;  %v2202_v1 = vpop.f32.mrf.mxu0  ;;  %7263 = vmatmul.msk.f32.gmra.mxu0 %vm825_vm8, %v14885_v37  ;;  %v14907_v37 = vld [vmem:[#allocation39_spill] sm:$0xff] }
 0x4be   : > { %14882 = vst [vmem:[#allocation194_spill] sm:$0xff] %v10103_v0  ;;  %7279 = vmatmul.msk.f32.gmra.mxu1 %vm825_vm8, %v10033_v46  ;;  %v10121_v46 = vpop.f32.mrf.mxu2  ;;  %v2296_v63 = vrot.slane %v2202_v1, 6 }
 0x4bf   : > { %14883 = vst [vmem:[#allocation207_spill] sm:$0xff] %v10105_v53  ;;  %v14926_v53 = vld [vmem:[#allocation65_spill] sm:$0xff] }
 0x4c0   : > { %3291 = vst [vmem:[#allocation1 + $0x20] ss:$4 sm:$0xff] %v9901_v27  ;;  %v2294_v27 = vrot.slane %v2202_v1, 2  ;;  %v10131_v31 = vadd.f32 %v2296_v63, %v1918_v4  ;;  %v14901_v4 = vld [vmem:[#allocation23_spill] sm:$0xff]  ;;  %v14911_v63 = vld [vmem:[#allocation45_spill] sm:$0xff] }
 0x4c1   : > { %3292 = vst [vmem:[#allocation1 + $0x21] ss:$4 sm:$0xff] %v9903_v49  ;;  %v2295_v49 = vrot.slane %v2202_v1, 4 }
 0x4c2   : > { %3293 = vst [vmem:[#allocation1 + $0x22] ss:$4 sm:$0xff] %v9905_v61  ;;  %v10123_v61 = vadd.f32 %v2202_v1, %v1915_v32  ;;  %v14896_v32 = vld [vmem:[#allocation29_spill] sm:$0xff]  ;;  %v14905_v1 = vld [vmem:[#allocation35_spill] sm:$0xff] }
 0x4c3   : > { %14884 = vst [vmem:[#allocation208_spill] sm:$0xff] %v10112_v10  ;;  %v10115_v6 = vld.sshfl [vmem:[#allocation1] sm:$0xff pattern:$0x73625140]  ;;  %v10129_v15 = vadd.f32 %v2295_v49, %v1917_v5  ;;  %v10137_v48 = vpop.f32.mrf.mxu1  ;;  %v14910_v49 = vld [vmem:[#allocation42_spill] sm:$0xff]  ;;  %v10359_v10 = vpop.f32.mrf.mxu3 }
 0x4c4   : > { %3294 = vst [vmem:[#allocation1 + $0x23] ss:$4 sm:$0xff] %v9908_v38  ;;  %v10127_v38 = vadd.f32 %v2294_v27, %v1916_v24  ;;  %v14899_v24 = vld [vmem:[#allocation25_spill] sm:$0xff]  ;;  %v14909_v27 = vld [vmem:[#allocation44_spill] sm:$0xff] }
 0x4c5   : > { %3297 = vst [vmem:[#allocation1] ss:$4 sm:$0xff] %v14886_v41  ;;  %v14908_v41 = vld [vmem:[#allocation43_spill] sm:$0xff] }
 0x4c6   : > { %3298 = vst [vmem:[#allocation1 + $0x1] ss:$4 sm:$0xff] %v14887_v23  ;;  %7280 = vmatmul.msk.f32.gmra.mxu1 %vm825_vm8, %v10046_v16  ;;  %v14898_v16 = vld [vmem:[#allocation19_spill] sm:$0xff]  ;;  %v10147_v5 = vpop.f32.mrf.mxu2 }
 0x4c7   : > { %14888 = vst [vmem:[#allocation200_spill] sm:$0xff] %v10121_v46  ;;  %v14961_v46 = vld [vmem:[#allocation107_spill] sm:$0xff] }
 0x4c8   : > { %14889 = vst [vmem:[#allocation201_spill] sm:$0xff] %v10123_v61  ;;  %v14945_v61 = vld [vmem:[#allocation93_spill] sm:$0xff] }
 0x4c9   : > { %14890 = vst [vmem:[#allocation192_spill] sm:$0xff] %v10127_v38  ;;  %v14940_v38 = vld [vmem:[#allocation86_spill] sm:$0xff] }
 0x4ca   : > { %14891 = vst [vmem:[#allocation202_spill] sm:$0xff] %v10129_v15  ;;  %v14935_v15 = vld [vmem:[#allocation80_spill] sm:$0xff] }
 0x4cb   : > { %14892 = vst [vmem:[#allocation203_spill] sm:$0xff] %v10131_v31  ;;  %v10133_v34 = vld.sshfl [vmem:[#allocation1 + $0x20] sm:$0xff pattern:$0x73625140]  ;;  %v10151_v54 = vpop.f32.mrf.mxu1 }
 0x4cc   : > { %3701 = vst [vmem:[#allocation1 + $0x20] ss:$4 sm:$0xff] %v14893_v28 }
 0x4cd   : > { %3703 = vst [vmem:[#allocation1 + $0x21] ss:$4 sm:$0xff] %v14894_v18  ;;  %v10139_v45 = vld.sshfl [vmem:[#allocation1] sm:$0xff pattern:$0x73625140] }
 0x4ce   : > { %14895 = vst [vmem:[#allocation10_spill] sm:$0xff] %v10137_v48  ;;  %7281 = vmatmul.msk.f32.gmra.mxu1 %vm825_vm8, %v10055_v21  ;;  %v10158_v21 = vpop.f32.mrf.mxu2 }
 0x4cf   : > { %3705 = vst [vmem:[#allocation1 + $0x22] ss:$4 sm:$0xff] %v14896_v32 }
 0x4d0   : > { %3693 = vst [vmem:[#allocation1] ss:$4 sm:$0xff] %v14897_v52 }
 0x4d1   : > { %3695 = vst [vmem:[#allocation1 + $0x1] ss:$4 sm:$0xff] %v14898_v16 }
 0x4d2   : > { %3697 = vst [vmem:[#allocation1 + $0x2] ss:$4 sm:$0xff] %v14899_v24 }
 0x4d3   : > { %14900 = vst [vmem:[#allocation209_spill] sm:$0xff] %v10147_v5  ;;  %v10168_v32 = vpop.f32.mrf.mxu1 }
 0x4d4   : > { %3699 = vst [vmem:[#allocation1 + $0x3] ss:$4 sm:$0xff] %v14901_v4  ;;  %v14914_v4 = vld [vmem:[#allocation49_spill] sm:$0xff] }
 0x4d5   : > { %3707 = vst [vmem:[#allocation1 + $0x23] ss:$4 sm:$0xff] %v14902_v35 }
 0x4d6   : > { %14903 = vst [vmem:[#allocation196_spill] sm:$0xff] %v10151_v54  ;;  %7282 = vmatmul.msk.f32.gmra.mxu1 %vm825_vm8, %v10065_v26  ;;  %v14912_v26 = vld [vmem:[#allocation47_spill] sm:$0xff]  ;;  %v10172_v35 = vpop.f32.mrf.mxu2  ;;  %v14985_v54 = vld [vmem:[#allocation177_spill] sm:$0xff] }
 0x4d7   : > { %14906 = vst [vmem:[#allocation197_spill] sm:$0xff] %v10158_v21  ;;  %v14960_v21 = vld [vmem:[#allocation105_spill] sm:$0xff] }
 0x4d8   : > { %14913 = vst [vmem:[#allocation198_spill] sm:$0xff] %v10168_v32  ;;  %v14976_v32 = vld [vmem:[#allocation162_spill] sm:$0xff] }
 0x4d9   : > { %14915 = vst [vmem:[#allocation199_spill] sm:$0xff] %v10172_v35  ;;  %v14946_v35 = vld [vmem:[#allocation137_spill] sm:$0xff] }
 0x4db   : > { %v3708_v22 = vld.sshfl [vmem:[#allocation1] sm:$0xff pattern:$0x73625140] }
 0x4dc   : > { %7291 = vmatmul.msk.f32.vlgmr.msrb.gmra.mxu2 %vm825_vm8, %v3708_v22  ;;  %3710 = vst [vmem:[#allocation1] ss:$4 sm:$0xff] %v14904_v47  ;;  %v3709_v23 = vld.sshfl [vmem:[#allocation1 + $0x20] sm:$0xff pattern:$0x73625140]  ;;  %v14916_v22 = vld [vmem:[#allocation51_spill] sm:$0xff] }
 0x4dd   : > { %3711 = vst [vmem:[#allocation1 + $0x1] ss:$4 sm:$0xff] %v14905_v1 }
 0x4de   : > { %3712 = vst [vmem:[#allocation1 + $0x2] ss:$4 sm:$0xff] %v14907_v37  ;;  %7283 = vmatmul.msk.f32.gmra.mxu1 %vm825_vm8, %v10077_v9  ;;  %v14920_v9 = vld [vmem:[#allocation68_spill] sm:$0xff]  ;;  %v10186_v18 = vpop.f32.mrf.mxu2 }
 0x4df   : > { %3713 = vst [vmem:[#allocation1 + $0x3] ss:$4 sm:$0xff] %v14908_v41  ;;  %v14917_v41 = vld [vmem:[#allocation62_spill] sm:$0xff] }
 0x4e0   : > { %3714 = vst [vmem:[#allocation1 + $0x20] ss:$4 sm:$0xff] %v14909_v27  ;;  %v14918_v27 = vld [vmem:[#allocation66_spill] sm:$0xff] }
 0x4e1   : > { %3715 = vst [vmem:[#allocation1 + $0x21] ss:$4 sm:$0xff] %v14910_v49 }
 0x4e2   : > { %3716 = vst [vmem:[#allocation1 + $0x22] ss:$4 sm:$0xff] %v14911_v63  ;;  %v14919_v63 = vld [vmem:[#allocation67_spill] sm:$0xff] }
 0x4e3   : > { %3717 = vst [vmem:[#allocation1 + $0x23] ss:$4 sm:$0xff] %v14912_v26  ;;  %v10183_v26 = vpop.f32.mrf.mxu1 }
 0x4e4   : > { %7292 = vmatmul.msk.f32.gmra.mxu2 %vm825_vm8, %v3709_v23  ;;  %v14921_v23 = vld [vmem:[#allocation57_spill] sm:$0xff]  ;;  %14922 = vst [vmem:[#allocation212_spill] sm:$0xff] %v10183_v26 }
 0x4e5   : > { %14924 = vst [vmem:[#allocation14_spill] sm:$0xff] %v10186_v18  ;;  %v14931_v18 = vld [vmem:[#allocation73_spill] sm:$0xff] }
 0x4e6   : > { %v3718_v24 = vld.sshfl [vmem:[#allocation1] sm:$0xff pattern:$0x73625140]  ;;  %7284 = vmatmul.msk.f32.gmra.mxu1 %vm825_vm8, %v10087_v14  ;;  %v14927_v14 = vld [vmem:[#allocation69_spill] sm:$0xff] }
 0x4e7   : > { %3720 = vst [vmem:[#allocation1] ss:$4 sm:$0xff] %v14914_v4  ;;  %v14923_v4 = vld [vmem:[#allocation60_spill] sm:$0xff] }
 0x4e8   : > { %3721 = vst [vmem:[#allocation1 + $0x1] ss:$4 sm:$0xff] %v14916_v22 }
 0x4e9   : > { %3722 = vst [vmem:[#allocation1 + $0x2] ss:$4 sm:$0xff] %v14917_v41 }
 0x4ea   : > { %3723 = vst [vmem:[#allocation1 + $0x3] ss:$4 sm:$0xff] %v14918_v27  ;;  %v3719_v37 = vld.sshfl [vmem:[#allocation1 + $0x20] sm:$0xff pattern:$0x73625140] }
 0x4eb   : > { %3724 = vst [vmem:[#allocation1 + $0x20] ss:$4 sm:$0xff] %v14919_v63  ;;  %v14925_v27 = vld [vmem:[#allocation64_spill] sm:$0xff]  ;;  %v14928_v63 = vld [vmem:[#allocation70_spill] sm:$0xff]  ;;  %v10197_v31 = vpop.f32.mrf.mxu1 }
 0x4ec   : > { %7293 = vmatmul.msk.f32.gmra.mxu2 %vm825_vm8, %v3718_v24  ;;  %3725 = vst [vmem:[#allocation1 + $0x21] ss:$4 sm:$0xff] %v14920_v9  ;;  %v14929_v9 = vld [vmem:[#allocation113_spill] sm:$0xff] }
 0x4ed   : > { %3726 = vst [vmem:[#allocation1 + $0x22] ss:$4 sm:$0xff] %v14921_v23 }
 0x4ee   : > { %3727 = vst [vmem:[#allocation1 + $0x23] ss:$4 sm:$0xff] %v14923_v4  ;;  %7285 = vmatmul.msk.f32.gmra.mxu1 %vm825_vm8, %v10099_v43  ;;  %v14930_v4 = vld [vmem:[#allocation114_spill] sm:$0xff] }
 0x4f1   : > { %v3728_v16 = vld.sshfl [vmem:[#allocation1] sm:$0xff pattern:$0x73625140] }
 0x4f2   : > { %3730 = vst [vmem:[#allocation1] ss:$4 sm:$0xff] %v14925_v27  ;;  %v14932_v27 = vld [vmem:[#allocation72_spill] sm:$0xff] }
 0x4f3   : > { %3731 = vst [vmem:[#allocation1 + $0x1] ss:$4 sm:$0xff] %v14926_v53  ;;  %v10201_v53 = vpop.f32.mrf.mxu2  ;;  %v10211_v40 = vpop.f32.mrf.mxu1 }
 0x4f4   : > { %7294 = vmatmul.msk.f32.gmra.mxu2 %vm825_vm8, %v3719_v37  ;;  %3732 = vst [vmem:[#allocation1 + $0x2] ss:$4 sm:$0xff] %v14927_v14  ;;  %v14934_v37 = vld [vmem:[#allocation78_spill] sm:$0xff] }
 0x4f5   : > { %3733 = vst [vmem:[#allocation1 + $0x3] ss:$4 sm:$0xff] %v14928_v63  ;;  %v3729_v24 = vld.sshfl [vmem:[#allocation1 + $0x20] sm:$0xff pattern:$0x73625140] }
 0x4f6   : > { %3734 = vst [vmem:[#allocation1 + $0x20] ss:$4 sm:$0xff] %v14929_v9  ;;  %7286 = vmatmul.msk.f32.gmra.mxu1 %vm825_vm8, %v10115_v6  ;;  %v14936_v9 = vld [vmem:[#allocation83_spill] sm:$0xff] }
 0x4f7   : > { %3735 = vst [vmem:[#allocation1 + $0x21] ss:$4 sm:$0xff] %v14930_v4  ;;  %v14937_v4 = vld [vmem:[#allocation124_spill] sm:$0xff]  ;;  %v14941_v6 = vld [vmem:[#allocation87_spill] sm:$0xff] }
 0x4f8   : > { %3736 = vst [vmem:[#allocation1 + $0x22] ss:$4 sm:$0xff] %v14931_v18  ;;  %v14938_v18 = vld [vmem:[#allocation84_spill] sm:$0xff] }
 0x4f9   : > { %3737 = vst [vmem:[#allocation1 + $0x23] ss:$4 sm:$0xff] %v14932_v27 }
 0x4fa   : > { %14933 = vst [vmem:[#allocation204_spill] sm:$0xff] %v10201_v53  ;;  %v14939_v53 = vld [vmem:[#allocation127_spill] sm:$0xff] }
 0x4fc   : > { %7295 = vmatmul.msk.f32.gmra.mxu2 %vm825_vm8, %v3728_v16  ;;  %v3738_v43 = vld.sshfl [vmem:[#allocation1] sm:$0xff pattern:$0x73625140] }
 0x4fd   : > { %3740 = vst [vmem:[#allocation1] ss:$4 sm:$0xff] %v14934_v37  ;;  %v14944_v37 = vld [vmem:[#allocation90_spill] sm:$0xff] }
 0x4fe   : > { %3741 = vst [vmem:[#allocation1 + $0x1] ss:$4 sm:$0xff] %v14935_v15  ;;  %7287 = vmatmul.msk.f32.gmra.mxu1 %vm825_vm8, %v10133_v34  ;;  %v10219_v15 = vpop.f32.mrf.mxu2  ;;  %v14948_v34 = vld [vmem:[#allocation94_spill] sm:$0xff] }
 0x4ff   : > { %3742 = vst [vmem:[#allocation1 + $0x2] ss:$4 sm:$0xff] %v14936_v9  ;;  %v14943_v9 = vld [vmem:[#allocation85_spill] sm:$0xff] }
 0x500   : > { %3743 = vst [vmem:[#allocation1 + $0x3] ss:$4 sm:$0xff] %v14937_v4  ;;  %v3739_v0 = vld.sshfl [vmem:[#allocation1 + $0x20] sm:$0xff pattern:$0x73625140] }
 0x501   : > { %3744 = vst [vmem:[#allocation1 + $0x20] ss:$4 sm:$0xff] %v14938_v18 }
 0x502   : > { %3745 = vst [vmem:[#allocation1 + $0x21] ss:$4 sm:$0xff] %v14939_v53 }
 0x503   : > { %3746 = vst [vmem:[#allocation1 + $0x22] ss:$4 sm:$0xff] %v14940_v38  ;;  %v10225_v38 = vpop.f32.mrf.mxu1 }
 0x504   : > { %7296 = vmatmul.msk.f32.gmra.mxu2 %vm825_vm8, %v3729_v24  ;;  %3747 = vst [vmem:[#allocation1 + $0x23] ss:$4 sm:$0xff] %v14941_v6  ;;  %v14947_v24 = vld [vmem:[#allocation139_spill] sm:$0xff] }
 0x505   : > { %14942 = vst [vmem:[#allocation169_spill] sm:$0xff] %v10219_v15  ;;  %v14949_v6 = vld [vmem:[#allocation95_spill] sm:$0xff] }
 0x506   : > { %7288 = vmatmul.msk.f32.gmra.mxu1 %vm825_vm8, %v10139_v45  ;;  %v10233_v15 = vpop.f32.mrf.mxu2  ;;  %v14954_v45 = vld [vmem:[#allocation103_spill] sm:$0xff] }
 0x507   : > { %v3748_v16 = vld.sshfl [vmem:[#allocation1] sm:$0xff pattern:$0x73625140]  ;;  %14950 = vst [vmem:[#allocation205_spill] sm:$0xff] %v10233_v15 }
 0x508   : > { %3750 = vst [vmem:[#allocation1] ss:$4 sm:$0xff] %v14943_v9 }
 0x509   : > { %3751 = vst [vmem:[#allocation1 + $0x1] ss:$4 sm:$0xff] %v14944_v37  ;;  %v14951_v37 = vld [vmem:[#allocation96_spill] sm:$0xff] }
 0x50a   : > { %3752 = vst [vmem:[#allocation1 + $0x2] ss:$4 sm:$0xff] %v14945_v61 }
 0x50b   : > { %3753 = vst [vmem:[#allocation1 + $0x3] ss:$4 sm:$0xff] %v14946_v35  ;;  %v3749_v53 = vld.sshfl [vmem:[#allocation1 + $0x20] sm:$0xff pattern:$0x73625140]  ;;  %v14952_v35 = vld [vmem:[#allocation98_spill] sm:$0xff] }
 0x50c   : > { %7297 = vmatmul.msk.f32.gmra.mxu2 %vm825_vm8, %v3738_v43  ;;  %3754 = vst [vmem:[#allocation1 + $0x20] ss:$4 sm:$0xff] %v14947_v24  ;;  %v7314_v43 = vld [vmem:[%s13825_s1 + $0x1c] sm:$0xf] }
 0x50d   : > { %3755 = vst [vmem:[#allocation1 + $0x21] ss:$4 sm:$0xff] %v14948_v34  ;;  %7317 = vmatpush.msk.msrb.mxu3 %vm872_vm0, %v7314_v43  ;;  %v14963_v43 = vld [vmem:[#allocation112_spill] sm:$0xff] }
 0x50e   : > { %3756 = vst [vmem:[#allocation1 + $0x22] ss:$4 sm:$0xff] %v14949_v6  ;;  %v14955_v6 = vld [vmem:[#allocation145_spill] sm:$0xff] }
 0x50f   : > { %3757 = vst [vmem:[#allocation1 + $0x23] ss:$4 sm:$0xff] %v14951_v37  ;;  %v14957_v37 = vld [vmem:[#allocation150_spill] sm:$0xff] }
 0x512   : > { %v3758_v61 = vld.sshfl [vmem:[#allocation1] sm:$0xff pattern:$0x73625140] }
 0x513   : > { %3760 = vst [vmem:[#allocation1] ss:$4 sm:$0xff] %v14952_v35  ;;  %v10247_v35 = vpop.f32.mrf.mxu2 }
 0x514   : > { %7298 = vmatmul.msk.f32.gmra.mxu2 %vm825_vm8, %v3739_v0  ;;  %3761 = vst [vmem:[#allocation1 + $0x1] ss:$4 sm:$0xff] %v14953_v33  ;;  %v14959_v0 = vld [vmem:[#allocation104_spill] sm:$0xff] }
 0x515   : > { %3762 = vst [vmem:[#allocation1 + $0x2] ss:$4 sm:$0xff] %v14954_v45  ;;  %v14962_v45 = vld [vmem:[#allocation109_spill] sm:$0xff] }
 0x516   : > { %3763 = vst [vmem:[#allocation1 + $0x3] ss:$4 sm:$0xff] %v14955_v6  ;;  %v3759_v15 = vld.sshfl [vmem:[#allocation1 + $0x20] sm:$0xff pattern:$0x73625140] }
 0x517   : > { %3764 = vst [vmem:[#allocation1 + $0x20] ss:$4 sm:$0xff] %v14956_v17  ;;  %v14964_v6 = vld [vmem:[#allocation152_spill] sm:$0xff] }
 0x518   : > { %3765 = vst [vmem:[#allocation1 + $0x21] ss:$4 sm:$0xff] %v14957_v37 }
 0x519   : > { %14958 = vst [vmem:[#allocation206_spill] sm:$0xff] %v10247_v35  ;;  %v14967_v35 = vld [vmem:[#allocation156_spill] sm:$0xff] }
 0x51a   : > { %3766 = vst [vmem:[#allocation1 + $0x22] ss:$4 sm:$0xff] %v14959_v0 }
 0x51b   : > { %3767 = vst [vmem:[#allocation1 + $0x23] ss:$4 sm:$0xff] %v14960_v21  ;;  %v10257_v26 = vpop.f32.mrf.mxu2  ;;  %v14968_v21 = vld [vmem:[#allocation116_spill] sm:$0xff] }
 0x51c   : > { %7299 = vmatmul.msk.f32.gmra.mxu2 %vm825_vm8, %v3748_v16  ;;  %14966 = vst [vmem:[#allocation30_spill] sm:$0xff] %v10257_v26  ;;  %v14969_v16 = vld [vmem:[#allocation115_spill] sm:$0xff]  ;;  %v14975_v26 = vld [vmem:[#allocation160_spill] sm:$0xff] }
 0x51d   : > { %v3768_v5 = vld.sshfl [vmem:[#allocation1] sm:$0xff pattern:$0x73625140] }
 0x51e   : > { %3770 = vst [vmem:[#allocation1] ss:$4 sm:$0xff] %v14961_v46 }
 0x51f   : > { %3771 = vst [vmem:[#allocation1 + $0x1] ss:$4 sm:$0xff] %v14962_v45  ;;  %v14970_v45 = vld [vmem:[#allocation118_spill] sm:$0xff] }
 0x520   : > { %3772 = vst [vmem:[#allocation1 + $0x2] ss:$4 sm:$0xff] %v14963_v43 }
 0x521   : > { %3773 = vst [vmem:[#allocation1 + $0x3] ss:$4 sm:$0xff] %v14964_v6  ;;  %v14972_v6 = vld [vmem:[#allocation126_spill] sm:$0xff] }
 0x522   : > { %v3769_v17 = vld.sshfl [vmem:[#allocation1 + $0x20] sm:$0xff pattern:$0x73625140] }
 0x523   : > { %3774 = vst [vmem:[#allocation1 + $0x20] ss:$4 sm:$0xff] %v14965_v42  ;;  %v14973_v42 = vld [vmem:[#allocation129_spill] sm:$0xff] }
 0x524   : > { %3775 = vst [vmem:[#allocation1 + $0x21] ss:$4 sm:$0xff] %v14967_v35  ;;  %7300 = vmatmul.msk.f32.gmra.mxu2 %vm825_vm8, %v3749_v53  ;;  %v10272_v53 = vpop.f32.mrf.mxu2 }
 0x525   : > { %3776 = vst [vmem:[#allocation1 + $0x22] ss:$4 sm:$0xff] %v14968_v21 }
 0x526   : > { %3777 = vst [vmem:[#allocation1 + $0x23] ss:$4 sm:$0xff] %v14969_v16 }
 0x527   : > { %14974 = vst [vmem:[#allocation217_spill] sm:$0xff] %v10272_v53  ;;  %v14983_v53 = vld [vmem:[#allocation175_spill] sm:$0xff] }
 0x528   : > { %v10263_v46 = vld.sshfl [vmem:[#allocation1] sm:$0xff pattern:$0x73625140] }
 0x529   : > { %3780 = vst [vmem:[#allocation1] ss:$4 sm:$0xff] %v14970_v45  ;;  %v14978_v45 = vld [vmem:[#allocation133_spill] sm:$0xff] }
 0x52a   : > { %3781 = vst [vmem:[#allocation1 + $0x1] ss:$4 sm:$0xff] %v14971_v3 }
 0x52b   : > { %3782 = vst [vmem:[#allocation1 + $0x2] ss:$4 sm:$0xff] %v14972_v6  ;;  %v14980_v6 = vld [vmem:[#allocation173_spill] sm:$0xff] }
 0x52c   : > { %7301 = vmatmul.msk.f32.gmra.mxu2 %vm825_vm8, %v3758_v61  ;;  %3783 = vst [vmem:[#allocation1 + $0x3] ss:$4 sm:$0xff] %v14973_v42  ;;  %v14979_v61 = vld [vmem:[#allocation172_spill] sm:$0xff]  ;;  %v10284_v58 = vpop.f32.mrf.mxu2  ;;  %v10307_v42 = vld [vmem:[%s7841_s14 + $0x110] sm:$0xff] }
 0x52d   : > { %v10270_v35 = vld.sshfl [vmem:[#allocation1 + $0x20] sm:$0xff pattern:$0x73625140]  ;;  %14982 = vst [vmem:[#allocation210_spill] sm:$0xff] %v10284_v58 }
 0x52e   : > { %3784 = vst [vmem:[#allocation1 + $0x20] ss:$4 sm:$0xff] %v14975_v26 }
 0x52f   : > { %3785 = vst [vmem:[#allocation1 + $0x21] ss:$4 sm:$0xff] %v14976_v32  ;;  %v14984_v32 = vld [vmem:[#allocation176_spill] sm:$0xff] }
 0x530   : > { %3786 = vst [vmem:[#allocation1 + $0x22] ss:$4 sm:$0xff] %v14977_v51  ;;  %v10291_v51 = vld [vmem:[%s7841_s14 + $0x108] sm:$0xff] }
 0x531   : > { %3787 = vst [vmem:[#allocation1 + $0x23] ss:$4 sm:$0xff] %v14978_v45  ;;  %v14220_v58 = vrot.slane %v10291_v51, 4 }
 0x533   : > { %v10278_v3 = vld.sshfl [vmem:[#allocation1] sm:$0xff pattern:$0x73625140] }
 0x534   : > { %7302 = vmatmul.msk.f32.gmra.mxu2 %vm825_vm8, %v3759_v15  ;;  %3790 = vst [vmem:[#allocation1] ss:$4 sm:$0xff] %v14979_v61  ;;  %v14986_v15 = vld [vmem:[#allocation185_spill] sm:$0xff] }
 0x535   : > { %3791 = vst [vmem:[#allocation1 + $0x1] ss:$4 sm:$0xff] %v14980_v6  ;;  %v14987_v6 = vld [vmem:[#allocation186_spill] sm:$0xff] }
 0x536   : > { %3792 = vst [vmem:[#allocation1 + $0x2] ss:$4 sm:$0xff] %v14981_v44  ;;  %v1206_v44 = vadd.f32 %v10197_v31, %v9972_v57  ;;  %v1746_v57 = vpop.f32.mrf.mxu2 }
 0x537   : > { %3793 = vst [vmem:[#allocation1 + $0x3] ss:$4 sm:$0xff] %v14983_v53  ;;  %v14219_v53 = vrot.slane %v10291_v51, 2  ;;  %v1839_v62 = vrot.slane %v1746_v57, 4 }
 0x538   : > { %v10287_v26 = vld.sshfl [vmem:[#allocation1 + $0x20] sm:$0xff pattern:$0x73625140]  ;;  %v1298_v7 = vrot.slane %v1206_v44, 4  ;;  %v10315_v48 = vadd.f32 %v1746_v57, %v1206_v44 }
 0x539   : > { %3794 = vst [vmem:[#allocation1 + $0x20] ss:$4 sm:$0xff] %v14984_v32  ;;  %v14988_v32 = vld [vmem:[#allocation179_spill] sm:$0xff] }
 0x53a   : > { %3795 = vst [vmem:[#allocation1 + $0x21] ss:$4 sm:$0xff] %v14985_v54  ;;  %v1840_v54 = vrot.slane %v1746_v57, 6  ;;  %v10326_v31 = vadd.f32 %v1839_v62, %v1298_v7 }
 0x53b   : > { %3796 = vst [vmem:[#allocation1 + $0x22] ss:$4 sm:$0xff] %v14986_v15  ;;  %v1297_v15 = vrot.slane %v1206_v44, 2 }
 0x53c   : > { %7303 = vmatmul.msk.f32.gmra.mxu2 %vm825_vm8, %v3768_v5  ;;  %3797 = vst [vmem:[#allocation1 + $0x23] ss:$4 sm:$0xff] %v14987_v6  ;;  %v1299_v5 = vrot.slane %v1206_v44, 6  ;;  %v14221_v44 = vrot.slane %v10307_v42, 6 }
 0x53d   : > { %14989 = vst [vmem:[#allocation211_spill] sm:$0xff] %v10315_v48 }
 0x53e   : > { %v10301_v61 = vld.sshfl [vmem:[#allocation1] sm:$0xff pattern:$0x73625140]  ;;  %14992 = vst [vmem:[#allocation214_spill] sm:$0xff] %v10326_v31  ;;  %v10328_v6 = vadd.f32 %v1840_v54, %v1299_v5  ;;  %v1749_v7 = vpop.f32.mrf.mxu2 }
 0x53f   : > { %3800 = vst [vmem:[#allocation1] ss:$4 sm:$0xff] %v14988_v32  ;;  %v1838_v32 = vrot.slane %v1746_v57, 2  ;;  %v14994_v57 = vrot.slane %v10307_v42, 2  ;;  %v1841_v62 = vrot.slane %v1749_v7, 2  ;;  %v1842_v54 = vrot.slane %v1749_v7, 4 }
 0x540   : > { %3801 = vst [vmem:[#allocation1 + $0x1] ss:$4 sm:$0xff] %v10291_v51 }
 0x541   : > { %3802 = vst [vmem:[#allocation1 + $0x2] ss:$4 sm:$0xff] %v14219_v53  ;;  %v14990_v53 = vrot.slane %v10291_v51, 6  ;;  %v10324_v45 = vadd.f32 %v1838_v32, %v1297_v15  ;;  %v1843_v15 = vrot.slane %v1749_v7, 6 }
 0x542   : > { %3803 = vst [vmem:[#allocation1 + $0x3] ss:$4 sm:$0xff] %v14220_v58  ;;  %v1209_v58 = vadd.f32 %v10211_v40, %v9987_v50 }
 0x543   : > { %v10317_v12 = vld.sshfl [vmem:[#allocation1 + $0x20] sm:$0xff pattern:$0x73625140]  ;;  %14991 = vst [vmem:[#allocation213_spill] sm:$0xff] %v10324_v45 }
 0x544   : > { %7304 = vmatmul.msk.f32.gmra.mxu2 %vm825_vm8, %v3769_v17  ;;  %3804 = vst [vmem:[#allocation1 + $0x20] ss:$4 sm:$0xff] %v14990_v53  ;;  %v14995_v17 = vrot.slane %v10307_v42, 4  ;;  %v10337_v53 = vld [vmem:[%s7841_s14 + $0x118] sm:$0xf]  ;;  %v1300_v48 = vrot.slane %v1209_v58, 2  ;;  %v10344_v5 = vadd.f32 %v1749_v7, %v1209_v58 }
 0x545   : > { %14993 = vst [vmem:[#allocation215_spill] sm:$0xff] %v10328_v6  ;;  %v1301_v50 = vrot.slane %v1209_v58, 4  ;;  %v1302_v40 = vrot.slane %v1209_v58, 6  ;;  %v15000_v45 = vld [vmem:[#allocation40_spill] sm:$0xff]  ;;  %v15001_v58 = vld [vmem:[#allocation41_spill] sm:$0xff]  ;;  %s7542_s14 = sshll.u32 %s7703_s24, 4 }
 0x546   : > { %3805 = vst [vmem:[#allocation1 + $0x21] ss:$4 sm:$0xff] %v10307_v42  ;;  %s7028_s29 = sadd.s32 %s7542_s14, %s7538_s20 }
 0x547   : > { %3806 = vst [vmem:[#allocation1 + $0x22] ss:$4 sm:$0xff] %v14994_v57  ;;  %v1212_v57 = vadd.f32 %v10225_v38, %v10001_v25  ;;  %v10352_v6 = vadd.f32 %v1842_v54, %v1301_v50  ;;  %v10354_v31 = vadd.f32 %v1843_v15, %v1302_v40  ;;  %v1752_v38 = vpop.f32.mrf.mxu2  ;;  %v15004_v50 = vld [vmem:[#allocation34_spill] sm:$0xff]  ;;  %v15005_v54 = vld [vmem:[#allocation36_spill] sm:$0xff]  ;;  %s7539_s30 = sshll.u32 %s7028_s29, 3 }
 0x548   : > { %3807 = vst [vmem:[#allocation1 + $0x23] ss:$4 sm:$0xff] %v14995_v17  ;;  %v10350_v17 = vadd.f32 %v1841_v62, %v1300_v48  ;;  %v15003_v48 = vld [vmem:[#allocation48_spill] sm:$0xff]  ;;  %v1844_v40 = vrot.slane %v1752_v38, 2  ;;  %v1845_v62 = vrot.slane %v1752_v38, 4  ;;  %s7030_s25 = scalar_lea.hbm %s13830_s6, %s7539_s30  ;;  %s7645_s30 = scalar_lea.hbm %s13830_s6, 512 }
 0x549   : > { %v10339_v32 = vld.sshfl [vmem:[#allocation1] sm:$0xff pattern:$0x73625140]  ;;  %14996 = vst [vmem:[#allocation216_spill] sm:$0xff] %v10344_v5  ;;  %v1303_v7 = vrot.slane %v1212_v57, 2  ;;  %v1304_v5 = vrot.slane %v1212_v57, 4  ;;  %v10368_v15 = vadd.f32 %v1752_v38, %v1212_v57 }
 0x54a   : > { %3810 = vst [vmem:[#allocation1] ss:$4 sm:$0xff] %v14221_v44  ;;  %v1305_v11 = vrot.slane %v1212_v57, 6  ;;  %v15014_v57 = vld [vmem:[#allocation56_spill] sm:$0xff] }
 0x54b   : > { %3811 = vst [vmem:[#allocation1 + $0x1] ss:$4 sm:$0xff] %v10337_v53 }
 0x54c   : > { %7305 = vmatmul.msk.f32.gmra.mxu2 %vm825_vm8, %v10263_v46  ;;  %14997 = vst [vmem:[#allocation5_spill] sm:$0xff] %v10350_v17  ;;  %v15002_v46 = vld [vmem:[#allocation46_spill] sm:$0xff]  ;;  %v10380_v17 = vpop.f32.mrf.mxu3 }
 0x54d   : > { %14998 = vst [vmem:[#allocation218_spill] sm:$0xff] %v10352_v6 }
 0x54e   : > { %14999 = vst [vmem:[#allocation24_spill] sm:$0xff] %v10354_v31  ;;  %v10375_v31 = vadd.f32 %v1845_v62, %v1304_v5  ;;  %v15017_v5 = vld [vmem:[#allocation50_spill] sm:$0xff]  ;;  %v15019_v62 = vld [vmem:[#allocation53_spill] sm:$0xff] }
 0x54f   : > { %v10356_v44 = vld.sshfl [vmem:[#allocation1 + $0x20] sm:$0xff pattern:$0x73625140]  ;;  %15006 = vst [vmem:[#allocation16_spill] sm:$0xff] %v10368_v15 }
 0x550   : > { %4234 = vst [vmem:[#allocation1 + $0x20] ss:$4 sm:$0xff] %v15000_v45  ;;  %v1846_v45 = vrot.slane %v1752_v38, 6  ;;  %v15015_v38 = vld [vmem:[#allocation58_spill] sm:$0xff] }
 0x551   : > { %4236 = vst [vmem:[#allocation1 + $0x21] ss:$4 sm:$0xff] %v15001_v58  ;;  %v15007_v58 = vld [vmem:[#allocation37_spill] sm:$0xff] }
 0x552   : > { %4238 = vst [vmem:[#allocation1 + $0x22] ss:$4 sm:$0xff] %v15002_v46  ;;  %v10363_v25 = vld.sshfl [vmem:[#allocation1] sm:$0xff pattern:$0x73625140]  ;;  %v10373_v46 = vadd.f32 %v1844_v40, %v1303_v7  ;;  %v10378_v6 = vadd.f32 %v1846_v45, %v1305_v11  ;;  %v15016_v7 = vld [vmem:[#allocation59_spill] sm:$0xff] }
 0x553   : > { %4240 = vst [vmem:[#allocation1 + $0x23] ss:$4 sm:$0xff] %v15003_v48  ;;  %v15010_v48 = vld [vmem:[#allocation38_spill] sm:$0xff]  ;;  %v7341_v11 = vld [vmem:[%s13825_s1 + $0x20] sm:$0xf] }
 0x554   : > { %4226 = vst [vmem:[#allocation1] ss:$4 sm:$0xff] %v15004_v50  ;;  %7306 = vmatmul.msk.f32.gmra.mxu2 %vm825_vm8, %v10270_v35  ;;  %v15018_v40 = vld [vmem:[#allocation52_spill] sm:$0xff]  ;;  %7342 = vmatpush.msk.msrb.mxu0 %vm872_vm0, %v7341_v11  ;;  %v15020_v45 = vld [vmem:[#allocation54_spill] sm:$0xff]  ;;  %v15028_v11 = vld [vmem:[#allocation71_spill] sm:$0xff] }
 0x555   : > { %4228 = vst [vmem:[#allocation1 + $0x1] ss:$4 sm:$0xff] %v15005_v54  ;;  %v15013_v54 = vld [vmem:[#allocation55_spill] sm:$0xff] }
 0x556   : > { %4230 = vst [vmem:[#allocation1 + $0x2] ss:$4 sm:$0xff] %v15007_v58 }
 0x557   : > { %15008 = vst [vmem:[#allocation219_spill] sm:$0xff] %v10373_v46  ;;  %v15085_v46 = vld [vmem:[#allocation144_spill] sm:$0xff] }
 0x558   : > { %15009 = vst [vmem:[#allocation220_spill] sm:$0xff] %v10375_v31 }
 0x559   : > { %4232 = vst [vmem:[#allocation1 + $0x3] ss:$4 sm:$0xff] %v15010_v48  ;;  %v15022_v48 = vld [vmem:[#allocation75_spill] sm:$0xff] }
 0x55a   : > { %15011 = vst [vmem:[#allocation22_spill] sm:$0xff] %v10378_v6  ;;  %v4242_v50 = vld.sshfl [vmem:[#allocation1 + $0x20] sm:$0xff pattern:$0x73625140]  ;;  %v15072_v6 = vld [vmem:[#allocation163_spill] sm:$0xff] }
 0x55b   : > { %15012 = vst [vmem:[#allocation29_spill] sm:$0xff] %v10380_v17 }
 0x55c   : > { %4247 = vst [vmem:[#allocation1 + $0x20] ss:$4 sm:$0xff] %v15013_v54  ;;  %7307 = vmatmul.msk.f32.gmra.mxu2 %vm825_vm8, %v10278_v3  ;;  %v10397_v3 = vpop.f32.mrf.mxu3  ;;  %v15023_v54 = vld [vmem:[#allocation76_spill] sm:$0xff] }
 0x55d   : > { %4248 = vst [vmem:[#allocation1 + $0x21] ss:$4 sm:$0xff] %v15014_v57  ;;  %v15024_v57 = vld [vmem:[#allocation77_spill] sm:$0xff] }
 0x55e   : > { %4249 = vst [vmem:[#allocation1 + $0x22] ss:$4 sm:$0xff] %v15015_v38 }
 0x55f   : > { %4250 = vst [vmem:[#allocation1 + $0x23] ss:$4 sm:$0xff] %v15016_v7  ;;  %v15026_v7 = vld [vmem:[#allocation61_spill] sm:$0xff] }
 0x560   : > { %v4241_v35 = vld.sshfl [vmem:[#allocation1] sm:$0xff pattern:$0x73625140]  ;;  %15021 = vst [vmem:[#allocation15_spill] sm:$0xff] %v10397_v3 }
 0x561   : > { %7318 = vmatmul.msk.f32.vlgmr.msrb.gmra.mxu3 %vm825_vm8, %v4241_v35  ;;  %4243 = vst [vmem:[#allocation1] ss:$4 sm:$0xff] %v15017_v5  ;;  %v15025_v35 = vld [vmem:[#allocation79_spill] sm:$0xff] }
 0x562   : > { %4244 = vst [vmem:[#allocation1 + $0x1] ss:$4 sm:$0xff] %v15018_v40  ;;  %v15027_v5 = vld [vmem:[#allocation63_spill] sm:$0xff]  ;;  %v15029_v40 = vld [vmem:[#allocation74_spill] sm:$0xff] }
 0x563   : > { %4245 = vst [vmem:[#allocation1 + $0x2] ss:$4 sm:$0xff] %v15019_v62  ;;  %v15031_v62 = vld [vmem:[#allocation128_spill] sm:$0xff] }
 0x564   : > { %4246 = vst [vmem:[#allocation1 + $0x3] ss:$4 sm:$0xff] %v15020_v45  ;;  %7308 = vmatmul.msk.f32.gmra.mxu2 %vm825_vm8, %v10287_v26  ;;  %v10412_v26 = vpop.f32.mrf.mxu3  ;;  %v15032_v45 = vld [vmem:[#allocation130_spill] sm:$0xff] }
 0x565   : > { %15030 = vst [vmem:[#allocation25_spill] sm:$0xff] %v10412_v26 }
 0x566   : > { %v4252_v58 = vld.sshfl [vmem:[#allocation1 + $0x20] sm:$0xff pattern:$0x73625140] }
 0x567   : > { %4257 = vst [vmem:[#allocation1 + $0x20] ss:$4 sm:$0xff] %v15022_v48  ;;  %v15033_v48 = vld [vmem:[#allocation88_spill] sm:$0xff] }
 0x568   : > { %4258 = vst [vmem:[#allocation1 + $0x21] ss:$4 sm:$0xff] %v15023_v54 }
 0x569   : > { %7319 = vmatmul.msk.f32.gmra.mxu3 %vm825_vm8, %v4242_v50  ;;  %4259 = vst [vmem:[#allocation1 + $0x22] ss:$4 sm:$0xff] %v15024_v57  ;;  %v15034_v57 = vld [vmem:[#allocation89_spill] sm:$0xff] }
 0x56a   : > { %4260 = vst [vmem:[#allocation1 + $0x23] ss:$4 sm:$0xff] %v15025_v35  ;;  %v15035_v35 = vld [vmem:[#allocation81_spill] sm:$0xff] }
 0x56b   : > { %v4251_v38 = vld.sshfl [vmem:[#allocation1] sm:$0xff pattern:$0x73625140] }
 0x56c   : > { %4253 = vst [vmem:[#allocation1] ss:$4 sm:$0xff] %v15026_v7  ;;  %7309 = vmatmul.msk.f32.gmra.mxu2 %vm825_vm8, %v10301_v61  ;;  %v15036_v7 = vld [vmem:[#allocation82_spill] sm:$0xff]  ;;  %v15037_v61 = vld [vmem:[#allocation123_spill] sm:$0xff] }
 0x56d   : > { %4254 = vst [vmem:[#allocation1 + $0x1] ss:$4 sm:$0xff] %v15027_v5  ;;  %v10426_v5 = vpop.f32.mrf.mxu3 }
 0x56e   : > { %4255 = vst [vmem:[#allocation1 + $0x2] ss:$4 sm:$0xff] %v15028_v11 }
 0x56f   : > { %4256 = vst [vmem:[#allocation1 + $0x3] ss:$4 sm:$0xff] %v15029_v40  ;;  %v15040_v40 = vld [vmem:[#allocation141_spill] sm:$0xff] }
 0x570   : > { %15039 = vst [vmem:[#allocation23_spill] sm:$0xff] %v10426_v5  ;;  %v15100_v5 = vrot.slane %v10307_v42, 4 }
 0x571   : > { %7320 = vmatmul.msk.f32.gmra.mxu3 %vm825_vm8, %v4251_v38  ;;  %v4262_v50 = vld.sshfl [vmem:[#allocation1 + $0x20] sm:$0xff pattern:$0x73625140]  ;;  %v15038_v38 = vld [vmem:[#allocation125_spill] sm:$0xff] }
 0x572   : > { %4267 = vst [vmem:[#allocation1 + $0x20] ss:$4 sm:$0xff] %v15031_v62  ;;  %v15041_v62 = vld [vmem:[#allocation142_spill] sm:$0xff]  ;;  %v4215_v26 = vrot.slane %v15100_v5, 7 }
 0x573   : > { %4268 = vst [vmem:[#allocation1 + $0x21] ss:$4 sm:$0xff] %v15032_v45  ;;  %v15042_v45 = vld [vmem:[#allocation97_spill] sm:$0xff] }
 0x574   : > { %4269 = vst [vmem:[#allocation1 + $0x22] ss:$4 sm:$0xff] %v15033_v48  ;;  %7310 = vmatmul.msk.f32.gmra.mxu2 %vm825_vm8, %v10317_v12  ;;  %v15044_v48 = vld [vmem:[#allocation91_spill] sm:$0xff]  ;;  %v4217_v5 = vrot.slane %v4215_v26, 2 }
 0x575   : > { %4270 = vst [vmem:[#allocation1 + $0x23] ss:$4 sm:$0xff] %v15034_v57  ;;  %v15045_v57 = vld [vmem:[#allocation92_spill] sm:$0xff] }
 0x576   : > { %v4261_v54 = vld.sshfl [vmem:[#allocation1] sm:$0xff pattern:$0x73625140] }
 0x577   : > { %4263 = vst [vmem:[#allocation1] ss:$4 sm:$0xff] %v15035_v35  ;;  %v15046_v35 = vld [vmem:[#allocation138_spill] sm:$0xff] }
 0x578   : > { %4264 = vst [vmem:[#allocation1 + $0x1] ss:$4 sm:$0xff] %v15036_v7  ;;  %v10438_v7 = vpop.f32.mrf.mxu3 }
 0x579   : > { %7321 = vmatmul.msk.f32.gmra.mxu3 %vm825_vm8, %v4252_v58  ;;  %4265 = vst [vmem:[#allocation1 + $0x2] ss:$4 sm:$0xff] %v15037_v61  ;;  %v15043_v58 = vld [vmem:[#allocation99_spill] sm:$0xff]  ;;  %v15048_v61 = vld [vmem:[#allocation140_spill] sm:$0xff] }
 0x57a   : > { %4266 = vst [vmem:[#allocation1 + $0x3] ss:$4 sm:$0xff] %v15038_v38 }
 0x57b   : > { %15047 = vst [vmem:[#allocation31_spill] sm:$0xff] %v10438_v7  ;;  %v15098_v7 = vld [vmem:[#allocation26_spill] sm:$0xff] }
 0x57c   : > { %v4272_v11 = vld.sshfl [vmem:[#allocation1 + $0x20] sm:$0xff pattern:$0x73625140]  ;;  %7311 = vmatmul.msk.f32.gmra.mxu2 %vm825_vm8, %v10339_v32  ;;  %v15049_v32 = vld [vmem:[#allocation149_spill] sm:$0xff] }
 0x57d   : > { %4277 = vst [vmem:[#allocation1 + $0x20] ss:$4 sm:$0xff] %v15040_v40 }
 0x57e   : > { %4278 = vst [vmem:[#allocation1 + $0x21] ss:$4 sm:$0xff] %v15041_v62  ;;  %v15051_v62 = vld [vmem:[#allocation106_spill] sm:$0xff] }
 0x57f   : > { %4279 = vst [vmem:[#allocation1 + $0x22] ss:$4 sm:$0xff] %v15042_v45  ;;  %v15052_v45 = vld [vmem:[#allocation100_spill] sm:$0xff] }
 0x580   : > { %4280 = vst [vmem:[#allocation1 + $0x23] ss:$4 sm:$0xff] %v15043_v58  ;;  %v15053_v58 = vld [vmem:[#allocation102_spill] sm:$0xff] }
 0x581   : > { %7322 = vmatmul.msk.f32.gmra.mxu3 %vm825_vm8, %v4261_v54  ;;  %v4271_v12 = vld.sshfl [vmem:[#allocation1] sm:$0xff pattern:$0x73625140]  ;;  %v15050_v54 = vld [vmem:[#allocation151_spill] sm:$0xff] }
 0x582   : > { %4273 = vst [vmem:[#allocation1] ss:$4 sm:$0xff] %v15044_v48  ;;  %v10449_v48 = vpop.f32.mrf.mxu3 }
 0x583   : > { %4274 = vst [vmem:[#allocation1 + $0x1] ss:$4 sm:$0xff] %v15045_v57  ;;  %v15055_v57 = vld [vmem:[#allocation146_spill] sm:$0xff] }
 0x584   : > { %4275 = vst [vmem:[#allocation1 + $0x2] ss:$4 sm:$0xff] %v15046_v35  ;;  %7312 = vmatmul.msk.f32.gmra.mxu2 %vm825_vm8, %v10356_v44  ;;  %v15056_v35 = vld [vmem:[#allocation148_spill] sm:$0xff] }
 0x585   : > { %4276 = vst [vmem:[#allocation1 + $0x3] ss:$4 sm:$0xff] %v15048_v61  ;;  %v15057_v44 = vld [vmem:[#allocation108_spill] sm:$0xff]  ;;  %v15058_v61 = vld [vmem:[#allocation110_spill] sm:$0xff] }
 0x586   : > { %15054 = vst [vmem:[#allocation35_spill] sm:$0xff] %v10449_v48 }
 0x587   : > { %v4282_v38 = vld.sshfl [vmem:[#allocation1 + $0x20] sm:$0xff pattern:$0x73625140] }
 0x588   : > { %4287 = vst [vmem:[#allocation1 + $0x20] ss:$4 sm:$0xff] %v15049_v32 }
 0x589   : > { %7323 = vmatmul.msk.f32.gmra.mxu3 %vm825_vm8, %v4262_v50  ;;  %4288 = vst [vmem:[#allocation1 + $0x21] ss:$4 sm:$0xff] %v15050_v54  ;;  %v15060_v54 = vld [vmem:[#allocation111_spill] sm:$0xff] }
 0x58a   : > { %4289 = vst [vmem:[#allocation1 + $0x22] ss:$4 sm:$0xff] %v15051_v62  ;;  %v10458_v32 = vpop.f32.mrf.mxu3 }
 0x58b   : > { %4290 = vst [vmem:[#allocation1 + $0x23] ss:$4 sm:$0xff] %v15057_v44 }
 0x58c   : > { %v4281_v40 = vld.sshfl [vmem:[#allocation1] sm:$0xff pattern:$0x73625140]  ;;  %7313 = vmatmul.msk.f32.gmra.mxu2 %vm825_vm8, %v10363_v25  ;;  %15059 = vst [vmem:[#allocation43_spill] sm:$0xff] %v10458_v32  ;;  %v15064_v25 = vld [vmem:[#allocation158_spill] sm:$0xff] }
 0x58d   : > { %4283 = vst [vmem:[#allocation1] ss:$4 sm:$0xff] %v15052_v45  ;;  %v15061_v45 = vld [vmem:[#allocation153_spill] sm:$0xff] }
 0x58e   : > { %4284 = vst [vmem:[#allocation1 + $0x1] ss:$4 sm:$0xff] %v15053_v58  ;;  %v15062_v58 = vld [vmem:[#allocation155_spill] sm:$0xff] }
 0x58f   : > { %4285 = vst [vmem:[#allocation1 + $0x2] ss:$4 sm:$0xff] %v15055_v57  ;;  %v15063_v57 = vld [vmem:[#allocation157_spill] sm:$0xff] }
 0x590   : > { %4286 = vst [vmem:[#allocation1 + $0x3] ss:$4 sm:$0xff] %v15056_v35  ;;  %v15066_v35 = vld [vmem:[#allocation119_spill] sm:$0xff] }
 0x591   : > { %7324 = vmatmul.msk.f32.gmra.mxu3 %vm825_vm8, %v4271_v12  ;;  %v15065_v12 = vld [vmem:[#allocation117_spill] sm:$0xff] }
 0x592   : > { %v4292_v62 = vld.sshfl [vmem:[#allocation1 + $0x20] sm:$0xff pattern:$0x73625140] }
 0x593   : > { %4297 = vst [vmem:[#allocation1 + $0x20] ss:$4 sm:$0xff] %v15063_v57 }
 0x594   : > { %4298 = vst [vmem:[#allocation1 + $0x21] ss:$4 sm:$0xff] %v15064_v25  ;;  %v15073_v25 = vld [vmem:[#allocation164_spill] sm:$0xff] }
 0x595   : > { %4299 = vst [vmem:[#allocation1 + $0x22] ss:$4 sm:$0xff] %v15065_v12  ;;  %v15074_v12 = vld [vmem:[#allocation132_spill] sm:$0xff] }
 0x596   : > { %4300 = vst [vmem:[#allocation1 + $0x23] ss:$4 sm:$0xff] %v15066_v35 }
 0x597   : > { %v4291_v50 = vld.sshfl [vmem:[#allocation1] sm:$0xff pattern:$0x73625140] }
 0x598   : > { %4293 = vst [vmem:[#allocation1] ss:$4 sm:$0xff] %v15058_v61  ;;  %v10469_v61 = vpop.f32.mrf.mxu3 }
 0x599   : > { %7325 = vmatmul.msk.f32.gmra.mxu3 %vm825_vm8, %v4272_v11  ;;  %4294 = vst [vmem:[#allocation1 + $0x1] ss:$4 sm:$0xff] %v15060_v54  ;;  %v15068_v11 = vld [vmem:[#allocation121_spill] sm:$0xff]  ;;  %v15069_v54 = vld [vmem:[#allocation122_spill] sm:$0xff] }
 0x59a   : > { %4295 = vst [vmem:[#allocation1 + $0x2] ss:$4 sm:$0xff] %v15061_v45  ;;  %v15070_v45 = vld [vmem:[#allocation159_spill] sm:$0xff] }
 0x59b   : > { %4296 = vst [vmem:[#allocation1 + $0x3] ss:$4 sm:$0xff] %v15062_v58  ;;  %v15071_v58 = vld [vmem:[#allocation161_spill] sm:$0xff] }
 0x59c   : > { %15067 = vst [vmem:[#allocation44_spill] sm:$0xff] %v10469_v61 }
 0x59d   : > { %v4302_v57 = vld.sshfl [vmem:[#allocation1 + $0x20] sm:$0xff pattern:$0x73625140] }
 0x59e   : > { %4307 = vst [vmem:[#allocation1 + $0x20] ss:$4 sm:$0xff] %v15072_v6  ;;  %v15080_v6 = vld [vmem:[#allocation166_spill] sm:$0xff] }
 0x59f   : > { %4308 = vst [vmem:[#allocation1 + $0x21] ss:$4 sm:$0xff] %v15073_v25  ;;  %v15081_v25 = vld [vmem:[#allocation167_spill] sm:$0xff] }
 0x5a0   : > { %4309 = vst [vmem:[#allocation1 + $0x22] ss:$4 sm:$0xff] %v15074_v12  ;;  %v10480_v35 = vpop.f32.mrf.mxu3  ;;  %v15082_v12 = vld [vmem:[#allocation168_spill] sm:$0xff] }
 0x5a1   : > { %7326 = vmatmul.msk.f32.gmra.mxu3 %vm825_vm8, %v4281_v40  ;;  %v15075_v40 = vld [vmem:[#allocation134_spill] sm:$0xff]  ;;  %15076 = vst [vmem:[#allocation42_spill] sm:$0xff] %v10480_v35  ;;  %v15092_v35 = vld [vmem:[#allocation12_spill] sm:$0xff] }
 0x5a2   : > { %v4301_v44 = vld.sshfl [vmem:[#allocation1] sm:$0xff pattern:$0x73625140]  ;;  %4310 = vst [vmem:[#allocation1 + $0x23] ss:$4 sm:$0xff] %v15075_v40  ;;  %v15083_v40 = vld [vmem:[#allocation143_spill] sm:$0xff] }
 0x5a3   : > { %4303 = vst [vmem:[#allocation1] ss:$4 sm:$0xff] %v15068_v11 }
 0x5a4   : > { %4304 = vst [vmem:[#allocation1 + $0x1] ss:$4 sm:$0xff] %v15069_v54  ;;  %v15077_v54 = vld [vmem:[#allocation135_spill] sm:$0xff] }
 0x5a5   : > { %4305 = vst [vmem:[#allocation1 + $0x2] ss:$4 sm:$0xff] %v15070_v45  ;;  %v15078_v45 = vld [vmem:[#allocation136_spill] sm:$0xff] }
 0x5a6   : > { %4306 = vst [vmem:[#allocation1 + $0x3] ss:$4 sm:$0xff] %v15071_v58  ;;  %v15079_v58 = vld [vmem:[#allocation165_spill] sm:$0xff] }
 0x5a8   : > { %v10494_v31 = vpop.f32.mrf.mxu3 }
 0x5a9   : > { %7327 = vmatmul.msk.f32.gmra.mxu3 %vm825_vm8, %v4282_v38  ;;  %v10489_v38 = vld.sshfl [vmem:[#allocation1 + $0x20] sm:$0xff pattern:$0x73625140]  ;;  %15084 = vst [vmem:[#allocation47_spill] sm:$0xff] %v10494_v31 }
 0x5aa   : > { %4317 = vst [vmem:[#allocation1 + $0x20] ss:$4 sm:$0xff] %v15081_v25 }
 0x5ab   : > { %4318 = vst [vmem:[#allocation1 + $0x21] ss:$4 sm:$0xff] %v15082_v12  ;;  %v15090_v12 = vld [vmem:[#allocation11_spill] sm:$0xff] }
 0x5ac   : > { %4319 = vst [vmem:[#allocation1 + $0x22] ss:$4 sm:$0xff] %v15083_v40  ;;  %v15091_v40 = vrot.slane %v10291_v51, 4 }
 0x5ad   : > { %v10482_v11 = vld.sshfl [vmem:[#allocation1] sm:$0xff pattern:$0x73625140]  ;;  %4320 = vst [vmem:[#allocation1 + $0x23] ss:$4 sm:$0xff] %v15085_v46  ;;  %v7315_v46 = vrot.slane %v10291_v51, 9 }
 0x5ae   : > { %4313 = vst [vmem:[#allocation1] ss:$4 sm:$0xff] %v15077_v54  ;;  %v4203_v15 = vrot.slane %v15091_v40, 7  ;;  %v15097_v40 = vrot.slane %v10307_v42, 2 }
 0x5af   : > { %4314 = vst [vmem:[#allocation1 + $0x1] ss:$4 sm:$0xff] %v15078_v45  ;;  %v15086_v45 = vld [vmem:[#allocation8_spill] sm:$0xff] }
 0x5b0   : > { %4315 = vst [vmem:[#allocation1 + $0x2] ss:$4 sm:$0xff] %v15079_v58  ;;  %v15088_v58 = vld [vmem:[#allocation17_spill] sm:$0xff]  ;;  %v10516_v32 = vpop.f32.mrf.mxu3  ;;  %v4212_v48 = vrot.slane %v15097_v40, 7 }
 0x5b1   : > { %7328 = vmatmul.msk.f32.gmra.mxu3 %vm825_vm8, %v4291_v50  ;;  %4316 = vst [vmem:[#allocation1 + $0x3] ss:$4 sm:$0xff] %v15080_v6  ;;  %v15087_v50 = vld [vmem:[#allocation9_spill] sm:$0xff]  ;;  %v15089_v6 = vrot.slane %v10291_v51, 2 }
 0x5b2   : > { %15095 = vst [vmem:[#allocation49_spill] sm:$0xff] %v10516_v32 }
 0x5b3   : > { %v4200_v25 = vrot.slane %v15089_v6, 7  ;;  %v4209_v6 = vrot.slane %v10307_v42, 7 }
 0x5b4   : > { %v10508_v31 = vld.sshfl [vmem:[#allocation1 + $0x20] sm:$0xff pattern:$0x73625140] }
 0x5b5   : > { %4327 = vst [vmem:[#allocation1 + $0x20] ss:$4 sm:$0xff] %v15092_v35  ;;  %v4211_v40 = vrot.slane %v4209_v6, 2 }
 0x5b6   : > { %4330 = vst [vmem:[#allocation1 + $0x23] ss:$4 sm:$0xff] %v15098_v7  ;;  %v15102_v7 = vrot.slane %v10307_v42, 6 }
 0x5b8   : > { %v10497_v54 = vld.sshfl [vmem:[#allocation1] sm:$0xff pattern:$0x73625140]  ;;  %v4218_v17 = vrot.slane %v15102_v7, 7  ;;  %v7316_v7 = vrot.slane %v10337_v53, 9 }
 0x5b9   : > { %7329 = vmatmul.msk.f32.gmra.mxu3 %vm825_vm8, %v4292_v62  ;;  %4323 = vst [vmem:[#allocation1] ss:$4 sm:$0xff] %v15086_v45  ;;  %v4202_v62 = vrot.slane %v4200_v25, 2  ;;  %v15093_v45 = vld [vmem:[#allocation13_spill] sm:$0xff] }
 0x5ba   : > { %4324 = vst [vmem:[#allocation1 + $0x1] ss:$4 sm:$0xff] %v15087_v50  ;;  %v4205_v50 = vrot.slane %v4203_v15, 2 }
 0x5bb   : > { %4325 = vst [vmem:[#allocation1 + $0x2] ss:$4 sm:$0xff] %v15088_v58  ;;  %v15094_v58 = vrot.slane %v10291_v51, 6  ;;  %v4204_v32 = vsel %vm7856_vm7, %v4202_v62, %v4203_v15  ;;  %v4213_v62 = vsel %vm7856_vm7, %v4211_v40, %v4212_v48 }
 0x5bc   : > { %4326 = vst [vmem:[#allocation1 + $0x3] ss:$4 sm:$0xff] %v15090_v12  ;;  %v15096_v12 = vld [vmem:[#allocation7_spill] sm:$0xff] }
 0x5bd   : > { %4328 = vst [vmem:[#allocation1 + $0x21] ss:$4 sm:$0xff] %v15093_v45  ;;  %v4206_v61 = vrot.slane %v15094_v58, 7  ;;  %v4201_v45 = vsel %vm7856_vm7, %v7315_v46, %v4200_v25  ;;  %v4214_v25 = vrot.slane %v4212_v48, 2  ;;  %v4221_v46 = vrot.slane %v10337_v53, 7 }
 0x5be   : > { %4329 = vst [vmem:[#allocation1 + $0x22] ss:$4 sm:$0xff] %v15096_v12 }
 0x5bf   : > { %v4208_v3 = vrot.slane %v4206_v61, 2  ;;  %v4207_v12 = vsel %vm7856_vm7, %v4205_v50, %v4206_v61  ;;  %v4216_v50 = vsel %vm7856_vm7, %v4214_v25, %v4215_v26 }
 0x5c1   : > { %7330 = vmatmul.msk.f32.gmra.mxu3 %vm825_vm8, %v4301_v44  ;;  %v15101_v44 = vld [vmem:[#allocation28_spill] sm:$0xff]  ;;  %v4210_v15 = vsel %vm7856_vm7, %v4208_v3, %v4209_v6 }
 0x5c3   : > { %v10527_v58 = vld.sshfl [vmem:[#allocation1] sm:$0xff pattern:$0x73625140] }
 0x5c4   : > { %4333 = vst [vmem:[#allocation1] ss:$4 sm:$0xff] %v15101_v44  ;;  %v4220_v44 = vrot.slane %v4218_v17, 2 }
 0x5c5   : > { %4334 = vst [vmem:[#allocation1 + $0x1] ss:$4 sm:$0xff] %v4201_v45  ;;  %v4332_v61 = vld.sshfl [vmem:[#allocation1 + $0x20] sm:$0xff pattern:$0x73625140]  ;;  %v4223_v45 = vrot.slane %v4221_v46, 2 }
 0x5c6   : > { %4335 = vst [vmem:[#allocation1 + $0x2] ss:$4 sm:$0xff] %v4204_v32  ;;  %v4219_v32 = vsel %vm7856_vm7, %v4217_v5, %v4218_v17  ;;  %v4222_v3 = vsel %vm7856_vm7, %v4220_v44, %v4221_v46 }
 0x5c7   : > { %4336 = vst [vmem:[#allocation1 + $0x3] ss:$4 sm:$0xff] %v4207_v12  ;;  %v10547_v12 = vpop.f32.mrf.mxu3  ;;  %v4225_v48 = vsel %vm7856_vm7, %v4223_v45, %v7316_v7 }
 0x5c8   : > { %4337 = vst [vmem:[#allocation1 + $0x20] ss:$4 sm:$0xff] %v4210_v15 }
 0x5c9   : > { %7331 = vmatmul.msk.f32.gmra.mxu3 %vm825_vm8, %v4302_v57  ;;  %15103 = vst [vmem:[#allocation62_spill] sm:$0xff] %v10547_v12 }
 0x5ca   : > { %4338 = vst [vmem:[#allocation1 + $0x21] ss:$4 sm:$0xff] %v4213_v62 }
 0x5cb   : > { %4339 = vst [vmem:[#allocation1 + $0x22] ss:$4 sm:$0xff] %v4216_v50 }
 0x5cc   : > { %4340 = vst [vmem:[#allocation1 + $0x23] ss:$4 sm:$0xff] %v4219_v32 }
 0x5ce   : > { %v4341_v57 = vld.sshfl [vmem:[#allocation1] sm:$0xff pattern:$0x73625140] }
 0x5cf   : > { %4343 = vst [vmem:[#allocation1] ss:$4 sm:$0xff] %v4222_v3  ;;  %v10555_v17 = vpop.f32.mrf.mxu3 }
 0x5d0   : > { %4344 = vst [vmem:[#allocation1 + $0x1] ss:$4 sm:$0xff] %v4225_v48 }
 0x5d1   : > { %7332 = vmatmul.msk.f32.gmra.mxu3 %vm825_vm8, %v10482_v11  ;;  %15104 = vst [vmem:[#allocation67_spill] sm:$0xff] %v10555_v17 }
 0x5d3   : > { %v4342_v26 = vld.sshfl [vmem:[#allocation1 + $0x20] sm:$0xff pattern:$0x73625140] }
 0x5d4   : > { %4731 = vst.sshfl [vmem:[#allocation1 + $0x20] sm:$0xff pattern:$0x73625140] %v14893_v28 }
 0x5d7   : > { %v10558_v6 = vld.sshfl [vmem:[#allocation1] sm:$0xff pattern:$0x73625140]  ;;  %v10572_v11 = vpop.f32.mrf.mxu3 }
 0x5d8   : > { %4730 = vst.sshfl [vmem:[#allocation1] sm:$0xff pattern:$0x73625140] %v14897_v52 }
 0x5d9   : > { %7333 = vmatmul.msk.f32.gmra.mxu3 %vm825_vm8, %v10489_v38  ;;  %15105 = vst [vmem:[#allocation68_spill] sm:$0xff] %v10572_v11 }
 0x5db   : > { %v10563_v35 = vld [vmem:[#allocation1 + $0x20] ss:$4 sm:$0xff]  ;;  %v10565_v40 = vld [vmem:[#allocation1 + $0x21] ss:$4 sm:$0xff]  ;;  %v10567_v25 = vld [vmem:[#allocation1 + $0x22] ss:$4 sm:$0xff] }
 0x5dc   : > { %v10569_v46 = vld [vmem:[#allocation1 + $0x23] ss:$4 sm:$0xff] }
 0x5dd   : > { %4749 = vst.sshfl [vmem:[#allocation1 + $0x20] sm:$0xff pattern:$0x73625140] %v14905_v1 }
 0x5df   : > { %v10574_v28 = vld [vmem:[#allocation1 + $0x1] ss:$4 sm:$0xff]  ;;  %v10576_v5 = vld [vmem:[#allocation1 + $0x2] ss:$4 sm:$0xff]  ;;  %v10578_v52 = vld [vmem:[#allocation1 + $0x3] ss:$4 sm:$0xff]  ;;  %v10594_v50 = vpop.f32.mrf.mxu3 }
 0x5e0   : > { %4746 = vst.sshfl [vmem:[#allocation1] sm:$0xff pattern:$0x73625140] %v14904_v47 }
 0x5e1   : > { %7334 = vmatmul.msk.f32.gmra.mxu3 %vm825_vm8, %v10497_v54  ;;  %15110 = vst [vmem:[#allocation114_spill] sm:$0xff] %v10594_v50 }
 0x5e4   : > { %v10583_v38 = vld [vmem:[#allocation1 + $0x21] ss:$4 sm:$0xff]  ;;  %v10585_v15 = vld [vmem:[#allocation1 + $0x22] ss:$4 sm:$0xff]  ;;  %v10591_v44 = vld [vmem:[#allocation1 + $0x23] ss:$4 sm:$0xff] }
 0x5e5   : > { %15106 = vst [vmem:[#allocation57_spill] sm:$0xff] %v10583_v38 }
 0x5e6   : > { %15107 = vst [vmem:[#allocation64_spill] sm:$0xff] %v10585_v15 }
 0x5e7   : > { %v10587_v62 = vld [vmem:[#allocation1] ss:$4 sm:$0xff]  ;;  %v10589_v1 = vld [vmem:[#allocation1 + $0x1] ss:$4 sm:$0xff]  ;;  %15109 = vst [vmem:[#allocation70_spill] sm:$0xff] %v10591_v44 }
 0x5e8   : > { %15108 = vst [vmem:[#allocation65_spill] sm:$0xff] %v10589_v1  ;;  %v15198_v44 = vld [vmem:[#allocation20_spill] sm:$0xff] }
 0x5e9   : > { %4753 = vst.sshfl [vmem:[#allocation1] sm:$0xff pattern:$0x73625140] %v14910_v49  ;;  %7335 = vmatmul.msk.f32.gmra.mxu3 %vm825_vm8, %v10508_v31  ;;  %v10615_v49 = vpop.f32.mrf.mxu3  ;;  %v10617_v31 = vpop.f32.mrf.mxu0 }
 0x5ea   : > { %4754 = vst.sshfl [vmem:[#allocation1 + $0x20] sm:$0xff pattern:$0x73625140] %v14916_v22 }
 0x5eb   : > { %15114 = vst [vmem:[#allocation83_spill] sm:$0xff] %v10615_v49  ;;  %v10638_v49 = vpop.f32.mrf.mxu1 }
 0x5f0   : > { %v10599_v54 = vld [vmem:[#allocation1] ss:$4 sm:$0xff]  ;;  %v10601_v45 = vld [vmem:[#allocation1 + $0x1] ss:$4 sm:$0xff]  ;;  %v10603_v7 = vld [vmem:[#allocation1 + $0x2] ss:$4 sm:$0xff] }
 0x5f1   : > { %v10605_v32 = vld [vmem:[#allocation1 + $0x3] ss:$4 sm:$0xff]  ;;  %v10607_v3 = vld [vmem:[#allocation1 + $0x20] ss:$4 sm:$0xff]  ;;  %v10609_v48 = vld [vmem:[#allocation1 + $0x21] ss:$4 sm:$0xff]  ;;  %7336 = vmatmul.msk.f32.gmra.mxu3 %vm825_vm8, %v10527_v58 }
 0x5f2   : > { %15111 = vst [vmem:[#allocation73_spill] sm:$0xff] %v10605_v32  ;;  %v15217_v32 = vld [vmem:[#allocation212_spill] sm:$0xff] }
 0x5f3   : > { %15112 = vst [vmem:[#allocation72_spill] sm:$0xff] %v10607_v3 }
 0x5f4   : > { %15113 = vst [vmem:[#allocation80_spill] sm:$0xff] %v10609_v48 }
 0x5f5   : > { %4761 = vst.sshfl [vmem:[#allocation1] sm:$0xff pattern:$0x73625140] %v14917_v41 }
 0x5f6   : > { %4762 = vst.sshfl [vmem:[#allocation1 + $0x20] sm:$0xff pattern:$0x73625140] %v14921_v23  ;;  %v10636_v23 = vpop.f32.mrf.mxu3 }
 0x5f7   : > { %15122 = vst [vmem:[#allocation96_spill] sm:$0xff] %v10636_v23  ;;  %v10657_v23 = vpop.f32.mrf.mxu1 }
 0x5f9   : > { %7337 = vmatmul.msk.f32.gmra.mxu3 %vm825_vm8, %v4332_v61 }
 0x5fc   : > { %v10619_v50 = vld [vmem:[#allocation1 + $0x1] ss:$4 sm:$0xff]  ;;  %v10621_v11 = vld [vmem:[#allocation1 + $0x2] ss:$4 sm:$0xff]  ;;  %v10623_v17 = vld [vmem:[#allocation1 + $0x3] ss:$4 sm:$0xff] }
 0x5fd   : > { %15115 = vst [vmem:[#allocation84_spill] sm:$0xff] %v10619_v50  ;;  %v10626_v12 = vld [vmem:[#allocation1 + $0x20] ss:$4 sm:$0xff]  ;;  %v10628_v22 = vld [vmem:[#allocation1 + $0x21] ss:$4 sm:$0xff] }
 0x5fe   : > { %15116 = vst [vmem:[#allocation86_spill] sm:$0xff] %v10621_v11  ;;  %v10630_v58 = vld [vmem:[#allocation1 + $0x22] ss:$4 sm:$0xff]  ;;  %v10632_v41 = vld [vmem:[#allocation1 + $0x23] ss:$4 sm:$0xff]  ;;  %v10640_v11 = vpop.f32.mrf.mxu0 }
 0x5ff   : > { %15117 = vst [vmem:[#allocation87_spill] sm:$0xff] %v10623_v17 }
 0x600   : > { %15118 = vst [vmem:[#allocation85_spill] sm:$0xff] %v10626_v12  ;;  %v15193_v12 = vld [vmem:[#allocation223_spill] sm:$0xff] }
 0x601   : > { %15119 = vst [vmem:[#allocation93_spill] sm:$0xff] %v10628_v22  ;;  %7338 = vmatmul.msk.f32.gmra.mxu3 %vm825_vm8, %v4341_v57  ;;  %v15190_v22 = vld [vmem:[#allocation129_spill] sm:$0xff] }
 0x602   : > { %15120 = vst [vmem:[#allocation137_spill] sm:$0xff] %v10630_v58 }
 0x603   : > { %15121 = vst [vmem:[#allocation94_spill] sm:$0xff] %v10632_v41 }
 0x604   : > { %4770 = vst.sshfl [vmem:[#allocation1] sm:$0xff pattern:$0x73625140] %v14927_v14 }
 0x605   : > { %4773 = vst.sshfl [vmem:[#allocation1 + $0x20] sm:$0xff pattern:$0x73625140] %v14928_v63  ;;  %v10655_v63 = vpop.f32.mrf.mxu3 }
 0x606   : > { %15128 = vst [vmem:[#allocation107_spill] sm:$0xff] %v10655_v63  ;;  %v10659_v14 = vpop.f32.mrf.mxu0 }
 0x609   : > { %7339 = vmatmul.msk.f32.gmra.mxu3 %vm825_vm8, %v4342_v26  ;;  %v10680_v26 = vpop.f32.mrf.mxu1 }
 0x60b   : > { %v10643_v61 = vld [vmem:[#allocation1] ss:$4 sm:$0xff]  ;;  %v10645_v50 = vld [vmem:[#allocation1 + $0x1] ss:$4 sm:$0xff] }
 0x60c   : > { %15123 = vst [vmem:[#allocation98_spill] sm:$0xff] %v10643_v61  ;;  %v10647_v47 = vld [vmem:[#allocation1 + $0x21] ss:$4 sm:$0xff]  ;;  %v10649_v48 = vld [vmem:[#allocation1 + $0x22] ss:$4 sm:$0xff] }
 0x60d   : > { %15124 = vst [vmem:[#allocation101_spill] sm:$0xff] %v10645_v50  ;;  %v10651_v41 = vld [vmem:[#allocation1 + $0x23] ss:$4 sm:$0xff]  ;;  %v10676_v63 = vpop.f32.mrf.mxu3 }
 0x60e   : > { %15125 = vst [vmem:[#allocation145_spill] sm:$0xff] %v10647_v47 }
 0x60f   : > { %15126 = vst [vmem:[#allocation147_spill] sm:$0xff] %v10649_v48  ;;  %v15176_v48 = vld [vmem:[#allocation221_spill] sm:$0xff] }
 0x610   : > { %15127 = vst [vmem:[#allocation104_spill] sm:$0xff] %v10651_v41 }
 0x611   : > { %4777 = vst.sshfl [vmem:[#allocation1] sm:$0xff pattern:$0x73625140] %v14932_v27  ;;  %7340 = vmatmul.msk.f32.gmra.mxu3 %vm825_vm8, %v10558_v6 }
 0x612   : > { %4778 = vst.sshfl [vmem:[#allocation1 + $0x20] sm:$0xff pattern:$0x73625140] %v14937_v4  ;;  %v10682_v4 = vpop.f32.mrf.mxu0 }
 0x613   : > { %15135 = vst [vmem:[#allocation126_spill] sm:$0xff] %v10676_v63 }
 0x618   : > { %v10662_v57 = vld [vmem:[#allocation1] ss:$4 sm:$0xff]  ;;  %v10664_v50 = vld [vmem:[#allocation1 + $0x1] ss:$4 sm:$0xff]  ;;  %v10666_v47 = vld [vmem:[#allocation1 + $0x2] ss:$4 sm:$0xff] }
 0x619   : > { %15129 = vst [vmem:[#allocation109_spill] sm:$0xff] %v10662_v57  ;;  %v10668_v61 = vld [vmem:[#allocation1 + $0x3] ss:$4 sm:$0xff]  ;;  %v10670_v41 = vld [vmem:[#allocation1 + $0x20] ss:$4 sm:$0xff]  ;;  %v1789_v57 = vrot.slane %v10023_v30, 6 }
 0x61a   : > { %15130 = vst [vmem:[#allocation112_spill] sm:$0xff] %v10664_v50  ;;  %v10672_v27 = vld [vmem:[#allocation1 + $0x21] ss:$4 sm:$0xff] }
 0x61b   : > { %15131 = vst [vmem:[#allocation154_spill] sm:$0xff] %v10666_v47 }
 0x61c   : > { %15132 = vst [vmem:[#allocation156_spill] sm:$0xff] %v10668_v61 }
 0x61d   : > { %15133 = vst [vmem:[#allocation115_spill] sm:$0xff] %v10670_v41 }
 0x61e   : > { %15134 = vst [vmem:[#allocation120_spill] sm:$0xff] %v10672_v27 }
 0x61f   : > { %4785 = vst.sshfl [vmem:[#allocation1] sm:$0xff pattern:$0x73625140] %v14938_v18 }
 0x620   : > { %4786 = vst.sshfl [vmem:[#allocation1 + $0x20] sm:$0xff pattern:$0x73625140] %v14943_v9 }
 0x626   : > { %v10684_v47 = vld [vmem:[#allocation1 + $0x1] ss:$4 sm:$0xff]  ;;  %v10686_v61 = vld [vmem:[#allocation1 + $0x2] ss:$4 sm:$0xff]  ;;  %v10688_v41 = vld [vmem:[#allocation1 + $0x3] ss:$4 sm:$0xff] }
 0x627   : > { %15136 = vst [vmem:[#allocation162_spill] sm:$0xff] %v10684_v47  ;;  %v10690_v27 = vld [vmem:[#allocation1 + $0x20] ss:$4 sm:$0xff]  ;;  %v10692_v18 = vld [vmem:[#allocation1 + $0x21] ss:$4 sm:$0xff]  ;;  %v10704_v47 = vpop.f32.mrf.mxu1 }
 0x628   : > { %15137 = vst [vmem:[#allocation131_spill] sm:$0xff] %v10686_v61  ;;  %v10694_v9 = vld [vmem:[#allocation1 + $0x22] ss:$4 sm:$0xff]  ;;  %v10696_v63 = vld [vmem:[#allocation1 + $0x23] ss:$4 sm:$0xff]  ;;  %v10706_v61 = vpop.f32.mrf.mxu0 }
 0x629   : > { %15138 = vst [vmem:[#allocation173_spill] sm:$0xff] %v10688_v41 }
 0x62a   : > { %15139 = vst [vmem:[#allocation174_spill] sm:$0xff] %v10690_v27 }
 0x62b   : > { %15140 = vst [vmem:[#allocation175_spill] sm:$0xff] %v10692_v18 }
 0x62c   : > { %15141 = vst [vmem:[#allocation177_spill] sm:$0xff] %v10694_v9 }
 0x62d   : > { %15142 = vst [vmem:[#allocation185_spill] sm:$0xff] %v10696_v63 }
 0x62e   : > { %4794 = vst.sshfl [vmem:[#allocation1] sm:$0xff pattern:$0x73625140] %v14947_v24 }
 0x62f   : > { %4797 = vst.sshfl [vmem:[#allocation1 + $0x20] sm:$0xff pattern:$0x73625140] %v14948_v34 }
 0x635   : > { %v10700_v6 = vld [vmem:[#allocation1] ss:$4 sm:$0xff]  ;;  %v10702_v50 = vld [vmem:[#allocation1 + $0x1] ss:$4 sm:$0xff] }
 0x636   : > { %15143 = vst [vmem:[#allocation186_spill] sm:$0xff] %v10700_v6  ;;  %v10708_v41 = vld [vmem:[#allocation1 + $0x21] ss:$4 sm:$0xff]  ;;  %v10710_v27 = vld [vmem:[#allocation1 + $0x22] ss:$4 sm:$0xff] }
 0x637   : > { %15144 = vst [vmem:[#allocation40_spill] sm:$0xff] %v10702_v50  ;;  %v10712_v18 = vld [vmem:[#allocation1 + $0x23] ss:$4 sm:$0xff] }
 0x638   : > { %15145 = vst [vmem:[#allocation41_spill] sm:$0xff] %v10708_v41  ;;  %v15150_v6 = vld [vmem:[#allocation170_spill] sm:$0xff]  ;;  %v15153_v41 = vld [vmem:[#allocation171_spill] sm:$0xff] }
 0x639   : > { %15146 = vst [vmem:[#allocation46_spill] sm:$0xff] %v10710_v27  ;;  %v10722_v63 = vadd.f32 %v9899_v36, %v15150_v6  ;;  %v15152_v50 = vld [vmem:[#allocation178_spill] sm:$0xff] }
 0x63a   : > { %15147 = vst [vmem:[#allocation48_spill] sm:$0xff] %v10712_v18  ;;  %v10729_v27 = vadd.f32 %v9919_v39, %v15152_v50  ;;  %v15160_v39 = vld [vmem:[#allocation181_spill] sm:$0xff] }
 0x63b   : > { %4802 = vst.sshfl [vmem:[#allocation1 + $0x20] sm:$0xff pattern:$0x73625140] %v14957_v37  ;;  %v10733_v37 = vadd.f32 %v9934_v55, %v15153_v41  ;;  %v15159_v41 = vld [vmem:[#allocation190_spill] sm:$0xff]  ;;  %v10766_v50 = vadd.f32 %v9981_v13, %v15160_v39  ;;  %v15166_v39 = vld [vmem:[#allocation183_spill] sm:$0xff] }
 0x63c   : > { %4801 = vst.sshfl [vmem:[#allocation1] sm:$0xff pattern:$0x73625140] %v14953_v33  ;;  %v10735_v33 = vpop.f32.mrf.mxu1  ;;  %v10755_v18 = vadd.f32 %v9967_v20, %v15159_v41 }
 0x642   : > { %v10716_v24 = vld [vmem:[#allocation1 + $0x20] ss:$4 sm:$0xff]  ;;  %v10718_v34 = vld [vmem:[#allocation1 + $0x21] ss:$4 sm:$0xff] }
 0x643   : > { %15148 = vst [vmem:[#allocation34_spill] sm:$0xff] %v10716_v24  ;;  %v10725_v9 = vld [vmem:[#allocation1] ss:$4 sm:$0xff]  ;;  %v10737_v24 = vpop.f32.mrf.mxu0  ;;  %v10741_v36 = vld [vmem:[#allocation1 + $0x2] ss:$4 sm:$0xff] }
 0x644   : > { %15149 = vst [vmem:[#allocation36_spill] sm:$0xff] %v10718_v34  ;;  %v10739_v34 = vld [vmem:[#allocation1 + $0x1] ss:$4 sm:$0xff]  ;;  %v10743_v6 = vld [vmem:[#allocation1 + $0x3] ss:$4 sm:$0xff] }
 0x645   : > { %4810 = vst.sshfl [vmem:[#allocation1 + $0x20] sm:$0xff pattern:$0x73625140] %v14963_v43  ;;  %v15158_v43 = vld [vmem:[#allocation180_spill] sm:$0xff] }
 0x646   : > { %15151 = vst [vmem:[#allocation37_spill] sm:$0xff] %v10725_v9  ;;  %v10747_v9 = vadd.f32 %v9953_v19, %v15158_v43 }
 0x647   : > { %15154 = vst [vmem:[#allocation38_spill] sm:$0xff] %v10737_v24  ;;  %v15216_v24 = vld [vmem:[#allocation225_spill] sm:$0xff] }
 0x648   : > { %15155 = vst [vmem:[#allocation55_spill] sm:$0xff] %v10739_v34  ;;  %v15168_v34 = vld [vmem:[#allocation184_spill] sm:$0xff] }
 0x649   : > { %15156 = vst [vmem:[#allocation56_spill] sm:$0xff] %v10741_v36 }
 0x64a   : > { %15157 = vst [vmem:[#allocation58_spill] sm:$0xff] %v10743_v6  ;;  %v15164_v6 = vld [vmem:[#allocation182_spill] sm:$0xff] }
 0x64b   : > { %4809 = vst.sshfl [vmem:[#allocation1] sm:$0xff pattern:$0x73625140] %v14959_v0  ;;  %v10779_v43 = vadd.f32 %v9998_v29, %v15164_v6  ;;  %v10795_v29 = vadd.f32 %v10031_v59, %v15168_v34  ;;  %v15169_v6 = vld [vmem:[#allocation187_spill] sm:$0xff]  ;;  %v15173_v0 = vld [vmem:[#allocation189_spill] sm:$0xff]  ;;  %v10815_v34 = vpop.f32.mrf.mxu1 }
 0x64c   : > { %v10768_v20 = vld [vmem:[#allocation1 + $0x20] ss:$4 sm:$0xff]  ;;  %v10770_v41 = vld [vmem:[#allocation1 + $0x21] ss:$4 sm:$0xff]  ;;  %v10772_v36 = vld [vmem:[#allocation1 + $0x22] ss:$4 sm:$0xff]  ;;  %v10813_v59 = vadd.f32 %v10085_v8, %v15173_v0 }
 0x64d   : > { %15161 = vst [vmem:[#allocation59_spill] sm:$0xff] %v10768_v20  ;;  %v10781_v55 = vld [vmem:[#allocation1 + $0x23] ss:$4 sm:$0xff]  ;;  %v10786_v20 = vadd.f32 %v10021_v60, %v15166_v39  ;;  %v1787_v39 = vrot.slane %v10023_v30, 2 }
 0x64e   : > { %15162 = vst [vmem:[#allocation50_spill] sm:$0xff] %v10770_v41  ;;  %v10799_v41 = vadd.f32 %v10049_v2, %v15169_v6  ;;  %v10817_v2 = vpop.f32.mrf.mxu0  ;;  %v15177_v8 = vld [vmem:[#allocation208_spill] sm:$0xff]  ;;  %v15182_v6 = vld [vmem:[#allocation133_spill] sm:$0xff] }
 0x64f   : > { %15163 = vst [vmem:[#allocation52_spill] sm:$0xff] %v10772_v36  ;;  %v10838_v3 = vadd.f32 %v15177_v8, %v15176_v48 }
 0x650   : > { %15165 = vst [vmem:[#allocation53_spill] sm:$0xff] %v10781_v55  ;;  %v15172_v55 = vld [vmem:[#allocation188_spill] sm:$0xff] }
 0x651   : > { %4821 = vst.sshfl [vmem:[#allocation1 + $0x20] sm:$0xff pattern:$0x73625140] %v14969_v16  ;;  %v10809_v19 = vadd.f32 %v10067_v56, %v15172_v55  ;;  %v15185_v16 = vrot.slane %v10722_v63, 2 }
 0x652   : > { %v10789_v36 = vld [vmem:[#allocation1 + $0x1] ss:$4 sm:$0xff]  ;;  %v10801_v13 = vld [vmem:[#allocation1 + $0x2] ss:$4 sm:$0xff]  ;;  %v10803_v60 = vld [vmem:[#allocation1 + $0x3] ss:$4 sm:$0xff] }
 0x653   : > { %15167 = vst [vmem:[#allocation54_spill] sm:$0xff] %v10789_v36  ;;  %v15186_v36 = vld [vmem:[#allocation222_spill] sm:$0xff]  ;;  %v10887_v56 = vpop.f32.mrf.mxu1 }
 0x654   : > { %15170 = vst [vmem:[#allocation75_spill] sm:$0xff] %v10801_v13 }
 0x655   : > { %15171 = vst [vmem:[#allocation76_spill] sm:$0xff] %v10803_v60  ;;  %v1788_v60 = vrot.slane %v10023_v30, 4 }
 0x656   : > { %15174 = vst [vmem:[#allocation77_spill] sm:$0xff] %v10815_v34  ;;  %v15202_v34 = vrot.slane %v10729_v27, 6 }
 0x657   : > { %15175 = vst [vmem:[#allocation79_spill] sm:$0xff] %v10817_v2 }
 0x658   : > { %4818 = vst.sshfl [vmem:[#allocation1] sm:$0xff pattern:$0x73625140] %v14968_v21  ;;  %v10840_v0 = vld [vmem:[#allocation1 + $0x21] ss:$4 sm:$0xff] }
 0x659   : > { %15178 = vst [vmem:[#allocation61_spill] sm:$0xff] %v10838_v3  ;;  %v10842_v13 = vld [vmem:[#allocation1 + $0x22] ss:$4 sm:$0xff]  ;;  %v10844_v21 = vld [vmem:[#allocation1 + $0x23] ss:$4 sm:$0xff] }
 0x65a   : > { %15179 = vst [vmem:[#allocation63_spill] sm:$0xff] %v10840_v0  ;;  %v15187_v0 = vld [vmem:[#allocation10_spill] sm:$0xff]  ;;  %v15206_v3 = vld [vmem:[#allocation224_spill] sm:$0xff] }
 0x65b   : > { %15180 = vst [vmem:[#allocation71_spill] sm:$0xff] %v10842_v13  ;;  %v10858_v13 = vadd.f32 %v10023_v30, %v10722_v63  ;;  %v10866_v58 = vadd.f32 %v15187_v0, %v15186_v36  ;;  %v15192_v36 = vrot.slane %v10722_v63, 6 }
 0x65c   : > { %15181 = vst [vmem:[#allocation74_spill] sm:$0xff] %v10844_v21  ;;  %v10862_v21 = vadd.f32 %v1787_v39, %v15185_v16  ;;  %v1793_v16 = vrot.slane %v15198_v44, 2  ;;  %v1794_v39 = vrot.slane %v15198_v44, 4 }
 0x65d   : > { %4826 = vst.sshfl [vmem:[#allocation1 + $0x20] sm:$0xff pattern:$0x73625140] %v15182_v6  ;;  %v15189_v6 = vld [vmem:[#allocation18_spill] sm:$0xff]  ;;  %v10881_v0 = vadd.f32 %v1789_v57, %v15192_v36 }
 0x65e   : > { %15188 = vst [vmem:[#allocation88_spill] sm:$0xff] %v10866_v58  ;;  %v1790_v55 = vrot.slane %v15189_v6, 2  ;;  %v1791_v30 = vrot.slane %v15189_v6, 4  ;;  %v1792_v2 = vrot.slane %v15189_v6, 6  ;;  %v15207_v58 = vld [vmem:[#allocation198_spill] sm:$0xff] }
 0x65f   : > { %v10852_v48 = vld [vmem:[#allocation1] ss:$4 sm:$0xff]  ;;  %v10854_v8 = vld [vmem:[#allocation1 + $0x1] ss:$4 sm:$0xff]  ;;  %15196 = vst [vmem:[#allocation81_spill] sm:$0xff] %v10887_v56 }
 0x660   : > { %15183 = vst [vmem:[#allocation128_spill] sm:$0xff] %v10852_v48  ;;  %v15200_v56 = vld [vmem:[#allocation21_spill] sm:$0xff]  ;;  %v10912_v38 = vadd.f32 %v1792_v2, %v15202_v34  ;;  %v15209_v34 = vld [vmem:[#allocation176_spill] sm:$0xff]  ;;  %v15210_v2 = vrot.slane %v10733_v37, 2 }
 0x661   : > { %15184 = vst [vmem:[#allocation130_spill] sm:$0xff] %v10854_v8  ;;  %v15191_v8 = vrot.slane %v10722_v63, 4  ;;  %v1795_v63 = vrot.slane %v15198_v44, 6  ;;  %v1797_v57 = vrot.slane %v15200_v56, 4 }
 0x662   : > { %4825 = vst.sshfl [vmem:[#allocation1] sm:$0xff pattern:$0x73625140] %v15190_v22  ;;  %v15194_v22 = vld [vmem:[#allocation196_spill] sm:$0xff] }
 0x663   : > { %v10873_v48 = vadd.f32 %v1788_v60, %v15191_v8  ;;  %v10885_v17 = vadd.f32 %v15194_v22, %v15193_v12  ;;  %v10889_v60 = vpop.f32.mrf.mxu0  ;;  %v10893_v8 = vadd.f32 %v15189_v6, %v10729_v27  ;;  %v15199_v12 = vrot.slane %v10729_v27, 2 }
 0x664   : > { %15197 = vst [vmem:[#allocation82_spill] sm:$0xff] %v10889_v60  ;;  %v1796_v60 = vrot.slane %v15200_v56, 2  ;;  %v15201_v6 = vrot.slane %v10729_v27, 4  ;;  %v10915_v1 = vld [vmem:[#allocation1 + $0x20] ss:$4 sm:$0xff]  ;;  %v1798_v27 = vrot.slane %v15200_v56, 6 }
 0x665   : > { %15195 = vst [vmem:[#allocation89_spill] sm:$0xff] %v10885_v17  ;;  %v10902_v22 = vadd.f32 %v1790_v55, %v15199_v12  ;;  %v10917_v36 = vld [vmem:[#allocation1 + $0x21] ss:$4 sm:$0xff]  ;;  %v10922_v12 = vadd.f32 %v15198_v44, %v10733_v37  ;;  %v15214_v55 = vrot.slane %v10733_v37, 6 }
 0x666   : > { %v10908_v15 = vadd.f32 %v1791_v30, %v15201_v6  ;;  %15203 = vst [vmem:[#allocation123_spill] sm:$0xff] %v10915_v1  ;;  %v10926_v30 = vadd.f32 %v15207_v58, %v15206_v3  ;;  %v10932_v6 = vadd.f32 %v1793_v16, %v15210_v2  ;;  %v10944_v3 = vadd.f32 %v15217_v32, %v15216_v24  ;;  %v10946_v58 = vpop.f32.mrf.mxu2 }
 0x667   : > { %15204 = vst [vmem:[#allocation125_spill] sm:$0xff] %v10917_v36  ;;  %v15212_v36 = vrot.slane %v10733_v37, 4  ;;  %v10940_v44 = vadd.f32 %v1795_v63, %v15214_v55  ;;  %v10958_v37 = vadd.f32 %v15200_v56, %v10747_v9  ;;  %v15224_v63 = vrot.slane %v10747_v9, 2 }
 0x668   : > { %15205 = vst [vmem:[#allocation141_spill] sm:$0xff] %v10922_v12 }
 0x669   : > { %15208 = vst [vmem:[#allocation142_spill] sm:$0xff] %v10926_v30  ;;  %v10936_v1 = vadd.f32 %v1794_v39, %v15212_v36  ;;  %v10948_v12 = vld [vmem:[#allocation1] ss:$4 sm:$0xff]  ;;  %v10952_v16 = vld [vmem:[#allocation1 + $0x2] ss:$4 sm:$0xff]  ;;  %v10962_v24 = vadd.f32 %v1796_v60, %v15224_v63  ;;  %v15227_v36 = vrot.slane %v10747_v9, 4 }
 0x66a   : > { %4834 = vst.sshfl [vmem:[#allocation1 + $0x20] sm:$0xff pattern:$0x73625140] %v15209_v34  ;;  %v10950_v34 = vld [vmem:[#allocation1 + $0x1] ss:$4 sm:$0xff]  ;;  %v15231_v60 = vrot.slane %v10747_v9, 6 }
 0x66b   : > { %15211 = vst [vmem:[#allocation97_spill] sm:$0xff] %v10932_v6  ;;  %v10964_v32 = vld [vmem:[#allocation1 + $0x3] ss:$4 sm:$0xff]  ;;  %v10968_v55 = vadd.f32 %v1797_v57, %v15227_v36  ;;  %v15238_v36 = vrot.slane %v10755_v18, 2 }
 0x66c   : > { %15213 = vst [vmem:[#allocation99_spill] sm:$0xff] %v10936_v1  ;;  %v10978_v63 = vadd.f32 %v1798_v27, %v15231_v60  ;;  %v10989_v27 = vpop.f32.mrf.mxu1  ;;  %v10991_v60 = vpop.f32.mrf.mxu0 }
 0x66d   : > { %15215 = vst [vmem:[#allocation91_spill] sm:$0xff] %v10940_v44  ;;  %v15242_v44 = vrot.slane %v10755_v18, 6 }
 0x66e   : > { %15218 = vst [vmem:[#allocation92_spill] sm:$0xff] %v10944_v3 }
 0x66f   : > { %15219 = vst [vmem:[#allocation138_spill] sm:$0xff] %v10946_v58 }
 0x670   : > { %15220 = vst [vmem:[#allocation140_spill] sm:$0xff] %v10948_v12 }
 0x671   : > { %15221 = vst [vmem:[#allocation149_spill] sm:$0xff] %v10950_v34  ;;  %v15229_v34 = vld [vmem:[#allocation195_spill] sm:$0xff] }
 0x672   : > { %15222 = vst [vmem:[#allocation151_spill] sm:$0xff] %v10952_v16  ;;  %v1799_v12 = vrot.slane %v15229_v34, 2  ;;  %v1800_v2 = vrot.slane %v15229_v34, 4  ;;  %v1801_v39 = vrot.slane %v15229_v34, 6  ;;  %v15230_v16 = vld [vmem:[#allocation172_spill] sm:$0xff]  ;;  %v10995_v57 = vadd.f32 %v15229_v34, %v10755_v18 }
 0x673   : > { %15223 = vst [vmem:[#allocation106_spill] sm:$0xff] %v10958_v37  ;;  %v15234_v37 = vld [vmem:[#allocation209_spill] sm:$0xff] }
 0x674   : > { %15225 = vst [vmem:[#allocation100_spill] sm:$0xff] %v10962_v24  ;;  %v1805_v56 = vrot.slane %v15234_v37, 2  ;;  %v1806_v58 = vrot.slane %v15234_v37, 4  ;;  %v1807_v9 = vrot.slane %v15234_v37, 6  ;;  %v10999_v30 = vadd.f32 %v1799_v12, %v15238_v36  ;;  %v11009_v6 = vld [vmem:[#allocation1 + $0x20] ss:$4 sm:$0xff] }
 0x675   : > { %15226 = vst [vmem:[#allocation102_spill] sm:$0xff] %v10964_v32  ;;  %v15233_v32 = vld [vmem:[#allocation200_spill] sm:$0xff]  ;;  %v11007_v1 = vadd.f32 %v1801_v39, %v15242_v44  ;;  %v15248_v36 = vrot.slane %v10766_v50, 2  ;;  %v15252_v39 = vrot.slane %v10766_v50, 4 }
 0x676   : > { %15228 = vst [vmem:[#allocation146_spill] sm:$0xff] %v10968_v55  ;;  %v1802_v17 = vrot.slane %v15233_v32, 2  ;;  %v1803_v55 = vrot.slane %v15233_v32, 4  ;;  %v1804_v24 = vrot.slane %v15233_v32, 6  ;;  %v11018_v12 = vadd.f32 %v15233_v32, %v10766_v50  ;;  %v11025_v44 = vld [vmem:[#allocation1 + $0x23] ss:$4 sm:$0xff] }
 0x677   : > { %4833 = vst.sshfl [vmem:[#allocation1] sm:$0xff pattern:$0x73625140] %v15230_v16  ;;  %v15240_v16 = vrot.slane %v10755_v18, 4 }
 0x678   : > { %15232 = vst [vmem:[#allocation148_spill] sm:$0xff] %v10978_v63 }
 0x679   : > { %15235 = vst [vmem:[#allocation108_spill] sm:$0xff] %v10989_v27  ;;  %v11003_v63 = vadd.f32 %v1800_v2, %v15240_v16  ;;  %v11011_v27 = vld [vmem:[#allocation1 + $0x21] ss:$4 sm:$0xff]  ;;  %v11022_v2 = vadd.f32 %v1802_v17, %v15248_v36  ;;  %v11040_v17 = vadd.f32 %v15234_v37, %v10779_v43  ;;  %v15257_v36 = vrot.slane %v10779_v43, 2 }
 0x67a   : > { %15236 = vst [vmem:[#allocation110_spill] sm:$0xff] %v10991_v60  ;;  %v11013_v60 = vld [vmem:[#allocation1 + $0x22] ss:$4 sm:$0xff] }
 0x67b   : > { %15237 = vst [vmem:[#allocation111_spill] sm:$0xff] %v10995_v57  ;;  %v15250_v16 = vld [vmem:[#allocation197_spill] sm:$0xff] }
 0x67c   : > { %15239 = vst [vmem:[#allocation153_spill] sm:$0xff] %v10999_v30  ;;  %v1808_v18 = vrot.slane %v15250_v16, 2  ;;  %v1809_v34 = vrot.slane %v15250_v16, 4  ;;  %v1810_v32 = vrot.slane %v15250_v16, 6  ;;  %v11062_v37 = vadd.f32 %v15250_v16, %v10786_v20  ;;  %v11106_v30 = vpop.f32.mrf.mxu0 }
 0x67d   : > { %15241 = vst [vmem:[#allocation155_spill] sm:$0xff] %v11003_v63  ;;  %v2828_v16 = vrot.slane %v10640_v11, 4  ;;  %v11104_v63 = vpop.f32.mrf.mxu1 }
 0x67e   : > { %15243 = vst [vmem:[#allocation157_spill] sm:$0xff] %v11007_v1  ;;  %v11056_v3 = vld [vmem:[#allocation1 + $0x2] ss:$4 sm:$0xff] }
 0x67f   : > { %15244 = vst [vmem:[#allocation158_spill] sm:$0xff] %v11009_v6  ;;  %v11029_v6 = vadd.f32 %v1803_v55, %v15252_v39  ;;  %v15259_v55 = vrot.slane %v10779_v43, 4 }
 0x680   : > { %15245 = vst [vmem:[#allocation117_spill] sm:$0xff] %v11011_v27 }
 0x681   : > { %15246 = vst [vmem:[#allocation119_spill] sm:$0xff] %v11013_v60  ;;  %v15254_v60 = vrot.slane %v10766_v50, 6  ;;  %v11048_v39 = vadd.f32 %v1806_v58, %v15259_v55  ;;  %v15261_v50 = vrot.slane %v10779_v43, 6  ;;  %v2827_v55 = vrot.slane %v10640_v11, 2  ;;  %v11068_v43 = vpop.f32.mrf.mxu2 }
 0x682   : > { %15247 = vst [vmem:[#allocation121_spill] sm:$0xff] %v11018_v12  ;;  %v15283_v12 = vld [vmem:[#allocation203_spill] sm:$0xff] }
 0x683   : > { %15249 = vst [vmem:[#allocation122_spill] sm:$0xff] %v11022_v2  ;;  %v11033_v27 = vadd.f32 %v1804_v24, %v15254_v60  ;;  %v11052_v24 = vadd.f32 %v1807_v9, %v15261_v50  ;;  %v11054_v60 = vld [vmem:[#allocation1 + $0x1] ss:$4 sm:$0xff]  ;;  %v15270_v50 = vrot.slane %v10786_v20, 2 }
 0x684   : > { %15251 = vst [vmem:[#allocation159_spill] sm:$0xff] %v11025_v44  ;;  %v11044_v44 = vadd.f32 %v1805_v56, %v15257_v36  ;;  %v2297_v56 = vrot.slane %v10617_v31, 2  ;;  %v15267_v36 = vld [vmem:[#allocation32_spill] sm:$0xff]  ;;  %v15269_v9 = vld [vmem:[#allocation179_spill] sm:$0xff] }
 0x685   : > { %15253 = vst [vmem:[#allocation161_spill] sm:$0xff] %v11029_v6  ;;  %v2432_v58 = vadd.f32 %v10617_v31, %v15267_v36  ;;  %v15274_v36 = vrot.slane %v10786_v20, 6  ;;  %v15282_v6 = vld [vmem:[#allocation202_spill] sm:$0xff] }
 0x686   : > { %15255 = vst [vmem:[#allocation163_spill] sm:$0xff] %v11033_v27  ;;  %v15278_v27 = vld [vmem:[#allocation201_spill] sm:$0xff]  ;;  %v2963_v2 = vadd.f32 %v2828_v16, %v15282_v6 }
 0x687   : > { %4845 = vst.sshfl [vmem:[#allocation1 + $0x20] sm:$0xff pattern:$0x73625140] %v10291_v51  ;;  %v11058_v51 = vld [vmem:[#allocation1 + $0x3] ss:$4 sm:$0xff] }
 0x688   : > { %15256 = vst [vmem:[#allocation164_spill] sm:$0xff] %v11040_v17 }
 0x689   : > { %15258 = vst [vmem:[#allocation132_spill] sm:$0xff] %v11044_v44 }
 0x68a   : > { %15260 = vst [vmem:[#allocation134_spill] sm:$0xff] %v11048_v39  ;;  %v11084_v39 = vadd.f32 %v1810_v32, %v15274_v36  ;;  %v3459_v32 = vrot.slane %v10657_v23, 4  ;;  %v15280_v36 = vld [vmem:[#allocation193_spill] sm:$0xff] }
 0x68b   : > { %15262 = vst [vmem:[#allocation135_spill] sm:$0xff] %v11052_v24 }
 0x68c   : > { %15263 = vst [vmem:[#allocation136_spill] sm:$0xff] %v11054_v60  ;;  %v2829_v60 = vrot.slane %v10640_v11, 6 }
 0x68d   : > { %15264 = vst [vmem:[#allocation165_spill] sm:$0xff] %v11056_v3  ;;  %v11073_v3 = vadd.f32 %v1808_v18, %v15270_v50  ;;  %v15277_v50 = vld [vmem:[#allocation199_spill] sm:$0xff] }
 0x68e   : > { %15265 = vst [vmem:[#allocation166_spill] sm:$0xff] %v11058_v51  ;;  %v2298_v51 = vrot.slane %v10617_v31, 4  ;;  %v1812_v44 = vrot.slane %v15277_v50, 4  ;;  %v1813_v17 = vrot.slane %v15277_v50, 6  ;;  %v2964_v1 = vadd.f32 %v2829_v60, %v15283_v12 }
 0x68f   : > { %15266 = vst [vmem:[#allocation167_spill] sm:$0xff] %v11062_v37  ;;  %v15272_v37 = vrot.slane %v10786_v20, 4  ;;  %v3458_v20 = vrot.slane %v10657_v23, 2  ;;  %v11121_v12 = vadd.f32 %v15277_v50, %v10795_v29  ;;  %v15289_v60 = vrot.slane %v10795_v29, 2 }
 0x690   : > { %15268 = vst [vmem:[#allocation168_spill] sm:$0xff] %v11068_v43  ;;  %v15276_v43 = vld [vmem:[#allocation191_spill] sm:$0xff] }
 0x691   : > { %4842 = vst.sshfl [vmem:[#allocation1] sm:$0xff pattern:$0x73625140] %v15269_v9  ;;  %v11080_v24 = vadd.f32 %v1809_v34, %v15272_v37  ;;  %v2299_v9 = vrot.slane %v10617_v31, 6  ;;  %v11089_v18 = vadd.f32 %v10638_v49, %v15276_v43  ;;  %v2961_v34 = vadd.f32 %v10640_v11, %v15278_v27  ;;  %v15279_v37 = vld [vmem:[#allocation192_spill] sm:$0xff]  ;;  %v15281_v43 = vld [vmem:[#allocation194_spill] sm:$0xff] }
 0x692   : > { %15271 = vst [vmem:[#allocation143_spill] sm:$0xff] %v11073_v3  ;;  %v1811_v3 = vrot.slane %v15277_v50, 2  ;;  %v3460_v31 = vrot.slane %v10657_v23, 6  ;;  %v2433_v49 = vadd.f32 %v2297_v56, %v15280_v36  ;;  %v11108_v11 = vld [vmem:[#allocation1 + $0x21] ss:$4 sm:$0xff] }
 0x693   : > { %15273 = vst [vmem:[#allocation144_spill] sm:$0xff] %v11080_v24  ;;  %v2962_v24 = vadd.f32 %v2827_v55, %v15279_v37  ;;  %v11110_v27 = vld [vmem:[#allocation1 + $0x22] ss:$4 sm:$0xff]  ;;  %v11112_v55 = vld [vmem:[#allocation1 + $0x23] ss:$4 sm:$0xff]  ;;  %v11141_v50 = vadd.f32 %v10657_v23, %v2961_v34  ;;  %v2965_v34 = vadd.f32 %v10659_v14, %v2432_v58  ;;  %v2436_v58 = vadd.f32 %v10359_v10, %v10858_v13 }
 0x694   : > { %15275 = vst [vmem:[#allocation8_spill] sm:$0xff] %v11084_v39  ;;  %v2434_v39 = vadd.f32 %v2298_v51, %v15281_v43  ;;  %v15287_v37 = vld [vmem:[#allocation207_spill] sm:$0xff]  ;;  %v15288_v36 = vld [vmem:[#allocation14_spill] sm:$0xff]  ;;  %v11125_v16 = vadd.f32 %v1811_v3, %v15289_v60  ;;  %v15290_v43 = vrot.slane %v10795_v29, 4  ;;  %v2830_v3 = vrot.slane %v10659_v14, 2 }
 0x695   : > { %15284 = vst [vmem:[#allocation9_spill] sm:$0xff] %v11108_v11  ;;  %v2435_v57 = vadd.f32 %v2299_v9, %v15287_v37  ;;  %v1814_v51 = vrot.slane %v15288_v36, 2  ;;  %v1815_v6 = vrot.slane %v15288_v36, 4  ;;  %v15291_v9 = vrot.slane %v10795_v29, 6 }
 0x696   : > { %15285 = vst [vmem:[#allocation17_spill] sm:$0xff] %v11110_v27  ;;  %v11143_v27 = vadd.f32 %v3458_v20, %v2962_v24  ;;  %v11148_v29 = vadd.f32 %v3459_v32, %v2963_v2  ;;  %v2300_v60 = vrot.slane %v10359_v10, 2  ;;  %v1816_v23 = vrot.slane %v15288_v36, 6  ;;  %v11162_v2 = vpop.f32.mrf.mxu2 }
 0x697   : > { %15286 = vst [vmem:[#allocation11_spill] sm:$0xff] %v11112_v55  ;;  %v11129_v55 = vadd.f32 %v1812_v44, %v15290_v43  ;;  %v11133_v37 = vadd.f32 %v1813_v17, %v15291_v9  ;;  %v2831_v44 = vrot.slane %v10659_v14, 4  ;;  %v11150_v17 = vadd.f32 %v3460_v31, %v2964_v1 }
 0x698   : > { %4850 = vst.sshfl [vmem:[#allocation1 + $0x20] sm:$0xff pattern:$0x73625140] %v10337_v53  ;;  %v11136_v56 = vld [vmem:[#allocation1] ss:$4 sm:$0xff]  ;;  %v11158_v24 = vadd.f32 %v15288_v36, %v10799_v41  ;;  %v15295_v1 = vrot.slane %v10799_v41, 2  ;;  %v2966_v36 = vadd.f32 %v2830_v3, %v2433_v49 }
 0x699   : > { %4869 = vst [vmem:[#allocation1 + $0x22] ss:$4 sm:$0xff] %v10569_v46  ;;  %v11138_v53 = vld [vmem:[#allocation1 + $0x1] ss:$4 sm:$0xff]  ;;  %v2832_v46 = vrot.slane %v10659_v14, 6  ;;  %v15296_v32 = vrot.slane %v10799_v41, 4  ;;  %v2967_v9 = vadd.f32 %v2831_v44, %v2434_v39 }
 0x69a   : > { %15292 = vst [vmem:[#allocation12_spill] sm:$0xff] %v11136_v56  ;;  %v11166_v20 = vadd.f32 %v1814_v51, %v15295_v1  ;;  %v2302_v43 = vrot.slane %v10359_v10, 6  ;;  %v3462_v14 = vrot.slane %v10680_v26, 4  ;;  %v2437_v51 = vadd.f32 %v2300_v60, %v10862_v21  ;;  %v15300_v3 = vld [vmem:[#allocation204_spill] sm:$0xff]  ;;  %v11196_v60 = vpop.f32.mrf.mxu1 }
 0x69b   : > { %15293 = vst [vmem:[#allocation13_spill] sm:$0xff] %v11138_v53  ;;  %v11170_v31 = vadd.f32 %v1815_v6, %v15296_v32  ;;  %v2968_v11 = vadd.f32 %v2832_v46, %v2435_v57  ;;  %v3463_v53 = vrot.slane %v10680_v26, 6  ;;  %v2833_v1 = vrot.slane %v10682_v4, 2 }
 0x69c   : > { %4871 = vst [vmem:[#allocation1 + $0x23] ss:$4 sm:$0xff] %v10587_v62  ;;  %v2301_v62 = vrot.slane %v10359_v10, 4  ;;  %v15299_v56 = vrot.slane %v10799_v41, 6  ;;  %v1817_v44 = vrot.slane %v15300_v3, 2  ;;  %v1818_v10 = vrot.slane %v15300_v3, 4  ;;  %v11198_v41 = vpop.f32.mrf.mxu0 }
 0x69d   : > { %4849 = vst.sshfl [vmem:[#allocation1] sm:$0xff pattern:$0x73625140] %v10307_v42  ;;  %v3461_v42 = vrot.slane %v10680_v26, 2  ;;  %v2439_v21 = vadd.f32 %v2302_v43, %v10881_v0  ;;  %v1819_v13 = vrot.slane %v15300_v3, 6  ;;  %v2834_v57 = vrot.slane %v10682_v4, 4 }
 0x69e   : > { %15294 = vst [vmem:[#allocation7_spill] sm:$0xff] %v11162_v2  ;;  %v11186_v49 = vadd.f32 %v1816_v23, %v15299_v56  ;;  %v2438_v39 = vadd.f32 %v2301_v62, %v10873_v48  ;;  %v2835_v46 = vrot.slane %v10682_v4, 6  ;;  %v11202_v48 = vadd.f32 %v10680_v26, %v2965_v34  ;;  %v15308_v2 = vld [vmem:[#allocation29_spill] sm:$0xff] }
 0x69f   : > { %v11180_v6 = vld [vmem:[#allocation1 + $0x20] ss:$4 sm:$0xff]  ;;  %v11182_v32 = vld [vmem:[#allocation1 + $0x21] ss:$4 sm:$0xff]  ;;  %v11204_v56 = vadd.f32 %v3461_v42, %v2966_v36  ;;  %v2969_v0 = vadd.f32 %v10682_v4, %v2436_v58  ;;  %v2303_v26 = vrot.slane %v15308_v2, 2  ;;  %v11224_v4 = vadd.f32 %v15300_v3, %v10809_v19 }
 0x6a0   : > { %15297 = vst [vmem:[#allocation26_spill] sm:$0xff] %v11180_v6  ;;  %v2970_v6 = vadd.f32 %v2833_v1, %v2437_v51  ;;  %v15310_v42 = vrot.slane %v10809_v19, 2  ;;  %v2972_v58 = vadd.f32 %v2835_v46, %v2439_v21  ;;  %v3466_v51 = vrot.slane %v10704_v47, 6 }
 0x6a1   : > { %15298 = vst [vmem:[#allocation6_spill] sm:$0xff] %v11182_v32  ;;  %v11215_v32 = vadd.f32 %v3463_v53, %v2968_v11  ;;  %v15311_v11 = vrot.slane %v10809_v19, 4  ;;  %v15312_v1 = vrot.slane %v10809_v19, 6 }
 0x6a2   : > { %4865 = vst [vmem:[#allocation1 + $0x20] ss:$4 sm:$0xff] %v10565_v40  ;;  %v11206_v40 = vadd.f32 %v3462_v14, %v2967_v9  ;;  %v11228_v36 = vadd.f32 %v1817_v44, %v15310_v42  ;;  %v2304_v9 = vrot.slane %v15308_v2, 4  ;;  %v2971_v14 = vadd.f32 %v2834_v57, %v2438_v39  ;;  %v11249_v39 = vpop.f32.mrf.mxu2  ;;  %v15316_v57 = vld [vmem:[#allocation169_spill] sm:$0xff] }
 0x6a3   : > { %4867 = vst [vmem:[#allocation1 + $0x21] ss:$4 sm:$0xff] %v10567_v25  ;;  %v3464_v25 = vrot.slane %v10704_v47, 2  ;;  %v11232_v53 = vadd.f32 %v1818_v10, %v15311_v11  ;;  %v11241_v3 = vadd.f32 %v1819_v13, %v15312_v1  ;;  %v11244_v44 = vadd.f32 %v10704_v47, %v2969_v0 }
 0x6a4   : > { %15301 = vst [vmem:[#allocation28_spill] sm:$0xff] %v11202_v48  ;;  %v11209_v23 = vld [vmem:[#allocation1] ss:$4 sm:$0xff]  ;;  %v11211_v62 = vld [vmem:[#allocation1 + $0x1] ss:$4 sm:$0xff]  ;;  %v2305_v10 = vrot.slane %v15308_v2, 6  ;;  %v11286_v1 = vpop.f32.mrf.mxu0 }
 0x6a5   : > { %15302 = vst [vmem:[#allocation170_spill] sm:$0xff] %v11204_v56  ;;  %v11213_v43 = vld [vmem:[#allocation1 + $0x2] ss:$4 sm:$0xff]  ;;  %v11219_v34 = vld [vmem:[#allocation1 + $0x3] ss:$4 sm:$0xff]  ;;  %v11252_v21 = vadd.f32 %v3464_v25, %v2970_v6  ;;  %v1820_v19 = vrot.slane %v15316_v57, 2 }
 0x6a6   : > { %15303 = vst [vmem:[#allocation178_spill] sm:$0xff] %v11206_v40  ;;  %v2836_v13 = vrot.slane %v10706_v61, 2  ;;  %v1821_v46 = vrot.slane %v15316_v57, 4  ;;  %v1822_v0 = vrot.slane %v15316_v57, 6  ;;  %v15319_v6 = vld [vmem:[#allocation15_spill] sm:$0xff]  ;;  %v2838_v11 = vrot.slane %v10706_v61, 6 }
 0x6a7   : > { %15304 = vst [vmem:[#allocation171_spill] sm:$0xff] %v11209_v23  ;;  %v2307_v25 = vrot.slane %v15319_v6, 4  ;;  %v15327_v23 = vld [vmem:[#allocation38_spill] sm:$0xff] }
 0x6a8   : > { %15305 = vst [vmem:[#allocation180_spill] sm:$0xff] %v11211_v62 }
 0x6a9   : > { %15306 = vst [vmem:[#allocation190_spill] sm:$0xff] %v11213_v43  ;;  %v15326_v43 = vld [vmem:[#allocation99_spill] sm:$0xff] }
 0x6aa   : > { %15307 = vst [vmem:[#allocation181_spill] sm:$0xff] %v11215_v32  ;;  %v2446_v62 = vadd.f32 %v2307_v25, %v15326_v43  ;;  %v15331_v43 = vld [vmem:[#allocation91_spill] sm:$0xff]  ;;  %v15332_v25 = vld [vmem:[#allocation205_spill] sm:$0xff] }
 0x6ab   : > { %15309 = vst [vmem:[#allocation182_spill] sm:$0xff] %v11219_v34 }
 0x6ac   : > { %4857 = vst [vmem:[#allocation1] ss:$4 sm:$0xff] %v10574_v28  ;;  %v3465_v28 = vrot.slane %v10704_v47, 4  ;;  %v2442_v47 = vadd.f32 %v2304_v9, %v10908_v15  ;;  %v2443_v15 = vadd.f32 %v2305_v10, %v10912_v38  ;;  %v11284_v38 = vpop.f32.mrf.mxu1  ;;  %v15321_v10 = vrot.slane %v10813_v59, 4 }
 0x6ad   : > { %4859 = vst [vmem:[#allocation1 + $0x1] ss:$4 sm:$0xff] %v10576_v5  ;;  %v2440_v5 = vadd.f32 %v15308_v2, %v10893_v8  ;;  %v2837_v8 = vrot.slane %v10706_v61, 4  ;;  %v11261_v2 = vld.sshfl [vmem:[#allocation1 + $0x20] sm:$0xff pattern:$0x73625140] }
 0x6ae   : > { %4861 = vst [vmem:[#allocation1 + $0x2] ss:$4 sm:$0xff] %v10578_v52  ;;  %v2441_v52 = vadd.f32 %v2303_v26, %v10902_v22  ;;  %v11263_v42 = vadd.f32 %v3465_v28, %v2971_v14  ;;  %v2306_v22 = vrot.slane %v15319_v6, 2  ;;  %v11273_v26 = vadd.f32 %v15316_v57, %v10813_v59 }
 0x6af   : > { %15313 = vst [vmem:[#allocation183_spill] sm:$0xff] %v11244_v44  ;;  %v2973_v9 = vadd.f32 %v10706_v61, %v2440_v5  ;;  %v15320_v14 = vrot.slane %v10813_v59, 2  ;;  %v11291_v61 = vadd.f32 %v1821_v46, %v15321_v10  ;;  %v2975_v57 = vadd.f32 %v2837_v8, %v2442_v47  ;;  %v15329_v8 = vld [vmem:[#allocation65_spill] sm:$0xff] }
 0x6b0   : > { %15314 = vst [vmem:[#allocation184_spill] sm:$0xff] %v11249_v39  ;;  %v2974_v28 = vadd.f32 %v2836_v13, %v2441_v52  ;;  %v15323_v52 = vld [vmem:[#allocation141_spill] sm:$0xff]  ;;  %v2976_v10 = vadd.f32 %v2838_v11, %v2443_v15  ;;  %v1825_v11 = vrot.slane %v15332_v25, 6 }
 0x6b1   : > { %4863 = vst [vmem:[#allocation1 + $0x3] ss:$4 sm:$0xff] %v10563_v35  ;;  %v11265_v35 = vadd.f32 %v3466_v51, %v2972_v58  ;;  %v11280_v58 = vadd.f32 %v1820_v19, %v15320_v14  ;;  %v3467_v51 = vrot.slane %v10735_v33, 2  ;;  %v2444_v19 = vadd.f32 %v15319_v6, %v15323_v52  ;;  %v15324_v13 = vld [vmem:[#allocation73_spill] sm:$0xff] }
 0x6b2   : > { %15315 = vst [vmem:[#allocation187_spill] sm:$0xff] %v11252_v21  ;;  %v15325_v14 = vld [vmem:[#allocation97_spill] sm:$0xff]  ;;  %v11307_v47 = vadd.f32 %v10735_v33, %v2973_v9  ;;  %v1824_v52 = vrot.slane %v15332_v25, 4 }
 0x6b3   : > { %15317 = vst [vmem:[#allocation188_spill] sm:$0xff] %v11263_v42  ;;  %v2445_v34 = vadd.f32 %v2306_v22, %v15325_v14  ;;  %v15333_v15 = vld [vmem:[#allocation57_spill] sm:$0xff] }
 0x6b4   : > { %15318 = vst [vmem:[#allocation189_spill] sm:$0xff] %v11265_v35  ;;  %v2840_v35 = vrot.slane %v15327_v23, 4  ;;  %v15334_v9 = vld [vmem:[#allocation77_spill] sm:$0xff] }
 0x6b5   : > { %4878 = vst [vmem:[#allocation1 + $0x20] ss:$4 sm:$0xff] %v10599_v54  ;;  %v2308_v54 = vrot.slane %v15319_v6, 6  ;;  %v11311_v6 = vadd.f32 %v3467_v51, %v2974_v28  ;;  %v3470_v14 = vrot.slane %v15334_v9, 2  ;;  %v15336_v28 = vld [vmem:[#allocation64_spill] sm:$0xff] }
 0x6b6   : > { %4879 = vst [vmem:[#allocation1 + $0x21] ss:$4 sm:$0xff] %v10601_v45  ;;  %v15322_v45 = vrot.slane %v10813_v59, 6  ;;  %v3468_v59 = vrot.slane %v10735_v33, 4 }
 0x6b7   : > { %4880 = vst [vmem:[#allocation1 + $0x22] ss:$4 sm:$0xff] %v10603_v7  ;;  %v2839_v7 = vrot.slane %v15327_v23, 2  ;;  %v2447_v22 = vadd.f32 %v2308_v54, %v15331_v43  ;;  %v2979_v54 = vadd.f32 %v2840_v35, %v2446_v62  ;;  %v15337_v43 = vld [vmem:[#allocation70_spill] sm:$0xff] }
 0x6b8   : > { %v11295_v5 = vadd.f32 %v1822_v0, %v15322_v45  ;;  %4881 = vst [vmem:[#allocation1 + $0x23] ss:$4 sm:$0xff] %v15324_v13  ;;  %v4872_v46 = vld.sshfl [vmem:[#allocation1] sm:$0xff pattern:$0x73625140]  ;;  %v3469_v0 = vrot.slane %v10735_v33, 6  ;;  %v2977_v33 = vadd.f32 %v15327_v23, %v2444_v19 }
 0x6b9   : > { %15328 = vst [vmem:[#allocation221_spill] sm:$0xff] %v11307_v47  ;;  %7343 = vmatmul.msk.f32.vlgmr.msrb.gmra.mxu0 %vm825_vm8, %v4872_v46  ;;  %v1823_v45 = vrot.slane %v15332_v25, 2  ;;  %v2841_v13 = vrot.slane %v15327_v23, 6  ;;  %v2978_v51 = vadd.f32 %v2839_v7, %v2445_v34  ;;  %v3471_v46 = vrot.slane %v15334_v9, 4  ;;  %v15339_v23 = vld [vmem:[#allocation25_spill] sm:$0xff]  ;;  %v15341_v34 = vld [vmem:[#allocation19_spill] sm:$0xff] }
 0x6ba   : > { %4874 = vst [vmem:[#allocation1] ss:$4 sm:$0xff] %v15329_v8  ;;  %v11321_v8 = vpop.f32.mrf.mxu2  ;;  %v2309_v19 = vrot.slane %v15339_v23, 2  ;;  %v2310_v47 = vrot.slane %v15339_v23, 4  ;;  %v11337_v35 = vadd.f32 %v3469_v0, %v2976_v10  ;;  %v15343_v7 = vld [vmem:[#allocation61_spill] sm:$0xff]  ;;  %v3472_v0 = vrot.slane %v15334_v9, 6 }
 0x6bb   : > { %15330 = vst [vmem:[#allocation208_spill] sm:$0xff] %v11311_v6  ;;  %v11329_v6 = vadd.f32 %v3468_v59, %v2975_v57  ;;  %v2311_v59 = vrot.slane %v15339_v23, 6  ;;  %v2980_v10 = vadd.f32 %v2841_v13, %v2447_v22  ;;  %v11364_v21 = vadd.f32 %v15334_v9, %v2977_v33  ;;  %v11372_v22 = vpop.f32.mrf.mxu0  ;;  %v15356_v13 = vld [vmem:[#allocation85_spill] sm:$0xff]  ;;  %v15361_v9 = vld [vmem:[#allocation148_spill] sm:$0xff] }
 0x6bc   : > { %4875 = vst [vmem:[#allocation1 + $0x1] ss:$4 sm:$0xff] %v15333_v15  ;;  %v5879_v15 = vld [vmem:[%s13829_s5] sm:$0xf]  ;;  %v11368_v44 = vadd.f32 %v3471_v46, %v2979_v54  ;;  %v15360_v33 = vld [vmem:[#allocation93_spill] sm:$0xff] }
 0x6bd   : > { %15335 = vst [vmem:[#allocation222_spill] sm:$0xff] %v11321_v8  ;;  %7382 = vmatpush.msk.msra.mxu2 %vm872_vm0, %v5879_v15  ;;  %v15345_v8 = vrot.slane %v15343_v7, 2  ;;  %v15347_v15 = vrot.slane %v15343_v7, 4 }
 0x6be   : > { %4876 = vst [vmem:[#allocation1 + $0x2] ss:$4 sm:$0xff] %v15336_v28  ;;  %v15340_v28 = vld [vmem:[#allocation27_spill] sm:$0xff] }
 0x6bf   : > { %4877 = vst [vmem:[#allocation1 + $0x3] ss:$4 sm:$0xff] %v15337_v43  ;;  %v5996_v62 = vsel %vm5995_vm9, %v15341_v34, %v15340_v28  ;;  %v11341_v43 = vadd.f32 %v15332_v25, %v15343_v7  ;;  %v11345_v57 = vadd.f32 %v1823_v45, %v15345_v8  ;;  %v11353_v42 = vadd.f32 %v1824_v52, %v15347_v15  ;;  %v15349_v34 = vld [vmem:[#allocation106_spill] sm:$0xff]  ;;  %v11370_v52 = vpop.f32.mrf.mxu1 }
 0x6c0   : > { %15338 = vst [vmem:[#allocation10_spill] sm:$0xff] %v11329_v6  ;;  %v11348_v6 = vld.sshfl [vmem:[#allocation1 + $0x20] sm:$0xff pattern:$0x73625140]  ;;  %7383 = vmatmul.msk.f32.vlgmr.msra.gmra.mxu2 %vm825_vm8, %v5996_v62  ;;  %v2448_v25 = vadd.f32 %v15339_v23, %v15349_v34  ;;  %v15351_v45 = vrot.slane %v15343_v7, 6  ;;  %v11366_v62 = vadd.f32 %v3470_v14, %v2978_v51  ;;  %v15359_v7 = vld [vmem:[#allocation79_spill] sm:$0xff]  ;;  %v2451_v14 = vadd.f32 %v2311_v59, %v15361_v9 }
 0x6c1   : > { %15342 = vst [vmem:[#allocation18_spill] sm:$0xff] %v11337_v35  ;;  %v15350_v35 = vld [vmem:[#allocation87_spill] sm:$0xff]  ;;  %v15357_v23 = vld [vmem:[#allocation100_spill] sm:$0xff]  ;;  %7344 = vmatmul.msk.f32.gmra.mxu0 %vm825_vm8, %v11261_v2  ;;  %v15362_v51 = vld [vmem:[#allocation206_spill] sm:$0xff] }
 0x6c2   : > { %15344 = vst [vmem:[#allocation129_spill] sm:$0xff] %v11341_v43  ;;  %v11361_v8 = vadd.f32 %v1825_v11, %v15351_v45  ;;  %v2449_v15 = vadd.f32 %v2309_v19, %v15357_v23  ;;  %v2842_v11 = vrot.slane %v15359_v7, 2  ;;  %v2843_v45 = vrot.slane %v15359_v7, 4  ;;  %v15363_v19 = vld [vmem:[#allocation137_spill] sm:$0xff]  ;;  %v15365_v23 = vld [vmem:[#allocation88_spill] sm:$0xff]  ;;  %v11401_v40 = vpop.f32.mrf.mxu2 }
 0x6c3   : > { %15346 = vst [vmem:[#allocation223_spill] sm:$0xff] %v11345_v57  ;;  %v1826_v54 = vrot.slane %v15362_v51, 2  ;;  %v1827_v46 = vrot.slane %v15362_v51, 4  ;;  %v1828_v59 = vrot.slane %v15362_v51, 6  ;;  %v15368_v9 = vld [vmem:[#allocation81_spill] sm:$0xff]  ;;  %v15374_v56 = vrot.slane %v15365_v23, 2 }
 0x6c4   : > { %15348 = vst [vmem:[#allocation196_spill] sm:$0xff] %v11353_v42  ;;  %v15421_v57 = vld [vmem:[#allocation101_spill] sm:$0xff] }
 0x6c5   : > { %4888 = vst [vmem:[#allocation1 + $0x20] ss:$4 sm:$0xff] %v15350_v35  ;;  %v15358_v35 = vld [vmem:[#allocation146_spill] sm:$0xff]  ;;  %v11410_v48 = vadd.f32 %v1826_v54, %v15374_v56 }
 0x6c6   : > { %15352 = vst [vmem:[#allocation20_spill] sm:$0xff] %v11361_v8  ;;  %v2450_v34 = vadd.f32 %v2310_v47, %v15358_v35  ;;  %v11387_v47 = vadd.f32 %v3472_v0, %v2980_v10  ;;  %v11391_v35 = vadd.f32 %v15362_v51, %v15365_v23  ;;  %v2982_v10 = vadd.f32 %v2842_v11, %v2449_v15  ;;  %v15378_v11 = vld [vmem:[#allocation84_spill] sm:$0xff]  ;;  %v15382_v56 = vld [vmem:[#allocation82_spill] sm:$0xff] }
 0x6c7   : > { %15353 = vst [vmem:[#allocation21_spill] sm:$0xff] %v11364_v21  ;;  %v3473_v21 = vrot.slane %v15368_v9, 2  ;;  %v15376_v8 = vrot.slane %v15365_v23, 4  ;;  %v2845_v54 = vrot.slane %v15382_v56, 2 }
 0x6c8   : > { %15354 = vst [vmem:[#allocation224_spill] sm:$0xff] %v11366_v62  ;;  %v4882_v62 = vld.sshfl [vmem:[#allocation1] sm:$0xff pattern:$0x73625140]  ;;  %v2983_v0 = vadd.f32 %v2843_v45, %v2450_v34  ;;  %v3475_v34 = vrot.slane %v15368_v9, 6  ;;  %v15379_v45 = vld [vmem:[#allocation111_spill] sm:$0xff] }
 0x6c9   : > { %15355 = vst [vmem:[#allocation198_spill] sm:$0xff] %v11368_v44  ;;  %v15367_v44 = vld [vmem:[#allocation23_spill] sm:$0xff]  ;;  %7345 = vmatmul.msk.f32.gmra.mxu0 %vm825_vm8, %v4882_v62 }
 0x6ca   : > { %4889 = vst [vmem:[#allocation1 + $0x21] ss:$4 sm:$0xff] %v15356_v13  ;;  %v2844_v13 = vrot.slane %v15359_v7, 6  ;;  %v2312_v2 = vrot.slane %v15367_v44, 2  ;;  %v2313_v39 = vrot.slane %v15367_v44, 4  ;;  %v2314_v32 = vrot.slane %v15367_v44, 6 }
 0x6cb   : > { %4890 = vst [vmem:[#allocation1 + $0x22] ss:$4 sm:$0xff] %v15360_v33  ;;  %v2981_v33 = vadd.f32 %v15359_v7, %v2448_v25  ;;  %v15371_v25 = vld [vmem:[#allocation80_spill] sm:$0xff]  ;;  %v15372_v7 = vld [vmem:[#allocation33_spill] sm:$0xff] }
 0x6cc   : > { %4891 = vst [vmem:[#allocation1 + $0x23] ss:$4 sm:$0xff] %v15363_v19  ;;  %v15369_v19 = vld [vmem:[#allocation72_spill] sm:$0xff]  ;;  %v2984_v15 = vadd.f32 %v2844_v13, %v2451_v14  ;;  %v15385_v14 = vld [vmem:[#allocation157_spill] sm:$0xff] }
 0x6cd   : > { %15364 = vst [vmem:[#allocation176_spill] sm:$0xff] %v11387_v47  ;;  %v3474_v47 = vrot.slane %v15368_v9, 4  ;;  %v2455_v13 = vadd.f32 %v2314_v32, %v15385_v14 }
 0x6ce   : > { %15366 = vst [vmem:[#allocation225_spill] sm:$0xff] %v11391_v35  ;;  %v15373_v35 = vrot.slane %v15372_v7, 2  ;;  %v15380_v7 = vld [vmem:[#allocation153_spill] sm:$0xff]  ;;  %v11443_v32 = vadd.f32 %v3475_v34, %v2984_v15  ;;  %v15397_v15 = vld [vmem:[#allocation31_spill] sm:$0xff] }
 0x6cf   : > { %4884 = vst [vmem:[#allocation1] ss:$4 sm:$0xff] %v15369_v19  ;;  %v11414_v19 = vadd.f32 %v1827_v46, %v15376_v8  ;;  %v15384_v8 = vld [vmem:[#allocation155_spill] sm:$0xff]  ;;  %v2315_v34 = vrot.slane %v15397_v15, 2 }
 0x6d0   : > { %15370 = vst [vmem:[#allocation212_spill] sm:$0xff] %v11401_v40  ;;  %v5997_v51 = vsel %vm5995_vm9, %v15340_v28, %v15373_v35  ;;  %v2453_v28 = vadd.f32 %v2312_v2, %v15380_v7  ;;  %v15381_v35 = vld [vmem:[#allocation30_spill] sm:$0xff]  ;;  %v2454_v46 = vadd.f32 %v2313_v39, %v15384_v8  ;;  %v11436_v2 = vadd.f32 %v3473_v21, %v2982_v10  ;;  %v11453_v21 = vpop.f32.mrf.mxu0  ;;  %v15398_v8 = vld [vmem:[#allocation104_spill] sm:$0xff] }
 0x6d1   : > { %4885 = vst [vmem:[#allocation1 + $0x1] ss:$4 sm:$0xff] %v15371_v25  ;;  %7384 = vmatmul.msk.f32.gmra.mxu2 %vm825_vm8, %v5997_v51  ;;  %v2452_v25 = vadd.f32 %v15367_v44, %v15379_v45  ;;  %v1829_v40 = vrot.slane %v15381_v35, 2  ;;  %v15386_v51 = vrot.slane %v15365_v23, 6  ;;  %v11434_v44 = vadd.f32 %v15368_v9, %v2981_v33  ;;  %v15392_v23 = vld [vmem:[#allocation89_spill] sm:$0xff]  ;;  %v11451_v33 = vpop.f32.mrf.mxu1  ;;  %7346 = vmatmul.msk.f32.gmra.mxu0 %vm825_vm8, %v11348_v6 }
 0x6d2   : > { %15375 = vst [vmem:[#allocation195_spill] sm:$0xff] %v11410_v48  ;;  %v15383_v48 = vld [vmem:[#allocation86_spill] sm:$0xff]  ;;  %v11438_v45 = vadd.f32 %v3474_v47, %v2983_v0  ;;  %v1830_v39 = vrot.slane %v15381_v35, 4  ;;  %v1831_v7 = vrot.slane %v15381_v35, 6  ;;  %v15394_v47 = vld [vmem:[#allocation147_spill] sm:$0xff]  ;;  %v15395_v9 = vrot.slane %v15392_v23, 2 }
 0x6d3   : > { %15377 = vst [vmem:[#allocation172_spill] sm:$0xff] %v11414_v19  ;;  %v2846_v19 = vrot.slane %v15382_v56, 4  ;;  %v11431_v42 = vadd.f32 %v1828_v59, %v15386_v51  ;;  %v11449_v59 = vadd.f32 %v15381_v35, %v15392_v23  ;;  %v2985_v62 = vadd.f32 %v15382_v56, %v2452_v25  ;;  %v15399_v51 = vld [vmem:[#allocation108_spill] sm:$0xff] }
 0x6d4   : > { %4886 = vst [vmem:[#allocation1 + $0x2] ss:$4 sm:$0xff] %v15378_v11  ;;  %v2847_v11 = vrot.slane %v15382_v56, 6  ;;  %v11458_v10 = vadd.f32 %v1829_v40, %v15395_v9  ;;  %v2986_v0 = vadd.f32 %v2845_v54, %v2453_v28  ;;  %v3478_v40 = vrot.slane %v15399_v51, 6  ;;  %v15401_v25 = vld [vmem:[#allocation112_spill] sm:$0xff]  ;;  %v15402_v28 = vld [vmem:[#allocation45_spill] sm:$0xff] }
 0x6d5   : > { %4887 = vst [vmem:[#allocation1 + $0x3] ss:$4 sm:$0xff] %v15383_v48  ;;  %v11440_v48 = vld.sshfl [vmem:[#allocation1 + $0x20] sm:$0xff pattern:$0x73625140]  ;;  %v2987_v14 = vadd.f32 %v2846_v19, %v2454_v46  ;;  %v2317_v9 = vrot.slane %v15397_v15, 6 }
 0x6d6   : > { %15387 = vst [vmem:[#allocation200_spill] sm:$0xff] %v11431_v42  ;;  %v2988_v35 = vadd.f32 %v2847_v11, %v2455_v13  ;;  %v15403_v56 = vld [vmem:[#allocation39_spill] sm:$0xff]  ;;  %v15404_v19 = vrot.slane %v15392_v23, 4  ;;  %v15406_v13 = vrot.slane %v15392_v23, 6  ;;  %v11491_v23 = vpop.f32.mrf.mxu2  ;;  %v3479_v6 = vrot.slane %v11104_v63, 2 }
 0x6d7   : > { %15388 = vst [vmem:[#allocation209_spill] sm:$0xff] %v11434_v44  ;;  %v5998_v54 = vsel %vm5995_vm9, %v15403_v56, %v15402_v28  ;;  %v15409_v44 = vld [vmem:[#allocation217_spill] sm:$0xff]  ;;  %v15411_v56 = vld [vmem:[#allocation122_spill] sm:$0xff] }
 0x6d8   : > { %15389 = vst [vmem:[#allocation197_spill] sm:$0xff] %v11436_v2  ;;  %v15400_v2 = vld [vmem:[#allocation109_spill] sm:$0xff]  ;;  %v11475_v46 = vadd.f32 %v1830_v39, %v15404_v19  ;;  %v11479_v11 = vadd.f32 %v1831_v7, %v15406_v13  ;;  %v2457_v42 = vadd.f32 %v2315_v34, %v15411_v56  ;;  %v1833_v39 = vrot.slane %v15409_v44, 4  ;;  %v15412_v19 = vld [vmem:[#allocation110_spill] sm:$0xff]  ;;  %v15420_v56 = vld [vmem:[#allocation163_spill] sm:$0xff] }
 0x6d9   : > { %15390 = vst [vmem:[#allocation32_spill] sm:$0xff] %v11438_v45  ;;  %v2316_v45 = vrot.slane %v15397_v15, 4  ;;  %7385 = vmatmul.msk.f32.gmra.mxu2 %vm825_vm8, %v5998_v54  ;;  %v15414_v7 = vld [vmem:[#allocation94_spill] sm:$0xff]  ;;  %v2849_v54 = vrot.slane %v15412_v19, 4  ;;  %v11502_v34 = vadd.f32 %v3478_v40, %v2988_v35  ;;  %v15426_v35 = vld [vmem:[#allocation35_spill] sm:$0xff]  ;;  %v15427_v40 = vld [vmem:[#allocation145_spill] sm:$0xff] }
 0x6da   : > { %15391 = vst [vmem:[#allocation179_spill] sm:$0xff] %v11443_v32  ;;  %v3476_v32 = vrot.slane %v15399_v51, 2 }
 0x6db   : > { %15393 = vst [vmem:[#allocation191_spill] sm:$0xff] %v11449_v59 }
 0x6dc   : > { %4898 = vst [vmem:[#allocation1 + $0x20] ss:$4 sm:$0xff] %v15394_v47  ;;  %v3477_v47 = vrot.slane %v15399_v51, 4  ;;  %v4892_v59 = vld.sshfl [vmem:[#allocation1] sm:$0xff pattern:$0x73625140]  ;;  %v11494_v13 = vadd.f32 %v3476_v32, %v2986_v0 }
 0x6dd   : > { %15396 = vst [vmem:[#allocation199_spill] sm:$0xff] %v11458_v10  ;;  %v1832_v10 = vrot.slane %v15409_v44, 2  ;;  %7347 = vmatmul.msk.f32.gmra.mxu0 %vm825_vm8, %v4892_v59 }
 0x6de   : > { %4899 = vst [vmem:[#allocation1 + $0x21] ss:$4 sm:$0xff] %v15398_v8 }
 0x6df   : > { %4900 = vst [vmem:[#allocation1 + $0x22] ss:$4 sm:$0xff] %v15400_v2  ;;  %v15408_v2 = vld [vmem:[#allocation121_spill] sm:$0xff] }
 0x6e0   : > { %4901 = vst [vmem:[#allocation1 + $0x23] ss:$4 sm:$0xff] %v15401_v25  ;;  %v2456_v8 = vadd.f32 %v15397_v15, %v15408_v2  ;;  %v11486_v25 = vadd.f32 %v15399_v51, %v2985_v62  ;;  %v15416_v15 = vld [vmem:[#allocation161_spill] sm:$0xff]  ;;  %v15417_v62 = vld [vmem:[#allocation98_spill] sm:$0xff]  ;;  %v11500_v51 = vadd.f32 %v3477_v47, %v2987_v14  ;;  %v2318_v47 = vrot.slane %v15426_v35, 2 }
 0x6e1   : > { %15405 = vst [vmem:[#allocation201_spill] sm:$0xff] %v11475_v46  ;;  %v2848_v46 = vrot.slane %v15412_v19, 2  ;;  %v2458_v2 = vadd.f32 %v2316_v45, %v15416_v15  ;;  %v15422_v45 = vld [vmem:[#allocation142_spill] sm:$0xff] }
 0x6e2   : > { %15407 = vst [vmem:[#allocation192_spill] sm:$0xff] %v11479_v11  ;;  %v1834_v11 = vrot.slane %v15409_v44, 6  ;;  %v11511_v32 = vadd.f32 %v15409_v44, %v15422_v45  ;;  %v15424_v0 = vrot.slane %v15422_v45, 2  ;;  %v2989_v14 = vadd.f32 %v15412_v19, %v2456_v8 }
 0x6e3   : > { %15410 = vst [vmem:[#allocation193_spill] sm:$0xff] %v11486_v25  ;;  %v2459_v25 = vadd.f32 %v2317_v9, %v15420_v56  ;;  %v15428_v9 = vrot.slane %v15422_v45, 4  ;;  %v2990_v15 = vadd.f32 %v2848_v46, %v2457_v42  ;;  %v2319_v44 = vrot.slane %v15426_v35, 4 }
 0x6e4   : > { %15413 = vst [vmem:[#allocation194_spill] sm:$0xff] %v11491_v23  ;;  %v2850_v23 = vrot.slane %v15412_v19, 6  ;;  %v3480_v8 = vrot.slane %v11104_v63, 4  ;;  %v2320_v19 = vrot.slane %v15426_v35, 6  ;;  %v3481_v46 = vrot.slane %v11104_v63, 6 }
 0x6e5   : > { %4894 = vst [vmem:[#allocation1] ss:$4 sm:$0xff] %v15414_v7  ;;  %v11515_v7 = vadd.f32 %v1832_v10, %v15424_v0  ;;  %v2991_v10 = vadd.f32 %v2849_v54, %v2458_v2  ;;  %v11532_v0 = vpop.f32.mrf.mxu1  ;;  %7348 = vmatmul.msk.f32.gmra.mxu0 %vm825_vm8, %v11440_v48  ;;  %v15472_v48 = vld [vmem:[#allocation40_spill] sm:$0xff] }
 0x6e6   : > { %15415 = vst [vmem:[#allocation202_spill] sm:$0xff] %v11494_v13  ;;  %v2992_v42 = vadd.f32 %v2850_v23, %v2459_v25  ;;  %v15437_v13 = vld [vmem:[#allocation210_spill] sm:$0xff]  ;;  %v2851_v25 = vrot.slane %v11106_v30, 2  ;;  %v15438_v23 = vld [vmem:[#allocation131_spill] sm:$0xff] }
 0x6e7   : > { %4895 = vst [vmem:[#allocation1 + $0x1] ss:$4 sm:$0xff] %v15417_v62  ;;  %v15430_v62 = vrot.slane %v15422_v45, 6  ;;  %v15433_v45 = vld [vmem:[#allocation162_spill] sm:$0xff] }
 0x6e8   : > { %15418 = vst [vmem:[#allocation203_spill] sm:$0xff] %v11500_v51 }
 0x6e9   : > { %15419 = vst [vmem:[#allocation207_spill] sm:$0xff] %v11502_v34  ;;  %v11528_v56 = vadd.f32 %v1834_v11, %v15430_v62  ;;  %v15434_v11 = vld [vmem:[#allocation51_spill] sm:$0xff]  ;;  %v15436_v62 = vld [vmem:[#allocation132_spill] sm:$0xff] }
 0x6ea   : > { %4896 = vst [vmem:[#allocation1 + $0x2] ss:$4 sm:$0xff] %v15421_v57  ;;  %v11522_v57 = vadd.f32 %v1833_v39, %v15428_v9  ;;  %v11536_v39 = vld.sshfl [vmem:[#allocation1 + $0x20] sm:$0xff pattern:$0x73625140]  ;;  %v15435_v2 = vrot.slane %v15434_v11, 2  ;;  %v2461_v51 = vadd.f32 %v2318_v47, %v15436_v62 }
 0x6eb   : > { %15423 = vst [vmem:[#allocation14_spill] sm:$0xff] %v11511_v32  ;;  %v15432_v9 = vld [vmem:[#allocation164_spill] sm:$0xff]  ;;  %v15442_v47 = vld [vmem:[#allocation173_spill] sm:$0xff]  ;;  %v15444_v62 = vld [vmem:[#allocation135_spill] sm:$0xff]  ;;  %v2853_v32 = vrot.slane %v11106_v30, 6 }
 0x6ec   : > { %15425 = vst [vmem:[#allocation204_spill] sm:$0xff] %v11515_v7  ;;  %v2460_v34 = vadd.f32 %v15426_v35, %v15432_v9  ;;  %v5999_v54 = vsel %vm5995_vm9, %v15402_v28, %v15435_v2  ;;  %v11553_v35 = vadd.f32 %v11104_v63, %v2989_v14  ;;  %v11555_v9 = vadd.f32 %v3479_v6, %v2990_v15  ;;  %v15448_v15 = vld [vmem:[#allocation92_spill] sm:$0xff] }
 0x6ed   : > { %4897 = vst [vmem:[#allocation1 + $0x3] ss:$4 sm:$0xff] %v15427_v40  ;;  %v11534_v40 = vpop.f32.mrf.mxu0  ;;  %7386 = vmatmul.msk.f32.gmra.mxu2 %vm825_vm8, %v5999_v54  ;;  %v2852_v28 = vrot.slane %v11106_v30, 4  ;;  %v11560_v2 = vadd.f32 %v3480_v8, %v2991_v10  ;;  %v2463_v7 = vadd.f32 %v2320_v19, %v15444_v62  ;;  %v15446_v54 = vld [vmem:[#allocation174_spill] sm:$0xff]  ;;  %v11566_v63 = vadd.f32 %v3481_v46, %v2992_v42  ;;  %v11574_v10 = vpop.f32.mrf.mxu2 }
 0x6ee   : > { %15429 = vst [vmem:[#allocation29_spill] sm:$0xff] %v11522_v57  ;;  %v1836_v57 = vrot.slane %v15437_v13, 4  ;;  %v1837_v14 = vrot.slane %v15437_v13, 6  ;;  %v11571_v6 = vadd.f32 %v15437_v13, %v15448_v15  ;;  %v15450_v19 = vrot.slane %v15448_v15, 2  ;;  %v15454_v62 = vld [vmem:[#allocation154_spill] sm:$0xff] }
 0x6ef   : > { %15431 = vst [vmem:[#allocation169_spill] sm:$0xff] %v11528_v56  ;;  %v1835_v56 = vrot.slane %v15437_v13, 2  ;;  %v15452_v42 = vrot.slane %v15448_v15, 4  ;;  %v2994_v13 = vadd.f32 %v2851_v25, %v2461_v51  ;;  %v15458_v51 = vld [vmem:[#allocation115_spill] sm:$0xff]  ;;  %v15459_v25 = vld [vmem:[#allocation144_spill] sm:$0xff] }
 0x6f0   : > { %4908 = vst [vmem:[#allocation1 + $0x20] ss:$4 sm:$0xff] %v15433_v45  ;;  %v15441_v45 = vld [vmem:[#allocation134_spill] sm:$0xff] }
 0x6f1   : > { %4909 = vst [vmem:[#allocation1 + $0x21] ss:$4 sm:$0xff] %v15438_v23  ;;  %v2462_v11 = vadd.f32 %v2319_v44, %v15441_v45  ;;  %v15445_v23 = vld [vmem:[#allocation43_spill] sm:$0xff]  ;;  %v11581_v45 = vadd.f32 %v1835_v56, %v15450_v19  ;;  %v11585_v46 = vadd.f32 %v1836_v57, %v15452_v42  ;;  %v2996_v56 = vadd.f32 %v2853_v32, %v2463_v7 }
 0x6f2   : > { %15439 = vst [vmem:[#allocation15_spill] sm:$0xff] %v11553_v35  ;;  %v2321_v43 = vrot.slane %v15445_v23, 2  ;;  %v2322_v44 = vrot.slane %v15445_v23, 4  ;;  %v2323_v59 = vrot.slane %v15445_v23, 6  ;;  %v15456_v19 = vld [vmem:[#allocation167_spill] sm:$0xff]  ;;  %v15463_v7 = vrot.slane %v15448_v15, 6 }
 0x6f3   : > { %15440 = vst [vmem:[#allocation141_spill] sm:$0xff] %v11555_v9  ;;  %v15455_v9 = vld [vmem:[#allocation156_spill] sm:$0xff]  ;;  %v2464_v35 = vadd.f32 %v15445_v23, %v15456_v19  ;;  %v15457_v57 = vld [vmem:[#allocation143_spill] sm:$0xff] }
 0x6f4   : > { %4910 = vst [vmem:[#allocation1 + $0x22] ss:$4 sm:$0xff] %v15442_v47  ;;  %v11576_v8 = vld.sshfl [vmem:[#allocation1] sm:$0xff pattern:$0x73625140]  ;;  %v2993_v47 = vadd.f32 %v11106_v30, %v2460_v34  ;;  %v2465_v42 = vadd.f32 %v2321_v43, %v15457_v57  ;;  %v2854_v30 = vrot.slane %v11198_v41, 2  ;;  %v11607_v23 = vadd.f32 %v1837_v14, %v15463_v7 }
 0x6f5   : > { %15443 = vst [vmem:[#allocation73_spill] sm:$0xff] %v11560_v2  ;;  %v3483_v2 = vrot.slane %v11196_v60, 4  ;;  %v3484_v34 = vrot.slane %v11196_v60, 6  ;;  %v15466_v19 = vld [vmem:[#allocation44_spill] sm:$0xff]  ;;  %v2856_v7 = vrot.slane %v11198_v41, 6  ;;  %7349 = vmatmul.msk.f32.gmra.mxu0 %vm825_vm8, %v11576_v8  ;;  %v3493_v8 = vrot.slane %v11451_v33, 6 }
 0x6f6   : > { %4911 = vst [vmem:[#allocation1 + $0x23] ss:$4 sm:$0xff] %v15446_v54  ;;  %v2995_v54 = vadd.f32 %v2852_v28, %v2462_v11  ;;  %v2466_v11 = vadd.f32 %v2322_v44, %v15459_v25  ;;  %v2855_v28 = vrot.slane %v11198_v41, 4  ;;  %v11610_v43 = vadd.f32 %v11196_v60, %v2993_v47  ;;  %v11614_v44 = vpop.f32.mrf.mxu1  ;;  %v11616_v25 = vpop.f32.mrf.mxu0  ;;  %v15467_v15 = vld [vmem:[#allocation8_spill] sm:$0xff] }
 0x6f7   : > { %15447 = vst [vmem:[#allocation97_spill] sm:$0xff] %v11566_v63  ;;  %v3482_v63 = vrot.slane %v11196_v60, 2  ;;  %v2324_v57 = vrot.slane %v15466_v19, 2  ;;  %v2467_v14 = vadd.f32 %v2323_v59, %v15467_v15  ;;  %v2997_v47 = vadd.f32 %v11198_v41, %v2464_v35 }
 0x6f8   : > { %15449 = vst [vmem:[#allocation99_spill] sm:$0xff] %v11574_v10  ;;  %v15461_v10 = vld [vmem:[#allocation60_spill] sm:$0xff]  ;;  %v2857_v59 = vrot.slane %v11286_v1, 2  ;;  %v2859_v15 = vrot.slane %v11286_v1, 6 }
 0x6f9   : > { %15451 = vst [vmem:[#allocation38_spill] sm:$0xff] %v11581_v45  ;;  %v15468_v45 = vld [vmem:[#allocation48_spill] sm:$0xff]  ;;  %v2469_v41 = vadd.f32 %v2324_v57, %v11125_v16  ;;  %v11651_v16 = vadd.f32 %v11284_v38, %v2997_v47  ;;  %v15477_v47 = vld [vmem:[#allocation177_spill] sm:$0xff] }
 0x6fa   : > { %15453 = vst [vmem:[#allocation65_spill] sm:$0xff] %v11585_v46  ;;  %v2326_v46 = vrot.slane %v15466_v19, 6 }
 0x6fb   : > { %4904 = vst [vmem:[#allocation1] ss:$4 sm:$0xff] %v15454_v62  ;;  %v15460_v62 = vld [vmem:[#allocation120_spill] sm:$0xff] }
 0x6fc   : > { %4905 = vst [vmem:[#allocation1 + $0x1] ss:$4 sm:$0xff] %v15455_v9  ;;  %v15462_v9 = vld [vmem:[#allocation66_spill] sm:$0xff] }
 0x6fd   : > { %4906 = vst [vmem:[#allocation1 + $0x2] ss:$4 sm:$0xff] %v15458_v51  ;;  %v6000_v32 = vsel %vm5995_vm9, %v15462_v9, %v15461_v10  ;;  %v2325_v51 = vrot.slane %v15466_v19, 4  ;;  %v11621_v9 = vadd.f32 %v3483_v2, %v2995_v54  ;;  %v11625_v60 = vld.sshfl [vmem:[#allocation1 + $0x20] sm:$0xff pattern:$0x73625140]  ;;  %7350 = vmatmul.msk.f32.gmra.mxu0 %vm825_vm8, %v11536_v39 }
 0x6fe   : > { %4907 = vst [vmem:[#allocation1 + $0x3] ss:$4 sm:$0xff] %v15460_v62  ;;  %7387 = vmatmul.msk.f32.gmra.mxu2 %vm825_vm8, %v6000_v32  ;;  %v11619_v62 = vadd.f32 %v3482_v63, %v2994_v13  ;;  %v11631_v32 = vadd.f32 %v3484_v34, %v2996_v56  ;;  %v2999_v63 = vadd.f32 %v2855_v28, %v2466_v11  ;;  %v3486_v2 = vrot.slane %v11284_v38, 4  ;;  %v15469_v54 = vld [vmem:[#allocation41_spill] sm:$0xff]  ;;  %v15470_v56 = vld [vmem:[#allocation46_spill] sm:$0xff]  ;;  %v11647_v28 = vpop.f32.mrf.mxu2 }
 0x6ff   : > { %15464 = vst [vmem:[#allocation91_spill] sm:$0xff] %v11607_v23  ;;  %v3485_v23 = vrot.slane %v11284_v38, 2  ;;  %v2468_v13 = vadd.f32 %v15466_v19, %v11121_v12  ;;  %v2470_v35 = vadd.f32 %v2325_v51, %v11129_v55  ;;  %v15471_v34 = vld [vmem:[#allocation42_spill] sm:$0xff]  ;;  %v2471_v19 = vadd.f32 %v2326_v46, %v11133_v37 }
 0x700   : > { %15465 = vst [vmem:[#allocation205_spill] sm:$0xff] %v11610_v43  ;;  %v2998_v43 = vadd.f32 %v2854_v30, %v2465_v42  ;;  %v3000_v42 = vadd.f32 %v2856_v7, %v2467_v14  ;;  %v3487_v30 = vrot.slane %v11284_v38, 6  ;;  %v2327_v12 = vrot.slane %v15471_v34, 2 }
 0x701   : > { %4921 = vst [vmem:[#allocation1 + $0x23] ss:$4 sm:$0xff] %v15468_v45  ;;  %v2858_v45 = vrot.slane %v11286_v1, 4  ;;  %v2328_v11 = vrot.slane %v15471_v34, 4  ;;  %v2329_v57 = vrot.slane %v15471_v34, 6  ;;  %v3001_v14 = vadd.f32 %v11286_v1, %v2468_v13 }
 0x702   : > { %4919 = vst [vmem:[#allocation1 + $0x21] ss:$4 sm:$0xff] %v15469_v54  ;;  %v11653_v55 = vadd.f32 %v3485_v23, %v2998_v43  ;;  %v3488_v7 = vrot.slane %v11370_v52, 2  ;;  %v15474_v54 = vld [vmem:[#allocation175_spill] sm:$0xff]  ;;  %v3002_v23 = vadd.f32 %v2857_v59, %v2469_v41  ;;  %v3489_v37 = vrot.slane %v11370_v52, 4 }
 0x703   : > { %4920 = vst [vmem:[#allocation1 + $0x22] ss:$4 sm:$0xff] %v15470_v56  ;;  %v15475_v56 = vld [vmem:[#allocation69_spill] sm:$0xff]  ;;  %v3003_v43 = vadd.f32 %v2858_v45, %v2470_v35  ;;  %v2472_v46 = vadd.f32 %v15471_v34, %v11158_v24  ;;  %v2473_v1 = vadd.f32 %v2327_v12, %v11166_v20  ;;  %v2474_v13 = vadd.f32 %v2328_v11, %v11170_v31  ;;  %v11683_v45 = vpop.f32.mrf.mxu1  ;;  %v11685_v34 = vpop.f32.mrf.mxu0  ;;  %v15481_v20 = vld [vmem:[#allocation186_spill] sm:$0xff] }
 0x704   : > { %4918 = vst [vmem:[#allocation1 + $0x20] ss:$4 sm:$0xff] %v15472_v48  ;;  %v15476_v48 = vrot.slane %v15475_v56, 2  ;;  %v2861_v56 = vrot.slane %v11372_v22, 4  ;;  %v11677_v41 = vadd.f32 %v3486_v2, %v2999_v63  ;;  %v11679_v35 = vadd.f32 %v3487_v30, %v3000_v42  ;;  %v15483_v63 = vld [vmem:[#allocation47_spill] sm:$0xff] }
 0x705   : > { %15473 = vst [vmem:[#allocation57_spill] sm:$0xff] %v11653_v55  ;;  %v11657_v51 = vld.sshfl [vmem:[#allocation1] sm:$0xff pattern:$0x73625140]  ;;  %v2475_v24 = vadd.f32 %v2329_v57, %v11186_v49  ;;  %v2862_v59 = vrot.slane %v11372_v22, 6  ;;  %v3004_v31 = vadd.f32 %v2859_v15, %v2471_v19  ;;  %v3490_v12 = vrot.slane %v11370_v52, 6 }
 0x706   : > { %4914 = vst [vmem:[#allocation1] ss:$4 sm:$0xff] %v15474_v54  ;;  %v6001_v38 = vsel %vm5995_vm9, %v15461_v10, %v15476_v48  ;;  %v2860_v54 = vrot.slane %v11372_v22, 2  ;;  %v15478_v10 = vld [vmem:[#allocation185_spill] sm:$0xff]  ;;  %v11690_v11 = vadd.f32 %v11370_v52, %v3001_v14  ;;  %v2330_v2 = vrot.slane %v15483_v63, 2  ;;  %7351 = vmatmul.msk.f32.gmra.mxu0 %vm825_vm8, %v11657_v51 }
 0x707   : > { %4915 = vst [vmem:[#allocation1 + $0x1] ss:$4 sm:$0xff] %v15477_v47  ;;  %7388 = vmatmul.msk.f32.gmra.mxu2 %vm825_vm8, %v6001_v38  ;;  %v11695_v49 = vadd.f32 %v3488_v7, %v3002_v23  ;;  %v11697_v42 = vadd.f32 %v3489_v37, %v3003_v43  ;;  %v3005_v30 = vadd.f32 %v11372_v22, %v2472_v46  ;;  %v2331_v57 = vrot.slane %v15483_v63, 4  ;;  %v15486_v38 = vld [vmem:[#allocation34_spill] sm:$0xff]  ;;  %v15487_v23 = vld [vmem:[#allocation36_spill] sm:$0xff]  ;;  %v15588_v55 = vld [vmem:[#allocation29_spill] sm:$0xff] }
 0x708   : > { %4916 = vst [vmem:[#allocation1 + $0x2] ss:$4 sm:$0xff] %v15478_v10  ;;  %v3006_v19 = vadd.f32 %v2860_v54, %v2473_v1  ;;  %v3007_v15 = vadd.f32 %v2861_v56, %v2474_v13  ;;  %v3491_v52 = vrot.slane %v11451_v33, 2  ;;  %v3492_v14 = vrot.slane %v11451_v33, 4  ;;  %v15488_v37 = vld [vmem:[#allocation138_spill] sm:$0xff]  ;;  %v11714_v13 = vpop.f32.mrf.mxu2  ;;  %v15491_v10 = vld [vmem:[#allocation113_spill] sm:$0xff] }
 0x709   : > { %15479 = vst [vmem:[#allocation77_spill] sm:$0xff] %v11677_v41  ;;  %v3008_v47 = vadd.f32 %v2862_v59, %v2475_v24  ;;  %v2332_v7 = vrot.slane %v15483_v63, 6  ;;  %v2476_v22 = vadd.f32 %v15483_v63, %v11224_v4  ;;  %v2477_v43 = vadd.f32 %v2330_v2, %v11228_v36  ;;  %v15489_v54 = vld [vmem:[#allocation54_spill] sm:$0xff]  ;;  %v15494_v63 = vld [vmem:[#allocation75_spill] sm:$0xff]  ;;  %v15582_v41 = vld [vmem:[#allocation12_spill] sm:$0xff] }
 0x70a   : > { %15480 = vst [vmem:[#allocation64_spill] sm:$0xff] %v11679_v35  ;;  %v1847_v46 = vrot.slane %v15488_v37, 2  ;;  %v2863_v1 = vrot.slane %v11453_v21, 2  ;;  %v15490_v56 = vld [vmem:[#allocation78_spill] sm:$0xff]  ;;  %v11720_v59 = vadd.f32 %v3490_v12, %v3004_v31  ;;  %v11723_v4 = vadd.f32 %v11451_v33, %v3005_v30 }
 0x70b   : > { %4917 = vst [vmem:[#allocation1 + $0x3] ss:$4 sm:$0xff] %v15481_v20  ;;  %v11701_v48 = vld.sshfl [vmem:[#allocation1 + $0x20] sm:$0xff pattern:$0x73625140]  ;;  %v6002_v24 = vsel %vm5995_vm9, %v15491_v10, %v15490_v56  ;;  %v2478_v20 = vadd.f32 %v2331_v57, %v11232_v53  ;;  %v2864_v36 = vrot.slane %v11453_v21, 4  ;;  %v11729_v2 = vadd.f32 %v3491_v52, %v3006_v19  ;;  %v11742_v10 = vpop.f32.mrf.mxu3 }
 0x70c   : > { %15482 = vst [vmem:[#allocation70_spill] sm:$0xff] %v11690_v11  ;;  %v11737_v33 = vadd.f32 %v3493_v8, %v3008_v47  ;;  %v2479_v53 = vadd.f32 %v2332_v7, %v11241_v3  ;;  %v2865_v30 = vrot.slane %v11453_v21, 6  ;;  %v3009_v57 = vadd.f32 %v11453_v21, %v2476_v22  ;;  %v15499_v19 = vld [vmem:[#allocation37_spill] sm:$0xff]  ;;  %v15501_v3 = vld [vmem:[#allocation55_spill] sm:$0xff] }
 0x70d   : > { %15484 = vst [vmem:[#allocation25_spill] sm:$0xff] %v11695_v49  ;;  %v15500_v52 = vrot.slane %v11089_v18, 2  ;;  %v3010_v47 = vadd.f32 %v2863_v1, %v2477_v43  ;;  %v3011_v21 = vadd.f32 %v2864_v36, %v2478_v20  ;;  %v3494_v7 = vrot.slane %v11532_v0, 2  ;;  %v15502_v43 = vld [vmem:[#allocation56_spill] sm:$0xff]  ;;  %v15503_v36 = vld [vmem:[#allocation58_spill] sm:$0xff]  ;;  %v15558_v11 = vld [vmem:[#allocation191_spill] sm:$0xff] }
 0x70e   : > { %15485 = vst [vmem:[#allocation27_spill] sm:$0xff] %v11697_v42  ;;  %v3495_v22 = vrot.slane %v11532_v0, 4  ;;  %v2866_v39 = vrot.slane %v11534_v40, 2  ;;  %v2867_v20 = vrot.slane %v11534_v40, 4  ;;  %7352 = vmatmul.msk.f32.gmra.mxu0 %vm825_vm8, %v11625_v60  ;;  %v2873_v60 = vrot.slane %v11685_v34, 4 }
 0x70f   : > { %4928 = vst [vmem:[#allocation1 + $0x20] ss:$4 sm:$0xff] %v15486_v38  ;;  %7389 = vmatmul.msk.f32.gmra.mxu2 %vm825_vm8, %v6002_v24  ;;  %v11731_v38 = vadd.f32 %v3492_v14, %v3007_v15  ;;  %v11747_v15 = vadd.f32 %v15488_v37, %v11089_v18  ;;  %v11751_v14 = vadd.f32 %v1847_v46, %v15500_v52  ;;  %v11761_v24 = vpop.f32.mrf.mxu1  ;;  %v11763_v18 = vpop.f32.mrf.mxu0 }
 0x710   : > { %4929 = vst [vmem:[#allocation1 + $0x21] ss:$4 sm:$0xff] %v15487_v23  ;;  %v15497_v23 = vld [vmem:[#allocation49_spill] sm:$0xff]  ;;  %v3505_v49 = vrot.slane %v11761_v24, 6 }
 0x711   : > { %4930 = vst [vmem:[#allocation1 + $0x22] ss:$4 sm:$0xff] %v15489_v54  ;;  %v2333_v54 = vrot.slane %v15497_v23, 2  ;;  %v2334_v31 = vrot.slane %v15497_v23, 4  ;;  %v2335_v8 = vrot.slane %v15497_v23, 6  ;;  %v2480_v37 = vadd.f32 %v15497_v23, %v11273_v26 }
 0x712   : > { %15492 = vst [vmem:[#allocation19_spill] sm:$0xff] %v11720_v59  ;;  %v11735_v12 = vld.sshfl [vmem:[#allocation1] sm:$0xff pattern:$0x73625140]  ;;  %v11773_v26 = vadd.f32 %v11532_v0, %v3009_v57  ;;  %v2868_v23 = vrot.slane %v11534_v40, 6  ;;  %v15554_v59 = vld [vmem:[#allocation71_spill] sm:$0xff] }
 0x713   : > { %15493 = vst [vmem:[#allocation61_spill] sm:$0xff] %v11723_v4  ;;  %v2481_v46 = vadd.f32 %v2333_v54, %v11280_v58  ;;  %v2482_v1 = vadd.f32 %v2334_v31, %v11291_v61  ;;  %v2483_v52 = vadd.f32 %v2335_v8, %v11295_v5  ;;  %v15506_v31 = vld [vmem:[#allocation124_spill] sm:$0xff]  ;;  %v15510_v5 = vld [vmem:[#allocation53_spill] sm:$0xff] }
 0x714   : > { %4931 = vst [vmem:[#allocation1 + $0x23] ss:$4 sm:$0xff] %v15494_v63  ;;  %v3012_v63 = vadd.f32 %v2865_v30, %v2479_v53  ;;  %v11785_v30 = vadd.f32 %v3494_v7, %v3010_v47  ;;  %v11797_v47 = vadd.f32 %v3495_v22, %v3011_v21  ;;  %v15515_v22 = vld [vmem:[#allocation63_spill] sm:$0xff] }
 0x715   : > { %15495 = vst [vmem:[#allocation106_spill] sm:$0xff] %v11729_v2  ;;  %v3014_v8 = vadd.f32 %v2866_v39, %v2481_v46  ;;  %v11794_v2 = vpop.f32.mrf.mxu2  ;;  %v11806_v46 = vpop.f32.mrf.mxu3  ;;  %v3016_v39 = vadd.f32 %v2868_v23, %v2483_v52  ;;  %v15517_v23 = vld [vmem:[#allocation223_spill] sm:$0xff] }
 0x716   : > { %15496 = vst [vmem:[#allocation87_spill] sm:$0xff] %v11731_v38  ;;  %v3497_v38 = vrot.slane %v11614_v44, 2  ;;  %7353 = vmatmul.msk.f32.gmra.mxu0 %vm825_vm8, %v11735_v12 }
 0x717   : > { %15498 = vst [vmem:[#allocation85_spill] sm:$0xff] %v11737_v33  ;;  %v3015_v33 = vadd.f32 %v2867_v20, %v2482_v1  ;;  %v15514_v1 = vld [vmem:[#allocation130_spill] sm:$0xff] }
 0x718   : > { %4924 = vst [vmem:[#allocation1] ss:$4 sm:$0xff] %v15499_v19  ;;  %v3496_v19 = vrot.slane %v11532_v0, 6  ;;  %v3013_v0 = vadd.f32 %v11534_v40, %v2480_v37 }
 0x719   : > { %4925 = vst [vmem:[#allocation1 + $0x1] ss:$4 sm:$0xff] %v15501_v3  ;;  %v15505_v3 = vld [vmem:[#allocation168_spill] sm:$0xff] }
 0x71a   : > { %4926 = vst [vmem:[#allocation1 + $0x2] ss:$4 sm:$0xff] %v15502_v43  ;;  %v3971_v58 = vrot.slane %v15505_v3, 2  ;;  %v3972_v61 = vrot.slane %v15505_v3, 4  ;;  %v15507_v43 = vrot.slane %v15506_v31, 2  ;;  %v3973_v57 = vrot.slane %v15505_v3, 6 }
 0x71b   : > { %4927 = vst [vmem:[#allocation1 + $0x3] ss:$4 sm:$0xff] %v15503_v36  ;;  %v11779_v54 = vld.sshfl [vmem:[#allocation1 + $0x20] sm:$0xff pattern:$0x73625140]  ;;  %v15509_v36 = vld [vmem:[#allocation62_spill] sm:$0xff]  ;;  %v11799_v40 = vadd.f32 %v3496_v19, %v3012_v63  ;;  %v11803_v7 = vadd.f32 %v15505_v3, %v11141_v50 }
 0x71c   : > { %15504 = vst [vmem:[#allocation100_spill] sm:$0xff] %v11773_v26  ;;  %v6003_v53 = vsel %vm5995_vm9, %v15490_v56, %v15507_v43  ;;  %v2336_v26 = vrot.slane %v15509_v36, 2  ;;  %v3498_v31 = vrot.slane %v11614_v44, 4  ;;  %v15511_v56 = vld [vmem:[#allocation128_spill] sm:$0xff]  ;;  %v2337_v37 = vrot.slane %v15509_v36, 4  ;;  %v15516_v63 = vld [vmem:[#allocation129_spill] sm:$0xff] }
 0x71d   : > { %15508 = vst [vmem:[#allocation146_spill] sm:$0xff] %v11785_v30  ;;  %7390 = vmatmul.msk.f32.gmra.mxu2 %vm825_vm8, %v6003_v53  ;;  %v11810_v20 = vadd.f32 %v3971_v58, %v11143_v27  ;;  %v11813_v43 = vadd.f32 %v3972_v61, %v11148_v29  ;;  %v2338_v21 = vrot.slane %v15509_v36, 6  ;;  %v11820_v50 = vadd.f32 %v3973_v57, %v11150_v17  ;;  %v15521_v17 = vld [vmem:[#allocation76_spill] sm:$0xff]  ;;  %v11879_v4 = vpop.f32.mrf.mxu2 }
 0x71e   : > { %4938 = vst [vmem:[#allocation1 + $0x20] ss:$4 sm:$0xff] %v15510_v5  ;;  %v2484_v19 = vadd.f32 %v15509_v36, %v15516_v63  ;;  %v2485_v52 = vadd.f32 %v2336_v26, %v15517_v23  ;;  %v2869_v27 = vrot.slane %v11616_v25, 2  ;;  %v3499_v29 = vrot.slane %v11614_v44, 6  ;;  %v15522_v53 = vld [vmem:[#allocation196_spill] sm:$0xff]  ;;  %v15523_v5 = vld [vmem:[#allocation7_spill] sm:$0xff]  ;;  %7354 = vmatmul.msk.f32.gmra.mxu0 %vm825_vm8, %v11701_v48 }
 0x71f   : > { %4939 = vst [vmem:[#allocation1 + $0x21] ss:$4 sm:$0xff] %v15511_v56  ;;  %v11830_v58 = vadd.f32 %v11614_v44, %v3013_v0  ;;  %v11832_v61 = vadd.f32 %v3497_v38, %v3014_v8  ;;  %v11834_v51 = vadd.f32 %v3498_v31, %v3015_v33  ;;  %v2486_v57 = vadd.f32 %v2337_v37, %v15522_v53  ;;  %v15524_v44 = vld [vmem:[#allocation59_spill] sm:$0xff]  ;;  %v15525_v38 = vld [vmem:[#allocation20_spill] sm:$0xff]  ;;  %v15527_v63 = vld [vmem:[#allocation50_spill] sm:$0xff] }
 0x720   : > { %15512 = vst [vmem:[#allocation79_spill] sm:$0xff] %v11797_v47  ;;  %v2870_v36 = vrot.slane %v11616_v25, 4  ;;  %v2871_v26 = vrot.slane %v11616_v25, 6  ;;  %v3974_v56 = vrot.slane %v15523_v5, 2  ;;  %v2487_v0 = vadd.f32 %v2338_v21, %v15525_v38  ;;  %v15526_v8 = vld [vmem:[#allocation67_spill] sm:$0xff]  ;;  %v15528_v37 = vld [vmem:[#allocation90_spill] sm:$0xff] }
 0x721   : > { %15513 = vst [vmem:[#allocation93_spill] sm:$0xff] %v11799_v40  ;;  %v3975_v33 = vrot.slane %v15523_v5, 4  ;;  %v2339_v31 = vrot.slane %v15526_v8, 2  ;;  %v15529_v23 = vld [vmem:[#allocation127_spill] sm:$0xff]  ;;  %v3017_v53 = vadd.f32 %v11616_v25, %v2484_v19  ;;  %v11858_v21 = vadd.f32 %v3499_v29, %v3016_v39  ;;  %v15532_v38 = vld [vmem:[#allocation28_spill] sm:$0xff]  ;;  %v15533_v19 = vld [vmem:[#allocation170_spill] sm:$0xff] }
 0x722   : > { %4940 = vst [vmem:[#allocation1 + $0x22] ss:$4 sm:$0xff] %v15514_v1  ;;  %v11826_v3 = vld.sshfl [vmem:[#allocation1] sm:$0xff pattern:$0x73625140]  ;;  %v11841_v1 = vpop.f32.mrf.mxu1  ;;  %v2340_v40 = vrot.slane %v15526_v8, 4  ;;  %v3019_v25 = vadd.f32 %v2870_v36, %v2486_v57  ;;  %v3020_v39 = vadd.f32 %v2871_v26, %v2487_v0 }
 0x723   : > { %4941 = vst [vmem:[#allocation1 + $0x23] ss:$4 sm:$0xff] %v15515_v22  ;;  %v11843_v22 = vpop.f32.mrf.mxu0  ;;  %v15534_v47 = vld [vmem:[#allocation225_spill] sm:$0xff]  ;;  %v15535_v29 = vld [vmem:[#allocation178_spill] sm:$0xff]  ;;  %v2872_v30 = vrot.slane %v11685_v34, 2  ;;  %v15538_v57 = vld [vmem:[#allocation151_spill] sm:$0xff]  ;;  %v11889_v26 = vadd.f32 %v11683_v45, %v3017_v53 }
 0x724   : > { %15518 = vst [vmem:[#allocation148_spill] sm:$0xff] %v11830_v58  ;;  %v3500_v58 = vrot.slane %v11683_v45, 2  ;;  %v15539_v36 = vld [vmem:[#allocation181_spill] sm:$0xff]  ;;  %v3508_v35 = vrot.slane %v11841_v1, 6  ;;  %v15597_v48 = vld [vmem:[#allocation166_spill] sm:$0xff] }
 0x725   : > { %15519 = vst [vmem:[#allocation206_spill] sm:$0xff] %v11832_v61  ;;  %v3976_v61 = vrot.slane %v15523_v5, 6 }
 0x726   : > { %15520 = vst [vmem:[#allocation137_spill] sm:$0xff] %v11834_v51  ;;  %v3018_v51 = vadd.f32 %v2869_v27, %v2485_v52  ;;  %v11867_v52 = vadd.f32 %v3974_v56, %v15533_v19  ;;  %v3501_v27 = vrot.slane %v11683_v45, 4  ;;  %7355 = vmatmul.msk.f32.gmra.mxu0 %vm825_vm8, %v11826_v3 }
 0x727   : > { %4934 = vst [vmem:[#allocation1] ss:$4 sm:$0xff] %v15521_v17  ;;  %v6004_v17 = vsel %vm5995_vm9, %v15529_v23, %v15528_v37  ;;  %v2341_v23 = vrot.slane %v15526_v8, 6  ;;  %v11885_v56 = vadd.f32 %v3976_v61, %v15539_v36  ;;  %v2874_v61 = vrot.slane %v11685_v34, 6 }
 0x728   : > { %4935 = vst [vmem:[#allocation1 + $0x1] ss:$4 sm:$0xff] %v15524_v44  ;;  %v15530_v44 = vld [vmem:[#allocation52_spill] sm:$0xff]  ;;  %7391 = vmatmul.msk.f32.gmra.mxu2 %vm825_vm8, %v6004_v17  ;;  %v11891_v0 = vadd.f32 %v3500_v58, %v3018_v51  ;;  %v11901_v36 = vadd.f32 %v3501_v27, %v3019_v25 }
 0x729   : > { %4936 = vst [vmem:[#allocation1 + $0x2] ss:$4 sm:$0xff] %v15527_v63  ;;  %v11862_v63 = vadd.f32 %v15523_v5, %v15532_v38  ;;  %v15536_v5 = vld [vmem:[#allocation195_spill] sm:$0xff]  ;;  %v15547_v58 = vld [vmem:[#allocation184_spill] sm:$0xff] }
 0x72a   : > { %4937 = vst [vmem:[#allocation1 + $0x3] ss:$4 sm:$0xff] %v15530_v44  ;;  %v2488_v44 = vadd.f32 %v15526_v8, %v15534_v47  ;;  %v11872_v17 = vld.sshfl [vmem:[#allocation1 + $0x20] sm:$0xff pattern:$0x73625140]  ;;  %v2489_v38 = vadd.f32 %v2339_v31, %v15536_v5  ;;  %v3502_v47 = vrot.slane %v11683_v45, 6 }
 0x72b   : > { %15531 = vst [vmem:[#allocation88_spill] sm:$0xff] %v11858_v21  ;;  %v11875_v21 = vadd.f32 %v3975_v33, %v15535_v29  ;;  %v11893_v33 = vpop.f32.mrf.mxu3  ;;  %v15542_v8 = vld [vmem:[#allocation102_spill] sm:$0xff]  ;;  %v15543_v31 = vld [vmem:[#allocation172_spill] sm:$0xff]  ;;  %v3977_v51 = vrot.slane %v15547_v58, 2  ;;  %v3978_v53 = vrot.slane %v15547_v58, 4 }
 0x72c   : > { %15537 = vst [vmem:[#allocation23_spill] sm:$0xff] %v11879_v4  ;;  %v2490_v19 = vadd.f32 %v2340_v40, %v15543_v31  ;;  %v15544_v29 = vld [vmem:[#allocation200_spill] sm:$0xff]  ;;  %v3021_v45 = vadd.f32 %v11685_v34, %v2488_v44  ;;  %v3979_v40 = vrot.slane %v15547_v58, 6  ;;  %v11915_v27 = vadd.f32 %v3502_v47, %v3020_v39  ;;  %v15552_v34 = vld [vmem:[#allocation183_spill] sm:$0xff] }
 0x72d   : > { %4948 = vst [vmem:[#allocation1 + $0x20] ss:$4 sm:$0xff] %v15538_v57  ;;  %v2491_v5 = vadd.f32 %v2341_v23, %v15544_v29  ;;  %v15545_v57 = vld [vmem:[#allocation123_spill] sm:$0xff]  ;;  %v3503_v23 = vrot.slane %v11761_v24, 2  ;;  %v11919_v44 = vadd.f32 %v15547_v58, %v15552_v34  ;;  %v3504_v39 = vrot.slane %v11761_v24, 4 }
 0x72e   : > { %15540 = vst [vmem:[#allocation81_spill] sm:$0xff] %v11889_v26  ;;  %v15549_v29 = vld [vmem:[#allocation139_spill] sm:$0xff]  ;;  %7356 = vmatmul.msk.f32.gmra.mxu0 %vm825_vm8, %v11779_v54 }
 0x72f   : > { %15541 = vst [vmem:[#allocation72_spill] sm:$0xff] %v11891_v0  ;;  %v15548_v0 = vld [vmem:[#allocation125_spill] sm:$0xff]  ;;  %v15550_v26 = vrot.slane %v15549_v29, 2  ;;  %v3023_v29 = vadd.f32 %v2873_v60, %v2490_v19  ;;  %v15556_v58 = vld [vmem:[#allocation187_spill] sm:$0xff]  ;;  %v11946_v60 = vadd.f32 %v11761_v24, %v3021_v45  ;;  %v2877_v45 = vrot.slane %v11763_v18, 6 }
 0x730   : > { %4949 = vst [vmem:[#allocation1 + $0x21] ss:$4 sm:$0xff] %v15542_v8  ;;  %v3022_v8 = vadd.f32 %v2872_v30, %v2489_v38  ;;  %v11923_v38 = vpop.f32.mrf.mxu1  ;;  %v11933_v34 = vadd.f32 %v3977_v51, %v15556_v58  ;;  %v15560_v19 = vld [vmem:[#allocation189_spill] sm:$0xff]  ;;  %v15579_v4 = vld [vmem:[#allocation159_spill] sm:$0xff] }
 0x731   : > { %4950 = vst [vmem:[#allocation1 + $0x22] ss:$4 sm:$0xff] %v15545_v57  ;;  %v11909_v31 = vld.sshfl [vmem:[#allocation1] sm:$0xff pattern:$0x73625140]  ;;  %v6005_v25 = vsel %vm5995_vm9, %v15528_v37, %v15550_v26  ;;  %v3024_v37 = vadd.f32 %v2874_v61, %v2491_v5  ;;  %v15555_v26 = vld [vmem:[#allocation74_spill] sm:$0xff]  ;;  %v11943_v5 = vadd.f32 %v3979_v40, %v15560_v19  ;;  %v11957_v40 = vadd.f32 %v3504_v39, %v3023_v29  ;;  %v11962_v19 = vpop.f32.mrf.mxu2 }
 0x732   : > { %15546 = vst [vmem:[#allocation80_spill] sm:$0xff] %v11901_v36  ;;  %v15553_v57 = vld [vmem:[#allocation68_spill] sm:$0xff]  ;;  %v11925_v36 = vpop.f32.mrf.mxu0  ;;  %7392 = vmatmul.msk.f32.gmra.mxu2 %vm825_vm8, %v6005_v25  ;;  %v11948_v61 = vadd.f32 %v3503_v23, %v3022_v8  ;;  %v15564_v51 = vld [vmem:[#allocation149_spill] sm:$0xff]  ;;  %v15569_v8 = vld [vmem:[#allocation222_spill] sm:$0xff] }
 0x733   : > { %4951 = vst [vmem:[#allocation1 + $0x23] ss:$4 sm:$0xff] %v15548_v0  ;;  %v2342_v0 = vrot.slane %v15553_v57, 2  ;;  %v2343_v30 = vrot.slane %v15553_v57, 4  ;;  %v2344_v47 = vrot.slane %v15553_v57, 6  ;;  %v15559_v25 = vld [vmem:[#allocation140_spill] sm:$0xff]  ;;  %v11966_v12 = vadd.f32 %v3505_v49, %v3024_v37  ;;  %v11971_v29 = vpop.f32.mrf.mxu3 }
 0x734   : > { %15551 = vst [vmem:[#allocation33_spill] sm:$0xff] %v11915_v27  ;;  %v15557_v27 = vld [vmem:[#allocation188_spill] sm:$0xff]  ;;  %v3980_v23 = vrot.slane %v15569_v8, 2  ;;  %v15572_v39 = vld [vmem:[#allocation117_spill] sm:$0xff]  ;;  %v15576_v49 = vld [vmem:[#allocation119_spill] sm:$0xff] }
 0x735   : > { %4944 = vst [vmem:[#allocation1] ss:$4 sm:$0xff] %v15554_v59  ;;  %v11936_v42 = vadd.f32 %v3978_v53, %v15557_v27  ;;  %v2492_v59 = vadd.f32 %v15553_v57, %v15558_v11  ;;  %v15565_v53 = vld [vmem:[#allocation199_spill] sm:$0xff]  ;;  %v2875_v11 = vrot.slane %v11763_v18, 2  ;;  %v2876_v57 = vrot.slane %v11763_v18, 4 }
 0x736   : > { %4945 = vst [vmem:[#allocation1 + $0x1] ss:$4 sm:$0xff] %v15555_v26  ;;  %v2493_v27 = vadd.f32 %v2342_v0, %v15565_v53  ;;  %v15566_v26 = vld [vmem:[#allocation201_spill] sm:$0xff]  ;;  %v3982_v53 = vrot.slane %v15569_v8, 6  ;;  %v15577_v37 = vld [vmem:[#allocation103_spill] sm:$0xff]  ;;  %7357 = vmatmul.msk.f32.gmra.mxu0 %vm825_vm8, %v11909_v31  ;;  %v15673_v31 = vld [vmem:[#allocation16_spill] sm:$0xff] }
 0x737   : > { %4946 = vst [vmem:[#allocation1 + $0x2] ss:$4 sm:$0xff] %v15559_v25  ;;  %v2494_v58 = vadd.f32 %v2343_v30, %v15566_v26  ;;  %v15568_v25 = vld [vmem:[#allocation192_spill] sm:$0xff]  ;;  %v3025_v0 = vadd.f32 %v11763_v18, %v2492_v59  ;;  %v3981_v30 = vrot.slane %v15569_v8, 4  ;;  %v15578_v18 = vld [vmem:[#allocation95_spill] sm:$0xff] }
 0x738   : > { %15561 = vst [vmem:[#allocation84_spill] sm:$0xff] %v11943_v5  ;;  %v2495_v24 = vadd.f32 %v2344_v47, %v15568_v25  ;;  %v15573_v47 = vld [vmem:[#allocation221_spill] sm:$0xff]  ;;  %v15575_v25 = vld [vmem:[#allocation114_spill] sm:$0xff]  ;;  %v6006_v59 = vsel %vm5995_vm9, %v15578_v18, %v15577_v37  ;;  %v12008_v18 = vpop.f32.mrf.mxu1 }
 0x739   : > { %15562 = vst [vmem:[#allocation111_spill] sm:$0xff] %v11946_v60  ;;  %v11976_v26 = vadd.f32 %v15569_v8, %v15573_v47  ;;  %v3027_v60 = vadd.f32 %v2876_v57, %v2494_v58  ;;  %v15580_v47 = vld [vmem:[#allocation208_spill] sm:$0xff]  ;;  %v15583_v58 = vld [vmem:[#allocation10_spill] sm:$0xff] }
 0x73a   : > { %15563 = vst [vmem:[#allocation153_spill] sm:$0xff] %v11948_v61  ;;  %v2346_v61 = vrot.slane %v15575_v25, 4  ;;  %7393 = vmatmul.msk.f32.gmra.mxu2 %vm825_vm8, %v6006_v59  ;;  %v3028_v8 = vadd.f32 %v2877_v45, %v2495_v24  ;;  %v15584_v57 = vld [vmem:[#allocation18_spill] sm:$0xff] }
 0x73b   : > { %4947 = vst [vmem:[#allocation1 + $0x3] ss:$4 sm:$0xff] %v15564_v51  ;;  %v11964_v51 = vld.sshfl [vmem:[#allocation1 + $0x20] sm:$0xff pattern:$0x73625140]  ;;  %v12004_v24 = vadd.f32 %v3982_v53, %v15584_v57  ;;  %v15586_v45 = vld [vmem:[#allocation14_spill] sm:$0xff] }
 0x73c   : > { %15567 = vst [vmem:[#allocation30_spill] sm:$0xff] %v11957_v40  ;;  %v2345_v40 = vrot.slane %v15575_v25, 2  ;;  %v2498_v5 = vadd.f32 %v2346_v61, %v15588_v55  ;;  %v2879_v53 = vrot.slane %v11843_v22, 4  ;;  %v15591_v57 = vld [vmem:[#allocation169_spill] sm:$0xff] }
 0x73d   : > { %15570 = vst [vmem:[#allocation82_spill] sm:$0xff] %v11962_v19  ;;  %v3506_v19 = vrot.slane %v11841_v1, 2 }
 0x73e   : > { %15571 = vst [vmem:[#allocation86_spill] sm:$0xff] %v11966_v12  ;;  %v3026_v12 = vadd.f32 %v2875_v11, %v2493_v27  ;;  %v7399_v27 = vld [vmem:[%s13827_s3 + $0x8] sm:$0xff]  ;;  %v12001_v11 = vadd.f32 %v3981_v30, %v15583_v58  ;;  %v2878_v30 = vrot.slane %v11843_v22, 2  ;;  %v15589_v58 = vld [vmem:[#allocation136_spill] sm:$0xff]  ;;  %7358 = vmatmul.msk.f32.gmra.mxu0 %vm825_vm8, %v11872_v17 }
 0x73f   : > { %4958 = vst [vmem:[#allocation1 + $0x20] ss:$4 sm:$0xff] %v15572_v39  ;;  %v2347_v39 = vrot.slane %v15575_v25, 6  ;;  %6210 = vmatpush.msra.mxu3 %v7399_v27  ;;  %v2880_v27 = vrot.slane %v11843_v22, 6 }
 0x740   : > { %15574 = vst [vmem:[#allocation155_spill] sm:$0xff] %v11976_v26  ;;  %v11989_v26 = vadd.f32 %v3980_v23, %v15580_v47  ;;  %v2496_v23 = vadd.f32 %v15575_v25, %v15586_v45  ;;  %v15587_v47 = vld [vmem:[#allocation204_spill] sm:$0xff]  ;;  %v12022_v25 = vadd.f32 %v11841_v1, %v3025_v0  ;;  %v12028_v55 = vadd.f32 %v3506_v19, %v3026_v12  ;;  %v15601_v19 = vld [vmem:[#allocation158_spill] sm:$0xff] }
 0x741   : > { %4959 = vst [vmem:[#allocation1 + $0x21] ss:$4 sm:$0xff] %v15576_v49  ;;  %v3507_v49 = vrot.slane %v11841_v1, 4  ;;  %v2499_v45 = vadd.f32 %v2347_v39, %v15591_v57  ;;  %v15598_v39 = vld [vmem:[#allocation21_spill] sm:$0xff]  ;;  %v3031_v12 = vadd.f32 %v2879_v53, %v2498_v5 }
 0x742   : > { %4960 = vst [vmem:[#allocation1 + $0x22] ss:$4 sm:$0xff] %v15579_v4  ;;  %v5880_v4 = vld [vmem:[%s13827_s3] sm:$0xff]  ;;  %v3029_v1 = vadd.f32 %v11843_v22, %v2496_v23 }
 0x743   : > { %15581 = vst [vmem:[#allocation157_spill] sm:$0xff] %v11989_v26  ;;  %v12012_v59 = vld.sshfl [vmem:[#allocation1] sm:$0xff pattern:$0x73625140]  ;;  %5945 = vmatpush.msra.mxu1 %v5880_v4  ;;  %v2497_v26 = vadd.f32 %v2345_v40, %v15587_v47  ;;  %v15593_v47 = vld [vmem:[#allocation165_spill] sm:$0xff]  ;;  %v12030_v61 = vadd.f32 %v3507_v49, %v3027_v60  ;;  %v12046_v49 = vpop.f32.mrf.mxu2 }
 0x744   : > { %4961 = vst [vmem:[#allocation1 + $0x23] ss:$4 sm:$0xff] %v15582_v41  ;;  %v12010_v41 = vpop.f32.mrf.mxu0  ;;  %v15592_v4 = vld [vmem:[#allocation212_spill] sm:$0xff] }
 0x745   : > { %15585 = vst [vmem:[#allocation89_spill] sm:$0xff] %v12004_v24  ;;  %v3983_v40 = vrot.slane %v15592_v4, 2  ;;  %v12032_v24 = vadd.f32 %v3508_v35, %v3028_v8  ;;  %v3985_v0 = vrot.slane %v15592_v4, 6  ;;  %v12040_v57 = vadd.f32 %v15592_v4, %v15598_v39  ;;  %v15603_v22 = vld [vmem:[#allocation224_spill] sm:$0xff]  ;;  %v12053_v39 = vpop.f32.mrf.mxu3 }
 0x746   : > { %4954 = vst [vmem:[#allocation1] ss:$4 sm:$0xff] %v15589_v58  ;;  %v3984_v58 = vrot.slane %v15592_v4, 4  ;;  %v3030_v60 = vadd.f32 %v2878_v30, %v2497_v26  ;;  %v3510_v4 = vrot.slane %v11923_v38, 4  ;;  %v15606_v26 = vld [vmem:[#allocation198_spill] sm:$0xff]  ;;  %v3511_v30 = vrot.slane %v11923_v38, 6  ;;  %7359 = vmatmul.msk.f32.gmra.mxu0 %vm825_vm8, %v12012_v59 }
 0x747   : > { %15590 = vst [vmem:[#allocation147_spill] sm:$0xff] %v12022_v25  ;;  %v15600_v25 = vld [vmem:[#allocation83_spill] sm:$0xff]  ;;  %v12049_v23 = vadd.f32 %v3983_v40, %v15603_v22  ;;  %v15611_v22 = vld [vmem:[#allocation176_spill] sm:$0xff] }
 0x748   : > { %4955 = vst [vmem:[#allocation1 + $0x1] ss:$4 sm:$0xff] %v15593_v47  ;;  %v2348_v47 = vrot.slane %v15600_v25, 2  ;;  %v2349_v35 = vrot.slane %v15600_v25, 4  ;;  %v2350_v8 = vrot.slane %v15600_v25, 6  ;;  %v12058_v5 = vadd.f32 %v3984_v58, %v15606_v26 }
 0x749   : > { %15594 = vst [vmem:[#allocation31_spill] sm:$0xff] %v12028_v55  ;;  %v2500_v53 = vadd.f32 %v15600_v25, %v11571_v6  ;;  %v12069_v55 = vadd.f32 %v3985_v0, %v15611_v22  ;;  %v2881_v58 = vrot.slane %v11925_v36, 2  ;;  %v2882_v26 = vrot.slane %v11925_v36, 4  ;;  %v15615_v6 = vld [vmem:[#allocation65_spill] sm:$0xff]  ;;  %v15618_v0 = vld [vmem:[#allocation190_spill] sm:$0xff] }
 0x74a   : > { %15595 = vst [vmem:[#allocation104_spill] sm:$0xff] %v12030_v61  ;;  %v2502_v25 = vadd.f32 %v2349_v35, %v15615_v6  ;;  %v15622_v22 = vld [vmem:[#allocation182_spill] sm:$0xff] }
 0x74b   : > { %15596 = vst [vmem:[#allocation108_spill] sm:$0xff] %v12032_v24  ;;  %v3509_v24 = vrot.slane %v11923_v38, 2  ;;  %v12055_v61 = vld.sshfl [vmem:[#allocation1 + $0x20] sm:$0xff pattern:$0x73625140] }
 0x74c   : > { %4956 = vst [vmem:[#allocation1 + $0x2] ss:$4 sm:$0xff] %v15597_v48  ;;  %v3032_v48 = vadd.f32 %v2880_v27, %v2499_v45  ;;  %v15608_v45 = vld [vmem:[#allocation171_spill] sm:$0xff]  ;;  %v15609_v27 = vld [vmem:[#allocation150_spill] sm:$0xff] }
 0x74d   : > { %15599 = vst [vmem:[#allocation109_spill] sm:$0xff] %v12040_v57  ;;  %v15610_v40 = vrot.slane %v15609_v27, 2  ;;  %v2883_v57 = vrot.slane %v11925_v36, 6 }
 0x74e   : > { %4957 = vst [vmem:[#allocation1 + $0x3] ss:$4 sm:$0xff] %v15601_v19  ;;  %v12096_v6 = vadd.f32 %v3511_v30, %v3032_v48  ;;  %v3035_v48 = vadd.f32 %v2882_v26, %v2502_v25  ;;  %v2884_v25 = vrot.slane %v12010_v41, 2  ;;  %7360 = vmatmul.msk.f32.gmra.mxu0 %vm825_vm8, %v11964_v51  ;;  %v7467_v51 = vld [vmem:[%s13827_s3 + $0x28] sm:$0xff] }
 0x74f   : > { %15602 = vst [vmem:[#allocation112_spill] sm:$0xff] %v12046_v49  ;;  %v6007_v19 = vsel %vm5995_vm9, %v15577_v37, %v15610_v40  ;;  %v15613_v49 = vld [vmem:[#allocation38_spill] sm:$0xff]  ;;  %6639 = vmatpush.msra.mxu0 %v7467_v51 }
 0x750   : > { %15604 = vst [vmem:[#allocation45_spill] sm:$0xff] %v12049_v23  ;;  %v2501_v23 = vadd.f32 %v2348_v47, %v15613_v49  ;;  %7394 = vmatmul.msk.f32.gmra.mxu2 %vm825_vm8, %v6007_v19  ;;  %v15617_v37 = vld [vmem:[#allocation194_spill] sm:$0xff]  ;;  %v12084_v47 = vadd.f32 %v11923_v38, %v3029_v1  ;;  %v12086_v49 = vadd.f32 %v3509_v24, %v3030_v60  ;;  %v12091_v19 = vpop.f32.mrf.mxu1  ;;  %v15624_v38 = vld [vmem:[#allocation209_spill] sm:$0xff] }
 0x751   : > { %15605 = vst [vmem:[#allocation39_spill] sm:$0xff] %v12055_v61  ;;  %v3986_v40 = vrot.slane %v15617_v37, 2  ;;  %v3987_v35 = vrot.slane %v15617_v37, 4  ;;  %v3988_v3 = vrot.slane %v15617_v37, 6  ;;  %v12102_v24 = vadd.f32 %v15617_v37, %v15624_v38  ;;  %v15630_v37 = vld [vmem:[#allocation9_spill] sm:$0xff]  ;;  %v15631_v38 = vld [vmem:[#allocation32_spill] sm:$0xff] }
 0x752   : > { %15607 = vst [vmem:[#allocation121_spill] sm:$0xff] %v12058_v5  ;;  %v15614_v5 = vld [vmem:[#allocation180_spill] sm:$0xff]  ;;  %v3034_v60 = vadd.f32 %v2881_v58, %v2501_v23  ;;  %v3513_v23 = vrot.slane %v12008_v18, 4  ;;  %v3514_v58 = vrot.slane %v12008_v18, 6 }
 0x753   : > { %4968 = vst [vmem:[#allocation1 + $0x20] ss:$4 sm:$0xff] %v15608_v45  ;;  %v15616_v45 = vld [vmem:[#allocation91_spill] sm:$0xff] }
 0x754   : > { %15612 = vst [vmem:[#allocation217_spill] sm:$0xff] %v12069_v55  ;;  %v2503_v27 = vadd.f32 %v2350_v8, %v15616_v45  ;;  %v12093_v8 = vpop.f32.mrf.mxu0  ;;  %v3033_v45 = vadd.f32 %v11925_v36, %v2500_v53  ;;  %v15628_v36 = vld [vmem:[#allocation197_spill] sm:$0xff] }
 0x755   : > { %4969 = vst [vmem:[#allocation1 + $0x21] ss:$4 sm:$0xff] %v15614_v5  ;;  %v12088_v5 = vadd.f32 %v3510_v4, %v3031_v12  ;;  %v12104_v1 = vld.sshfl [vmem:[#allocation1] sm:$0xff pattern:$0x73625140]  ;;  %v12111_v53 = vadd.f32 %v3986_v40, %v15628_v36  ;;  %v12128_v40 = vpop.f32.mrf.mxu2 }
 0x756   : > { %4970 = vst [vmem:[#allocation1 + $0x22] ss:$4 sm:$0xff] %v15618_v0  ;;  %v15626_v12 = vld [vmem:[#allocation96_spill] sm:$0xff]  ;;  %v3036_v30 = vadd.f32 %v2883_v57, %v2503_v27  ;;  %v15635_v57 = vld [vmem:[#allocation179_spill] sm:$0xff]  ;;  %v2885_v27 = vrot.slane %v12010_v41, 4  ;;  %7361 = vmatmul.msk.f32.gmra.mxu0 %vm825_vm8, %v12104_v1  ;;  %v15710_v1 = vld [vmem:[#allocation70_spill] sm:$0xff] }
 0x757   : > { %15619 = vst [vmem:[#allocation122_spill] sm:$0xff] %v12084_v47  ;;  %v2351_v4 = vrot.slane %v15626_v12, 2  ;;  %v2352_v0 = vrot.slane %v15626_v12, 4  ;;  %v15633_v47 = vld [vmem:[#allocation211_spill] sm:$0xff]  ;;  %v12124_v26 = vadd.f32 %v3988_v3, %v15635_v57  ;;  %v15639_v36 = vld [vmem:[#allocation152_spill] sm:$0xff]  ;;  %v2886_v3 = vrot.slane %v12010_v41, 6  ;;  %v12138_v57 = vpop.f32.mrf.mxu3 }
 0x758   : > { %15620 = vst [vmem:[#allocation110_spill] sm:$0xff] %v12086_v49  ;;  %v12116_v49 = vadd.f32 %v3987_v35, %v15631_v38  ;;  %v15638_v35 = vld [vmem:[#allocation11_spill] sm:$0xff] }
 0x759   : > { %15621 = vst [vmem:[#allocation94_spill] sm:$0xff] %v12088_v5  ;;  %v2353_v5 = vrot.slane %v15626_v12, 6  ;;  %v15725_v51 = vld [vmem:[#allocation121_spill] sm:$0xff] }
 0x75a   : > { %4971 = vst [vmem:[#allocation1 + $0x23] ss:$4 sm:$0xff] %v15622_v22  ;;  %v15627_v22 = vld [vmem:[#allocation13_spill] sm:$0xff] }
 0x75b   : > { %15623 = vst [vmem:[#allocation161_spill] sm:$0xff] %v12096_v6  ;;  %v3512_v6 = vrot.slane %v12008_v18, 2 }
 0x75c   : > { %15625 = vst [vmem:[#allocation98_spill] sm:$0xff] %v12102_v24  ;;  %v2504_v24 = vadd.f32 %v15626_v12, %v15633_v47  ;;  %v15642_v47 = vld [vmem:[#allocation214_spill] sm:$0xff] }
 0x75d   : > { %4964 = vst [vmem:[#allocation1] ss:$4 sm:$0xff] %v15627_v22  ;;  %v15634_v22 = vld [vmem:[#allocation17_spill] sm:$0xff]  ;;  %v2506_v12 = vadd.f32 %v2352_v0, %v15642_v47  ;;  %v15649_v0 = vld [vmem:[#allocation107_spill] sm:$0xff] }
 0x75e   : > { %15629 = vst [vmem:[#allocation163_spill] sm:$0xff] %v12111_v53  ;;  %v2356_v47 = vrot.slane %v15649_v0, 6 }
 0x75f   : > { %4965 = vst [vmem:[#allocation1 + $0x1] ss:$4 sm:$0xff] %v15630_v37  ;;  %v15640_v37 = vld [vmem:[#allocation105_spill] sm:$0xff]  ;;  %v3039_v54 = vadd.f32 %v2885_v27, %v2506_v12  ;;  %v2887_v27 = vrot.slane %v12093_v8, 2  ;;  %v2888_v12 = vrot.slane %v12093_v8, 4 }
 0x760   : > { %15632 = vst [vmem:[#allocation101_spill] sm:$0xff] %v12116_v49  ;;  %v6008_v38 = vsel %vm5995_vm9, %v15640_v37, %v15639_v36  ;;  %v15641_v49 = vld [vmem:[#allocation213_spill] sm:$0xff] }
 0x761   : > { %4966 = vst [vmem:[#allocation1 + $0x2] ss:$4 sm:$0xff] %v15634_v22  ;;  %v2505_v53 = vadd.f32 %v2351_v4, %v15641_v49  ;;  %v15643_v22 = vld [vmem:[#allocation215_spill] sm:$0xff]  ;;  %7395 = vmatmul.msk.f32.gmra.mxu2 %vm825_vm8, %v6008_v38  ;;  %v12150_v49 = vadd.f32 %v3513_v23, %v3035_v48  ;;  %v3037_v4 = vadd.f32 %v12010_v41, %v2504_v24  ;;  %v2354_v38 = vrot.slane %v15649_v0, 2  ;;  %v12164_v23 = vpop.f32.mrf.mxu1  ;;  %v12166_v41 = vpop.f32.mrf.mxu0  ;;  %v15652_v24 = vld [vmem:[#allocation202_spill] sm:$0xff] }
 0x762   : > { %15636 = vst [vmem:[#allocation142_spill] sm:$0xff] %v12124_v26  ;;  %v2507_v55 = vadd.f32 %v2353_v5, %v15643_v22  ;;  %v15646_v26 = vld [vmem:[#allocation99_spill] sm:$0xff]  ;;  %v12152_v5 = vadd.f32 %v3514_v58, %v3036_v30  ;;  %v3515_v30 = vrot.slane %v12091_v19, 2 }
 0x763   : > { %15637 = vst [vmem:[#allocation35_spill] sm:$0xff] %v12128_v40  ;;  %v12142_v40 = vadd.f32 %v12008_v18, %v3033_v45  ;;  %v3989_v61 = vrot.slane %v15646_v26, 2  ;;  %v3990_v37 = vrot.slane %v15646_v26, 4  ;;  %v3991_v18 = vrot.slane %v15646_v26, 6  ;;  %v15650_v45 = vld [vmem:[#allocation193_spill] sm:$0xff] }
 0x764   : > { %4967 = vst [vmem:[#allocation1 + $0x3] ss:$4 sm:$0xff] %v15638_v35  ;;  %v12144_v35 = vadd.f32 %v3512_v6, %v3034_v60  ;;  %v12159_v6 = vadd.f32 %v15646_v26, %v15650_v45  ;;  %v2355_v60 = vrot.slane %v15649_v0, 4  ;;  %v3038_v22 = vadd.f32 %v2884_v25, %v2505_v53 }
 0x765   : > { %15644 = vst [vmem:[#allocation145_spill] sm:$0xff] %v12142_v40  ;;  %v3040_v48 = vadd.f32 %v2886_v3, %v2507_v55  ;;  %v12169_v58 = vadd.f32 %v3989_v61, %v15652_v24  ;;  %v3516_v26 = vrot.slane %v12091_v19, 4  ;;  %v3517_v45 = vrot.slane %v12091_v19, 6  ;;  %v15657_v55 = vld [vmem:[#allocation5_spill] sm:$0xff]  ;;  %v15659_v61 = vld [vmem:[#allocation218_spill] sm:$0xff]  ;;  %v15660_v40 = vld [vmem:[#allocation24_spill] sm:$0xff] }
 0x766   : > { %15645 = vst [vmem:[#allocation164_spill] sm:$0xff] %v12144_v35  ;;  %v15656_v35 = vld [vmem:[#allocation216_spill] sm:$0xff]  ;;  %v2509_v25 = vadd.f32 %v2354_v38, %v15657_v55  ;;  %v2510_v24 = vadd.f32 %v2355_v60, %v15659_v61  ;;  %v12195_v55 = vadd.f32 %v12091_v19, %v3037_v4  ;;  %v15667_v60 = vld [vmem:[#allocation126_spill] sm:$0xff] }
 0x767   : > { %15647 = vst [vmem:[#allocation162_spill] sm:$0xff] %v12150_v49  ;;  %v2508_v53 = vadd.f32 %v15649_v0, %v15656_v35  ;;  %v15664_v0 = vld [vmem:[#allocation207_spill] sm:$0xff]  ;;  %v2357_v61 = vrot.slane %v15667_v60, 2  ;;  %v12211_v19 = vadd.f32 %v3517_v45, %v3040_v48  ;;  %v2512_v48 = vadd.f32 %v15667_v60, %v15673_v31 }
 0x768   : > { %15648 = vst [vmem:[#allocation51_spill] sm:$0xff] %v12152_v5  ;;  %v15654_v5 = vld [vmem:[#allocation203_spill] sm:$0xff]  ;;  %v12192_v38 = vadd.f32 %v3991_v18, %v15664_v0  ;;  %v3994_v18 = vrot.slane %v11647_v28, 6  ;;  %v2358_v0 = vrot.slane %v15667_v60, 4 }
 0x769   : > { %15651 = vst [vmem:[#allocation132_spill] sm:$0xff] %v12159_v6  ;;  %v12172_v49 = vadd.f32 %v3990_v37, %v15654_v5  ;;  %v2511_v37 = vadd.f32 %v2356_v47, %v15660_v40  ;;  %v2889_v5 = vrot.slane %v12093_v8, 6  ;;  %v15668_v40 = vld [vmem:[#allocation6_spill] sm:$0xff]  ;;  %v3992_v47 = vrot.slane %v11647_v28, 2  ;;  %v15674_v45 = vld [vmem:[#allocation219_spill] sm:$0xff]  ;;  %v3429_v31 = vpop.f32.mrf.mxu1 }
 0x76a   : > { %15653 = vst [vmem:[#allocation210_spill] sm:$0xff] %v12169_v58  ;;  %v15662_v58 = vld [vmem:[#allocation116_spill] sm:$0xff]  ;;  %v3041_v4 = vadd.f32 %v12093_v8, %v2508_v53  ;;  %v2513_v8 = vadd.f32 %v2357_v61, %v15674_v45  ;;  %v2890_v53 = vrot.slane %v12166_v41, 2  ;;  %v2892_v61 = vrot.slane %v12166_v41, 6 }
 0x76b   : > { %15655 = vst [vmem:[#allocation131_spill] sm:$0xff] %v12172_v49  ;;  %v12181_v3 = vld.sshfl [vmem:[#allocation1] sm:$0xff pattern:$0x73625140]  ;;  %v15661_v49 = vld [vmem:[#allocation26_spill] sm:$0xff]  ;;  %v15663_v6 = vrot.slane %v15662_v58, 2  ;;  %v12218_v58 = vpop.f32.mrf.mxu3 }
 0x76c   : > { %15658 = vst [vmem:[#allocation134_spill] sm:$0xff] %v12181_v3  ;;  %v12197_v3 = vadd.f32 %v3515_v30, %v3038_v22  ;;  %v3042_v22 = vadd.f32 %v2887_v27, %v2509_v25  ;;  %v15672_v30 = vld [vmem:[#allocation15_spill] sm:$0xff]  ;;  %v15675_v25 = vld [vmem:[#allocation141_spill] sm:$0xff]  ;;  %v15680_v45 = vld [vmem:[#allocation220_spill] sm:$0xff] }
 0x76d   : > { %4974 = vst [vmem:[#allocation1] ss:$4 sm:$0xff] %v15661_v49  ;;  %v6009_v35 = vsel %vm5995_vm9, %v15639_v36, %v15663_v6  ;;  %v12202_v49 = vadd.f32 %v3516_v26, %v3039_v54  ;;  %v3993_v36 = vrot.slane %v11647_v28, 4  ;;  %v12207_v6 = vpop.f32.mrf.mxu2  ;;  %v12216_v54 = vadd.f32 %v11647_v28, %v15672_v30  ;;  %v15676_v27 = vld [vmem:[#allocation73_spill] sm:$0xff] }
 0x76e   : > { %15665 = vst [vmem:[#allocation173_spill] sm:$0xff] %v12195_v55  ;;  %7396 = vmatmul.msk.f32.gmra.mxu2 %vm825_vm8, %v6009_v35  ;;  %v3043_v26 = vadd.f32 %v2888_v12, %v2510_v24  ;;  %v3044_v35 = vadd.f32 %v2889_v5, %v2511_v37  ;;  %v12228_v28 = vadd.f32 %v3992_v47, %v15675_v25  ;;  %v15677_v12 = vld [vmem:[#allocation97_spill] sm:$0xff]  ;;  %v3519_v37 = vrot.slane %v12164_v23, 4  ;;  %v12243_v47 = vpop.f32.mrf.mxu0  ;;  %v15681_v25 = vld [vmem:[#allocation22_spill] sm:$0xff] }
 0x76f   : > { %15666 = vst [vmem:[#allocation135_spill] sm:$0xff] %v12197_v3  ;;  %v12231_v30 = vadd.f32 %v3993_v36, %v15676_v27  ;;  %v12234_v24 = vadd.f32 %v3994_v18, %v15677_v12  ;;  %v3520_v5 = vrot.slane %v12164_v23, 6  ;;  %v2514_v36 = vadd.f32 %v2358_v0, %v15680_v45  ;;  %v15683_v0 = vld [vmem:[#allocation160_spill] sm:$0xff] }
 0x770   : > { %4975 = vst [vmem:[#allocation1 + $0x1] ss:$4 sm:$0xff] %v15668_v40  ;;  %v2359_v40 = vrot.slane %v15667_v60, 6  ;;  %v2891_v60 = vrot.slane %v12166_v41, 4  ;;  %v3995_v18 = vrot.slane %v11714_v13, 2  ;;  %v3996_v12 = vrot.slane %v11714_v13, 4 }
 0x771   : > { %15669 = vst [vmem:[#allocation43_spill] sm:$0xff] %v12202_v49  ;;  %v3518_v49 = vrot.slane %v12164_v23, 2  ;;  %v3521_v55 = vrot.slane %v3429_v31, 2 }
 0x772   : > { %15670 = vst [vmem:[#allocation174_spill] sm:$0xff] %v12207_v6  ;;  %v2515_v27 = vadd.f32 %v2359_v40, %v15681_v25  ;;  %v4504_v6 = vrot.slane %v11806_v46, 2  ;;  %v15684_v40 = vld [vmem:[#allocation118_spill] sm:$0xff]  ;;  %v12260_v25 = vadd.f32 %v3519_v37, %v3043_v26  ;;  %v3047_v17 = vadd.f32 %v2891_v60, %v2514_v36 }
 0x773   : > { %15671 = vst [vmem:[#allocation92_spill] sm:$0xff] %v12211_v19  ;;  %v12239_v19 = vadd.f32 %v12164_v23, %v3041_v4  ;;  %v12249_v3 = vadd.f32 %v3518_v49, %v3042_v22  ;;  %v3045_v23 = vadd.f32 %v12166_v41, %v2512_v48  ;;  %v3046_v4 = vadd.f32 %v2890_v53, %v2513_v8  ;;  %v15687_v41 = vld [vmem:[#allocation205_spill] sm:$0xff]  ;;  %v12272_v8 = vld [vmem:[%s13826_s2] ss:$0 sm:$0xff] }
 0x774   : > { %15678 = vst [vmem:[#allocation154_spill] sm:$0xff] %v12234_v24  ;;  %v4505_v24 = vrot.slane %v11806_v46, 4  ;;  %v6010_v45 = vsel %vm5995_vm9, %v15684_v40, %v15683_v0  ;;  %v12262_v49 = vadd.f32 %v3520_v5, %v3044_v35  ;;  %v12266_v22 = vadd.f32 %v11714_v13, %v15687_v41 }
 0x775   : > { %15679 = vst [vmem:[#allocation156_spill] sm:$0xff] %v12239_v19  ;;  %v3997_v19 = vrot.slane %v11714_v13, 6  ;;  %v4506_v48 = vrot.slane %v11806_v46, 6  ;;  %v3048_v53 = vadd.f32 %v2892_v61, %v2515_v27  ;;  %v12276_v26 = vadd.f32 %v3995_v18, %v11619_v62  ;;  %v12281_v13 = vpop.f32.mrf.mxu2 }
 0x776   : > { %15682 = vst [vmem:[#allocation167_spill] sm:$0xff] %v12249_v3  ;;  %7397 = vmatmul.msk.f32.gmra.mxu2 %vm825_vm8, %v6010_v45  ;;  %v12279_v35 = vadd.f32 %v3996_v12, %v11621_v9  ;;  %v3522_v5 = vrot.slane %v3429_v31, 4  ;;  %v3523_v40 = vrot.slane %v3429_v31, 6  ;;  %v12286_v41 = vadd.f32 %v3429_v31, %v3045_v23 }
 0x777   : > { %15685 = vst [vmem:[#allocation143_spill] sm:$0xff] %v12260_v25  ;;  %v12284_v37 = vadd.f32 %v3997_v19, %v11631_v32  ;;  %v12290_v45 = vadd.f32 %v3521_v55, %v3046_v4  ;;  %v4638_v62 = vadd.f32 %v11806_v46, %v11803_v7  ;;  %v4639_v60 = vadd.f32 %v4504_v6, %v11810_v20  ;;  %v5043_v32 = vpop.f32.mrf.mxu0 }
 0x778   : > { %15686 = vst [vmem:[#allocation115_spill] sm:$0xff] %v12262_v49  ;;  %v12288_v49 = vpop.f32.mrf.mxu3  ;;  %v4640_v9 = vadd.f32 %v4505_v24, %v11813_v43  ;;  %v4641_v61 = vadd.f32 %v4506_v48, %v11820_v50  ;;  %v12299_v19 = vrot.slane %v12272_v8, 2  ;;  %v12302_v31 = vrot.slane %v12272_v8, 4 }
 0x779   : > { %15688 = vst [vmem:[#allocation144_spill] sm:$0xff] %v12286_v41  ;;  %v12305_v55 = vrot.slane %v12272_v8, 6  ;;  %v5135_v36 = vrot.slane %v5043_v32, 2  ;;  %v5136_v7 = vrot.slane %v5043_v32, 4  ;;  %v5137_v46 = vrot.slane %v5043_v32, 6  ;;  %v15734_v41 = vld [vmem:[#allocation101_spill] sm:$0xff] }
 0x77a   : > { %15689 = vst [vmem:[#allocation120_spill] sm:$0xff] %v12290_v45  ;;  %v5269_v20 = vadd.f32 %v5043_v32, %v4638_v62  ;;  %v12307_v6 = vadd.f32 %v3522_v5, %v3047_v17  ;;  %v12309_v43 = vadd.f32 %v3523_v40, %v3048_v53  ;;  %v2360_v50 = vrot.slane %v11742_v10, 2  ;;  %v12324_v53 = vld.sshfl [vmem:[#allocation1] sm:$0xff pattern:$0x73625140]  ;;  %v15728_v45 = vld [vmem:[#allocation134_spill] sm:$0xff] }
 0x77b   : > { %v2516_v24 = vadd.f32 %v11742_v10, %v11747_v15  ;;  %v5270_v27 = vadd.f32 %v5135_v36, %v4639_v60  ;;  %v5271_v18 = vadd.f32 %v5136_v7, %v4640_v9  ;;  %v5272_v12 = vadd.f32 %v5137_v46, %v4641_v61  ;;  %v15692_v10 = vld [vmem:[#allocation133_spill] sm:$0xff] }
 0x77c   : > { %15690 = vst [vmem:[#allocation60_spill] sm:$0xff] %v12307_v6  ;;  %v5369_v23 = vadd.f32 %v12272_v8, %v5269_v20  ;;  %v4507_v4 = vrot.slane %v11893_v33, 2  ;;  %v4508_v48 = vrot.slane %v11893_v33, 4  ;;  %v4509_v17 = vrot.slane %v11893_v33, 6 }
 0x77d   : > { %15691 = vst [vmem:[#allocation66_spill] sm:$0xff] %v12309_v43  ;;  %v15693_v15 = vrot.slane %v15692_v10, 2  ;;  %v5370_v40 = vadd.f32 %v12299_v19, %v5270_v27  ;;  %v5371_v59 = vadd.f32 %v12302_v31, %v5271_v18  ;;  %v5372_v62 = vadd.f32 %v12305_v55, %v5272_v12  ;;  %v12338_v7 = vpop.f32.mrf.mxu2  ;;  %v15714_v43 = vld [vmem:[#allocation25_spill] sm:$0xff] }
 0x77e   : > { %v5459_v60 = vmax.f32 %v5369_v23, 0.0  ;;  %v3998_v61 = vrot.slane %v11794_v2, 2  ;;  %v4642_v32 = vadd.f32 %v11893_v33, %v11862_v63  ;;  %v5549_v36 = vlaneseq  ;;  %15694 = vst [vmem:[#allocation44_spill] sm:$0xff] %v12338_v7 }
 0x77f   : > { %v6011_v5 = vsel %vm5995_vm9, %v15683_v0, %v15693_v15  ;;  %v5460_v0 = vmax.f32 %v5370_v40, 0.0  ;;  %v5461_v46 = vmax.f32 %v5371_v59, 0.0  ;;  %v5462_v20 = vmax.f32 %v5372_v62, 0.0  ;;  %v7433_v59 = vld [vmem:[%s13827_s3 + $0x18] sm:$0xff] }
 0x780   : > { %7398 = vmatmul.msk.f32.gmra.mxu2 %vm825_vm8, %v6011_v5  ;;  %5692 = vst [vmem:[#allocation1] ss:$4 sm:$0xff] %v5459_v60  ;;  %v5564_v27 = vstv %s12319_s19  ;;  %v3999_v18 = vrot.slane %v11794_v2, 4  ;;  %v4643_v12 = vadd.f32 %v4507_v4, %v11867_v52  ;;  %v4644_v23 = vadd.f32 %v4508_v48, %v11875_v21  ;;  %v12345_v15 = vpop.f32.mrf.mxu3  ;;  %v5046_v5 = vpop.f32.mrf.mxu0  ;;  %s13710_s19 = scalar_lea.vmem [#allocation2], %s7124_s16  ;;  %s7033_s16 = sshll.u32 %s7030_s25, 4  ;;  %s7034_s16 = int_to_ptr.hbm [resolvable:$true] %s7033_s16 }
 0x781   : > { %v4645_v10 = vadd.f32 %v4509_v17, %v11885_v56  ;;  %5694 = vst [vmem:[#allocation1 + $0x1] ss:$4 sm:$0xff] %v5460_v0  ;;  %v5138_v63 = vrot.slane %v5046_v5, 2  ;;  %v5139_v33 = vrot.slane %v5046_v5, 4  ;;  %v5140_v9 = vrot.slane %v5046_v5, 6  ;;  %6454 = vmatpush.msrb.mxu2 %v7433_v59  ;;  %s7639_s18 = sshra.s32 %s7034_s16, 4  ;;  %s7640_s18 = int_to_ptr.hbm [resolvable:$true] %s7639_s18 }
 0x782   : > { %v5273_v40 = vadd.f32 %v5046_v5, %v4642_v32  ;;  %v4510_v62 = vrot.slane %v11971_v29, 2  ;;  %5696 = vst [vmem:[#allocation1 + $0x2] ss:$4 sm:$0xff] %v5461_v46  ;;  %v12351_v52 = vshrl.u32 %v5549_v36, 7  ;;  %vm12353_vm10 = vcmp.eq.s32.totalorder %v5564_v27, 1  ;;  %s7641_s14 = scalar_lea.hbm %s7640_s18, 128  ;;  %p7646_p6 = scmp.lt.s32.totalorder %s7640_s18, %s13830_s6 }
 0x783   : > { %5698 = vst [vmem:[#allocation1 + $0x3] ss:$4 sm:$0xff] %v5462_v20  ;;  %v5274_v56 = vadd.f32 %v5138_v63, %v4643_v12  ;;  %v5275_v4 = vadd.f32 %v5139_v33, %v4644_v23  ;;  %v5276_v48 = vadd.f32 %v5140_v9, %v4645_v10  ;;  %v4000_v60 = vrot.slane %v11794_v2, 6  ;;  %v12365_v46 = vld.sshfl [vmem:[#allocation1 + $0x20] sm:$0xff pattern:$0x73625140]  ;;  %vm12382_vm13 = vmxor %vm12353_vm10, %vm7721_vm12  ;;  %p7642_p2 = scmp.ne.s32.totalorder %s7640_s18, %s7641_s14  ;;  %p7647_p7 = scmp.lt.s32.totalorder %s7645_s30, %s7641_s14 }
 0x784   : > { %v5373_v17 = vadd.f32 %v12272_v8, %v5273_v40  ;;  %v12361_v32 = vadd.f32 %v11794_v2, %v11651_v16  ;;  %v4511_v36 = vrot.slane %v11971_v29, 4  ;;  %v4512_v0 = vrot.slane %v11971_v29, 6 }
 0x785   : > { %v5374_v20 = vadd.f32 %v12299_v19, %v5274_v56  ;;  %v5375_v9 = vadd.f32 %v12302_v31, %v5275_v4  ;;  %v5376_v27 = vadd.f32 %v12305_v55, %v5276_v48  ;;  %v2517_v23 = vadd.f32 %v2360_v50, %v11751_v14  ;;  %p7643_p4 = pnand %p7642_p2, %p7810_p3  ;;  %p7648_p9 = por %p7647_p7, %p7646_p6 }
 0x786   : > { %v5463_v12 = vmax.f32 %v5373_v17, 0.0  ;;  %v12374_v16 = vadd.f32 %v12243_v47, %v2516_v24  ;;  %v4646_v10 = vadd.f32 %v11971_v29, %v11919_v44  ;;  %vm5553_vm11 = vcmp.ge.s32.totalorder %v12351_v52, 1  ;;  %v7450_v44 = vld [vmem:[%s13827_s3 + $0x20] sm:$0xff] }
 0x787   : > { %v4647_v5 = vadd.f32 %v4510_v62, %v11933_v34  ;;  %v5464_v63 = vmax.f32 %v5374_v20, 0.0  ;;  %v5465_v14 = vmax.f32 %v5375_v9, 0.0  ;;  %v5466_v50 = vmax.f32 %v5376_v27, 0.0  ;;  %v15700_v24 = vld [vmem:[#allocation84_spill] sm:$0xff]  ;;  %6547 = vmatpush.msrb.mxu3 %v7450_v44  ;;  %v7416_v34 = vld [vmem:[%s13827_s3 + $0x10] sm:$0xff]  ;;  %v12397_v62 = vpop.f32.mrf.mxu2  ;;  %vm12403_vm14 = vmand %vm5553_vm11, %vm12382_vm13  ;;  %p7644_p5 = pneg %p7643_p4 }
 0x788   : > { %15697 = vst [vmem:[#allocation8_spill] sm:$0xff] %v12374_v16  ;;  %v4648_v29 = vadd.f32 %v4511_v36, %v11936_v42  ;;  %v4649_v33 = vadd.f32 %v4512_v0, %v15700_v24  ;;  %v4513_v40 = vrot.slane %v12053_v39, 2  ;;  %v4514_v59 = vrot.slane %v12053_v39, 4  ;;  %v5049_v21 = vpop.f32.mrf.mxu0  ;;  %6365 = vmatpush.msrb.mxu1 %v7416_v34  ;;  %v15704_v36 = vld [vmem:[#allocation57_spill] sm:$0xff]  ;;  %v15706_v27 = vld [vmem:[#allocation64_spill] sm:$0xff] }
 0x789   : > { %5700 = vst [vmem:[#allocation1 + $0x20] ss:$4 sm:$0xff] %v5463_v12  ;;  %v5141_v56 = vrot.slane %v5049_v21, 2  ;;  %v5142_v4 = vrot.slane %v5049_v21, 4  ;;  %v5143_v48 = vrot.slane %v5049_v21, 6  ;;  %v5277_v17 = vadd.f32 %v5049_v21, %v4646_v10  ;;  %v15705_v20 = vld [vmem:[#allocation77_spill] sm:$0xff]  ;;  %v12418_v10 = vpop.f32.mrf.mxu3  ;;  %p7649_p10 = pnand %p7648_p9, %p7644_p5 }
 0x78a   : > { %15701 = vst [vmem:[#allocation48_spill] sm:$0xff] %v12397_v62  ;;  %v12410_v0 = vadd.f32 %v3998_v61, %v15704_v36  ;;  %v12413_v9 = vadd.f32 %v3999_v18, %v15705_v20  ;;  %v12416_v12 = vadd.f32 %v4000_v60, %v15706_v27  ;;  %v15707_v2 = vrot.slane %v12243_v47, 2  ;;  %v15712_v36 = vld [vmem:[#allocation157_spill] sm:$0xff] }
 0x78b   : > { %5702 = vst [vmem:[#allocation1 + $0x21] ss:$4 sm:$0xff] %v5464_v63  ;;  %v5707_v63 = vld.sshfl [vmem:[#allocation1] sm:$0xff pattern:$0x73625140]  ;;  %v5278_v44 = vadd.f32 %v5141_v56, %v4647_v5  ;;  %v5279_v24 = vadd.f32 %v5142_v4, %v4648_v29  ;;  %v5280_v21 = vadd.f32 %v5143_v48, %v4649_v33  ;;  %v5377_v34 = vadd.f32 %v12272_v8, %v5277_v17  ;;  %v15709_v29 = vld [vmem:[#allocation23_spill] sm:$0xff] }
 0x78c   : > { %5704 = vst [vmem:[#allocation1 + $0x22] ss:$4 sm:$0xff] %v5465_v14  ;;  %v12423_v61 = vadd.f32 %v15707_v2, %v2517_v23  ;;  %v4515_v18 = vrot.slane %v12053_v39, 6  ;;  %v12428_v60 = vsel %vm12403_vm14, %v5707_v63, 0.0  ;;  %v12433_v14 = vadd.s32 16, %v12351_v52  ;;  %v15711_v17 = vld [vmem:[#allocation155_spill] sm:$0xff] }
 0x78d   : > { %5706 = vst [vmem:[#allocation1 + $0x23] ss:$4 sm:$0xff] %v5466_v50  ;;  %v5378_v5 = vadd.f32 %v12272_v8, %v5278_v44  ;;  %v5379_v50 = vadd.f32 %v12299_v19, %v5279_v24  ;;  %v5380_v47 = vadd.f32 %v12302_v31, %v5280_v21  ;;  %v5467_v23 = vmax.f32 %v5377_v34, 0.0  ;;  %7366 = vmatmul.msk.f32.vlgmr.msra.gmra.mxu1 %vm5881_vm15, %v12428_v60  ;;  %v15713_v44 = vld [vmem:[#allocation89_spill] sm:$0xff] }
 0x78e   : > { %15708 = vst [vmem:[#allocation41_spill] sm:$0xff] %v12423_v61  ;;  %v4001_v33 = vrot.slane %v15709_v29, 2  ;;  %v4002_v56 = vrot.slane %v15709_v29, 4  ;;  %v4003_v4 = vrot.slane %v15709_v29, 6  ;;  %v12445_v48 = vadd.f32 %v15709_v29, %v15710_v1 }
 0x78f   : > { %v4650_v42 = vadd.f32 %v12053_v39, %v15711_v17  ;;  %v4651_v20 = vadd.f32 %v4513_v40, %v15712_v36  ;;  %v4652_v27 = vadd.f32 %v4514_v59, %v12001_v11  ;;  %v5468_v63 = vmax.f32 %v5378_v5, 0.0  ;;  %5709 = vst [vmem:[#allocation1] ss:$4 sm:$0xff] %v5467_v23  ;;  %v15715_v39 = vld [vmem:[#allocation27_spill] sm:$0xff] }
 0x790   : > { %v4653_v24 = vadd.f32 %v4515_v18, %v15713_v44  ;;  %v5469_v21 = vmax.f32 %v5379_v50, 0.0  ;;  %v5470_v34 = vmax.f32 %v5380_v47, 0.0  ;;  %v5052_v2 = vpop.f32.mrf.mxu0  ;;  %vm5558_vm0 = vcmp.le.s32.totalorder %v12433_v14, 16  ;;  %v15716_v11 = vld [vmem:[#allocation19_spill] sm:$0xff]  ;;  %v12463_v50 = vpop.f32.mrf.mxu2  ;;  %v15721_v44 = vld [vmem:[#allocation109_spill] sm:$0xff] }
 0x791   : > { %v5144_v61 = vrot.slane %v5052_v2, 2  ;;  %v5145_v16 = vrot.slane %v5052_v2, 4  ;;  %v5146_v29 = vrot.slane %v5052_v2, 6  ;;  %v5281_v1 = vadd.f32 %v5052_v2, %v4650_v42  ;;  %15717 = vst [vmem:[#allocation46_spill] sm:$0xff] %v12463_v50  ;;  %v15718_v42 = vld [vmem:[#allocation39_spill] sm:$0xff]  ;;  %vm12480_vm2 = vmand %vm5558_vm0, %vm12382_vm13 }
 0x792   : > { %v12454_v6 = vadd.f32 %v4001_v33, %v15714_v43  ;;  %v12457_v40 = vadd.f32 %v4002_v56, %v15715_v39  ;;  %v12460_v59 = vadd.f32 %v4003_v4, %v15716_v11  ;;  %v4516_v18 = vrot.slane %v12138_v57, 2  ;;  %v12467_v33 = vpop.f32.mrf.mxu3  ;;  %7362 = vmatmul.msk.f32.gmra.mxu0 %vm825_vm8, %v15718_v42  ;;  %v15723_v42 = vld [vmem:[#allocation45_spill] sm:$0xff] }
 0x793   : > { %v5282_v47 = vadd.f32 %v5144_v61, %v4651_v20  ;;  %v5283_v23 = vadd.f32 %v5145_v16, %v4652_v27  ;;  %v5284_v17 = vadd.f32 %v5146_v29, %v4653_v24  ;;  %v5381_v36 = vadd.f32 %v12305_v55, %v5281_v1 }
 0x794   : > { %v5708_v5 = vld.sshfl [vmem:[#allocation1 + $0x20] sm:$0xff pattern:$0x73625140]  ;;  %v4517_v43 = vrot.slane %v12138_v57, 4  ;;  %v6123_v56 = vrot.slane %v12428_v60, 1  ;;  %v4654_v24 = vadd.f32 %v12138_v57, %v15721_v44 }
 0x795   : > { %5711 = vst [vmem:[#allocation1 + $0x20] ss:$4 sm:$0xff] %v5468_v63  ;;  %v12472_v4 = vsel %vm12382_vm13, %v5708_v5, 0.0  ;;  %v5382_v61 = vadd.f32 %v12272_v8, %v5282_v47  ;;  %v5383_v20 = vadd.f32 %v12299_v19, %v5283_v23  ;;  %v5384_v27 = vadd.f32 %v12302_v31, %v5284_v17 }
 0x796   : > { %5712 = vst [vmem:[#allocation1 + $0x21] ss:$4 sm:$0xff] %v5469_v21  ;;  %v5471_v63 = vmax.f32 %v5381_v36, 0.0  ;;  %7367 = vmatmul.msk.f32.gmra.mxu1 %vm5881_vm15, %v12472_v4  ;;  %v6278_v21 = vrot.slane %v12428_v60, 2  ;;  %v6124_v2 = vrot.slane %v12472_v4, 1  ;;  %v6279_v29 = vrot.slane %v12472_v4, 2 }
 0x797   : > { %5713 = vst [vmem:[#allocation1 + $0x22] ss:$4 sm:$0xff] %v5470_v34  ;;  %v5710_v1 = vld.sshfl [vmem:[#allocation1] sm:$0xff pattern:$0x73625140]  ;;  %v5472_v39 = vmax.f32 %v5382_v61, 0.0  ;;  %v4655_v4 = vadd.f32 %v4516_v18, %v15723_v42  ;;  %v4656_v44 = vadd.f32 %v4517_v43, %v15725_v51 }
 0x798   : > { %v5473_v11 = vmax.f32 %v5383_v20, 0.0  ;;  %v5474_v5 = vmax.f32 %v5384_v27, 0.0  ;;  %5714 = vst [vmem:[#allocation1 + $0x23] ss:$4 sm:$0xff] %v5471_v63  ;;  %v5851_v34 = vsel %vm12480_vm2, %v5710_v1, 0.0  ;;  %v4518_v47 = vrot.slane %v12138_v57, 6  ;;  %v5055_v17 = vpop.f32.mrf.mxu0 }
 0x799   : > { %v6125_v23 = vsel %vm6122_vm1, %v6123_v56, %v6124_v2  ;;  %v12502_v60 = vsel %vm5995_vm9, %v6278_v21, %v6279_v29  ;;  %v6281_v36 = vrot.slane %v5851_v34, 2  ;;  %v5147_v61 = vrot.slane %v5055_v17, 2  ;;  %5716 = vst [vmem:[#allocation1] ss:$4 sm:$0xff] %v5472_v39  ;;  %v15724_v63 = vld [vmem:[#allocation82_spill] sm:$0xff]  ;;  %v15727_v42 = vld [vmem:[#allocation217_spill] sm:$0xff] }
 0x79a   : > { %15722 = vst [vmem:[#allocation42_spill] sm:$0xff] %v12502_v60  ;;  %7400 = vmatmul.msk.f32.vlgmr.msra.gmra.mxu3 %vm5881_vm15, %v6125_v23  ;;  %v5148_v20 = vrot.slane %v5055_v17, 4  ;;  %v5285_v27 = vadd.f32 %v5055_v17, %v4654_v24  ;;  %v4004_v16 = vrot.slane %v15724_v63, 2  ;;  %v5149_v57 = vrot.slane %v5055_v17, 6  ;;  %7363 = vmatmul.msk.f32.gmra.mxu0 %vm825_vm8, %v15728_v45  ;;  %v12520_v17 = vpop.f32.mrf.mxu2 }
 0x79b   : > { %5717 = vst [vmem:[#allocation1 + $0x1] ss:$4 sm:$0xff] %v5473_v11  ;;  %v12509_v56 = vsel %vm5995_vm9, %v6279_v29, %v6281_v36  ;;  %v4519_v21 = vrot.slane %v12218_v58, 2  ;;  %v4520_v1 = vrot.slane %v12218_v58, 4  ;;  %v5286_v18 = vadd.f32 %v5147_v61, %v4655_v4  ;;  %v15730_v61 = vld [vmem:[#allocation61_spill] sm:$0xff] }
 0x79c   : > { %15726 = vst [vmem:[#allocation40_spill] sm:$0xff] %v12509_v56  ;;  %v5385_v23 = vadd.f32 %v12305_v55, %v5285_v27  ;;  %v4657_v24 = vadd.f32 %v4518_v47, %v15727_v42  ;;  %v4521_v39 = vrot.slane %v12218_v58, 6  ;;  %v5287_v60 = vadd.f32 %v5148_v20, %v4656_v44  ;;  %v15731_v47 = vld [vmem:[#allocation106_spill] sm:$0xff]  ;;  %v15733_v42 = vld [vmem:[#allocation163_spill] sm:$0xff] }
 0x79d   : > { %5718 = vst [vmem:[#allocation1 + $0x2] ss:$4 sm:$0xff] %v5474_v5  ;;  %v6126_v43 = vrot.slane %v5851_v34, 1  ;;  %v4005_v29 = vrot.slane %v15724_v63, 4  ;;  %v4006_v11 = vrot.slane %v15724_v63, 6  ;;  %v5386_v36 = vadd.f32 %v12272_v8, %v5286_v18  ;;  %v15732_v20 = vld [vmem:[#allocation98_spill] sm:$0xff]  ;;  %v12532_v34 = vpop.f32.mrf.mxu3 }
 0x79e   : > { %15729 = vst [vmem:[#allocation175_spill] sm:$0xff] %v12520_v17  ;;  %v5475_v4 = vmax.f32 %v5385_v23, 0.0  ;;  %v12525_v5 = vadd.f32 %v15724_v63, %v15730_v61  ;;  %v12528_v27 = vadd.f32 %v4004_v16, %v15731_v47  ;;  %v4658_v45 = vadd.f32 %v12218_v58, %v15732_v20  ;;  %v15735_v23 = vld [vmem:[#allocation142_spill] sm:$0xff] }
 0x79f   : > { %v5288_v51 = vadd.f32 %v5149_v57, %v4657_v24  ;;  %v5715_v44 = vld.sshfl [vmem:[#allocation1 + $0x20] sm:$0xff pattern:$0x73625140]  ;;  %v4659_v56 = vadd.f32 %v4519_v21, %v15733_v42  ;;  %v4660_v25 = vadd.f32 %v4520_v1, %v15734_v41  ;;  %v5476_v18 = vmax.f32 %v5386_v36, 0.0  ;;  %v15736_v24 = vld [vmem:[#allocation87_spill] sm:$0xff] }
 0x7a0   : > { %5719 = vst [vmem:[#allocation1 + $0x3] ss:$4 sm:$0xff] %v5475_v4  ;;  %v12538_v63 = vsel %vm5553_vm11, %v5715_v44, 0.0  ;;  %v4661_v16 = vadd.f32 %v4521_v39, %v15735_v23  ;;  %v5387_v61 = vadd.f32 %v12272_v8, %v5287_v60  ;;  %v6127_v58 = vsel %vm6122_vm1, %v6124_v2, %v6126_v43  ;;  %v5058_v47 = vpop.f32.mrf.mxu0  ;;  %v15737_v60 = vld [vmem:[#allocation85_spill] sm:$0xff]  ;;  %v15738_v2 = vld [vmem:[#allocation112_spill] sm:$0xff] }
 0x7a1   : > { %7368 = vmatmul.msk.f32.gmra.mxu1 %vm5881_vm15, %v12538_v63  ;;  %7434 = vmatmul.msk.f32.vlgmr.msrb.gmra.mxu2 %vm5881_vm15, %v12538_v63  ;;  %v5150_v41 = vrot.slane %v5058_v47, 2  ;;  %v5151_v57 = vrot.slane %v5058_v47, 4  ;;  %v5152_v21 = vrot.slane %v5058_v47, 6  ;;  %v5289_v1 = vadd.f32 %v5058_v47, %v4658_v45  ;;  %5720 = vst [vmem:[#allocation1 + $0x20] ss:$4 sm:$0xff] %v5476_v18 }
 0x7a2   : > { %7401 = vmatmul.msk.f32.gmra.mxu3 %vm5881_vm15, %v6127_v58  ;;  %v12549_v39 = vadd.f32 %v4005_v29, %v15736_v24  ;;  %v12552_v36 = vadd.f32 %v4006_v11, %v15737_v60  ;;  %v4007_v43 = vrot.slane %v15738_v2, 2  ;;  %v5388_v4 = vadd.f32 %v12299_v19, %v5288_v51  ;;  %7364 = vmatmul.msk.f32.gmra.mxu0 %vm825_vm8, %v12365_v46  ;;  %v15741_v46 = vld [vmem:[#allocation132_spill] sm:$0xff]  ;;  %v12577_v60 = vpop.f32.mrf.mxu2 }
 0x7a3   : > { %v5290_v20 = vadd.f32 %v5150_v41, %v4659_v56  ;;  %v5291_v44 = vadd.f32 %v5151_v57, %v4660_v25  ;;  %v5292_v42 = vadd.f32 %v5152_v21, %v4661_v16  ;;  %v5389_v23 = vadd.f32 %v12302_v31, %v5289_v1  ;;  %v15739_v16 = vld [vmem:[#allocation100_spill] sm:$0xff]  ;;  %v15740_v57 = vld [vmem:[#allocation146_spill] sm:$0xff]  ;;  %15742 = vst [vmem:[#allocation69_spill] sm:$0xff] %v12577_v60 }
 0x7a4   : > { %v4008_v58 = vrot.slane %v15738_v2, 4  ;;  %v4522_v45 = vrot.slane %v12288_v49, 2  ;;  %v4523_v18 = vrot.slane %v12288_v49, 4  ;;  %v5477_v29 = vmax.f32 %v5387_v61, 0.0 }
 0x7a5   : > { %v5390_v11 = vadd.f32 %v12305_v55, %v5290_v20  ;;  %v5391_v47 = vadd.f32 %v12272_v8, %v5291_v44  ;;  %v5392_v56 = vadd.f32 %v12299_v19, %v5292_v42  ;;  %v5479_v25 = vmax.f32 %v5389_v23, 0.0  ;;  %v15743_v23 = vld [vmem:[#allocation210_spill] sm:$0xff] }
 0x7a6   : > { %v4009_v51 = vrot.slane %v15738_v2, 6  ;;  %v12568_v41 = vadd.f32 %v15738_v2, %v15739_v16  ;;  %v12571_v21 = vadd.f32 %v4007_v43, %v15740_v57  ;;  %v5478_v61 = vmax.f32 %v5388_v4, 0.0  ;;  %v15744_v16 = vld [vmem:[#allocation131_spill] sm:$0xff]  ;;  %v12583_v43 = vpop.f32.mrf.mxu3 }
 0x7a7   : > { %v12573_v1 = vld.sshfl [vmem:[#allocation1] sm:$0xff pattern:$0x73625140]  ;;  %v4662_v24 = vadd.f32 %v12288_v49, %v15741_v46  ;;  %v5480_v20 = vmax.f32 %v5390_v11, 0.0  ;;  %v6128_v44 = vrot.slane %v12538_v63, 1  ;;  %v4663_v2 = vadd.f32 %v4522_v45, %v15743_v23  ;;  %v15745_v45 = vld [vmem:[#allocation79_spill] sm:$0xff] }
 0x7a8   : > { %5723 = vst [vmem:[#allocation1] ss:$4 sm:$0xff] %v5477_v29  ;;  %v4664_v3 = vadd.f32 %v4523_v18, %v15744_v16  ;;  %v5481_v4 = vmax.f32 %v5391_v47, 0.0  ;;  %v5061_v57 = vpop.f32.mrf.mxu0  ;;  %v5722_v11 = vld.sshfl [vmem:[#allocation1 + $0x20] sm:$0xff pattern:$0x73625140]  ;;  %v12590_v23 = vadd.f32 %v4008_v58, %v15745_v45 }
 0x7a9   : > { %7369 = vmatmul.msk.f32.gmra.mxu1 %vm5881_vm15, %v12573_v1  ;;  %5724 = vst [vmem:[#allocation1 + $0x1] ss:$4 sm:$0xff] %v5478_v61  ;;  %7435 = vmatmul.msk.f32.gmra.mxu2 %vm5881_vm15, %v12573_v1  ;;  %v5482_v46 = vmax.f32 %v5392_v56, 0.0  ;;  %v5153_v29 = vrot.slane %v5061_v57, 2  ;;  %v5154_v60 = vrot.slane %v5061_v57, 4  ;;  %v5293_v42 = vadd.f32 %v5061_v57, %v4662_v24  ;;  %v15748_v58 = vld [vmem:[#allocation93_spill] sm:$0xff] }
 0x7aa   : > { %5725 = vst [vmem:[#allocation1 + $0x2] ss:$4 sm:$0xff] %v5479_v25  ;;  %v4524_v18 = vrot.slane %v12288_v49, 6  ;;  %v4525_v47 = vrot.slane %v12345_v15, 2  ;;  %v15746_v16 = vrot.slane %v12573_v1, 1  ;;  %v4526_v17 = vrot.slane %v12345_v15, 4  ;;  %7365 = vmatmul.msk.f32.gmra.mxu0 %vm825_vm8, %v12324_v53 }
 0x7ab   : > { %5726 = vst [vmem:[#allocation1 + $0x3] ss:$4 sm:$0xff] %v5480_v20  ;;  %v5294_v56 = vadd.f32 %v5153_v29, %v4663_v2  ;;  %v5295_v50 = vadd.f32 %v5154_v60, %v4664_v3  ;;  %v5393_v24 = vadd.f32 %v12302_v31, %v5293_v42  ;;  %v12604_v25 = vadd.f32 %v4009_v51, %v15748_v58  ;;  %v15750_v49 = vld [vmem:[#allocation35_spill] sm:$0xff] }
 0x7ac   : > { %v12597_v61 = vsel %vm6122_vm1, %v6128_v44, %v15746_v16  ;;  %v4010_v45 = vrot.slane %v15750_v49, 2  ;;  %v4011_v20 = vrot.slane %v15750_v49, 4  ;;  %v12612_v44 = vsel %vm5558_vm0, %v5722_v11, 0.0  ;;  %5727 = vst [vmem:[#allocation1 + $0x20] ss:$4 sm:$0xff] %v5481_v4 }
 0x7ad   : > { %15747 = vst [vmem:[#allocation177_spill] sm:$0xff] %v12597_v61  ;;  %7402 = vmatmul.msk.f32.gmra.mxu3 %vm5881_vm15, %v12597_v61  ;;  %v4527_v3 = vrot.slane %v12345_v15, 6  ;;  %v5394_v60 = vadd.f32 %v12305_v55, %v5294_v56  ;;  %v5395_v42 = vadd.f32 %v12272_v8, %v5295_v50  ;;  %v5483_v51 = vmax.f32 %v5393_v24, 0.0 }
 0x7ae   : > { %15749 = vst [vmem:[#allocation185_spill] sm:$0xff] %v12604_v25  ;;  %v4012_v2 = vrot.slane %v15750_v49, 6  ;;  %v4665_v29 = vadd.f32 %v4524_v18, %v12192_v38  ;;  %v4666_v53 = vadd.f32 %v12345_v15, %v12216_v54  ;;  %v5155_v16 = vrot.slane %v5061_v57, 6  ;;  %v15751_v18 = vld [vmem:[#allocation154_spill] sm:$0xff]  ;;  %v15755_v25 = vld [vmem:[#allocation148_spill] sm:$0xff] }
 0x7af   : > { %5728 = vst [vmem:[#allocation1 + $0x21] ss:$4 sm:$0xff] %v5482_v46  ;;  %v4667_v11 = vadd.f32 %v4525_v47, %v12228_v28  ;;  %v4668_v4 = vadd.f32 %v4526_v17, %v12231_v30  ;;  %v5485_v58 = vmax.f32 %v5395_v42, 0.0  ;;  %v6131_v61 = vrot.slane %v12612_v44, 1  ;;  %v12628_v47 = vpop.f32.mrf.mxu2  ;;  %v12630_v30 = vpop.f32.mrf.mxu3 }
 0x7b0   : > { %5729 = vst [vmem:[#allocation1 + $0x22] ss:$4 sm:$0xff] %v5483_v51  ;;  %v4528_v50 = vrot.slane %v12418_v10, 2  ;;  %v4529_v46 = vrot.slane %v12418_v10, 4  ;;  %v5484_v56 = vmax.f32 %v5394_v60, 0.0  ;;  %v5064_v24 = vpop.f32.mrf.mxu0  ;;  %v4669_v62 = vadd.f32 %v4527_v3, %v15751_v18 }
 0x7b1   : > { %v5156_v54 = vrot.slane %v5064_v24, 2  ;;  %v5157_v15 = vrot.slane %v5064_v24, 4  ;;  %v5158_v57 = vrot.slane %v5064_v24, 6  ;;  %15752 = vst [vmem:[#allocation186_spill] sm:$0xff] %v12628_v47  ;;  %v6283_v17 = vrot.slane %v12538_v63, 2 }
 0x7b2   : > { %v5731_v28 = vld.sshfl [vmem:[#allocation1] sm:$0xff pattern:$0x73625140]  ;;  %v5296_v42 = vadd.f32 %v5155_v16, %v4665_v29  ;;  %v5297_v51 = vadd.f32 %v5064_v24, %v4666_v53  ;;  %v15754_v18 = vrot.slane %v12573_v1, 1  ;;  %v12646_v63 = vadd.f32 %v15750_v49, %v15755_v25  ;;  %5730 = vst [vmem:[#allocation1 + $0x23] ss:$4 sm:$0xff] %v5484_v56 }
 0x7b3   : > { %v12635_v60 = vsel %vm5553_vm11, %v5731_v28, 0.0  ;;  %5733 = vst [vmem:[#allocation1] ss:$4 sm:$0xff] %v5485_v58  ;;  %v5298_v38 = vadd.f32 %v5156_v54, %v4667_v11  ;;  %v5299_v7 = vadd.f32 %v5157_v15, %v4668_v4  ;;  %v5300_v3 = vadd.f32 %v5158_v57, %v4669_v62  ;;  %v15758_v11 = vld [vmem:[#allocation137_spill] sm:$0xff]  ;;  %v15759_v49 = vld [vmem:[#allocation88_spill] sm:$0xff] }
 0x7b4   : > { %15753 = vst [vmem:[#allocation47_spill] sm:$0xff] %v12635_v60  ;;  %7370 = vmatmul.msk.f32.gmra.mxu1 %vm5881_vm15, %v12635_v60  ;;  %v12642_v47 = vsel %vm6122_vm1, %v15754_v18, %v6131_v61  ;;  %v4530_v29 = vrot.slane %v12418_v10, 6  ;;  %7436 = vmatmul.msk.f32.gmra.mxu2 %vm5881_vm15, %v12635_v60  ;;  %v15756_v62 = vrot.slane %v12573_v1, 2  ;;  %v15757_v61 = vld [vmem:[#allocation206_spill] sm:$0xff]  ;;  %v12662_v25 = vadd.f32 %v4011_v20, %v15758_v11 }
 0x7b5   : > { %7403 = vmatmul.msk.f32.gmra.mxu3 %vm5881_vm15, %v12642_v47  ;;  %v12659_v16 = vadd.f32 %v4010_v45, %v15757_v61  ;;  %v12665_v4 = vadd.f32 %v4012_v2, %v15759_v49  ;;  %v5400_v58 = vadd.f32 %v12272_v8, %v5300_v3  ;;  %v5396_v56 = vadd.f32 %v12272_v8, %v5296_v42 }
 0x7b6   : > { %v12656_v53 = vsel %vm5995_vm9, %v6283_v17, %v15756_v62  ;;  %v5397_v24 = vadd.f32 %v12299_v19, %v5297_v51  ;;  %v5398_v54 = vadd.f32 %v12302_v31, %v5298_v38  ;;  %v5399_v45 = vadd.f32 %v12305_v55, %v5299_v7 }
 0x7b7   : > { %7468 = vmatmul.msk.f32.vlgmr.msra.gmra.mxu0 %vm5881_vm15, %v12656_v53  ;;  %v4670_v20 = vadd.f32 %v12418_v10, %v12266_v22  ;;  %v4671_v15 = vadd.f32 %v4528_v50, %v12276_v26  ;;  %v4672_v2 = vadd.f32 %v4529_v46, %v12279_v35  ;;  %v5490_v57 = vmax.f32 %v5400_v58, 0.0  ;;  %v12688_v58 = vpop.f32.mrf.mxu3 }
 0x7b8   : > { %v4673_v28 = vadd.f32 %v4530_v29, %v12284_v37  ;;  %v4531_v17 = vrot.slane %v12467_v33, 2  ;;  %v4532_v42 = vrot.slane %v12467_v33, 4  ;;  %v5067_v3 = vpop.f32.mrf.mxu0  ;;  %v6286_v51 = vrot.slane %v12612_v44, 2  ;;  %v12686_v44 = vpop.f32.mrf.mxu2 }
 0x7b9   : > { %v5159_v38 = vrot.slane %v5067_v3, 2  ;;  %v5160_v18 = vrot.slane %v5067_v3, 4  ;;  %v5161_v7 = vrot.slane %v5067_v3, 6  ;;  %v5301_v62 = vadd.f32 %v5067_v3, %v4670_v20  ;;  %v12683_v11 = vld.sshfl [vmem:[#allocation1 + $0x20] sm:$0xff pattern:$0x73625140] }
 0x7ba   : > { %v5734_v61 = vld.sshfl [vmem:[#allocation1] sm:$0xff pattern:$0x73625140]  ;;  %v5486_v22 = vmax.f32 %v5396_v56, 0.0  ;;  %v5487_v10 = vmax.f32 %v5397_v24, 0.0  ;;  %v5488_v26 = vmax.f32 %v5398_v54, 0.0  ;;  %v4674_v3 = vadd.f32 %v12467_v33, %v12361_v32 }
 0x7bb   : > { %v5489_v50 = vmax.f32 %v5399_v45, 0.0  ;;  %5740 = vst [vmem:[#allocation1] ss:$4 sm:$0xff] %v5490_v57  ;;  %v5302_v35 = vadd.f32 %v5159_v38, %v4671_v15  ;;  %v5303_v46 = vadd.f32 %v5160_v18, %v4672_v2  ;;  %v5304_v37 = vadd.f32 %v5161_v7, %v4673_v28  ;;  %v15762_v20 = vld [vmem:[#allocation174_spill] sm:$0xff] }
 0x7bc   : > { %v5401_v29 = vadd.f32 %v12299_v19, %v5301_v62  ;;  %15760 = vst [vmem:[#allocation34_spill] sm:$0xff] %v12683_v11  ;;  %v4533_v49 = vrot.slane %v12467_v33, 6  ;;  %7371 = vmatmul.msk.f32.gmra.mxu1 %vm5881_vm15, %v12683_v11  ;;  %7437 = vmatmul.msk.f32.gmra.mxu2 %vm5881_vm15, %v12683_v11  ;;  %v15761_v56 = vrot.slane %v12573_v1, 2  ;;  %v6133_v54 = vrot.slane %v12635_v60, 1 }
 0x7bd   : > { %5735 = vst [vmem:[#allocation1 + $0x20] ss:$4 sm:$0xff] %v5486_v22  ;;  %v6134_v45 = vrot.slane %v12683_v11, 1  ;;  %v4013_v15 = vrot.slane %v15762_v20, 2  ;;  %v5402_v2 = vadd.f32 %v12302_v31, %v5302_v35  ;;  %v5403_v57 = vadd.f32 %v12305_v55, %v5303_v46 }
 0x7be   : > { %v12697_v24 = vsel %vm5995_vm9, %v15761_v56, %v6286_v51  ;;  %v5491_v28 = vmax.f32 %v5401_v29, 0.0  ;;  %5736 = vst [vmem:[#allocation1 + $0x21] ss:$4 sm:$0xff] %v5487_v10  ;;  %v4014_v1 = vrot.slane %v15762_v20, 4  ;;  %v4675_v51 = vadd.f32 %v4531_v17, %v12410_v0 }
 0x7bf   : > { %7469 = vmatmul.msk.f32.gmra.mxu0 %vm5881_vm15, %v12697_v24  ;;  %5737 = vst [vmem:[#allocation1 + $0x22] ss:$4 sm:$0xff] %v5488_v26  ;;  %v12711_v38 = vsel %vm6122_vm1, %v6133_v54, %v6134_v45  ;;  %v5404_v18 = vadd.f32 %v12272_v8, %v5304_v37  ;;  %v5492_v7 = vmax.f32 %v5402_v2, 0.0  ;;  %v5493_v62 = vmax.f32 %v5403_v57, 0.0  ;;  %v15763_v2 = vld [vmem:[#allocation81_spill] sm:$0xff] }
 0x7c0   : > { %5738 = vst [vmem:[#allocation1 + $0x23] ss:$4 sm:$0xff] %v5489_v50  ;;  %7404 = vmatmul.msk.f32.gmra.mxu3 %vm5881_vm15, %v12711_v38  ;;  %v12718_v22 = vsel %vm5558_vm0, %v5734_v61, 0.0  ;;  %v4676_v32 = vadd.f32 %v4532_v42, %v12413_v9  ;;  %v4677_v0 = vadd.f32 %v4533_v49, %v12416_v12  ;;  %v4534_v33 = vrot.slane %v12532_v34, 2  ;;  %v5070_v17 = vpop.f32.mrf.mxu0 }
 0x7c1   : > { %v6289_v10 = vrot.slane %v12683_v11, 2  ;;  %5741 = vst [vmem:[#allocation1 + $0x1] ss:$4 sm:$0xff] %v5491_v28  ;;  %v5162_v26 = vrot.slane %v5070_v17, 2  ;;  %v5163_v35 = vrot.slane %v5070_v17, 4  ;;  %v5164_v50 = vrot.slane %v5070_v17, 6  ;;  %v12733_v28 = vpop.f32.mrf.mxu2 }
 0x7c2   : > { %v5305_v46 = vadd.f32 %v5070_v17, %v4674_v3  ;;  %5742 = vst [vmem:[#allocation1 + $0x2] ss:$4 sm:$0xff] %v5492_v7  ;;  %v4535_v37 = vrot.slane %v12532_v34, 4  ;;  %v4536_v61 = vrot.slane %v12532_v34, 6  ;;  %v6288_v29 = vrot.slane %v12635_v60, 2 }
 0x7c3   : > { %v6136_v9 = vrot.slane %v12718_v22, 1  ;;  %5743 = vst [vmem:[#allocation1 + $0x3] ss:$4 sm:$0xff] %v5493_v62  ;;  %v5494_v12 = vmax.f32 %v5404_v18, 0.0  ;;  %v5306_v42 = vadd.f32 %v5162_v26, %v4675_v51  ;;  %v5307_v49 = vadd.f32 %v5163_v35, %v4676_v32  ;;  %v15765_v62 = vld [vmem:[#allocation72_spill] sm:$0xff] }
 0x7c4   : > { %v5308_v56 = vadd.f32 %v5164_v50, %v4677_v0  ;;  %v4015_v54 = vrot.slane %v15762_v20, 6  ;;  %v12731_v57 = vadd.f32 %v15762_v20, %v15763_v2  ;;  %15764 = vst [vmem:[#allocation36_spill] sm:$0xff] %v12733_v28  ;;  %v5405_v3 = vadd.f32 %v12272_v8, %v5305_v46  ;;  %v15766_v20 = vld [vmem:[#allocation80_spill] sm:$0xff]  ;;  %v12755_v50 = vpop.f32.mrf.mxu3 }
 0x7c5   : > { %v12739_v7 = vsel %vm5995_vm9, %v6288_v29, %v6289_v10  ;;  %v12742_v18 = vadd.f32 %v4013_v15, %v15765_v62  ;;  %v5406_v51 = vadd.f32 %v12299_v19, %v5306_v42  ;;  %v5407_v32 = vadd.f32 %v12302_v31, %v5307_v49 }
 0x7c6   : > { %v5408_v0 = vadd.f32 %v12305_v55, %v5308_v56  ;;  %v12750_v17 = vadd.f32 %v4014_v1, %v15766_v20  ;;  %v4678_v26 = vadd.f32 %v12532_v34, %v12445_v48  ;;  %v4679_v35 = vadd.f32 %v4534_v33, %v12454_v6 }
 0x7c7   : > { %7470 = vmatmul.msk.f32.gmra.mxu0 %vm5881_vm15, %v12739_v7  ;;  %v5739_v15 = vld.sshfl [vmem:[#allocation1 + $0x20] sm:$0xff pattern:$0x73625140]  ;;  %v12758_v46 = vsel %vm6122_vm1, %v6134_v45, %v6136_v9  ;;  %v4680_v29 = vadd.f32 %v4535_v37, %v12457_v40  ;;  %v4681_v42 = vadd.f32 %v4536_v61, %v12460_v59  ;;  %v5496_v49 = vmax.f32 %v5406_v51, 0.0 }
 0x7c8   : > { %v12764_v1 = vsel %vm5553_vm11, %v5739_v15, 0.0  ;;  %5744 = vst [vmem:[#allocation1 + $0x20] ss:$4 sm:$0xff] %v5494_v12  ;;  %7405 = vmatmul.msk.f32.gmra.mxu3 %vm5881_vm15, %v12758_v46  ;;  %v5495_v6 = vmax.f32 %v5405_v3, 0.0  ;;  %v5497_v48 = vmax.f32 %v5407_v32, 0.0  ;;  %v5498_v34 = vmax.f32 %v5408_v0, 0.0  ;;  %v5073_v40 = vpop.f32.mrf.mxu0 }
 0x7c9   : > { %15767 = vst [vmem:[#allocation138_spill] sm:$0xff] %v12764_v1  ;;  %7372 = vmatmul.msk.f32.gmra.mxu1 %vm5881_vm15, %v12764_v1  ;;  %7438 = vmatmul.msk.f32.gmra.mxu2 %vm5881_vm15, %v12764_v1  ;;  %v6291_v59 = vrot.slane %v12718_v22, 2  ;;  %v5165_v45 = vrot.slane %v5073_v40, 2  ;;  %v5166_v33 = vrot.slane %v5073_v40, 4  ;;  %v5167_v37 = vrot.slane %v5073_v40, 6  ;;  %v15769_v12 = vld [vmem:[#allocation33_spill] sm:$0xff] }
 0x7ca   : > { %v5309_v61 = vadd.f32 %v5073_v40, %v4678_v26  ;;  %v12773_v9 = vld.sshfl [vmem:[#allocation1] sm:$0xff pattern:$0x73625140]  ;;  %v12776_v56 = vadd.f32 %v4015_v54, %v15769_v12  ;;  %v4537_v2 = vrot.slane %v12583_v43, 2  ;;  %v6138_v3 = vrot.slane %v12764_v1, 1  ;;  %v12804_v40 = vpop.f32.mrf.mxu2 }
 0x7cb   : > { %15768 = vst [vmem:[#allocation54_spill] sm:$0xff] %v12773_v9  ;;  %v6139_v62 = vrot.slane %v12773_v9, 1  ;;  %v5310_v51 = vadd.f32 %v5165_v45, %v4679_v35  ;;  %v5311_v32 = vadd.f32 %v5166_v33, %v4680_v29  ;;  %v5312_v0 = vadd.f32 %v5167_v37, %v4681_v42 }
 0x7cc   : > { %5747 = vst [vmem:[#allocation1] ss:$4 sm:$0xff] %v5495_v6  ;;  %v5409_v22 = vadd.f32 %v12272_v8, %v5309_v61  ;;  %v4538_v20 = vrot.slane %v12583_v43, 4  ;;  %v4539_v26 = vrot.slane %v12583_v43, 6  ;;  %v12787_v54 = vsel %vm5995_vm9, %v6289_v10, %v6291_v59 }
 0x7cd   : > { %5748 = vst [vmem:[#allocation1 + $0x1] ss:$4 sm:$0xff] %v5496_v49  ;;  %v12792_v15 = vsel %vm6122_vm1, %v6138_v3, %v6139_v62  ;;  %v5410_v35 = vadd.f32 %v12299_v19, %v5310_v51  ;;  %v5411_v8 = vadd.f32 %v12302_v31, %v5311_v32  ;;  %v5412_v29 = vadd.f32 %v12305_v55, %v5312_v0 }
 0x7ce   : > { %5749 = vst [vmem:[#allocation1 + $0x2] ss:$4 sm:$0xff] %v5497_v48  ;;  %v5499_v42 = vmax.f32 %v5409_v22, 0.0  ;;  %v4016_v49 = vrot.slane %v12281_v13, 2  ;;  %v4017_v10 = vrot.slane %v12281_v13, 4  ;;  %v4018_v6 = vrot.slane %v12281_v13, 6 }
 0x7cf   : > { %5750 = vst [vmem:[#allocation1 + $0x3] ss:$4 sm:$0xff] %v5498_v34  ;;  %7471 = vmatmul.msk.f32.gmra.mxu0 %vm5881_vm15, %v12787_v54  ;;  %v4682_v48 = vadd.f32 %v12583_v43, %v12525_v5  ;;  %v5746_v59 = vld.sshfl [vmem:[#allocation1 + $0x20] sm:$0xff pattern:$0x73625140]  ;;  %v5500_v45 = vmax.f32 %v5410_v35, 0.0  ;;  %v4683_v61 = vadd.f32 %v4537_v2, %v12528_v27  ;;  %v4684_v12 = vadd.f32 %v4538_v20, %v12549_v39  ;;  %v12815_v43 = vpop.f32.mrf.mxu3 }
 0x7d0   : > { %15770 = vst [vmem:[#allocation78_spill] sm:$0xff] %v12804_v40  ;;  %v5501_v33 = vmax.f32 %v5411_v8, 0.0  ;;  %v5502_v37 = vmax.f32 %v5412_v29, 0.0  ;;  %7406 = vmatmul.msk.f32.gmra.mxu3 %vm5881_vm15, %v12792_v15  ;;  %v12810_v34 = vsel %vm5558_vm0, %v5746_v59, 0.0  ;;  %v4685_v5 = vadd.f32 %v4539_v26, %v12552_v36  ;;  %v5076_v3 = vpop.f32.mrf.mxu0  ;;  %v12829_v29 = vld [vmem:[%s13826_s2] ss:$0 sm:$0xff] }
 0x7d1   : > { %5751 = vst [vmem:[#allocation1 + $0x20] ss:$4 sm:$0xff] %v5499_v42  ;;  %7373 = vmatmul.msk.f32.gmra.mxu1 %vm5881_vm15, %v12773_v9  ;;  %7439 = vmatmul.msk.f32.gmra.mxu2 %vm5881_vm15, %v12773_v9  ;;  %v14285_v51 = vrot.slane %v12773_v9, 2  ;;  %v5168_v32 = vrot.slane %v5076_v3, 2  ;;  %v5169_v0 = vrot.slane %v5076_v3, 4  ;;  %v5170_v22 = vrot.slane %v5076_v3, 6 }
 0x7d2   : > { %v5313_v35 = vadd.f32 %v5076_v3, %v4682_v48  ;;  %5752 = vst [vmem:[#allocation1 + $0x21] ss:$4 sm:$0xff] %v5500_v45  ;;  %v4540_v27 = vrot.slane %v12630_v30, 2  ;;  %v4541_v39 = vrot.slane %v12630_v30, 4  ;;  %v6293_v36 = vrot.slane %v12764_v1, 2  ;;  %v15771_v48 = vld [vmem:[#allocation111_spill] sm:$0xff] }
 0x7d3   : > { %v6141_v2 = vrot.slane %v12810_v34, 1  ;;  %5753 = vst [vmem:[#allocation1 + $0x22] ss:$4 sm:$0xff] %v5501_v33  ;;  %v5314_v20 = vadd.f32 %v5168_v32, %v4683_v61  ;;  %v5315_v26 = vadd.f32 %v5169_v0, %v4684_v12  ;;  %v5316_v8 = vadd.f32 %v5170_v22, %v4685_v5  ;;  %v15772_v45 = vld [vmem:[#allocation153_spill] sm:$0xff]  ;;  %v15774_v22 = vld [vmem:[#allocation86_spill] sm:$0xff] }
 0x7d4   : > { %v5413_v42 = vadd.f32 %v12829_v29, %v5313_v35  ;;  %5754 = vst [vmem:[#allocation1 + $0x23] ss:$4 sm:$0xff] %v5502_v37  ;;  %v12834_v59 = vadd.f32 %v12281_v13, %v15771_v48  ;;  %v12837_v3 = vadd.f32 %v4016_v49, %v15772_v45  ;;  %v4542_v33 = vrot.slane %v12630_v30, 6  ;;  %v15773_v13 = vld [vmem:[#allocation30_spill] sm:$0xff]  ;;  %v12872_v45 = vpop.f32.mrf.mxu2 }
 0x7d5   : > { %v12843_v12 = vsel %vm5995_vm9, %v6293_v36, %v14285_v51  ;;  %v5414_v5 = vadd.f32 %v12829_v29, %v5314_v20  ;;  %v5415_v32 = vadd.f32 %v12299_v19, %v5315_v26  ;;  %v5416_v37 = vadd.f32 %v12302_v31, %v5316_v8  ;;  %15777 = vst [vmem:[#allocation75_spill] sm:$0xff] %v12872_v45 }
 0x7d6   : > { %v5755_v61 = vld.sshfl [vmem:[#allocation1] sm:$0xff pattern:$0x73625140]  ;;  %v5503_v0 = vmax.f32 %v5413_v42, 0.0  ;;  %v12851_v49 = vadd.f32 %v4017_v10, %v15773_v13  ;;  %v12854_v35 = vadd.f32 %v4018_v6, %v15774_v22  ;;  %v12863_v20 = vsel %vm6122_vm1, %v6139_v62, %v6141_v2  ;;  %v15776_v6 = vld [vmem:[#allocation185_spill] sm:$0xff] }
 0x7d7   : > { %7472 = vmatmul.msk.f32.gmra.mxu0 %vm5881_vm15, %v12843_v12  ;;  %v12858_v36 = vsel %vm5553_vm11, %v5755_v61, 0.0  ;;  %v4686_v26 = vadd.f32 %v12630_v30, %v12568_v41  ;;  %v4687_v8 = vadd.f32 %v4540_v27, %v12571_v21  ;;  %v4688_v10 = vadd.f32 %v4541_v39, %v12590_v23  ;;  %v15778_v39 = vld [vmem:[#allocation44_spill] sm:$0xff] }
 0x7d8   : > { %15775 = vst [vmem:[#allocation113_spill] sm:$0xff] %v12858_v36  ;;  %v5504_v42 = vmax.f32 %v5414_v5, 0.0  ;;  %7407 = vmatmul.msk.f32.gmra.mxu3 %vm5881_vm15, %v12863_v20  ;;  %v4689_v48 = vadd.f32 %v4542_v33, %v15776_v6  ;;  %v5505_v61 = vmax.f32 %v5415_v32, 0.0  ;;  %v5506_v13 = vmax.f32 %v5416_v37, 0.0  ;;  %v5079_v41 = vpop.f32.mrf.mxu0  ;;  %v15779_v32 = vld [vmem:[#allocation147_spill] sm:$0xff] }
 0x7d9   : > { %5757 = vst [vmem:[#allocation1] ss:$4 sm:$0xff] %v5503_v0  ;;  %7374 = vmatmul.msk.f32.gmra.mxu1 %vm5881_vm15, %v12858_v36  ;;  %7440 = vmatmul.msk.f32.gmra.mxu2 %vm5881_vm15, %v12858_v36  ;;  %v6296_v21 = vrot.slane %v12810_v34, 2  ;;  %v5171_v23 = vrot.slane %v5079_v41, 2  ;;  %v5172_v30 = vrot.slane %v5079_v41, 4  ;;  %v5173_v62 = vrot.slane %v5079_v41, 6  ;;  %v12886_v0 = vpop.f32.mrf.mxu3 }
 0x7da   : > { %v5317_v27 = vadd.f32 %v5079_v41, %v4686_v26  ;;  %v4019_v2 = vrot.slane %v15778_v39, 2  ;;  %v4020_v33 = vrot.slane %v15778_v39, 4  ;;  %v4021_v5 = vrot.slane %v15778_v39, 6 }
 0x7db   : > { %v12884_v37 = vadd.f32 %v15778_v39, %v15779_v32  ;;  %v12888_v22 = vld.sshfl [vmem:[#allocation1 + $0x20] sm:$0xff pattern:$0x73625140]  ;;  %v5318_v6 = vadd.f32 %v5171_v23, %v4687_v8  ;;  %v5319_v34 = vadd.f32 %v5172_v30, %v4688_v10  ;;  %v5320_v51 = vadd.f32 %v5173_v62, %v4689_v48 }
 0x7dc   : > { %15780 = vst [vmem:[#allocation49_spill] sm:$0xff] %v12888_v22  ;;  %v5417_v45 = vadd.f32 %v12305_v55, %v5317_v27  ;;  %v4543_v26 = vrot.slane %v12688_v58, 2  ;;  %v15781_v41 = vrot.slane %v12773_v9, 2  ;;  %v6143_v39 = vrot.slane %v12858_v36, 1 }
 0x7dd   : > { %5759 = vst [vmem:[#allocation1 + $0x20] ss:$4 sm:$0xff] %v5504_v42  ;;  %v6144_v32 = vrot.slane %v12888_v22, 1  ;;  %v5418_v28 = vadd.f32 %v12829_v29, %v5318_v6  ;;  %v5419_v8 = vadd.f32 %v12299_v19, %v5319_v34  ;;  %v5420_v10 = vadd.f32 %v12302_v31, %v5320_v51  ;;  %v15783_v34 = vld [vmem:[#allocation104_spill] sm:$0xff] }
 0x7de   : > { %5760 = vst [vmem:[#allocation1 + $0x21] ss:$4 sm:$0xff] %v5505_v61  ;;  %v12895_v40 = vsel %vm5995_vm9, %v15781_v41, %v6296_v21  ;;  %v5507_v48 = vmax.f32 %v5417_v45, 0.0  ;;  %v4544_v42 = vrot.slane %v12688_v58, 4  ;;  %v4545_v61 = vrot.slane %v12688_v58, 6  ;;  %v15782_v45 = vld [vmem:[#allocation31_spill] sm:$0xff] }
 0x7df   : > { %5761 = vst [vmem:[#allocation1 + $0x22] ss:$4 sm:$0xff] %v5506_v13  ;;  %7473 = vmatmul.msk.f32.gmra.mxu0 %vm5881_vm15, %v12895_v40  ;;  %v4690_v21 = vadd.f32 %v12688_v58, %v12646_v63  ;;  %v12909_v23 = vsel %vm6122_vm1, %v6143_v39, %v6144_v32  ;;  %v5508_v62 = vmax.f32 %v5418_v28, 0.0  ;;  %v5509_v27 = vmax.f32 %v5419_v8, 0.0 }
 0x7e0   : > { %v5758_v30 = vld.sshfl [vmem:[#allocation1] sm:$0xff pattern:$0x73625140]  ;;  %v5510_v6 = vmax.f32 %v5420_v10, 0.0  ;;  %5762 = vst [vmem:[#allocation1 + $0x23] ss:$4 sm:$0xff] %v5507_v48  ;;  %7408 = vmatmul.msk.f32.gmra.mxu3 %vm5881_vm15, %v12909_v23  ;;  %v12918_v13 = vadd.f32 %v4019_v2, %v15782_v45  ;;  %v12921_v63 = vadd.f32 %v4020_v33, %v15783_v34  ;;  %v5082_v58 = vpop.f32.mrf.mxu0  ;;  %v4691_v39 = vadd.f32 %v4543_v26, %v12659_v16 }
 0x7e1   : > { %v12915_v51 = vsel %vm5558_vm0, %v5758_v30, 0.0  ;;  %7375 = vmatmul.msk.f32.gmra.mxu1 %vm5881_vm15, %v12888_v22  ;;  %7441 = vmatmul.msk.f32.gmra.mxu2 %vm5881_vm15, %v12888_v22  ;;  %v5174_v8 = vrot.slane %v5082_v58, 2  ;;  %v5175_v10 = vrot.slane %v5082_v58, 4  ;;  %v5321_v2 = vadd.f32 %v5082_v58, %v4690_v21  ;;  %5764 = vst [vmem:[#allocation1] ss:$4 sm:$0xff] %v5508_v62  ;;  %v12932_v30 = vpop.f32.mrf.mxu2  ;;  %v12939_v21 = vpop.f32.mrf.mxu3  ;;  %v15786_v62 = vld [vmem:[#allocation108_spill] sm:$0xff] }
 0x7e2   : > { %v6146_v41 = vrot.slane %v12915_v51, 1  ;;  %v4692_v33 = vadd.f32 %v4544_v42, %v12662_v25  ;;  %v4693_v48 = vadd.f32 %v4545_v61, %v12665_v4  ;;  %15784 = vst [vmem:[#allocation37_spill] sm:$0xff] %v12932_v30  ;;  %v5176_v45 = vrot.slane %v5082_v58, 6  ;;  %v15787_v58 = vld [vmem:[#allocation48_spill] sm:$0xff] }
 0x7e3   : > { %v6298_v34 = vrot.slane %v12858_v36, 2  ;;  %5765 = vst [vmem:[#allocation1 + $0x1] ss:$4 sm:$0xff] %v5509_v27  ;;  %v4546_v28 = vrot.slane %v12755_v50, 2  ;;  %v4547_v9 = vrot.slane %v12755_v50, 4  ;;  %v5322_v1 = vadd.f32 %v5174_v8, %v4691_v39 }
 0x7e4   : > { %v5421_v16 = vadd.f32 %v12305_v55, %v5321_v2  ;;  %5766 = vst [vmem:[#allocation1 + $0x2] ss:$4 sm:$0xff] %v5510_v6  ;;  %v4548_v26 = vrot.slane %v12755_v50, 6  ;;  %v5323_v25 = vadd.f32 %v5175_v10, %v4692_v33  ;;  %v15785_v4 = vrot.slane %v12888_v22, 2  ;;  %v15788_v33 = vld [vmem:[#allocation122_spill] sm:$0xff] }
 0x7e5   : > { %v12947_v61 = vsel %vm6122_vm1, %v6144_v32, %v6146_v41  ;;  %v12950_v27 = vadd.f32 %v4021_v5, %v15786_v62  ;;  %v4022_v39 = vrot.slane %v15787_v58, 2  ;;  %v5422_v6 = vadd.f32 %v12829_v29, %v5322_v1 }
 0x7e6   : > { %v12944_v42 = vsel %vm5995_vm9, %v6298_v34, %v15785_v4  ;;  %v5511_v8 = vmax.f32 %v5421_v16, 0.0  ;;  %v4023_v10 = vrot.slane %v15787_v58, 4  ;;  %v12960_v34 = vadd.f32 %v15787_v58, %v15788_v33 }
 0x7e7   : > { %7474 = vmatmul.msk.f32.gmra.mxu0 %vm5881_vm15, %v12944_v42  ;;  %v5324_v32 = vadd.f32 %v5176_v45, %v4693_v48  ;;  %v5763_v41 = vld.sshfl [vmem:[#allocation1 + $0x20] sm:$0xff pattern:$0x73625140]  ;;  %v4694_v5 = vadd.f32 %v12755_v50, %v12731_v57  ;;  %v4695_v4 = vadd.f32 %v4546_v28, %v12742_v18  ;;  %v5512_v1 = vmax.f32 %v5422_v6, 0.0 }
 0x7e8   : > { %7409 = vmatmul.msk.f32.gmra.mxu3 %vm5881_vm15, %v12947_v61  ;;  %5767 = vst [vmem:[#allocation1 + $0x3] ss:$4 sm:$0xff] %v5511_v8  ;;  %v12969_v16 = vsel %vm5553_vm11, %v5763_v41, 0.0  ;;  %v4696_v62 = vadd.f32 %v4547_v9, %v12750_v17  ;;  %v4697_v33 = vadd.f32 %v4548_v26, %v12776_v56  ;;  %v5423_v48 = vadd.f32 %v12829_v29, %v5323_v25  ;;  %v5085_v45 = vpop.f32.mrf.mxu0  ;;  %v15790_v8 = vld [vmem:[#allocation110_spill] sm:$0xff] }
 0x7e9   : > { %15789 = vst [vmem:[#allocation55_spill] sm:$0xff] %v12969_v16  ;;  %7376 = vmatmul.msk.f32.gmra.mxu1 %vm5881_vm15, %v12969_v16  ;;  %7442 = vmatmul.msk.f32.gmra.mxu2 %vm5881_vm15, %v12969_v16  ;;  %v6301_v57 = vrot.slane %v12915_v51, 2  ;;  %v5177_v18 = vrot.slane %v5085_v45, 2  ;;  %v5178_v50 = vrot.slane %v5085_v45, 4  ;;  %v5179_v28 = vrot.slane %v5085_v45, 6  ;;  %v15791_v9 = vld [vmem:[#allocation94_spill] sm:$0xff] }
 0x7ea   : > { %v5325_v6 = vadd.f32 %v5085_v45, %v4694_v5  ;;  %5768 = vst [vmem:[#allocation1 + $0x20] ss:$4 sm:$0xff] %v5512_v1  ;;  %v12980_v17 = vadd.f32 %v4022_v39, %v15790_v8  ;;  %v12983_v56 = vadd.f32 %v4023_v10, %v15791_v9  ;;  %v15792_v26 = vld [vmem:[#allocation46_spill] sm:$0xff]  ;;  %v5424_v41 = vadd.f32 %v12299_v19, %v5324_v32  ;;  %v12990_v1 = vpop.f32.mrf.mxu2 }
 0x7eb   : > { %v4025_v25 = vrot.slane %v15792_v26, 2  ;;  %v5326_v2 = vadd.f32 %v5177_v18, %v4695_v4  ;;  %v5327_v30 = vadd.f32 %v5178_v50, %v4696_v62  ;;  %v5328_v36 = vadd.f32 %v5179_v28, %v4697_v33  ;;  %15793 = vst [vmem:[#allocation56_spill] sm:$0xff] %v12990_v1  ;;  %v13003_v18 = vpop.f32.mrf.mxu3 }
 0x7ec   : > { %v5425_v51 = vadd.f32 %v12302_v31, %v5325_v6  ;;  %v4549_v11 = vrot.slane %v12815_v43, 2  ;;  %v4550_v5 = vrot.slane %v12815_v43, 4  ;;  %v5513_v39 = vmax.f32 %v5423_v48, 0.0 }
 0x7ed   : > { %v15794_v45 = vrot.slane %v12888_v22, 2  ;;  %v5426_v8 = vadd.f32 %v12305_v55, %v5326_v2  ;;  %v5427_v32 = vadd.f32 %v12829_v29, %v5327_v30  ;;  %v5428_v4 = vadd.f32 %v12299_v19, %v5328_v36 }
 0x7ee   : > { %v5515_v62 = vmax.f32 %v5425_v51, 0.0  ;;  %v4026_v33 = vrot.slane %v15792_v26, 4  ;;  %v5514_v48 = vmax.f32 %v5424_v41, 0.0  ;;  %v4698_v50 = vadd.f32 %v12815_v43, %v12834_v59 }
 0x7ef   : > { %v12995_v10 = vsel %vm5995_vm9, %v15794_v45, %v6301_v57  ;;  %v13007_v57 = vld.sshfl [vmem:[#allocation1] sm:$0xff pattern:$0x73625140]  ;;  %v6148_v2 = vrot.slane %v12969_v16, 1  ;;  %v5516_v28 = vmax.f32 %v5426_v8, 0.0  ;;  %v5517_v30 = vmax.f32 %v5427_v32, 0.0 }
 0x7f0   : > { %15795 = vst [vmem:[#allocation58_spill] sm:$0xff] %v12995_v10  ;;  %7475 = vmatmul.msk.f32.gmra.mxu0 %vm5881_vm15, %v12995_v10  ;;  %v6303_v6 = vrot.slane %v12969_v16, 2  ;;  %v4699_v9 = vadd.f32 %v4549_v11, %v12837_v3  ;;  %v4700_v51 = vadd.f32 %v4550_v5, %v12851_v49  ;;  %v5088_v45 = vpop.f32.mrf.mxu0  ;;  %v14290_v59 = vrot.slane %v13007_v57, 2 }
 0x7f1   : > { %15796 = vst [vmem:[#allocation168_spill] sm:$0xff] %v13007_v57  ;;  %7377 = vmatmul.msk.f32.gmra.mxu1 %vm5881_vm15, %v13007_v57  ;;  %7443 = vmatmul.msk.f32.gmra.mxu2 %vm5881_vm15, %v13007_v57  ;;  %v5770_v41 = vld.sshfl [vmem:[#allocation1 + $0x20] sm:$0xff pattern:$0x73625140]  ;;  %v5180_v8 = vrot.slane %v5088_v45, 2  ;;  %v5181_v32 = vrot.slane %v5088_v45, 4  ;;  %v5329_v36 = vadd.f32 %v5088_v45, %v4698_v50 }
 0x7f2   : > { %5771 = vst [vmem:[#allocation1] ss:$4 sm:$0xff] %v5513_v39  ;;  %v5518_v39 = vmax.f32 %v5428_v4, 0.0  ;;  %v4551_v11 = vrot.slane %v12815_v43, 6  ;;  %v4552_v3 = vrot.slane %v12886_v0, 2  ;;  %v15797_v49 = vrot.slane %v13007_v57, 1 }
 0x7f3   : > { %5772 = vst [vmem:[#allocation1 + $0x1] ss:$4 sm:$0xff] %v5514_v48  ;;  %v13029_v48 = vsel %vm5995_vm9, %v6303_v6, %v14290_v59  ;;  %v5330_v4 = vadd.f32 %v5180_v8, %v4699_v9  ;;  %v5331_v1 = vadd.f32 %v5181_v32, %v4700_v51  ;;  %v5429_v50 = vadd.f32 %v12302_v31, %v5329_v36  ;;  %v15803_v59 = vld [vmem:[#allocation162_spill] sm:$0xff] }
 0x7f4   : > { %5773 = vst [vmem:[#allocation1 + $0x2] ss:$4 sm:$0xff] %v5515_v62  ;;  %v13024_v5 = vsel %vm6122_vm1, %v6148_v2, %v15797_v49  ;;  %v5866_v43 = vsel %vm5558_vm0, %v5770_v41, 0.0  ;;  %v15799_v62 = vld [vmem:[#allocation161_spill] sm:$0xff]  ;;  %v4027_v49 = vrot.slane %v15792_v26, 6  ;;  %v4553_v6 = vrot.slane %v12886_v0, 4 }
 0x7f5   : > { %5774 = vst [vmem:[#allocation1 + $0x3] ss:$4 sm:$0xff] %v5516_v28  ;;  %7410 = vmatmul.msk.f32.gmra.mxu3 %vm5881_vm15, %v13024_v5  ;;  %v15800_v28 = vrot.slane %v15787_v58, 6  ;;  %v4554_v9 = vrot.slane %v12886_v0, 6  ;;  %v5182_v51 = vrot.slane %v5088_v45, 6  ;;  %v5430_v36 = vadd.f32 %v12305_v55, %v5330_v4  ;;  %v15801_v58 = vld [vmem:[#allocation145_spill] sm:$0xff] }
 0x7f6   : > { %15798 = vst [vmem:[#allocation124_spill] sm:$0xff] %v13029_v48  ;;  %v5431_v8 = vadd.f32 %v12829_v29, %v5331_v1  ;;  %v5519_v32 = vmax.f32 %v5429_v50, 0.0  ;;  %v13050_v41 = vadd.f32 %v15792_v26, %v15801_v58  ;;  %v13056_v16 = vadd.f32 %v4026_v33, %v15803_v59  ;;  %v13064_v26 = vpop.f32.mrf.mxu3 }
 0x7f7   : > { %v13039_v2 = vadd.f32 %v15800_v28, %v15799_v62  ;;  %5775 = vst [vmem:[#allocation1 + $0x20] ss:$4 sm:$0xff] %v5517_v30  ;;  %v15802_v62 = vld [vmem:[#allocation164_spill] sm:$0xff]  ;;  %v13058_v30 = vpop.f32.mrf.mxu2  ;;  %v6151_v45 = vrot.slane %v5866_v43, 1  ;;  %v4701_v1 = vadd.f32 %v4551_v11, %v12854_v35  ;;  %v4702_v50 = vadd.f32 %v12886_v0, %v12884_v37  ;;  %v15805_v37 = vld [vmem:[#allocation175_spill] sm:$0xff] }
 0x7f8   : > { %7476 = vmatmul.msk.f32.gmra.mxu0 %vm5881_vm15, %v13029_v48  ;;  %5776 = vst [vmem:[#allocation1 + $0x21] ss:$4 sm:$0xff] %v5518_v39  ;;  %v13053_v28 = vadd.f32 %v4025_v25, %v15802_v62  ;;  %v5521_v4 = vmax.f32 %v5431_v8, 0.0  ;;  %v4703_v39 = vadd.f32 %v4552_v3, %v12918_v13  ;;  %v5520_v58 = vmax.f32 %v5430_v36, 0.0  ;;  %v5091_v59 = vpop.f32.mrf.mxu0 }
 0x7f9   : > { %15804 = vst [vmem:[#allocation62_spill] sm:$0xff] %v13058_v30  ;;  %v4704_v25 = vadd.f32 %v4553_v6, %v12921_v63  ;;  %v4705_v33 = vadd.f32 %v4554_v9, %v12950_v27  ;;  %v6306_v62 = vrot.slane %v5866_v43, 2  ;;  %v13068_v30 = vpop.f32.mrf.mxu1  ;;  %v5332_v22 = vadd.f32 %v5182_v51, %v4701_v1 }
 0x7fa   : > { %5777 = vst [vmem:[#allocation1 + $0x22] ss:$4 sm:$0xff] %v5519_v32  ;;  %v5183_v35 = vrot.slane %v5091_v59, 2  ;;  %v5184_v11 = vrot.slane %v5091_v59, 4  ;;  %v5185_v8 = vrot.slane %v5091_v59, 6  ;;  %v4028_v0 = vrot.slane %v15805_v37, 2 }
 0x7fb   : > { %v4029_v13 = vrot.slane %v15805_v37, 4  ;;  %v15806_v63 = vrot.slane %v13007_v57, 1  ;;  %v5333_v43 = vadd.f32 %v5091_v59, %v4702_v50  ;;  %v15808_v32 = vld [vmem:[#allocation51_spill] sm:$0xff]  ;;  %5778 = vst [vmem:[#allocation1 + $0x23] ss:$4 sm:$0xff] %v5520_v58  ;;  %v4556_v50 = vrot.slane %v12939_v21, 4 }
 0x7fc   : > { %v5779_v60 = vld.sshfl [vmem:[#allocation1] sm:$0xff pattern:$0x73625140]  ;;  %v5334_v6 = vadd.f32 %v5183_v35, %v4703_v39  ;;  %v5335_v9 = vadd.f32 %v5184_v11, %v4704_v25  ;;  %v5336_v51 = vadd.f32 %v5185_v8, %v4705_v33  ;;  %v13085_v1 = vadd.f32 %v4027_v49, %v15808_v32  ;;  %v15811_v33 = vld [vmem:[#allocation173_spill] sm:$0xff]  ;;  %v15812_v35 = vld [vmem:[#allocation135_spill] sm:$0xff] }
 0x7fd   : > { %v13074_v3 = vsel %vm5553_vm11, %v5779_v60, 0.0  ;;  %5781 = vst [vmem:[#allocation1] ss:$4 sm:$0xff] %v5521_v4  ;;  %v13079_v27 = vsel %vm6122_vm1, %v15806_v63, %v6151_v45  ;;  %v4555_v60 = vrot.slane %v12939_v21, 2  ;;  %v15809_v45 = vrot.slane %v13007_v57, 2  ;;  %v15813_v11 = vld [vmem:[#allocation43_spill] sm:$0xff] }
 0x7fe   : > { %15807 = vst [vmem:[#allocation53_spill] sm:$0xff] %v13079_v27  ;;  %7378 = vmatmul.msk.f32.gmra.mxu1 %vm5881_vm15, %v13074_v3  ;;  %7411 = vmatmul.msk.f32.gmra.mxu3 %vm5881_vm15, %v13079_v27  ;;  %v4557_v39 = vrot.slane %v12939_v21, 6  ;;  %v5432_v49 = vadd.f32 %v12829_v29, %v5332_v22  ;;  %v5436_v25 = vadd.f32 %v12829_v29, %v5336_v51  ;;  %v4030_v58 = vrot.slane %v15805_v37, 6 }
 0x7ff   : > { %7444 = vmatmul.msk.f32.gmra.mxu2 %vm5881_vm15, %v13074_v3  ;;  %v13095_v4 = vsel %vm5995_vm9, %v15809_v45, %v6306_v62  ;;  %v13106_v59 = vadd.f32 %v15805_v37, %v15811_v33  ;;  %v13109_v62 = vadd.f32 %v4028_v0, %v15812_v35  ;;  %v13112_v8 = vadd.f32 %v4029_v13, %v15813_v11  ;;  %v13120_v33 = vpop.f32.mrf.mxu2  ;;  %v13127_v11 = vpop.f32.mrf.mxu3 }
 0x800   : > { %15810 = vst [vmem:[#allocation128_spill] sm:$0xff] %v13095_v4  ;;  %7477 = vmatmul.msk.f32.gmra.mxu0 %vm5881_vm15, %v13095_v4  ;;  %v5433_v63 = vadd.f32 %v12299_v19, %v5333_v43  ;;  %v5434_v22 = vadd.f32 %v12302_v31, %v5334_v6  ;;  %v5435_v51 = vadd.f32 %v12305_v55, %v5335_v9  ;;  %v5526_v32 = vmax.f32 %v5436_v25, 0.0  ;;  %v5094_v9 = vpop.f32.mrf.mxu0 }
 0x801   : > { %v4558_v45 = vrot.slane %v13003_v18, 2  ;;  %v4559_v36 = vrot.slane %v13003_v18, 4  ;;  %v4560_v37 = vrot.slane %v13003_v18, 6  ;;  %15814 = vst [vmem:[#allocation130_spill] sm:$0xff] %v13120_v33  ;;  %v4706_v0 = vadd.f32 %v12939_v21, %v12960_v34  ;;  %v15815_v33 = vld [vmem:[#allocation92_spill] sm:$0xff] }
 0x802   : > { %v5522_v13 = vmax.f32 %v5432_v49, 0.0  ;;  %v4707_v35 = vadd.f32 %v4555_v60, %v12980_v17  ;;  %v4708_v43 = vadd.f32 %v4556_v50, %v12983_v56  ;;  %v4709_v6 = vadd.f32 %v4557_v39, %v13039_v2  ;;  %v13132_v17 = vld.sshfl [vmem:[#allocation1 + $0x20] sm:$0xff pattern:$0x73625140] }
 0x803   : > { %v5186_v57 = vrot.slane %v5094_v9, 2  ;;  %v5187_v4 = vrot.slane %v5094_v9, 4  ;;  %v5188_v48 = vrot.slane %v5094_v9, 6  ;;  %v5337_v27 = vadd.f32 %v5094_v9, %v4706_v0  ;;  %15816 = vst [vmem:[#allocation63_spill] sm:$0xff] %v13132_v17 }
 0x804   : > { %v5782_v25 = vld.sshfl [vmem:[#allocation1] sm:$0xff pattern:$0x73625140]  ;;  %v13130_v10 = vadd.f32 %v4030_v58, %v15815_v33  ;;  %v5523_v21 = vmax.f32 %v5433_v63, 0.0  ;;  %v5524_v34 = vmax.f32 %v5434_v22, 0.0  ;;  %v5525_v49 = vmax.f32 %v5435_v51, 0.0 }
 0x805   : > { %5788 = vst [vmem:[#allocation1] ss:$4 sm:$0xff] %v5526_v32  ;;  %v5338_v56 = vadd.f32 %v5186_v57, %v4707_v35  ;;  %v5339_v60 = vadd.f32 %v5187_v4, %v4708_v43  ;;  %v5340_v2 = vadd.f32 %v5188_v48, %v4709_v6  ;;  %v5437_v50 = vadd.f32 %v12299_v19, %v5337_v27  ;;  %v15817_v57 = vld [vmem:[#allocation69_spill] sm:$0xff] }
 0x806   : > { %7379 = vmatmul.msk.f32.gmra.mxu1 %vm5881_vm15, %v13132_v17  ;;  %5783 = vst [vmem:[#allocation1 + $0x20] ss:$4 sm:$0xff] %v5522_v13  ;;  %v6153_v39 = vrot.slane %v13074_v3, 1  ;;  %v6154_v58 = vrot.slane %v13132_v17, 1  ;;  %v6308_v63 = vrot.slane %v13074_v3, 2  ;;  %v6309_v22 = vrot.slane %v13132_v17, 2 }
 0x807   : > { %7445 = vmatmul.msk.f32.gmra.mxu2 %vm5881_vm15, %v13132_v17  ;;  %v4031_v4 = vrot.slane %v15817_v57, 2  ;;  %v5438_v48 = vadd.f32 %v12302_v31, %v5338_v56  ;;  %v5439_v27 = vadd.f32 %v12305_v55, %v5339_v60  ;;  %v5527_v51 = vmax.f32 %v5437_v50, 0.0  ;;  %5784 = vst [vmem:[#allocation1 + $0x21] ss:$4 sm:$0xff] %v5523_v21  ;;  %v7518_v60 = vld [vmem:[%s13827_s3 + $0x40] sm:$0xff] }
 0x808   : > { %v4032_v32 = vrot.slane %v15817_v57, 4  ;;  %5785 = vst [vmem:[#allocation1 + $0x22] ss:$4 sm:$0xff] %v5524_v34  ;;  %v13148_v33 = vsel %vm6122_vm1, %v6153_v39, %v6154_v58  ;;  %v13151_v0 = vsel %vm5995_vm9, %v6308_v63, %v6309_v22  ;;  %v4710_v13 = vadd.f32 %v13003_v18, %v13050_v41  ;;  %v5097_v56 = vpop.f32.mrf.mxu0  ;;  %6913 = vmatpush.msra.mxu3 %v7518_v60  ;;  %v13179_v63 = vpop.f32.mrf.mxu3 }
 0x809   : > { %v5440_v35 = vadd.f32 %v12829_v29, %v5340_v2  ;;  %v5528_v43 = vmax.f32 %v5438_v48, 0.0  ;;  %v5529_v6 = vmax.f32 %v5439_v27, 0.0  ;;  %5786 = vst [vmem:[#allocation1 + $0x23] ss:$4 sm:$0xff] %v5525_v49  ;;  %7412 = vmatmul.msk.f32.gmra.mxu3 %vm5881_vm15, %v13148_v33  ;;  %7478 = vmatmul.msk.f32.gmra.mxu0 %vm5881_vm15, %v13151_v0  ;;  %v5869_v9 = vsel %vm5558_vm0, %v5782_v25, 0.0  ;;  %v7501_v49 = vld [vmem:[%s13827_s3 + $0x38] sm:$0xff]  ;;  %v13175_v2 = vpop.f32.mrf.mxu2 }
 0x80a   : > { %v4711_v34 = vadd.f32 %v4558_v45, %v13053_v28  ;;  %v4712_v18 = vadd.f32 %v4559_v36, %v13056_v16  ;;  %v4713_v41 = vadd.f32 %v4560_v37, %v13085_v1  ;;  %5789 = vst [vmem:[#allocation1 + $0x1] ss:$4 sm:$0xff] %v5527_v51  ;;  %v7484_v25 = vld [vmem:[%s13827_s3 + $0x30] sm:$0xff]  ;;  %v5189_v28 = vrot.slane %v5097_v56, 2  ;;  %6821 = vmatpush.msra.mxu2 %v7501_v49  ;;  %v13187_v60 = vpop.f32.mrf.mxu1 }
 0x80b   : > { %15818 = vst [vmem:[#allocation129_spill] sm:$0xff] %v13175_v2  ;;  %v5190_v16 = vrot.slane %v5097_v56, 4  ;;  %v5191_v36 = vrot.slane %v5097_v56, 6  ;;  %v5341_v1 = vadd.f32 %v5097_v56, %v4710_v13  ;;  %v4561_v45 = vrot.slane %v13064_v26, 2  ;;  %6728 = vmatpush.msra.mxu1 %v7484_v25  ;;  %v15819_v2 = vld [vmem:[#allocation156_spill] sm:$0xff] }
 0x80c   : > { %5790 = vst [vmem:[#allocation1 + $0x2] ss:$4 sm:$0xff] %v5528_v43  ;;  %v4562_v37 = vrot.slane %v13064_v26, 4  ;;  %v6156_v50 = vrot.slane %v5869_v9, 1  ;;  %v6311_v39 = vrot.slane %v5869_v9, 2  ;;  %v5530_v48 = vmax.f32 %v5440_v35, 0.0 }
 0x80d   : > { %5791 = vst [vmem:[#allocation1 + $0x3] ss:$4 sm:$0xff] %v5529_v6  ;;  %v5342_v27 = vadd.f32 %v5189_v28, %v4711_v34  ;;  %v5343_v51 = vadd.f32 %v5190_v16, %v4712_v18  ;;  %v5344_v21 = vadd.f32 %v5191_v36, %v4713_v41  ;;  %v4185_v13 = vadd.f32 %v15817_v57, %v15819_v2  ;;  %v15820_v43 = vld [vmem:[#allocation167_spill] sm:$0xff] }
 0x80e   : > { %v13184_v56 = vadd.f32 %v4031_v4, %v15820_v43  ;;  %v4563_v49 = vrot.slane %v13064_v26, 6  ;;  %15821 = vst [vmem:[#allocation223_spill] sm:$0xff] %v13187_v60  ;;  %v5441_v6 = vadd.f32 %v12829_v29, %v5341_v1  ;;  %v15822_v9 = vld [vmem:[#allocation143_spill] sm:$0xff]  ;;  %v4564_v41 = vrot.slane %v13127_v11, 2 }
 0x80f   : > { %v13191_v25 = vadd.f32 %v4032_v32, %v15822_v9  ;;  %v5442_v35 = vadd.f32 %v12299_v19, %v5342_v27  ;;  %v5443_v34 = vadd.f32 %v12302_v31, %v5343_v51  ;;  %v5444_v18 = vadd.f32 %v12305_v55, %v5344_v21 }
 0x810   : > { %v5787_v2 = vld.sshfl [vmem:[#allocation1 + $0x20] sm:$0xff pattern:$0x73625140]  ;;  %v13198_v4 = vsel %vm6122_vm1, %v6154_v58, %v6156_v50  ;;  %v13201_v28 = vsel %vm5995_vm9, %v6309_v22, %v6311_v39  ;;  %v4714_v16 = vadd.f32 %v13064_v26, %v13106_v59  ;;  %v4715_v58 = vadd.f32 %v4561_v45, %v13109_v62  ;;  %v5100_v59 = vpop.f32.mrf.mxu0 }
 0x811   : > { %v5532_v32 = vmax.f32 %v5442_v35, 0.0  ;;  %v13207_v36 = vsel %vm5553_vm11, %v5787_v2, 0.0  ;;  %5792 = vst [vmem:[#allocation1 + $0x20] ss:$4 sm:$0xff] %v5530_v48  ;;  %7413 = vmatmul.msk.f32.gmra.mxu3 %vm5881_vm15, %v13198_v4  ;;  %7479 = vmatmul.msk.f32.gmra.mxu0 %vm5881_vm15, %v13201_v28  ;;  %v4716_v22 = vadd.f32 %v4562_v37, %v13112_v8  ;;  %v5531_v21 = vmax.f32 %v5441_v6, 0.0  ;;  %v13226_v6 = vpop.f32.mrf.mxu2 }
 0x812   : > { %15823 = vst [vmem:[#allocation76_spill] sm:$0xff] %v13207_v36  ;;  %v5533_v1 = vmax.f32 %v5443_v34, 0.0  ;;  %v5534_v50 = vmax.f32 %v5444_v18, 0.0  ;;  %7380 = vmatmul.msk.f32.gmra.mxu1 %vm5881_vm15, %v13207_v36  ;;  %7446 = vmatmul.msk.f32.gmra.mxu2 %vm5881_vm15, %v13207_v36  ;;  %v4717_v26 = vadd.f32 %v4563_v49, %v13130_v10  ;;  %v5192_v39 = vrot.slane %v5100_v59, 2 }
 0x813   : > { %v5193_v48 = vrot.slane %v5100_v59, 4  ;;  %v5194_v27 = vrot.slane %v5100_v59, 6  ;;  %v5345_v51 = vadd.f32 %v5100_v59, %v4714_v16  ;;  %v6158_v62 = vrot.slane %v13207_v36, 1 }
 0x814   : > { %v13220_v43 = vld.sshfl [vmem:[#allocation1] sm:$0xff pattern:$0x73625140]  ;;  %v6313_v45 = vrot.slane %v13207_v36, 2  ;;  %v5346_v9 = vadd.f32 %v5192_v39, %v4715_v58  ;;  %v4565_v34 = vrot.slane %v13127_v11, 4  ;;  %v4566_v18 = vrot.slane %v13127_v11, 6  ;;  %v13241_v58 = vpop.f32.mrf.mxu3 }
 0x815   : > { %5795 = vst [vmem:[#allocation1] ss:$4 sm:$0xff] %v5531_v21  ;;  %v14304_v8 = vrot.slane %v13220_v43, 1  ;;  %v14303_v37 = vrot.slane %v13220_v43, 2  ;;  %v5347_v10 = vadd.f32 %v5193_v48, %v4716_v22  ;;  %v5348_v49 = vadd.f32 %v5194_v27, %v4717_v26  ;;  %v15826_v48 = vld [vmem:[#allocation186_spill] sm:$0xff] }
 0x816   : > { %v5445_v35 = vadd.f32 %v12829_v29, %v5345_v51  ;;  %5796 = vst [vmem:[#allocation1 + $0x1] ss:$4 sm:$0xff] %v5532_v32  ;;  %v5446_v22 = vadd.f32 %v12299_v19, %v5346_v9  ;;  %v15825_v59 = vrot.slane %v15817_v57, 6  ;;  %v4034_v27 = vrot.slane %v15826_v48, 2 }
 0x817   : > { %5797 = vst [vmem:[#allocation1 + $0x2] ss:$4 sm:$0xff] %v5533_v1  ;;  %v13234_v2 = vsel %vm6122_vm1, %v6158_v62, %v14304_v8  ;;  %v13239_v16 = vsel %vm5995_vm9, %v6313_v45, %v14303_v37  ;;  %v5447_v32 = vadd.f32 %v12302_v31, %v5347_v10  ;;  %v5448_v21 = vadd.f32 %v12305_v55, %v5348_v49  ;;  %v15824_v1 = vld [vmem:[#allocation115_spill] sm:$0xff]  ;;  %v13251_v62 = vpop.f32.mrf.mxu1 }
 0x818   : > { %v5535_v26 = vmax.f32 %v5445_v35, 0.0  ;;  %5798 = vst [vmem:[#allocation1 + $0x3] ss:$4 sm:$0xff] %v5534_v50  ;;  %v4188_v39 = vadd.f32 %v15825_v59, %v15824_v1  ;;  %v4035_v51 = vrot.slane %v15826_v48, 4  ;;  %v4718_v45 = vadd.f32 %v13127_v11, %v4185_v13  ;;  %v5103_v35 = vpop.f32.mrf.mxu0 }
 0x819   : > { %15827 = vst [vmem:[#allocation196_spill] sm:$0xff] %v13251_v62  ;;  %v5794_v37 = vld.sshfl [vmem:[#allocation1 + $0x20] sm:$0xff pattern:$0x73625140]  ;;  %v5536_v9 = vmax.f32 %v5446_v22, 0.0  ;;  %v5537_v8 = vmax.f32 %v5447_v32, 0.0  ;;  %7414 = vmatmul.msk.f32.gmra.mxu3 %vm5881_vm15, %v13234_v2  ;;  %7480 = vmatmul.msk.f32.gmra.mxu0 %vm5881_vm15, %v13239_v16  ;;  %v4719_v11 = vadd.f32 %v4564_v41, %v13184_v56  ;;  %v4720_v13 = vadd.f32 %v4565_v34, %v13191_v25 }
 0x81a   : > { %v5538_v10 = vmax.f32 %v5448_v21, 0.0  ;;  %v5872_v57 = vsel %vm5558_vm0, %v5794_v37, 0.0  ;;  %5799 = vst [vmem:[#allocation1 + $0x20] ss:$4 sm:$0xff] %v5535_v26  ;;  %v4036_v50 = vrot.slane %v15826_v48, 6  ;;  %7381 = vmatmul.msk.f32.gmra.mxu1 %vm5881_vm15, %v13220_v43  ;;  %7447 = vmatmul.msk.f32.gmra.mxu2 %vm5881_vm15, %v13220_v43  ;;  %v4721_v49 = vadd.f32 %v4566_v18, %v4188_v39  ;;  %v15828_v37 = vld [vmem:[#allocation144_spill] sm:$0xff] }
 0x81b   : > { %v5195_v22 = vrot.slane %v5103_v35, 2  ;;  %v5196_v32 = vrot.slane %v5103_v35, 4  ;;  %v5197_v21 = vrot.slane %v5103_v35, 6  ;;  %v5349_v1 = vadd.f32 %v5103_v35, %v4718_v45  ;;  %5800 = vst [vmem:[#allocation1 + $0x21] ss:$4 sm:$0xff] %v5536_v9  ;;  %v15829_v41 = vld [vmem:[#allocation120_spill] sm:$0xff]  ;;  %v13275_v35 = vpop.f32.mrf.mxu2 }
 0x81c   : > { %v4189_v26 = vadd.f32 %v15826_v48, %v15828_v37  ;;  %v4567_v59 = vrot.slane %v13179_v63, 2  ;;  %v6161_v62 = vrot.slane %v5872_v57, 1  ;;  %5801 = vst [vmem:[#allocation1 + $0x22] ss:$4 sm:$0xff] %v5537_v8  ;;  %v6316_v60 = vrot.slane %v5872_v57, 2  ;;  %v15830_v18 = vld [vmem:[#allocation60_spill] sm:$0xff] }
 0x81d   : > { %v5350_v36 = vadd.f32 %v5195_v22, %v4719_v11  ;;  %v5351_v17 = vadd.f32 %v5196_v32, %v4720_v13  ;;  %v5352_v56 = vadd.f32 %v5197_v21, %v4721_v49  ;;  %v5449_v25 = vadd.f32 %v12829_v29, %v5349_v1  ;;  %5802 = vst [vmem:[#allocation1 + $0x23] ss:$4 sm:$0xff] %v5538_v10  ;;  %v13280_v49 = vpop.f32.mrf.mxu3  ;;  %v15831_v10 = vld [vmem:[#allocation66_spill] sm:$0xff] }
 0x81e   : > { %v4190_v34 = vadd.f32 %v4034_v27, %v15829_v41  ;;  %v4191_v39 = vadd.f32 %v4035_v51, %v15830_v18  ;;  %v4568_v45 = vrot.slane %v13179_v63, 4  ;;  %v4569_v9 = vrot.slane %v13179_v63, 6 }
 0x81f   : > { %v5803_v48 = vld.sshfl [vmem:[#allocation1] sm:$0xff pattern:$0x73625140]  ;;  %v5450_v8 = vadd.f32 %v12829_v29, %v5350_v36  ;;  %v5451_v57 = vadd.f32 %v12299_v19, %v5351_v17  ;;  %v5452_v11 = vadd.f32 %v12302_v31, %v5352_v56  ;;  %v5539_v13 = vmax.f32 %v5449_v25, 0.0  ;;  %v13297_v21 = vpop.f32.mrf.mxu1  ;;  %v15834_v25 = vld [vmem:[#allocation42_spill] sm:$0xff] }
 0x820   : > { %v4192_v27 = vadd.f32 %v4036_v50, %v15831_v10  ;;  %v13285_v51 = vsel %vm5553_vm11, %v5803_v48, 0.0  ;;  %v15832_v22 = vrot.slane %v13220_v43, 1  ;;  %v15833_v36 = vrot.slane %v13220_v43, 2  ;;  %v5106_v18 = vpop.f32.mrf.mxu0 }
 0x821   : > { %v5540_v1 = vmax.f32 %v5450_v8, 0.0  ;;  %5805 = vst [vmem:[#allocation1] ss:$4 sm:$0xff] %v5539_v13  ;;  %v4722_v50 = vadd.f32 %v13179_v63, %v4189_v26  ;;  %v4723_v37 = vadd.f32 %v4567_v59, %v4190_v34  ;;  %v5542_v56 = vmax.f32 %v5452_v11, 0.0  ;;  %v15836_v63 = vld [vmem:[#allocation41_spill] sm:$0xff] }
 0x822   : > { %v13290_v32 = vsel %vm6122_vm1, %v15832_v22, %v6161_v62  ;;  %v13295_v17 = vsel %vm5995_vm9, %v15833_v36, %v6316_v60  ;;  %v5541_v62 = vmax.f32 %v5451_v57, 0.0  ;;  %7417 = vmatmul.msk.f32.vlgmr.msrb.gmra.mxu1 %vm5881_vm15, %v15834_v25  ;;  %7448 = vmatmul.msk.f32.gmra.mxu2 %vm5881_vm15, %v13285_v51  ;;  %v4724_v60 = vadd.f32 %v4568_v45, %v4191_v39  ;;  %v15835_v22 = vld [vmem:[#allocation8_spill] sm:$0xff] }
 0x823   : > { %7415 = vmatmul.msk.f32.gmra.mxu3 %vm5881_vm15, %v13290_v32  ;;  %7481 = vmatmul.msk.f32.gmra.mxu0 %vm5881_vm15, %v13295_v17  ;;  %v4725_v41 = vadd.f32 %v4569_v9, %v4192_v27  ;;  %v5198_v48 = vrot.slane %v5106_v18, 2  ;;  %v5199_v8 = vrot.slane %v5106_v18, 4  ;;  %v5200_v13 = vrot.slane %v5106_v18, 6 }
 0x824   : > { %v5353_v10 = vadd.f32 %v5106_v18, %v4722_v50  ;;  %v3680_v36 = vadd.f32 %v13068_v30, %v15835_v22  ;;  %v15837_v26 = vrot.slane %v13068_v30, 2  ;;  %v4037_v34 = vrot.slane %v12686_v44, 2  ;;  %v13314_v57 = vld.sshfl [vmem:[#allocation1 + $0x20] sm:$0xff pattern:$0x73625140] }
 0x825   : > { %v5354_v11 = vadd.f32 %v5198_v48, %v4723_v37  ;;  %v5355_v25 = vadd.f32 %v5199_v8, %v4724_v60  ;;  %v5356_v39 = vadd.f32 %v5200_v13, %v4725_v41  ;;  %5807 = vst [vmem:[#allocation1 + $0x20] ss:$4 sm:$0xff] %v5540_v1  ;;  %v4570_v27 = vrot.slane %v13241_v58, 2  ;;  %v13328_v8 = vpop.f32.mrf.mxu2 }
 0x826   : > { %v3681_v59 = vadd.f32 %v15837_v26, %v15836_v63  ;;  %v5453_v45 = vadd.f32 %v12305_v55, %v5353_v10  ;;  %v4193_v9 = vadd.f32 %v12686_v44, %v3680_v36  ;;  %v6615_v50 = vrot.slane %v13285_v51, 2  ;;  %5808 = vst [vmem:[#allocation1 + $0x21] ss:$4 sm:$0xff] %v5541_v62  ;;  %v13330_v36 = vpop.f32.mrf.mxu3 }
 0x827   : > { %v6616_v30 = vrot.slane %v13314_v57, 2  ;;  %v5454_v18 = vadd.f32 %v12829_v29, %v5354_v11  ;;  %v5455_v22 = vadd.f32 %v12299_v19, %v5355_v25  ;;  %v5456_v37 = vadd.f32 %v12302_v31, %v5356_v39  ;;  %5809 = vst [vmem:[#allocation1 + $0x22] ss:$4 sm:$0xff] %v5542_v56  ;;  %v15838_v19 = vld [vmem:[#allocation177_spill] sm:$0xff]  ;;  %v13344_v56 = vpop.f32.mrf.mxu1 }
 0x828   : > { %v5543_v60 = vmax.f32 %v5453_v45, 0.0  ;;  %v4194_v41 = vadd.f32 %v4037_v34, %v3681_v59  ;;  %v4726_v1 = vadd.f32 %v13241_v58, %v4193_v9  ;;  %v5806_v48 = vld.sshfl [vmem:[#allocation1] sm:$0xff pattern:$0x73625140]  ;;  %v5109_v63 = vpop.f32.mrf.mxu0 }
 0x829   : > { %v13326_v44 = vsel %vm5995_vm9, %v6615_v50, %v6616_v30  ;;  %v5544_v62 = vmax.f32 %v5454_v18, 0.0  ;;  %v5545_v13 = vmax.f32 %v5455_v22, 0.0  ;;  %v5546_v10 = vmax.f32 %v5456_v37, 0.0  ;;  %v15839_v58 = vld [vmem:[#allocation40_spill] sm:$0xff] }
 0x82a   : > { %5810 = vst [vmem:[#allocation1 + $0x23] ss:$4 sm:$0xff] %v5543_v60  ;;  %v13338_v31 = vsel %vm5558_vm0, %v5806_v48, 0.0  ;;  %7418 = vmatmul.msk.f32.gmra.mxu1 %vm5881_vm15, %v15839_v58  ;;  %7449 = vmatmul.msk.f32.gmra.mxu2 %vm5881_vm15, %v13314_v57  ;;  %v4727_v59 = vadd.f32 %v4570_v27, %v4194_v41  ;;  %v5201_v34 = vrot.slane %v5109_v63, 2  ;;  %v5357_v11 = vadd.f32 %v5109_v63, %v4726_v1  ;;  %v15850_v58 = vld [vmem:[#allocation53_spill] sm:$0xff] }
 0x82b   : > { %7451 = vmatmul.msk.f32.vlgmr.msrb.gmra.mxu3 %vm5881_vm15, %v15838_v19  ;;  %7482 = vmatmul.msk.f32.gmra.mxu0 %vm5881_vm15, %v13326_v44  ;;  %v6618_v26 = vrot.slane %v13338_v31, 2  ;;  %5812 = vst [vmem:[#allocation1] ss:$4 sm:$0xff] %v5544_v62  ;;  %v15849_v19 = vld [vmem:[#allocation58_spill] sm:$0xff] }
 0x82c   : > { %5813 = vst [vmem:[#allocation1 + $0x1] ss:$4 sm:$0xff] %v5545_v13  ;;  %v5358_v25 = vadd.f32 %v5201_v34, %v4727_v59  ;;  %v5457_v39 = vadd.f32 %v12305_v55, %v5357_v11  ;;  %v15853_v34 = vld [vmem:[#allocation128_spill] sm:$0xff] }
 0x82d   : > { %5814 = vst [vmem:[#allocation1 + $0x2] ss:$4 sm:$0xff] %v5546_v10  ;;  %v13349_v45 = vsel %vm5995_vm9, %v6616_v30, %v6618_v26  ;;  %v13366_v30 = vpop.f32.mrf.mxu2  ;;  %v15851_v26 = vld [vmem:[#allocation124_spill] sm:$0xff] }
 0x82e   : > { %v5458_v9 = vadd.f32 %v12829_v29, %v5358_v25  ;;  %v5547_v50 = vmax.f32 %v5457_v39, 0.0 }
 0x830   : > { %v5548_v18 = vmax.f32 %v5458_v9, 0.0  ;;  %5815 = vst [vmem:[#allocation1 + $0x3] ss:$4 sm:$0xff] %v5547_v50  ;;  %v13356_v27 = vpop.f32.mrf.mxu3 }
 0x831   : > { %v13362_v55 = vpop.f32.mrf.mxu1  ;;  %v13364_v29 = vld.sshfl [vmem:[#allocation1 + $0x20] sm:$0xff pattern:$0x73625140] }
 0x832   : > { %7419 = vmatmul.msk.f32.gmra.mxu1 %vm5881_vm15, %v12656_v53  ;;  %7502 = vmatmul.msk.f32.vlgmr.msra.gmra.mxu2 %vm5881_vm15, %v12711_v38  ;;  %15840 = vst [vmem:[#allocation7_spill] sm:$0xff] %v13362_v55 }
 0x833   : > { %7452 = vmatmul.msk.f32.gmra.mxu3 %vm5881_vm15, %v12642_v47  ;;  %7483 = vmatmul.msk.f32.gmra.mxu0 %vm5881_vm15, %v13349_v45  ;;  %5816 = vst [vmem:[#allocation1 + $0x20] ss:$4 sm:$0xff] %v5548_v18  ;;  %v6524_v18 = vrot.slane %v13314_v57, 1 }
 0x835   : > { %v13378_v22 = vpop.f32.mrf.mxu2 }
 0x838   : > { %v13374_v47 = vpop.f32.mrf.mxu3 }
 0x839   : > { %15841 = vst [vmem:[#allocation59_spill] sm:$0xff] %v13374_v47  ;;  %v13376_v53 = vpop.f32.mrf.mxu1 }
 0x83a   : > { %7420 = vmatmul.msk.f32.gmra.mxu1 %vm5881_vm15, %v12697_v24  ;;  %7503 = vmatmul.msk.f32.gmra.mxu2 %vm5881_vm15, %v12758_v46  ;;  %15842 = vst [vmem:[#allocation20_spill] sm:$0xff] %v13376_v53  ;;  %v5818_v52 = vld.sshfl [vmem:[#allocation1 + $0x20] sm:$0xff pattern:$0x73625140] }
 0x83b   : > { %7453 = vmatmul.msk.f32.gmra.mxu3 %vm5881_vm15, %v12711_v38 }
 0x83d   : > { %v13390_v37 = vpop.f32.mrf.mxu2 }
 0x842   : > { %7421 = vmatmul.msk.f32.gmra.mxu1 %vm5881_vm15, %v12739_v7  ;;  %7504 = vmatmul.msk.f32.gmra.mxu2 %vm5881_vm15, %v12792_v15 }
 0x843   : > { %7454 = vmatmul.msk.f32.gmra.mxu3 %vm5881_vm15, %v12758_v46  ;;  %v13386_v38 = vpop.f32.mrf.mxu3 }
 0x844   : > { %15843 = vst [vmem:[#allocation67_spill] sm:$0xff] %v13386_v38  ;;  %v15858_v38 = vld [vmem:[#allocation47_spill] sm:$0xff] }
 0x845   : > { %v13404_v41 = vpop.f32.mrf.mxu2 }
 0x846   : > { %v13388_v24 = vpop.f32.mrf.mxu1 }
 0x847   : > { %15844 = vst [vmem:[#allocation50_spill] sm:$0xff] %v13388_v24  ;;  %v6526_v24 = vrot.slane %v13338_v31, 1 }
 0x849   : > { %v6527_v53 = vsel %vm6122_vm1, %v6524_v18, %v6526_v24 }
 0x84a   : > { %7422 = vmatmul.msk.f32.gmra.mxu1 %vm5881_vm15, %v12787_v54  ;;  %7505 = vmatmul.msk.f32.gmra.mxu2 %vm5881_vm15, %v12863_v20 }
 0x84b   : > { %7455 = vmatmul.msk.f32.gmra.mxu3 %vm5881_vm15, %v12792_v15  ;;  %v13398_v46 = vpop.f32.mrf.mxu3 }
 0x84c   : > { %15845 = vst [vmem:[#allocation90_spill] sm:$0xff] %v13398_v46 }
 0x84e   : > { %v13400_v60 = vpop.f32.mrf.mxu1 }
 0x84f   : > { %15846 = vst [vmem:[#allocation127_spill] sm:$0xff] %v13400_v60  ;;  %v5575_v60 = vstv %s5574_s12  ;;  %s7031_s12 = sshll.u32 %s13710_s19, 4  ;;  %s7032_s12 = int_to_ptr.vmem [resolvable:$true] %s7031_s12 }
 0x850   : > { %vm5576_vm3 = vcmp.eq.s32.totalorder %v5575_v60, 1 }
 0x851   : > { %vm5577_vm4 = vmxor %vm5576_vm3, %vm7721_vm12 }
 0x852   : > { %7423 = vmatmul.msk.f32.gmra.mxu1 %vm5881_vm15, %v12843_v12  ;;  %7506 = vmatmul.msk.f32.gmra.mxu2 %vm5881_vm15, %v12909_v23  ;;  %vm5581_vm5 = vmand %vm5553_vm11, %vm5577_vm4 }
 0x853   : > { %7456 = vmatmul.msk.f32.gmra.mxu3 %vm5881_vm15, %v12863_v20  ;;  %v13410_v15 = vpop.f32.mrf.mxu3  ;;  %v13420_v20 = vpop.f32.mrf.mxu2  ;;  %v13521_v60 = vsel %vm5581_vm5, %v13364_v29, 0.0  ;;  %vm5583_vm6 = vmand %vm5558_vm0, %vm5577_vm4 }
 0x854   : > { %15847 = vst [vmem:[#allocation52_spill] sm:$0xff] %v13410_v15  ;;  %v13536_v29 = vsel %vm5583_vm6, %v5818_v52, 0.0 }
 0x855   : > { %v6800_v55 = vrot.slane %v13536_v29, 1 }
 0x856   : > { %v13412_v1 = vpop.f32.mrf.mxu1 }
 0x85a   : > { %7424 = vmatmul.msk.f32.gmra.mxu1 %vm5881_vm15, %v12895_v40  ;;  %7507 = vmatmul.msk.f32.gmra.mxu2 %vm5881_vm15, %v12947_v61 }
 0x85b   : > { %7457 = vmatmul.msk.f32.gmra.mxu3 %vm5881_vm15, %v12909_v23  ;;  %v13422_v48 = vpop.f32.mrf.mxu3  ;;  %v13432_v23 = vpop.f32.mrf.mxu2 }
 0x85c   : > { %15848 = vst [vmem:[#allocation28_spill] sm:$0xff] %v13422_v48 }
 0x85e   : > { %v13424_v62 = vpop.f32.mrf.mxu1 }
 0x862   : > { %7425 = vmatmul.msk.f32.gmra.mxu1 %vm5881_vm15, %v12944_v42  ;;  %7508 = vmatmul.msk.f32.gmra.mxu2 %vm5881_vm15, %v13024_v5 }
 0x863   : > { %7458 = vmatmul.msk.f32.gmra.mxu3 %vm5881_vm15, %v12947_v61  ;;  %v13434_v13 = vpop.f32.mrf.mxu3  ;;  %v13444_v61 = vpop.f32.mrf.mxu2 }
 0x866   : > { %v13438_v10 = vpop.f32.mrf.mxu1 }
 0x86a   : > { %7426 = vmatmul.msk.f32.gmra.mxu1 %vm5881_vm15, %v15849_v19  ;;  %7509 = vmatmul.msk.f32.gmra.mxu2 %vm5881_vm15, %v15850_v58 }
 0x86b   : > { %7459 = vmatmul.msk.f32.gmra.mxu3 %vm5881_vm15, %v13024_v5  ;;  %v13448_v63 = vpop.f32.mrf.mxu3  ;;  %v13456_v59 = vpop.f32.mrf.mxu2 }
 0x86c   : > { %15852 = vst [vmem:[#allocation170_spill] sm:$0xff] %v13456_v59 }
 0x86e   : > { %v13454_v5 = vpop.f32.mrf.mxu1 }
 0x872   : > { %7427 = vmatmul.msk.f32.gmra.mxu1 %vm5881_vm15, %v15851_v26  ;;  %7510 = vmatmul.msk.f32.gmra.mxu2 %vm5881_vm15, %v13148_v33 }
 0x873   : > { %7460 = vmatmul.msk.f32.gmra.mxu3 %vm5881_vm15, %v15850_v58  ;;  %v13470_v39 = vpop.f32.mrf.mxu2  ;;  %v6523_v58 = vrot.slane %v13285_v51, 1 }
 0x874   : > { %15854 = vst [vmem:[#allocation225_spill] sm:$0xff] %v13470_v39 }
 0x878   : > { %v13464_v11 = vpop.f32.mrf.mxu3 }
 0x87a   : > { %7428 = vmatmul.msk.f32.gmra.mxu1 %vm5881_vm15, %v15853_v34  ;;  %7511 = vmatmul.msk.f32.gmra.mxu2 %vm5881_vm15, %v13198_v4 }
 0x87b   : > { %7461 = vmatmul.msk.f32.gmra.mxu3 %vm5881_vm15, %v13148_v33  ;;  %v13466_v25 = vpop.f32.mrf.mxu1 }
 0x881   : > { %v13476_v33 = vpop.f32.mrf.mxu3 }
 0x882   : > { %7429 = vmatmul.msk.f32.gmra.mxu1 %vm5881_vm15, %v13151_v0  ;;  %7512 = vmatmul.msk.f32.gmra.mxu2 %vm5881_vm15, %v13234_v2 }
 0x883   : > { %7462 = vmatmul.msk.f32.gmra.mxu3 %vm5881_vm15, %v13198_v4  ;;  %v13478_v9 = vpop.f32.mrf.mxu1  ;;  %v13487_v4 = vpop.f32.mrf.mxu2 }
 0x884   : > { %15855 = vst [vmem:[#allocation178_spill] sm:$0xff] %v13487_v4 }
 0x88a   : > { %7430 = vmatmul.msk.f32.gmra.mxu1 %vm5881_vm15, %v13201_v28  ;;  %7513 = vmatmul.msk.f32.gmra.mxu2 %vm5881_vm15, %v13290_v32 }
 0x88b   : > { %7463 = vmatmul.msk.f32.gmra.mxu3 %vm5881_vm15, %v13234_v2  ;;  %v6525_v2 = vsel %vm6122_vm1, %v6523_v58, %v6524_v18  ;;  %v13504_v46 = vpop.f32.mrf.mxu2  ;;  %v5817_v58 = vld.sshfl [vmem:[#allocation1] sm:$0xff pattern:$0x73625140]  ;;  %v6797_v18 = vrot.slane %v13521_v60, 1 }
 0x88c   : > { %v13489_v50 = vpop.f32.mrf.mxu3  ;;  %15856 = vst [vmem:[#allocation195_spill] sm:$0xff] %v13504_v46 }
 0x88f   : > { %v13493_v48 = vpop.f32.mrf.mxu1 }
 0x892   : > { %7431 = vmatmul.msk.f32.gmra.mxu1 %vm5881_vm15, %v13239_v16  ;;  %7514 = vmatmul.msk.f32.gmra.mxu2 %vm5881_vm15, %v6525_v2 }
 0x893   : > { %7464 = vmatmul.msk.f32.gmra.mxu3 %vm5881_vm15, %v13290_v32  ;;  %v13516_v32 = vsel %vm5577_vm4, %v5817_v58, 0.0 }
 0x894   : > { %v13501_v15 = vpop.f32.mrf.mxu3  ;;  %v6798_v46 = vrot.slane %v13516_v32, 1 }
 0x896   : > { %v6799_v58 = vsel %vm6122_vm1, %v6797_v18, %v6798_v46  ;;  %v6801_v47 = vsel %vm6122_vm1, %v6798_v46, %v6800_v55  ;;  %v15863_v46 = vld [vmem:[#allocation54_spill] sm:$0xff] }
 0x897   : > { %v13507_v4 = vpop.f32.mrf.mxu1 }
 0x89a   : > { %7432 = vmatmul.msk.f32.gmra.mxu1 %vm5881_vm15, %v13295_v17  ;;  %7515 = vmatmul.msk.f32.gmra.mxu2 %vm5881_vm15, %v6527_v53 }
 0x89b   : > { %7465 = vmatmul.msk.f32.gmra.mxu3 %vm5881_vm15, %v6525_v2  ;;  %v13529_v2 = vpop.f32.mrf.mxu2 }
 0x89c   : > { %v13518_v31 = vpop.f32.mrf.mxu3  ;;  %15857 = vst [vmem:[#allocation151_spill] sm:$0xff] %v13529_v2 }
 0x89f   : > { %v13524_v24 = vpop.f32.mrf.mxu1 }
 0x8a2   : > { %7485 = vmatmul.msk.f32.vlgmr.msra.gmra.mxu1 %vm5881_vm15, %v15858_v38  ;;  %7516 = vmatmul.msk.f32.gmra.mxu2 %vm5881_vm15, %v6799_v58  ;;  %v15861_v58 = vld [vmem:[#allocation138_spill] sm:$0xff] }
 0x8a3   : > { %7466 = vmatmul.msk.f32.gmra.mxu3 %vm5881_vm15, %v6527_v53  ;;  %v13546_v18 = vpop.f32.mrf.mxu2  ;;  %v15860_v53 = vld [vmem:[#allocation34_spill] sm:$0xff] }
 0x8a4   : > { %15859 = vst [vmem:[#allocation181_spill] sm:$0xff] %v13546_v18 }
 0x8a6   : > { %v13538_v39 = vpop.f32.mrf.mxu3 }
 0x8a7   : > { %v13541_v14 = vpop.f32.mrf.mxu1 }
 0x8aa   : > { %7486 = vmatmul.msk.f32.gmra.mxu1 %vm5881_vm15, %v15860_v53  ;;  %7517 = vmatmul.msk.f32.gmra.mxu2 %vm5881_vm15, %v6801_v47 }
 0x8ab   : > { %7519 = vmatmul.msk.f32.vlgmr.msra.gmra.mxu3 %vm5881_vm15, %v12739_v7  ;;  %v6480_v53 = vpop.f32.mrf.mxu2 }
 0x8ae   : > { %v13551_v38 = vpop.f32.mrf.mxu3 }
 0x8af   : > { %v13553_v52 = vpop.f32.mrf.mxu1 }
 0x8b2   : > { %7487 = vmatmul.msk.f32.gmra.mxu1 %vm5881_vm15, %v15861_v58 }
 0x8b3   : > { %7520 = vmatmul.msk.f32.gmra.mxu3 %vm5881_vm15, %v12787_v54  ;;  %v15866_v54 = vld [vmem:[#allocation113_spill] sm:$0xff] }
 0x8b6   : > { %v13559_v55 = vpop.f32.mrf.mxu3 }
 0x8b7   : > { %v13561_v7 = vpop.f32.mrf.mxu1 }
 0x8b8   : > { %15862 = vst [vmem:[#allocation102_spill] sm:$0xff] %v13561_v7  ;;  %v6483_v7 = vpop.f32.mrf.mxu2 }
 0x8ba   : > { %7488 = vmatmul.msk.f32.gmra.mxu1 %vm5881_vm15, %v15863_v46 }
 0x8bb   : > { %7521 = vmatmul.msk.f32.gmra.mxu3 %vm5881_vm15, %v12843_v12  ;;  %v15869_v12 = vld [vmem:[#allocation49_spill] sm:$0xff] }
 0x8be   : > { %v13567_v47 = vpop.f32.mrf.mxu3 }
 0x8bf   : > { %15864 = vst [vmem:[#allocation172_spill] sm:$0xff] %v13567_v47  ;;  %v13569_v18 = vpop.f32.mrf.mxu1 }
 0x8c0   : > { %15865 = vst [vmem:[#allocation200_spill] sm:$0xff] %v13569_v18  ;;  %v6486_v47 = vpop.f32.mrf.mxu2 }
 0x8c2   : > { %7489 = vmatmul.msk.f32.gmra.mxu1 %vm5881_vm15, %v15866_v54 }
 0x8c3   : > { %7522 = vmatmul.msk.f32.gmra.mxu3 %vm5881_vm15, %v12895_v40  ;;  %v15872_v40 = vld [vmem:[#allocation55_spill] sm:$0xff] }
 0x8c6   : > { %v13575_v58 = vpop.f32.mrf.mxu3 }
 0x8c7   : > { %15867 = vst [vmem:[#allocation123_spill] sm:$0xff] %v13575_v58  ;;  %v13577_v2 = vpop.f32.mrf.mxu1 }
 0x8c8   : > { %15868 = vst [vmem:[#allocation184_spill] sm:$0xff] %v13577_v2 }
 0x8ca   : > { %7490 = vmatmul.msk.f32.gmra.mxu1 %vm5881_vm15, %v15869_v12  ;;  %v15875_v12 = vld [vmem:[#allocation168_spill] sm:$0xff] }
 0x8cb   : > { %7523 = vmatmul.msk.f32.gmra.mxu3 %vm5881_vm15, %v12944_v42  ;;  %v6489_v42 = vpop.f32.mrf.mxu2 }
 0x8ce   : > { %v13583_v46 = vpop.f32.mrf.mxu3 }
 0x8cf   : > { %15870 = vst [vmem:[#allocation125_spill] sm:$0xff] %v13583_v46  ;;  %v13585_v18 = vpop.f32.mrf.mxu1 }
 0x8d0   : > { %15871 = vst [vmem:[#allocation139_spill] sm:$0xff] %v13585_v18 }
 0x8d2   : > { %7491 = vmatmul.msk.f32.gmra.mxu1 %vm5881_vm15, %v15872_v40 }
 0x8d3   : > { %7524 = vmatmul.msk.f32.gmra.mxu3 %vm5881_vm15, %v15849_v19  ;;  %v6089_v19 = vadd.f32 %v13226_v6, %v13412_v1  ;;  %v6492_v40 = vpop.f32.mrf.mxu2 }
 0x8d6   : > { %v13591_v54 = vpop.f32.mrf.mxu3 }
 0x8d7   : > { %15873 = vst [vmem:[#allocation183_spill] sm:$0xff] %v13591_v54  ;;  %v13593_v2 = vpop.f32.mrf.mxu1 }
 0x8d8   : > { %15874 = vst [vmem:[#allocation68_spill] sm:$0xff] %v13593_v2 }
 0x8da   : > { %7492 = vmatmul.msk.f32.gmra.mxu1 %vm5881_vm15, %v15875_v12  ;;  %v15878_v12 = vld [vmem:[#allocation63_spill] sm:$0xff] }
 0x8db   : > { %7525 = vmatmul.msk.f32.gmra.mxu3 %vm5881_vm15, %v15851_v26  ;;  %v6268_v26 = vadd.f32 %v13434_v13, %v6089_v19 }
 0x8de   : > { %v13599_v46 = vpop.f32.mrf.mxu3 }
 0x8df   : > { %15876 = vst [vmem:[#allocation71_spill] sm:$0xff] %v13599_v46  ;;  %v6391_v18 = vpop.f32.mrf.mxu1 }
 0x8e0   : > { %v6423_v54 = vadd.f32 %v6391_v18, %v6268_v26  ;;  %v15879_v18 = vld [vmem:[#allocation76_spill] sm:$0xff] }
 0x8e2   : > { %7493 = vmatmul.msk.f32.gmra.mxu1 %vm5881_vm15, %v13074_v3  ;;  %v6512_v3 = vadd.f32 %v6480_v53, %v6423_v54 }
 0x8e3   : > { %7526 = vmatmul.msk.f32.gmra.mxu3 %vm5881_vm15, %v15853_v34  ;;  %v6092_v34 = vadd.f32 %v13275_v35, %v13424_v62  ;;  %v6098_v35 = vadd.f32 %v13366_v30, %v13454_v5  ;;  %v6101_v30 = vadd.f32 %v13378_v22, %v13466_v25  ;;  %v6641_v22 = vpop.f32.mrf.mxu0 }
 0x8e5   : > { %v6269_v6 = vadd.f32 %v13448_v63, %v6092_v34 }
 0x8e6   : > { %v13607_v2 = vpop.f32.mrf.mxu3 }
 0x8e7   : > { %15877 = vst [vmem:[#allocation74_spill] sm:$0xff] %v13607_v2  ;;  %v6394_v58 = vpop.f32.mrf.mxu1  ;;  %v6495_v2 = vpop.f32.mrf.mxu2 }
 0x8e8   : > { %v6424_v59 = vadd.f32 %v6394_v58, %v6269_v6  ;;  %v6271_v58 = vadd.f32 %v13476_v33, %v6098_v35  ;;  %v15881_v35 = vld [vmem:[#allocation36_spill] sm:$0xff] }
 0x8ea   : > { %7494 = vmatmul.msk.f32.gmra.mxu1 %vm5881_vm15, %v15878_v12  ;;  %v6513_v19 = vadd.f32 %v6483_v7, %v6424_v59  ;;  %v6272_v59 = vadd.f32 %v13489_v50, %v6101_v30 }
 0x8eb   : > { %7527 = vmatmul.msk.f32.gmra.mxu3 %vm5881_vm15, %v13151_v0  ;;  %v6095_v0 = vadd.f32 %v13328_v8, %v13438_v10  ;;  %v6644_v6 = vpop.f32.mrf.mxu0 }
 0x8ed   : > { %v6270_v63 = vadd.f32 %v13464_v11, %v6095_v0  ;;  %v6889_v0 = vrot.slane %v13521_v60, 2 }
 0x8ee   : > { %v6573_v46 = vpop.f32.mrf.mxu3 }
 0x8ef   : > { %v13617_v1 = vadd.f32 %v6573_v46, %v6512_v3  ;;  %v6397_v13 = vpop.f32.mrf.mxu1 }
 0x8f0   : > { %v6425_v46 = vadd.f32 %v6397_v13, %v6270_v63 }
 0x8f2   : > { %7495 = vmatmul.msk.f32.gmra.mxu1 %vm5881_vm15, %v15879_v18  ;;  %v6514_v8 = vadd.f32 %v6486_v47, %v6425_v46 }
 0x8f3   : > { %7528 = vmatmul.msk.f32.gmra.mxu3 %vm5881_vm15, %v13201_v28  ;;  %v6498_v28 = vpop.f32.mrf.mxu2 }
 0x8f6   : > { %v6576_v62 = vpop.f32.mrf.mxu3 }
 0x8f7   : > { %v13628_v53 = vadd.f32 %v6576_v62, %v6513_v19  ;;  %v6400_v54 = vpop.f32.mrf.mxu1  ;;  %v15880_v19 = vld [vmem:[#allocation223_spill] sm:$0xff] }
 0x8f8   : > { %v6426_v26 = vadd.f32 %v6400_v54, %v6271_v58 }
 0x8fa   : > { %7496 = vmatmul.msk.f32.gmra.mxu1 %vm5881_vm15, %v13220_v43  ;;  %v6104_v43 = vadd.f32 %v13390_v37, %v13478_v9 }
 0x8fb   : > { %7529 = vmatmul.msk.f32.gmra.mxu3 %vm5881_vm15, %v13239_v16  ;;  %v6501_v7 = vpop.f32.mrf.mxu2  ;;  %v6515_v16 = vadd.f32 %v6489_v42, %v6426_v26  ;;  %v15882_v26 = vld [vmem:[#allocation196_spill] sm:$0xff] }
 0x8fc   : > { %v6273_v12 = vadd.f32 %v13501_v15, %v6104_v43 }
 0x8fe   : > { %v6579_v10 = vpop.f32.mrf.mxu3 }
 0x8ff   : > { %v13637_v5 = vadd.f32 %v6579_v10, %v6514_v8  ;;  %v6403_v11 = vpop.f32.mrf.mxu1  ;;  %v15883_v8 = vld [vmem:[#allocation78_spill] sm:$0xff] }
 0x900   : > { %v6427_v33 = vadd.f32 %v6403_v11, %v6272_v59  ;;  %v6068_v30 = vadd.f32 %v15883_v8, %v15882_v26 }
 0x902   : > { %7497 = vmatmul.msk.f32.gmra.mxu1 %vm5881_vm15, %v13285_v51  ;;  %v6107_v51 = vadd.f32 %v13404_v41, %v13493_v48  ;;  %v6890_v48 = vrot.slane %v13516_v32, 2 }
 0x903   : > { %7530 = vmatmul.msk.f32.gmra.mxu3 %vm5881_vm15, %v13295_v17  ;;  %v6516_v17 = vadd.f32 %v6492_v40, %v6427_v33  ;;  %v6823_v42 = vpop.f32.mrf.mxu2 }
 0x904   : > { %v6274_v3 = vadd.f32 %v13518_v31, %v6107_v51 }
 0x906   : > { %v6582_v47 = vpop.f32.mrf.mxu3 }
 0x907   : > { %v13646_v25 = vadd.f32 %v6582_v47, %v6515_v16  ;;  %v6406_v50 = vpop.f32.mrf.mxu1 }
 0x908   : > { %v6428_v34 = vadd.f32 %v6406_v50, %v6273_v12 }
 0x90a   : > { %7498 = vmatmul.msk.f32.gmra.mxu1 %vm5881_vm15, %v13314_v57  ;;  %v6517_v57 = vadd.f32 %v6495_v2, %v6428_v34  ;;  %v6891_v2 = vsel %vm5995_vm9, %v6889_v0, %v6890_v48 }
 0x90b   : > { %7531 = vmatmul.msk.f32.gmra.mxu3 %vm5881_vm15, %v13326_v44  ;;  %v6110_v44 = vadd.f32 %v13420_v20, %v13507_v4  ;;  %v6826_v18 = vpop.f32.mrf.mxu2  ;;  %v6647_v20 = vpop.f32.mrf.mxu0 }
 0x90d   : > { %v6275_v31 = vadd.f32 %v13538_v39, %v6110_v44 }
 0x90e   : > { %v6585_v37 = vpop.f32.mrf.mxu3 }
 0x90f   : > { %v13655_v9 = vadd.f32 %v6585_v37, %v6516_v17  ;;  %v6409_v15 = vpop.f32.mrf.mxu1 }
 0x910   : > { %v6429_v13 = vadd.f32 %v6409_v15, %v6274_v3  ;;  %v15885_v15 = vld [vmem:[#allocation37_spill] sm:$0xff] }
 0x912   : > { %7499 = vmatmul.msk.f32.gmra.mxu1 %vm5881_vm15, %v13521_v60  ;;  %v6518_v4 = vadd.f32 %v6498_v28, %v6429_v13  ;;  %v6892_v60 = vrot.slane %v13536_v29, 2  ;;  %v15886_v13 = vld [vmem:[#allocation170_spill] sm:$0xff] }
 0x913   : > { %7532 = vmatmul.msk.f32.gmra.mxu3 %vm5881_vm15, %v13349_v45  ;;  %v6065_v45 = vadd.f32 %v15881_v35, %v15880_v19  ;;  %v6829_v59 = vpop.f32.mrf.mxu2  ;;  %v6650_v29 = vpop.f32.mrf.mxu0 }
 0x914   : > { %v6893_v11 = vsel %vm5995_vm9, %v6890_v48, %v6892_v60  ;;  %v15888_v48 = vld [vmem:[#allocation172_spill] sm:$0xff] }
 0x915   : > { %v6260_v58 = vadd.f32 %v13280_v49, %v6065_v45 }
 0x916   : > { %v6588_v41 = vpop.f32.mrf.mxu3 }
 0x917   : > { %v13665_v40 = vadd.f32 %v6588_v41, %v6517_v57  ;;  %v6412_v62 = vpop.f32.mrf.mxu1  ;;  %v6415_v39 = vadd.f32 %v13524_v24, %v6260_v58  ;;  %v15887_v41 = vld [vmem:[#allocation59_spill] sm:$0xff] }
 0x918   : > { %v6430_v63 = vadd.f32 %v6412_v62, %v6275_v31 }
 0x919   : > { %v6504_v10 = vadd.f32 %v13432_v23, %v6415_v39  ;;  %v15884_v23 = vld [vmem:[#allocation75_spill] sm:$0xff] }
 0x91a   : > { %7500 = vmatmul.msk.f32.gmra.mxu1 %vm5881_vm15, %v13516_v32  ;;  %v6261_v32 = vadd.f32 %v13330_v36, %v6068_v30  ;;  %v6519_v33 = vadd.f32 %v6501_v7, %v6430_v63  ;;  %v6071_v12 = vadd.f32 %v15884_v23, %v13297_v21  ;;  %v15890_v63 = vld [vmem:[#allocation7_spill] sm:$0xff]  ;;  %v15897_v23 = vld [vmem:[#allocation62_spill] sm:$0xff] }
 0x91b   : > { %7533 = vmatmul.msk.f32.gmra.mxu3 %vm5881_vm15, %v6891_v2  ;;  %v6597_v24 = vadd.f32 %v13551_v38, %v6504_v10  ;;  %v6832_v51 = vpop.f32.mrf.mxu2  ;;  %v15891_v2 = vld [vmem:[#allocation56_spill] sm:$0xff]  ;;  %v15893_v30 = vld [vmem:[#allocation67_spill] sm:$0xff] }
 0x91c   : > { %v6416_v28 = vadd.f32 %v13541_v14, %v6261_v32  ;;  %v6262_v38 = vadd.f32 %v13356_v27, %v6071_v12  ;;  %v6074_v27 = vadd.f32 %v15885_v15, %v13344_v56  ;;  %v6077_v58 = vadd.f32 %v15891_v2, %v15890_v63  ;;  %v15907_v63 = vld [vmem:[#allocation139_spill] sm:$0xff] }
 0x91d   : > { %v6689_v43 = vadd.f32 %v6641_v22, %v6597_v24  ;;  %v13702_v22 = vld [vmem:[%s13828_s4] ss:$0 sm:$0xff] }
 0x91e   : > { %v6591_v46 = vpop.f32.mrf.mxu3  ;;  %v6505_v50 = vadd.f32 %v13444_v61, %v6416_v28  ;;  %v6417_v14 = vadd.f32 %v13553_v52, %v6262_v38  ;;  %v6653_v61 = vpop.f32.mrf.mxu0  ;;  %v6264_v10 = vadd.f32 %v15893_v30, %v6077_v58  ;;  %v15910_v30 = vld [vmem:[#allocation151_spill] sm:$0xff] }
 0x91f   : > { %v13678_v54 = vadd.f32 %v6591_v46, %v6518_v4  ;;  %v6730_v49 = vpop.f32.mrf.mxu1  ;;  %v15892_v4 = vld [vmem:[#allocation225_spill] sm:$0xff] }
 0x920   : > { %v6778_v34 = vadd.f32 %v6730_v49, %v6689_v43  ;;  %v6598_v17 = vadd.f32 %v13559_v55, %v6505_v50  ;;  %v6506_v55 = vadd.f32 %v15886_v13, %v6417_v14  ;;  %v15894_v49 = vld [vmem:[#allocation123_spill] sm:$0xff]  ;;  %v15896_v43 = vld [vmem:[#allocation20_spill] sm:$0xff]  ;;  %v15898_v50 = vld [vmem:[#allocation178_spill] sm:$0xff] }
 0x921   : > { %v6080_v12 = vadd.f32 %v15897_v23, %v15896_v43  ;;  %v15899_v14 = vld [vmem:[#allocation90_spill] sm:$0xff] }
 0x922   : > { %v6871_v7 = vadd.f32 %v6823_v42, %v6778_v34  ;;  %v6690_v37 = vadd.f32 %v6644_v6, %v6598_v17  ;;  %v6263_v42 = vadd.f32 %v15887_v41, %v6074_v27  ;;  %v6599_v31 = vadd.f32 %v15888_v48, %v6506_v55  ;;  %v15889_v6 = vld [vmem:[#allocation102_spill] sm:$0xff]  ;;  %v15904_v41 = vld [vmem:[#allocation195_spill] sm:$0xff] }
 0x923   : > { %7534 = vmatmul.msk.f32.gmra.mxu3 %vm5881_vm15, %v6893_v11  ;;  %v6835_v35 = vpop.f32.mrf.mxu2 }
 0x924   : > { %v6418_v0 = vadd.f32 %v15889_v6, %v6263_v42  ;;  %v6691_v45 = vadd.f32 %v6647_v20, %v6599_v31 }
 0x926   : > { %v6594_v16 = vpop.f32.mrf.mxu3  ;;  %v6656_v39 = vpop.f32.mrf.mxu0  ;;  %v6507_v46 = vadd.f32 %v15892_v4, %v6418_v0 }
 0x927   : > { %v13688_v47 = vadd.f32 %v6594_v16, %v6519_v33  ;;  %v6733_v36 = vpop.f32.mrf.mxu1 }
 0x928   : > { %v6779_v57 = vadd.f32 %v6733_v36, %v6690_v37  ;;  %v6600_v11 = vadd.f32 %v15894_v49, %v6507_v46  ;;  %v15900_v37 = vld [vmem:[#allocation125_spill] sm:$0xff] }
 0x92a   : > { %v6872_v19 = vadd.f32 %v6826_v18, %v6779_v57  ;;  %v15895_v18 = vld [vmem:[#allocation200_spill] sm:$0xff]  ;;  %v6692_v28 = vadd.f32 %v6650_v29, %v6600_v11  ;;  %v15902_v57 = vld [vmem:[#allocation50_spill] sm:$0xff] }
 0x92b   : > { %v6419_v32 = vadd.f32 %v15895_v18, %v6264_v10  ;;  %v6838_v16 = vpop.f32.mrf.mxu2 }
 0x92d   : > { %v6508_v34 = vadd.f32 %v15898_v50, %v6419_v32  ;;  %v15911_v32 = vld [vmem:[#allocation28_spill] sm:$0xff] }
 0x92e   : > { %v6915_v21 = vpop.f32.mrf.mxu3 }
 0x92f   : > { %v6963_v3 = vadd.f32 %v6915_v21, %v6871_v7  ;;  %v6736_v44 = vpop.f32.mrf.mxu1  ;;  %v6265_v7 = vadd.f32 %v15899_v14, %v6080_v12  ;;  %v6659_v21 = vpop.f32.mrf.mxu0 }
 0x930   : > { %v6780_v60 = vadd.f32 %v6736_v44, %v6691_v45  ;;  %v15903_v44 = vld [vmem:[#allocation130_spill] sm:$0xff]  ;;  %v15906_v45 = vld [vmem:[#allocation183_spill] sm:$0xff] }
 0x931   : > { %v6983_v52 = vadd.f32 %v13702_v22, %v6963_v3  ;;  %v6601_v3 = vadd.f32 %v15900_v37, %v6508_v34  ;;  %v15915_v37 = vld [vmem:[#allocation74_spill] sm:$0xff] }
 0x932   : > { %v6873_v20 = vadd.f32 %v6829_v59, %v6780_v60  ;;  %v15901_v59 = vld [vmem:[#allocation184_spill] sm:$0xff]  ;;  %v15908_v60 = vld [vmem:[#allocation127_spill] sm:$0xff] }
 0x933   : > { %6999 = vst [vmem:[%s13710_s19] sm:$0xff] %v6983_v52  ;;  %v6420_v29 = vadd.f32 %v15901_v59, %v6265_v7  ;;  %v6693_v13 = vadd.f32 %v6653_v61, %v6601_v3  ;;  %v6083_v52 = vadd.f32 %v15903_v44, %v15902_v57  ;;  %v6841_v0 = vpop.f32.mrf.mxu2 }
 0x935   : > { %v6509_v42 = vadd.f32 %v15904_v41, %v6420_v29 }
 0x936   : > { %v6918_v56 = vpop.f32.mrf.mxu3 }
 0x937   : > { %v6964_v62 = vadd.f32 %v6918_v56, %v6872_v19  ;;  %v6739_v26 = vpop.f32.mrf.mxu1  ;;  %v15905_v19 = vld [vmem:[#allocation52_spill] sm:$0xff] }
 0x938   : > { %v6781_v36 = vadd.f32 %v6739_v26, %v6692_v28  ;;  %v6266_v56 = vadd.f32 %v15905_v19, %v6083_v52  ;;  %v15909_v26 = vld [vmem:[#allocation129_spill] sm:$0xff] }
 0x939   : > { %v6984_v8 = vadd.f32 %v13702_v22, %v6964_v62  ;;  %v6602_v62 = vadd.f32 %v15906_v45, %v6509_v42 }
 0x93a   : > { %v6874_v15 = vadd.f32 %v6832_v51, %v6781_v36  ;;  %v6662_v51 = vpop.f32.mrf.mxu0  ;;  %v6421_v61 = vadd.f32 %v15907_v63, %v6266_v56  ;;  %v15914_v36 = vld [vmem:[#allocation181_spill] sm:$0xff] }
 0x93b   : > { %7000 = vst [vmem:[%s13710_s19 + $0x8] sm:$0xff] %v6984_v8  ;;  %v6694_v4 = vadd.f32 %v6656_v39, %v6602_v62  ;;  %v6086_v8 = vadd.f32 %v15909_v26, %v15908_v60 }
 0x93c   : > { %v6510_v10 = vadd.f32 %v15910_v30, %v6421_v61 }
 0x93e   : > { %v6921_v24 = vpop.f32.mrf.mxu3 }
 0x93f   : > { %v6965_v33 = vadd.f32 %v6921_v24, %v6873_v20  ;;  %v6742_v38 = vpop.f32.mrf.mxu1  ;;  %v6267_v20 = vadd.f32 %v15911_v32, %v6086_v8  ;;  %v15912_v24 = vld [vmem:[#allocation71_spill] sm:$0xff] }
 0x940   : > { %v6782_v48 = vadd.f32 %v6742_v38, %v6693_v13  ;;  %v6603_v28 = vadd.f32 %v15912_v24, %v6510_v10 }
 0x941   : > { %v6985_v17 = vadd.f32 %v13702_v22, %v6965_v33  ;;  %v6844_v33 = vpop.f32.mrf.mxu2 }
 0x942   : > { %v6875_v2 = vadd.f32 %v6835_v35, %v6782_v48  ;;  %v15913_v35 = vld [vmem:[#allocation68_spill] sm:$0xff]  ;;  %v6665_v12 = vpop.f32.mrf.mxu0  ;;  %v6695_v50 = vadd.f32 %v6659_v21, %v6603_v28 }
 0x943   : > { %7001 = vst [vmem:[%s13710_s19 + $0x10] sm:$0xff] %v6985_v17  ;;  %v6422_v43 = vadd.f32 %v15913_v35, %v6267_v20  ;;  %v6697_v41 = vadd.f32 %v6665_v12, %v13617_v1 }
 0x945   : > { %v6511_v38 = vadd.f32 %v15914_v36, %v6422_v43 }
 0x946   : > { %v6924_v27 = vpop.f32.mrf.mxu3 }
 0x947   : > { %v6966_v55 = vadd.f32 %v6924_v27, %v6874_v15  ;;  %v6745_v31 = vpop.f32.mrf.mxu1  ;;  %v6604_v3 = vadd.f32 %v15915_v37, %v6511_v38 }
 0x948   : > { %v6783_v49 = vadd.f32 %v6745_v31, %v6694_v4 }
 0x949   : > { %v6986_v6 = vadd.f32 %v13702_v22, %v6966_v55  ;;  %v6847_v29 = vpop.f32.mrf.mxu2  ;;  %v6696_v27 = vadd.f32 %v6662_v51, %v6604_v3 }
 0x94a   : > { %v6876_v39 = vadd.f32 %v6838_v16, %v6783_v49  ;;  %v6668_v13 = vpop.f32.mrf.mxu0 }
 0x94b   : > { %7002 = vst [vmem:[%s13710_s19 + $0x18] sm:$0xff] %v6986_v6  ;;  %v6698_v62 = vadd.f32 %v6668_v13, %v13628_v53 }
 0x94e   : > { %v6927_v58 = vpop.f32.mrf.mxu3 }
 0x94f   : > { %v6967_v46 = vadd.f32 %v6927_v58, %v6875_v2  ;;  %v6748_v11 = vpop.f32.mrf.mxu1 }
 0x950   : > { %v6784_v17 = vadd.f32 %v6748_v11, %v6695_v50 }
 0x951   : > { %v6987_v18 = vadd.f32 %v13702_v22, %v6967_v46  ;;  %v6850_v48 = vpop.f32.mrf.mxu2 }
 0x952   : > { %v6877_v59 = vadd.f32 %v6841_v0, %v6784_v17  ;;  %v6671_v19 = vpop.f32.mrf.mxu0 }
 0x953   : > { %7003 = vst [vmem:[%s13710_s19 + $0x20] sm:$0xff] %v6987_v18  ;;  %v6699_v60 = vadd.f32 %v6671_v19, %v13637_v5 }
 0x956   : > { %v6930_v23 = vpop.f32.mrf.mxu3 }
 0x957   : > { %v6968_v34 = vadd.f32 %v6930_v23, %v6876_v39  ;;  %v6751_v14 = vpop.f32.mrf.mxu1 }
 0x958   : > { %v6785_v55 = vadd.f32 %v6751_v14, %v6696_v27 }
 0x959   : > { %v6988_v7 = vadd.f32 %v13702_v22, %v6968_v34  ;;  %v6853_v1 = vpop.f32.mrf.mxu2 }
 0x95a   : > { %v6878_v44 = vadd.f32 %v6844_v33, %v6785_v55  ;;  %v6674_v58 = vpop.f32.mrf.mxu0 }
 0x95b   : > { %7004 = vst [vmem:[%s13710_s19 + $0x28] sm:$0xff] %v6988_v7  ;;  %v6700_v32 = vadd.f32 %v6674_v58, %v13646_v25 }
 0x95e   : > { %v6933_v15 = vpop.f32.mrf.mxu3 }
 0x95f   : > { %v6969_v16 = vadd.f32 %v6933_v15, %v6877_v59  ;;  %v6754_v21 = vpop.f32.mrf.mxu1 }
 0x960   : > { %v6786_v31 = vadd.f32 %v6754_v21, %v6697_v41 }
 0x961   : > { %v6989_v57 = vadd.f32 %v13702_v22, %v6969_v16  ;;  %v6856_v53 = vpop.f32.mrf.mxu2 }
 0x962   : > { %v6879_v56 = vadd.f32 %v6847_v29, %v6786_v31  ;;  %v6677_v18 = vpop.f32.mrf.mxu0 }
 0x963   : > { %7005 = vst [vmem:[%s13710_s19 + $0x30] sm:$0xff] %v6989_v57  ;;  %v6701_v39 = vadd.f32 %v6677_v18, %v13655_v9 }
 0x966   : > { %v6936_v52 = vpop.f32.mrf.mxu3 }
 0x967   : > { %v6970_v42 = vadd.f32 %v6936_v52, %v6878_v44  ;;  %v6757_v6 = vpop.f32.mrf.mxu1 }
 0x968   : > { %v6787_v63 = vadd.f32 %v6757_v6, %v6698_v62 }
 0x969   : > { %v6990_v0 = vadd.f32 %v13702_v22, %v6970_v42  ;;  %v6859_v35 = vpop.f32.mrf.mxu2 }
 0x96a   : > { %v6880_v4 = vadd.f32 %v6850_v48, %v6787_v63  ;;  %v6680_v12 = vpop.f32.mrf.mxu0 }
 0x96b   : > { %7006 = vst [vmem:[%s13710_s19 + $0x38] sm:$0xff] %v6990_v0  ;;  %v6702_v17 = vadd.f32 %v6680_v12, %v13665_v40 }
 0x96e   : > { %v6939_v45 = vpop.f32.mrf.mxu3 }
 0x96f   : > { %v6971_v51 = vadd.f32 %v6939_v45, %v6879_v56  ;;  %v6760_v61 = vpop.f32.mrf.mxu1 }
 0x970   : > { %v6788_v8 = vadd.f32 %v6760_v61, %v6699_v60 }
 0x971   : > { %v6991_v2 = vadd.f32 %v13702_v22, %v6971_v51  ;;  %v6862_v7 = vpop.f32.mrf.mxu2 }
 0x972   : > { %v6881_v49 = vadd.f32 %v6853_v1, %v6788_v8  ;;  %v6683_v9 = vpop.f32.mrf.mxu0 }
 0x973   : > { %7007 = vst [vmem:[%s13710_s19 + $0x40] sm:$0xff] %v6991_v2  ;;  %v6703_v27 = vadd.f32 %v6683_v9, %v13678_v54 }
 0x976   : > { %v6942_v46 = vpop.f32.mrf.mxu3 }
 0x977   : > { %v6972_v26 = vadd.f32 %v6942_v46, %v6880_v4  ;;  %v6763_v30 = vpop.f32.mrf.mxu1 }
 0x978   : > { %v6789_v24 = vadd.f32 %v6763_v30, %v6700_v32 }
 0x979   : > { %v6992_v10 = vadd.f32 %v13702_v22, %v6972_v26  ;;  %v6865_v40 = vpop.f32.mrf.mxu2 }
 0x97a   : > { %v6882_v5 = vadd.f32 %v6856_v53, %v6789_v24  ;;  %v6686_v21 = vpop.f32.mrf.mxu0 }
 0x97b   : > { %7008 = vst [vmem:[%s13710_s19 + $0x48] sm:$0xff] %v6992_v10  ;;  %v6704_v41 = vadd.f32 %v6686_v21, %v13688_v47 }
 0x97e   : > { %v6945_v11 = vpop.f32.mrf.mxu3 }
 0x97f   : > { %v6973_v20 = vadd.f32 %v6945_v11, %v6881_v49  ;;  %v6766_v28 = vpop.f32.mrf.mxu1 }
 0x980   : > { %v6790_v50 = vadd.f32 %v6766_v28, %v6701_v39 }
 0x981   : > { %v6993_v33 = vadd.f32 %v13702_v22, %v6973_v20  ;;  %v6868_v31 = vpop.f32.mrf.mxu2 }
 0x982   : > { %v6883_v25 = vadd.f32 %v6859_v35, %v6790_v50 }
 0x983   : > { %7009 = vst [vmem:[%s13710_s19 + $0x50] sm:$0xff] %v6993_v33 }
 0x986   : > { %v6948_v43 = vpop.f32.mrf.mxu3 }
 0x987   : > { %v6974_v23 = vadd.f32 %v6948_v43, %v6882_v5  ;;  %v6769_v36 = vpop.f32.mrf.mxu1 }
 0x988   : > { %v6791_v37 = vadd.f32 %v6769_v36, %v6702_v17 }
 0x989   : > { %v6994_v34 = vadd.f32 %v13702_v22, %v6974_v23 }
 0x98a   : > { %v6884_v29 = vadd.f32 %v6862_v7, %v6791_v37 }
 0x98b   : > { %7010 = vst [vmem:[%s13710_s19 + $0x58] sm:$0xff] %v6994_v34 }
 0x98e   : > { %v6951_v38 = vpop.f32.mrf.mxu3 }
 0x98f   : > { %v6975_v14 = vadd.f32 %v6951_v38, %v6883_v25  ;;  %v6772_v59 = vpop.f32.mrf.mxu1 }
 0x990   : > { %v6792_v13 = vadd.f32 %v6772_v59, %v6703_v27 }
 0x991   : > { %v6995_v3 = vadd.f32 %v13702_v22, %v6975_v14 }
 0x992   : > { %v6885_v57 = vadd.f32 %v6865_v40, %v6792_v13 }
 0x993   : > { %7011 = vst [vmem:[%s13710_s19 + $0x60] sm:$0xff] %v6995_v3 }
 0x996   : > { %v6954_v15 = vpop.f32.mrf.mxu3 }
 0x997   : > { %v6976_v16 = vadd.f32 %v6954_v15, %v6884_v29  ;;  %v6775_v44 = vpop.f32.mrf.mxu1 }
 0x998   : > { %v6793_v54 = vadd.f32 %v6775_v44, %v6704_v41 }
 0x999   : > { %v6996_v55 = vadd.f32 %v13702_v22, %v6976_v16 }
 0x99a   : > { %v6886_v6 = vadd.f32 %v6868_v31, %v6793_v54 }
 0x99b   : > { %7012 = vst [vmem:[%s13710_s19 + $0x68] sm:$0xff] %v6996_v55 }
 0x99e   : > { %v6957_v52 = vpop.f32.mrf.mxu3 }
 0x99f   : > { %v6977_v42 = vadd.f32 %v6957_v52, %v6885_v57 }
 0x9a1   : > { %v6997_v48 = vadd.f32 %v13702_v22, %v6977_v42 }
 0x9a3   : > { %7013 = vst [vmem:[%s13710_s19 + $0x70] sm:$0xff] %v6997_v48 }
 0x9a6   : > { %v6960_v0 = vpop.f32.mrf.mxu3 }
 0x9a7   : > { %v6978_v19 = vadd.f32 %v6960_v0, %v6886_v6 }
 0x9a9   : > { %v6998_v47 = vadd.f32 %v13702_v22, %v6978_v19 }
 0x9ab   : > { %7014 = vst [vmem:[%s13710_s19 + $0x78] sm:$0xff] %v6998_v47 }
 0x9ac   : > { %7652 = shalt.err (!%p7649_p10)
}
 0x9ad   : > { %s7722_s13 = smov 128   ;;  %s7723_s19 = smov 8  }
 0x9ae   : > { %7548 = dma.vmem_to_hbm [thread:$0]  (%p7810_p3), %s7032_s12, 2048, %s7034_s16, %s7016_s17, %s7722_s13, %s7722_s13, %s7723_s19  }
 0x9af PF: > { %p7554_p11 = scmp.ge.s32.totalorder %s7719_s28, 2  ;;  %s7048_s25 = sand.u32 1, %s7691_s21  }
 0x9b0   : > { %s7049_s20 = scalar_lea.sflag [#allocation3], %s7048_s25 }
 0x9b1   : > { %p7551_p12 = pnand %p7554_p11, %p7819_p8 }
 0x9b3   : > { %p7552_p13 = pneg %p7551_p12 }
 0x9b5   : > { %7686 = dma.done.wait (%p7552_p13), %s7049_s20, 2048  }
 0x9b6   : > { %7688 = vsyncadd (%p7552_p13), %s7049_s20, 4294965248  ;;  %s19_s28 = sadd.s32 1, %s7719_s28   ;;  %s15916_s21 = smov %s7695_s22 }
 0x9b7   : > { %p16_p0 = scmp.ge.s32.totalorder %s19_s28, 6   ;;  %s15917_s22 = smov %s7699_s23 }
 0x9b8   : > { %s15918_s23 = smov %s7828_s15  ;;  %s15919_s24 = smov %s7711_s26 }
 0x9b9   : > { %s15920_s25 = smov %s7715_s27  ;;  %s15921_s26 = smov %s15924_s7 }
 0x9ba   : > { %s15922_s27 = smov %s15928_s8  ;;  %18 = sbr.rel (!%p16_p0) target bundleno = 5 (0x5), region = 186 }
 0x9bf   :  { %7055 = vsyncpa [#allocation3], 1 }
 0x9c0   :  { %7057 = vsyncpa [#allocation3 + $0x1], 1 }

</bundles_post_ra>
